<compile_context>
chip_gen: v7x
topology: tpu7x:2x2x1
jax: 0.10.0
libtpu: 0.0.40
codegen_flags: <defaults>
</compile_context>

<pallas_src>
import numpy as np

import jax
import jax.numpy as jnp
from jax.experimental import pallas as pl
from jax.experimental.pallas import tpu as pltpu

BLOCK_B = 16  # images per grid step (batch is zero-padded up to a multiple)


# --------------------------------------------------------------------------
# Fused kernel
# --------------------------------------------------------------------------
def _fused_convnet_kernel(x_ref, rhs1_ref, rhs2_ref, wfc_ref, sb1_ref, sb2_ref,
                          fcb_ref, out_ref, h1pad_ref):
    """Full ConvNet forward for one batch block.

    x_ref:     (4, 9, BLOCK_B, 32) bf16   padded input, rows split mod-4
                                          (x_ref[ry, i, b, c] = x_pad[b, 4i+ry, c])
    rhs1_ref:  (5, 32, 512)  bf16         layer-1 Toeplitz weights per row-tap ky;
                                          out lane = col_parity*256 + v*16 + cout
    rhs2_ref:  (5, 288, 512) bf16         layer-2 Toeplitz weights per row-tap ky;
                                          row = col*16+cin, lane = pc*256 + t*32 + cout
    wfc_ref:   (7, 256, 128) bf16         fc weights per pooled output row sigma
    sb1_ref:   (2, 512) f32               folded BN1 scale/bias in the layer-1 lane layout
    sb2_ref:   (2, 512) f32               folded BN2 scale/bias in the layer-2 lane layout
    fcb_ref:   (1, 128) f32               fc bias (lane-padded)
    out_ref:   (BLOCK_B, 128) f32         logits (lane-padded)
    h1pad_ref: (2, 10, BLOCK_B, 288) bf16 VMEM scratch: pooled layer-1 output,
                                          split by row parity, spatially zero-padded
                                          (h1pad[e, m, b, col*16+c] = h1_pad[2m+e, col, c])
    """
    bB = out_ref.shape[0]
    M = 8 * bB

    # Zero the padded layer-1 scratch (borders must be zero every step).
    h1pad_ref[...] = jnp.zeros(h1pad_ref.shape, h1pad_ref.dtype)

    s1 = sb1_ref[0:1, :]
    t1 = sb1_ref[1:2, :]
    s2 = sb2_ref[0:1, :]
    t2 = sb2_ref[1:2, :]

    # ---- layer 1: conv(5x5, 1->16, pad 2) + BN + ReLU + maxpool(2,2) --------
    def conv1_rows(phi):
        # Conv output rows 4a+phi (a = 0..7), all 28 columns, already grouped
        # by column parity in the 512 output lanes.
        acc = None
        for ky in range(5):
            ry, qy = (phi + ky) % 4, (phi + ky) // 4
            lhs = x_ref[ry, qy:qy + 8, :, :].reshape(M, 32)        # rows (a, b)
            p = jnp.dot(lhs, rhs1_ref[ky], preferred_element_type=jnp.float32)
            acc = p if acc is None else acc + p
        z = jnp.maximum(acc * s1 + t1, 0.0)                        # BN + ReLU
        return jnp.maximum(z[:, 0:256], z[:, 256:512])             # horizontal pool

    for pu in range(2):  # row parity of the pooled 14x14 map
        h1 = jnp.maximum(conv1_rows(2 * pu), conv1_rows(2 * pu + 1))  # vertical pool
        h1 = h1.astype(h1pad_ref.dtype).reshape(8, bB, 256)
        # valid rows a=0..6, valid lanes v=0..13 -> interior of the padded scratch
        h1pad_ref[pu, 1:8, :, 32:256] = h1[0:7, :, 0:224]

    # ---- layer 2: conv(5x5, 16->32, pad 2) + BN + ReLU + maxpool(2,2) -------
    h2 = None
    for pr in range(2):  # row parity of the conv-2 output rows
        acc = None
        for ky in range(5):
            e, q = (pr + ky) % 2, (pr + ky) // 2
            lhs = h1pad_ref[e, q:q + 8, :, :].reshape(M, 288)      # rows (s, b)
            p = jnp.dot(lhs, rhs2_ref[ky], preferred_element_type=jnp.float32)
            acc = p if acc is None else acc + p
        z = jnp.maximum(acc * s2 + t2, 0.0)                        # BN + ReLU
        zp = jnp.maximum(z[:, 0:256], z[:, 256:512])               # horizontal pool
        h2 = zp if h2 is None else jnp.maximum(h2, zp)             # vertical pool

    # ---- fc ------------------------------------------------------------------
    h2 = h2.astype(jnp.bfloat16).reshape(8, bB, 256)               # [sigma, b, t*32+c]
    out = None
    for sg in range(7):
        p = jnp.dot(h2[sg], wfc_ref[sg], preferred_element_type=jnp.float32)
        out = p if out is None else out + p
    out_ref[...] = out + fcb_ref[...]


# --------------------------------------------------------------------------
# Parameter folding / offline weight packing
# --------------------------------------------------------------------------
def fold_bn(gamma, beta, conv_bias, running_mean, running_var, eps=1e-5):
    s = gamma / jnp.sqrt(running_var + eps)
    return s, (conv_bias - running_mean) * s + beta


def prepare_params(params, num_classes=10):
    """One-time packing of weights into the kernel's Toeplitz / lane layouts."""
    w1 = params["conv1_w"].astype(jnp.float32)      # (5,5,1,16)  HWIO
    w2 = params["conv2_w"].astype(jnp.float32)      # (5,5,16,32) HWIO
    fcw = params["fc_w"].astype(jnp.float32)        # (1568, 10), torch (C,H,W) row order
    s1, t1 = fold_bn(params["bn1_gamma"], params["bn1_beta"], params["conv1_b"],
                     params["bn1_mean"], params["bn1_var"])
    s2, t2 = fold_bn(params["bn2_gamma"], params["bn2_beta"], params["conv2_b"],
                     params["bn2_mean"], params["bn2_var"])

    # layer-1 Toeplitz weights: rhs1[ky, ci, pc*256 + v*16 + o] = w1[ky, kx, 0, o]
    # with ci = 2v + pc + kx  (conv col C = 2v+pc, input col ci = C+kx).
    ky, kx, v, pc, o = np.meshgrid(np.arange(5), np.arange(5), np.arange(14),
                                   np.arange(2), np.arange(16), indexing="ij")
    ky, kx, v, pc, o = [a.ravel() for a in (ky, kx, v, pc, o)]
    rhs1 = jnp.zeros((5, 32, 512), jnp.float32).at[
        ky, 2 * v + pc + kx, pc * 256 + v * 16 + o].set(w1[ky, kx, 0, o])

    # layer-2 Toeplitz weights:
    # rhs2[ky, ci*16+cin, pc*256 + t*32 + o2] = w2[ky, kx, cin, o2], ci = 2t+pc+kx.
    ky, kx, tt, pc, cin, o2 = np.meshgrid(np.arange(5), np.arange(5), np.arange(7),
                                          np.arange(2), np.arange(16), np.arange(32),
                                          indexing="ij")
    ky, kx, tt, pc, cin, o2 = [a.ravel() for a in (ky, kx, tt, pc, cin, o2)]
    rhs2 = jnp.zeros((5, 288, 512), jnp.float32).at[
        ky, (2 * tt + pc + kx) * 16 + cin, pc * 256 + tt * 32 + o2].set(
        w2[ky, kx, cin, o2])

    # fc weights, pre-permuted: wfc[sigma, t*32 + o2, n] = fc_w[o2*49 + sigma*7 + t, n]
    sg, tt, o2, n = np.meshgrid(np.arange(7), np.arange(7), np.arange(32),
                                np.arange(num_classes), indexing="ij")
    sg, tt, o2, n = [a.ravel() for a in (sg, tt, o2, n)]
    wfc = jnp.zeros((7, 256, 128), jnp.float32).at[
        sg, tt * 32 + o2, n].set(fcw[o2 * 49 + sg * 7 + tt, n])

    # folded BN scale/bias rows matching the packed lane layouts (zeros on pad lanes)
    lane = np.arange(512)
    v_l, o_l = (lane % 256) // 16, lane % 16
    sb1 = jnp.stack([jnp.where(v_l <= 13, s1[o_l], 0.0),
                     jnp.where(v_l <= 13, t1[o_l], 0.0)]).astype(jnp.float32)
    t_l, o2_l = (lane % 256) // 32, lane % 32
    sb2 = jnp.stack([jnp.where(t_l <= 6, s2[o2_l], 0.0),
                     jnp.where(t_l <= 6, t2[o2_l], 0.0)]).astype(jnp.float32)

    fcb = jnp.zeros((128,), jnp.float32).at[:num_classes].set(
        params["fc_b"].astype(jnp.float32)).reshape(1, 128)

    return {"rhs1": rhs1.astype(jnp.bfloat16),
            "rhs2": rhs2.astype(jnp.bfloat16),
            "wfc": wfc.astype(jnp.bfloat16),
            "sb1": sb1, "sb2": sb2, "fcb": fcb}


# --------------------------------------------------------------------------
# Forward pass
# --------------------------------------------------------------------------
def convnet_forward(x_nchw, prep):
    B = x_nchw.shape[0]
    x = x_nchw.reshape(B, 28, 28).astype(jnp.float32)
    xp = jnp.pad(x, ((0, 0), (2, 6), (2, 2)))                     # (B, 36, 32)
    # split rows mod 4: xrp[ry, i, b, c] = x_pad[b, 4i+ry, c]
    xrp = xp.reshape(B, 9, 4, 32).transpose(2, 1, 0, 3).astype(jnp.bfloat16)
    Bp = -(-B // BLOCK_B) * BLOCK_B
    if Bp != B:
        xrp = jnp.pad(xrp, ((0, 0), (0, 0), (0, Bp - B), (0, 0)))
    grid = Bp // BLOCK_B

    m = 8 * BLOCK_B
    flops = grid * (2 * 20 * m * 32 * 512 + 2 * 10 * m * 288 * 512
                    + 2 * 7 * BLOCK_B * 256 * 128)
    bytes_acc = (grid * (4 * 9 * BLOCK_B * 32 * 2 + BLOCK_B * 128 * 4)
                 + (prep["rhs1"].size + prep["rhs2"].size + prep["wfc"].size) * 2
                 + (prep["sb1"].size + prep["sb2"].size + prep["fcb"].size) * 4)

    out = pl.pallas_call(
        _fused_convnet_kernel,
        out_shape=jax.ShapeDtypeStruct((Bp, 128), jnp.float32),
        grid_spec=pltpu.PrefetchScalarGridSpec(
            num_scalar_prefetch=0,
            grid=(grid,),
            in_specs=[
                pl.BlockSpec((4, 9, BLOCK_B, 32), lambda g: (0, 0, g, 0)),
                pl.BlockSpec((5, 32, 512), lambda g: (0, 0, 0)),
                pl.BlockSpec((5, 288, 512), lambda g: (0, 0, 0)),
                pl.BlockSpec((7, 256, 128), lambda g: (0, 0, 0)),
                pl.BlockSpec((2, 512), lambda g: (0, 0)),
                pl.BlockSpec((2, 512), lambda g: (0, 0)),
                pl.BlockSpec((1, 128), lambda g: (0, 0)),
            ],
            out_specs=pl.BlockSpec((BLOCK_B, 128), lambda g: (g, 0)),
            scratch_shapes=[pltpu.VMEM((2, 10, BLOCK_B, 288), jnp.bfloat16)],
        ),
        compiler_params=pltpu.CompilerParams(dimension_semantics=("parallel",)),
        cost_estimate=pl.CostEstimate(flops=flops, transcendentals=0,
                                      bytes_accessed=bytes_acc),
    )(xrp, prep["rhs1"], prep["rhs2"], prep["wfc"],
      prep["sb1"], prep["sb2"], prep["fcb"])
    return out[:B, :10]


# --------------------------------------------------------------------------
# Pure-JAX reference (same bf16 quantization of inputs/weights, f32 math)
# --------------------------------------------------------------------------
def convnet_reference(x_nchw, params):
    f32 = jnp.float32
    x = jnp.transpose(x_nchw, (0, 2, 3, 1)).astype(jnp.bfloat16).astype(f32)
    w1 = params["conv1_w"].astype(jnp.bfloat16).astype(f32)
    w2 = params["conv2_w"].astype(jnp.bfloat16).astype(f32)
    fcw = params["fc_w"].astype(jnp.bfloat16).astype(f32)
    s1, t1 = fold_bn(params["bn1_gamma"], params["bn1_beta"], params["conv1_b"],
                     params["bn1_mean"], params["bn1_var"])
    s2, t2 = fold_bn(params["bn2_gamma"], params["bn2_beta"], params["conv2_b"],
                     params["bn2_mean"], params["bn2_var"])

    def block(h, w, s, t):
        y = jax.lax.conv_general_dilated(
            h, w, (1, 1), ((2, 2), (2, 2)),
            dimension_numbers=("NHWC", "HWIO", "NHWC"))
        y = jnp.maximum(y * s + t, 0.0)
        return jax.lax.reduce_window(y, -jnp.inf, jax.lax.max,
                                     (1, 2, 2, 1), (1, 2, 2, 1), "VALID")

    h1 = block(x, w1, s1, t1)
    h2 = block(h1, w2, s2, t2)
    feat = jnp.transpose(h2, (0, 3, 1, 2)).reshape(x.shape[0], -1)  # torch NCHW flatten
    return feat @ fcw + params["fc_b"]


# --------------------------------------------------------------------------
def make_params(key, num_classes=10):
    ks = jax.random.split(key, 8)
    return {
        "conv1_w": jax.random.normal(ks[0], (5, 5, 1, 16), jnp.float32) * 0.1,
        "conv1_b": jax.random.normal(ks[1], (16,), jnp.float32) * 0.1,
        "bn1_gamma": jnp.ones((16,), jnp.float32),
        "bn1_beta": jnp.zeros((16,), jnp.float32),
        "bn1_mean": jnp.zeros((16,), jnp.float32),
        "bn1_var": jnp.ones((16,), jnp.float32),
        "conv2_w": jax.random.normal(ks[2], (5, 5, 16, 32), jnp.float32) * 0.05,
        "conv2_b": jax.random.normal(ks[3], (32,), jnp.float32) * 0.05,
        "bn2_gamma": jnp.ones((32,), jnp.float32),
        "bn2_beta": jnp.zeros((32,), jnp.float32),
        "bn2_mean": jnp.zeros((32,), jnp.float32),
        "bn2_var": jnp.ones((32,), jnp.float32),
        "fc_w": jax.random.normal(ks[4], (7 * 7 * 32, num_classes),
                                  jnp.float32) * 0.02,
        "fc_b": jax.random.normal(ks[5], (num_classes,), jnp.float32) * 0.02,
    }


if __name__ == "__main__":
    key = jax.random.PRNGKey(0)
    kx_, kp_ = jax.random.split(key)
    # MNIST-shaped input: the fc layer (7*7*32) requires 28x28 spatial.
    x = jax.random.normal(kx_, (2, 1, 28, 28), jnp.float32)
    params = make_params(kp_)
    prep = prepare_params(params)

    logits = jax.jit(convnet_forward)(x, prep)
    jax.block_until_ready(logits)
    assert logits.shape == (2, 10) and logits.dtype == jnp.float32

    ref = convnet_reference(x, params)
    np.testing.assert_allclose(np.asarray(logits), np.asarray(ref),
                               rtol=6e-2, atol=6e-2)
    print("KERNEL_OK")
</pallas_src>

<mosaic_0001>
module attributes {stable_mosaic.version = 11 : i64} {
  func.func @_fused_convnet_kernel(%arg0: i32, %arg1: memref<4x9x16x32xbf16, #tpu.memory_space<vmem>>, %arg2: memref<5x32x512xbf16, #tpu.memory_space<vmem>>, %arg3: memref<5x288x512xbf16, #tpu.memory_space<vmem>>, %arg4: memref<7x256x128xbf16, #tpu.memory_space<vmem>>, %arg5: memref<2x512xf32, #tpu.memory_space<vmem>>, %arg6: memref<2x512xf32, #tpu.memory_space<vmem>>, %arg7: memref<1x128xf32, #tpu.memory_space<vmem>>, %arg8: memref<16x128xf32, #tpu.memory_space<vmem>>, %arg9: memref<2x10x16x288xbf16, #tpu.memory_space<vmem>>) attributes {dimension_semantics = [#tpu.dimension_semantics<parallel>], iteration_bounds = array<i64: 1>, scalar_prefetch = 0 : i64, scratch_operands = 1 : i64, tpu.core_type = #tpu.core_type<tc>, window_params = [{transform_indices = @transform_0, window_bounds = array<i64: 4, 9, 16, 32>}, {pipeline_mode = #tpu.pipeline_mode<synchronous>, transform_indices = @transform_1, window_bounds = array<i64: 5, 32, 512>}, {pipeline_mode = #tpu.pipeline_mode<synchronous>, transform_indices = @transform_2, window_bounds = array<i64: 5, 288, 512>}, {pipeline_mode = #tpu.pipeline_mode<synchronous>, transform_indices = @transform_3, window_bounds = array<i64: 7, 256, 128>}, {pipeline_mode = #tpu.pipeline_mode<synchronous>, transform_indices = @transform_4, window_bounds = array<i64: 2, 512>}, {pipeline_mode = #tpu.pipeline_mode<synchronous>, transform_indices = @transform_5, window_bounds = array<i64: 2, 512>}, {pipeline_mode = #tpu.pipeline_mode<synchronous>, transform_indices = @transform_6, window_bounds = array<i64: 1, 128>}, {transform_indices = @transform_7, window_bounds = array<i64: 16, 128>}]} {
    %cst = arith.constant 0.000000e+00 : bf16
    %0 = vector.broadcast %cst : bf16 to vector<2x10x16x288xbf16>
    %c0 = arith.constant 0 : index
    %c0_0 = arith.constant 0 : index
    %c0_1 = arith.constant 0 : index
    %c0_2 = arith.constant 0 : index
    %1 = vector.load %arg9[%c0, %c0_0, %c0_1, %c0_2] : memref<2x10x16x288xbf16, #tpu.memory_space<vmem>>, vector<2x10x16x288xbf16>
    tpu.vector_store %arg9[%c0, %c0_0, %c0_1, %c0_2], %0 {strides = array<i32>} : memref<2x10x16x288xbf16, #tpu.memory_space<vmem>>, vector<2x10x16x288xbf16>,
    %c0_3 = arith.constant 0 : index
    %c0_4 = arith.constant 0 : index
    %2 = vector.load %arg5[%c0_3, %c0_4] : memref<2x512xf32, #tpu.memory_space<vmem>>, vector<1x512xf32>
    %c1 = arith.constant 1 : index
    %c0_5 = arith.constant 0 : index
    %3 = vector.load %arg5[%c1, %c0_5] : memref<2x512xf32, #tpu.memory_space<vmem>>, vector<1x512xf32>
    %c0_6 = arith.constant 0 : index
    %c0_7 = arith.constant 0 : index
    %4 = vector.load %arg6[%c0_6, %c0_7] : memref<2x512xf32, #tpu.memory_space<vmem>>, vector<1x512xf32>
    %c1_8 = arith.constant 1 : index
    %c0_9 = arith.constant 0 : index
    %5 = vector.load %arg6[%c1_8, %c0_9] : memref<2x512xf32, #tpu.memory_space<vmem>>, vector<1x512xf32>
    %c0_10 = arith.constant 0 : index
    %c0_11 = arith.constant 0 : index
    %c0_12 = arith.constant 0 : index
    %c0_13 = arith.constant 0 : index
    %6 = vector.load %arg1[%c0_10, %c0_11, %c0_12, %c0_13] : memref<4x9x16x32xbf16, #tpu.memory_space<vmem>>, vector<1x8x16x32xbf16>
    %7 = vector.shape_cast %6 : vector<1x8x16x32xbf16> to vector<8x16x32xbf16>
    %8 = vector.shape_cast %7 : vector<8x16x32xbf16> to vector<128x32xbf16>
    %c0_14 = arith.constant 0 : index
    %c0_15 = arith.constant 0 : index
    %c0_16 = arith.constant 0 : index
    %9 = vector.load %arg2[%c0_14, %c0_15, %c0_16] : memref<5x32x512xbf16, #tpu.memory_space<vmem>>, vector<1x32x512xbf16>
    %10 = vector.shape_cast %9 : vector<1x32x512xbf16> to vector<32x512xbf16>
    %cst_17 = arith.constant dense<0.000000e+00> : vector<128x512xf32>
    %11 = tpu.matmul %8, %10, %cst_17 {dimension_numbers = #tpu.dot_dimension_numbers<[1], [0], [0], [1], [0, 0, 1, 1], [], []>} : vector<128x32xbf16>, vector<32x512xbf16>, vector<128x512xf32> -> vector<128x512xf32>
    %c1_18 = arith.constant 1 : index
    %c0_19 = arith.constant 0 : index
    %c0_20 = arith.constant 0 : index
    %c0_21 = arith.constant 0 : index
    %12 = vector.load %arg1[%c1_18, %c0_19, %c0_20, %c0_21] : memref<4x9x16x32xbf16, #tpu.memory_space<vmem>>, vector<1x8x16x32xbf16>
    %13 = vector.shape_cast %12 : vector<1x8x16x32xbf16> to vector<8x16x32xbf16>
    %14 = vector.shape_cast %13 : vector<8x16x32xbf16> to vector<128x32xbf16>
    %c1_22 = arith.constant 1 : index
    %c0_23 = arith.constant 0 : index
    %c0_24 = arith.constant 0 : index
    %15 = vector.load %arg2[%c1_22, %c0_23, %c0_24] : memref<5x32x512xbf16, #tpu.memory_space<vmem>>, vector<1x32x512xbf16>
    %16 = vector.shape_cast %15 : vector<1x32x512xbf16> to vector<32x512xbf16>
    %cst_25 = arith.constant dense<0.000000e+00> : vector<128x512xf32>
    %17 = tpu.matmul %14, %16, %cst_25 {dimension_numbers = #tpu.dot_dimension_numbers<[1], [0], [0], [1], [0, 0, 1, 1], [], []>} : vector<128x32xbf16>, vector<32x512xbf16>, vector<128x512xf32> -> vector<128x512xf32>
    %18 = arith.addf %11, %17 : vector<128x512xf32>
    %c2 = arith.constant 2 : index
    %c0_26 = arith.constant 0 : index
    %c0_27 = arith.constant 0 : index
    %c0_28 = arith.constant 0 : index
    %19 = vector.load %arg1[%c2, %c0_26, %c0_27, %c0_28] : memref<4x9x16x32xbf16, #tpu.memory_space<vmem>>, vector<1x8x16x32xbf16>
    %20 = vector.shape_cast %19 : vector<1x8x16x32xbf16> to vector<8x16x32xbf16>
    %21 = vector.shape_cast %20 : vector<8x16x32xbf16> to vector<128x32xbf16>
    %c2_29 = arith.constant 2 : index
    %c0_30 = arith.constant 0 : index
    %c0_31 = arith.constant 0 : index
    %22 = vector.load %arg2[%c2_29, %c0_30, %c0_31] : memref<5x32x512xbf16, #tpu.memory_space<vmem>>, vector<1x32x512xbf16>
    %23 = vector.shape_cast %22 : vector<1x32x512xbf16> to vector<32x512xbf16>
    %cst_32 = arith.constant dense<0.000000e+00> : vector<128x512xf32>
    %24 = tpu.matmul %21, %23, %cst_32 {dimension_numbers = #tpu.dot_dimension_numbers<[1], [0], [0], [1], [0, 0, 1, 1], [], []>} : vector<128x32xbf16>, vector<32x512xbf16>, vector<128x512xf32> -> vector<128x512xf32>
    %25 = arith.addf %18, %24 : vector<128x512xf32>
    %c3 = arith.constant 3 : index
    %c0_33 = arith.constant 0 : index
    %c0_34 = arith.constant 0 : index
    %c0_35 = arith.constant 0 : index
    %26 = vector.load %arg1[%c3, %c0_33, %c0_34, %c0_35] : memref<4x9x16x32xbf16, #tpu.memory_space<vmem>>, vector<1x8x16x32xbf16>
    %27 = vector.shape_cast %26 : vector<1x8x16x32xbf16> to vector<8x16x32xbf16>
    %28 = vector.shape_cast %27 : vector<8x16x32xbf16> to vector<128x32xbf16>
    %c3_36 = arith.constant 3 : index
    %c0_37 = arith.constant 0 : index
    %c0_38 = arith.constant 0 : index
    %29 = vector.load %arg2[%c3_36, %c0_37, %c0_38] : memref<5x32x512xbf16, #tpu.memory_space<vmem>>, vector<1x32x512xbf16>
    %30 = vector.shape_cast %29 : vector<1x32x512xbf16> to vector<32x512xbf16>
    %cst_39 = arith.constant dense<0.000000e+00> : vector<128x512xf32>
    %31 = tpu.matmul %28, %30, %cst_39 {dimension_numbers = #tpu.dot_dimension_numbers<[1], [0], [0], [1], [0, 0, 1, 1], [], []>} : vector<128x32xbf16>, vector<32x512xbf16>, vector<128x512xf32> -> vector<128x512xf32>
    %32 = arith.addf %25, %31 : vector<128x512xf32>
    %c0_40 = arith.constant 0 : index
    %c1_41 = arith.constant 1 : index
    %c0_42 = arith.constant 0 : index
    %c0_43 = arith.constant 0 : index
    %33 = vector.load %arg1[%c0_40, %c1_41, %c0_42, %c0_43] : memref<4x9x16x32xbf16, #tpu.memory_space<vmem>>, vector<1x8x16x32xbf16>
    %34 = vector.shape_cast %33 : vector<1x8x16x32xbf16> to vector<8x16x32xbf16>
    %35 = vector.shape_cast %34 : vector<8x16x32xbf16> to vector<128x32xbf16>
    %c4 = arith.constant 4 : index
    %c0_44 = arith.constant 0 : index
    %c0_45 = arith.constant 0 : index
    %36 = vector.load %arg2[%c4, %c0_44, %c0_45] : memref<5x32x512xbf16, #tpu.memory_space<vmem>>, vector<1x32x512xbf16>
    %37 = vector.shape_cast %36 : vector<1x32x512xbf16> to vector<32x512xbf16>
    %cst_46 = arith.constant dense<0.000000e+00> : vector<128x512xf32>
    %38 = tpu.matmul %35, %37, %cst_46 {dimension_numbers = #tpu.dot_dimension_numbers<[1], [0], [0], [1], [0, 0, 1, 1], [], []>} : vector<128x32xbf16>, vector<32x512xbf16>, vector<128x512xf32> -> vector<128x512xf32>
    %39 = arith.addf %32, %38 : vector<128x512xf32>
    %40 = vector.broadcast %2 : vector<1x512xf32> to vector<128x512xf32>
    %41 = arith.mulf %39, %40 : vector<128x512xf32>
    %42 = vector.broadcast %3 : vector<1x512xf32> to vector<128x512xf32>
    %43 = arith.addf %41, %42 : vector<128x512xf32>
    %cst_47 = arith.constant 0.000000e+00 : f32
    %44 = vector.broadcast %cst_47 : f32 to vector<128x512xf32>
    %45 = arith.maximumf %43, %44 : vector<128x512xf32>
    %46 = vector.extract_strided_slice %45 {offsets = [0, 0], sizes = [128, 256], strides = [1, 1]} : vector<128x512xf32> to vector<128x256xf32>
    %47 = vector.extract_strided_slice %45 {offsets = [0, 256], sizes = [128, 256], strides = [1, 1]} : vector<128x512xf32> to vector<128x256xf32>
    %48 = arith.maximumf %46, %47 : vector<128x256xf32>
    %c1_48 = arith.constant 1 : index
    %c0_49 = arith.constant 0 : index
    %c0_50 = arith.constant 0 : index
    %c0_51 = arith.constant 0 : index
    %49 = vector.load %arg1[%c1_48, %c0_49, %c0_50, %c0_51] : memref<4x9x16x32xbf16, #tpu.memory_space<vmem>>, vector<1x8x16x32xbf16>
    %50 = vector.shape_cast %49 : vector<1x8x16x32xbf16> to vector<8x16x32xbf16>
    %51 = vector.shape_cast %50 : vector<8x16x32xbf16> to vector<128x32xbf16>
    %c0_52 = arith.constant 0 : index
    %c0_53 = arith.constant 0 : index
    %c0_54 = arith.constant 0 : index
    %52 = vector.load %arg2[%c0_52, %c0_53, %c0_54] : memref<5x32x512xbf16, #tpu.memory_space<vmem>>, vector<1x32x512xbf16>
    %53 = vector.shape_cast %52 : vector<1x32x512xbf16> to vector<32x512xbf16>
    %cst_55 = arith.constant dense<0.000000e+00> : vector<128x512xf32>
    %54 = tpu.matmul %51, %53, %cst_55 {dimension_numbers = #tpu.dot_dimension_numbers<[1], [0], [0], [1], [0, 0, 1, 1], [], []>} : vector<128x32xbf16>, vector<32x512xbf16>, vector<128x512xf32> -> vector<128x512xf32>
    %c2_56 = arith.constant 2 : index
    %c0_57 = arith.constant 0 : index
    %c0_58 = arith.constant 0 : index
    %c0_59 = arith.constant 0 : index
    %55 = vector.load %arg1[%c2_56, %c0_57, %c0_58, %c0_59] : memref<4x9x16x32xbf16, #tpu.memory_space<vmem>>, vector<1x8x16x32xbf16>
    %56 = vector.shape_cast %55 : vector<1x8x16x32xbf16> to vector<8x16x32xbf16>
    %57 = vector.shape_cast %56 : vector<8x16x32xbf16> to vector<128x32xbf16>
    %c1_60 = arith.constant 1 : index
    %c0_61 = arith.constant 0 : index
    %c0_62 = arith.constant 0 : index
    %58 = vector.load %arg2[%c1_60, %c0_61, %c0_62] : memref<5x32x512xbf16, #tpu.memory_space<vmem>>, vector<1x32x512xbf16>
    %59 = vector.shape_cast %58 : vector<1x32x512xbf16> to vector<32x512xbf16>
    %cst_63 = arith.constant dense<0.000000e+00> : vector<128x512xf32>
    %60 = tpu.matmul %57, %59, %cst_63 {dimension_numbers = #tpu.dot_dimension_numbers<[1], [0], [0], [1], [0, 0, 1, 1], [], []>} : vector<128x32xbf16>, vector<32x512xbf16>, vector<128x512xf32> -> vector<128x512xf32>
    %61 = arith.addf %54, %60 : vector<128x512xf32>
    %c3_64 = arith.constant 3 : index
    %c0_65 = arith.constant 0 : index
    %c0_66 = arith.constant 0 : index
    %c0_67 = arith.constant 0 : index
    %62 = vector.load %arg1[%c3_64, %c0_65, %c0_66, %c0_67] : memref<4x9x16x32xbf16, #tpu.memory_space<vmem>>, vector<1x8x16x32xbf16>
    %63 = vector.shape_cast %62 : vector<1x8x16x32xbf16> to vector<8x16x32xbf16>
    %64 = vector.shape_cast %63 : vector<8x16x32xbf16> to vector<128x32xbf16>
    %c2_68 = arith.constant 2 : index
    %c0_69 = arith.constant 0 : index
    %c0_70 = arith.constant 0 : index
    %65 = vector.load %arg2[%c2_68, %c0_69, %c0_70] : memref<5x32x512xbf16, #tpu.memory_space<vmem>>, vector<1x32x512xbf16>
    %66 = vector.shape_cast %65 : vector<1x32x512xbf16> to vector<32x512xbf16>
    %cst_71 = arith.constant dense<0.000000e+00> : vector<128x512xf32>
    %67 = tpu.matmul %64, %66, %cst_71 {dimension_numbers = #tpu.dot_dimension_numbers<[1], [0], [0], [1], [0, 0, 1, 1], [], []>} : vector<128x32xbf16>, vector<32x512xbf16>, vector<128x512xf32> -> vector<128x512xf32>
    %68 = arith.addf %61, %67 : vector<128x512xf32>
    %c0_72 = arith.constant 0 : index
    %c1_73 = arith.constant 1 : index
    %c0_74 = arith.constant 0 : index
    %c0_75 = arith.constant 0 : index
    %69 = vector.load %arg1[%c0_72, %c1_73, %c0_74, %c0_75] : memref<4x9x16x32xbf16, #tpu.memory_space<vmem>>, vector<1x8x16x32xbf16>
    %70 = vector.shape_cast %69 : vector<1x8x16x32xbf16> to vector<8x16x32xbf16>
    %71 = vector.shape_cast %70 : vector<8x16x32xbf16> to vector<128x32xbf16>
    %c3_76 = arith.constant 3 : index
    %c0_77 = arith.constant 0 : index
    %c0_78 = arith.constant 0 : index
    %72 = vector.load %arg2[%c3_76, %c0_77, %c0_78] : memref<5x32x512xbf16, #tpu.memory_space<vmem>>, vector<1x32x512xbf16>
    %73 = vector.shape_cast %72 : vector<1x32x512xbf16> to vector<32x512xbf16>
    %cst_79 = arith.constant dense<0.000000e+00> : vector<128x512xf32>
    %74 = tpu.matmul %71, %73, %cst_79 {dimension_numbers = #tpu.dot_dimension_numbers<[1], [0], [0], [1], [0, 0, 1, 1], [], []>} : vector<128x32xbf16>, vector<32x512xbf16>, vector<128x512xf32> -> vector<128x512xf32>
    %75 = arith.addf %68, %74 : vector<128x512xf32>
    %c1_80 = arith.constant 1 : index
    %c1_81 = arith.constant 1 : index
    %c0_82 = arith.constant 0 : index
    %c0_83 = arith.constant 0 : index
    %76 = vector.load %arg1[%c1_80, %c1_81, %c0_82, %c0_83] : memref<4x9x16x32xbf16, #tpu.memory_space<vmem>>, vector<1x8x16x32xbf16>
    %77 = vector.shape_cast %76 : vector<1x8x16x32xbf16> to vector<8x16x32xbf16>
    %78 = vector.shape_cast %77 : vector<8x16x32xbf16> to vector<128x32xbf16>
    %c4_84 = arith.constant 4 : index
    %c0_85 = arith.constant 0 : index
    %c0_86 = arith.constant 0 : index
    %79 = vector.load %arg2[%c4_84, %c0_85, %c0_86] : memref<5x32x512xbf16, #tpu.memory_space<vmem>>, vector<1x32x512xbf16>
    %80 = vector.shape_cast %79 : vector<1x32x512xbf16> to vector<32x512xbf16>
    %cst_87 = arith.constant dense<0.000000e+00> : vector<128x512xf32>
    %81 = tpu.matmul %78, %80, %cst_87 {dimension_numbers = #tpu.dot_dimension_numbers<[1], [0], [0], [1], [0, 0, 1, 1], [], []>} : vector<128x32xbf16>, vector<32x512xbf16>, vector<128x512xf32> -> vector<128x512xf32>
    %82 = arith.addf %75, %81 : vector<128x512xf32>
    %83 = vector.broadcast %2 : vector<1x512xf32> to vector<128x512xf32>
    %84 = arith.mulf %82, %83 : vector<128x512xf32>
    %85 = vector.broadcast %3 : vector<1x512xf32> to vector<128x512xf32>
    %86 = arith.addf %84, %85 : vector<128x512xf32>
    %cst_88 = arith.constant 0.000000e+00 : f32
    %87 = vector.broadcast %cst_88 : f32 to vector<128x512xf32>
    %88 = arith.maximumf %86, %87 : vector<128x512xf32>
    %89 = vector.extract_strided_slice %88 {offsets = [0, 0], sizes = [128, 256], strides = [1, 1]} : vector<128x512xf32> to vector<128x256xf32>
    %90 = vector.extract_strided_slice %88 {offsets = [0, 256], sizes = [128, 256], strides = [1, 1]} : vector<128x512xf32> to vector<128x256xf32>
    %91 = arith.maximumf %89, %90 : vector<128x256xf32>
    %92 = arith.maximumf %48, %91 : vector<128x256xf32>
    %93 = arith.truncf %92 : vector<128x256xf32> to vector<128x256xbf16>
    %94 = vector.shape_cast %93 : vector<128x256xbf16> to vector<8x16x256xbf16>
    %95 = vector.extract_strided_slice %94 {offsets = [0, 0, 0], sizes = [7, 16, 224], strides = [1, 1, 1]} : vector<8x16x256xbf16> to vector<7x16x224xbf16>
    %c0_89 = arith.constant 0 : index
    %c1_90 = arith.constant 1 : index
    %c0_91 = arith.constant 0 : index
    %c32 = arith.constant 32 : index
    %96 = vector.load %arg9[%c0_89, %c1_90, %c0_91, %c32] : memref<2x10x16x288xbf16, #tpu.memory_space<vmem>>, vector<1x7x16x224xbf16>
    %97 = vector.shape_cast %96 : vector<1x7x16x224xbf16> to vector<7x16x224xbf16>
    %98 = vector.shape_cast %95 : vector<7x16x224xbf16> to vector<1x7x16x224xbf16>
    tpu.vector_store %arg9[%c0_89, %c1_90, %c0_91, %c32], %98 {strides = array<i32>} : memref<2x10x16x288xbf16, #tpu.memory_space<vmem>>, vector<1x7x16x224xbf16>,
    %c2_92 = arith.constant 2 : index
    %c0_93 = arith.constant 0 : index
    %c0_94 = arith.constant 0 : index
    %c0_95 = arith.constant 0 : index
    %99 = vector.load %arg1[%c2_92, %c0_93, %c0_94, %c0_95] : memref<4x9x16x32xbf16, #tpu.memory_space<vmem>>, vector<1x8x16x32xbf16>
    %100 = vector.shape_cast %99 : vector<1x8x16x32xbf16> to vector<8x16x32xbf16>
    %101 = vector.shape_cast %100 : vector<8x16x32xbf16> to vector<128x32xbf16>
    %c0_96 = arith.constant 0 : index
    %c0_97 = arith.constant 0 : index
    %c0_98 = arith.constant 0 : index
    %102 = vector.load %arg2[%c0_96, %c0_97, %c0_98] : memref<5x32x512xbf16, #tpu.memory_space<vmem>>, vector<1x32x512xbf16>
    %103 = vector.shape_cast %102 : vector<1x32x512xbf16> to vector<32x512xbf16>
    %cst_99 = arith.constant dense<0.000000e+00> : vector<128x512xf32>
    %104 = tpu.matmul %101, %103, %cst_99 {dimension_numbers = #tpu.dot_dimension_numbers<[1], [0], [0], [1], [0, 0, 1, 1], [], []>} : vector<128x32xbf16>, vector<32x512xbf16>, vector<128x512xf32> -> vector<128x512xf32>
    %c3_100 = arith.constant 3 : index
    %c0_101 = arith.constant 0 : index
    %c0_102 = arith.constant 0 : index
    %c0_103 = arith.constant 0 : index
    %105 = vector.load %arg1[%c3_100, %c0_101, %c0_102, %c0_103] : memref<4x9x16x32xbf16, #tpu.memory_space<vmem>>, vector<1x8x16x32xbf16>
    %106 = vector.shape_cast %105 : vector<1x8x16x32xbf16> to vector<8x16x32xbf16>
    %107 = vector.shape_cast %106 : vector<8x16x32xbf16> to vector<128x32xbf16>
    %c1_104 = arith.constant 1 : index
    %c0_105 = arith.constant 0 : index
    %c0_106 = arith.constant 0 : index
    %108 = vector.load %arg2[%c1_104, %c0_105, %c0_106] : memref<5x32x512xbf16, #tpu.memory_space<vmem>>, vector<1x32x512xbf16>
    %109 = vector.shape_cast %108 : vector<1x32x512xbf16> to vector<32x512xbf16>
    %cst_107 = arith.constant dense<0.000000e+00> : vector<128x512xf32>
    %110 = tpu.matmul %107, %109, %cst_107 {dimension_numbers = #tpu.dot_dimension_numbers<[1], [0], [0], [1], [0, 0, 1, 1], [], []>} : vector<128x32xbf16>, vector<32x512xbf16>, vector<128x512xf32> -> vector<128x512xf32>
    %111 = arith.addf %104, %110 : vector<128x512xf32>
    %c0_108 = arith.constant 0 : index
    %c1_109 = arith.constant 1 : index
    %c0_110 = arith.constant 0 : index
    %c0_111 = arith.constant 0 : index
    %112 = vector.load %arg1[%c0_108, %c1_109, %c0_110, %c0_111] : memref<4x9x16x32xbf16, #tpu.memory_space<vmem>>, vector<1x8x16x32xbf16>
    %113 = vector.shape_cast %112 : vector<1x8x16x32xbf16> to vector<8x16x32xbf16>
    %114 = vector.shape_cast %113 : vector<8x16x32xbf16> to vector<128x32xbf16>
    %c2_112 = arith.constant 2 : index
    %c0_113 = arith.constant 0 : index
    %c0_114 = arith.constant 0 : index
    %115 = vector.load %arg2[%c2_112, %c0_113, %c0_114] : memref<5x32x512xbf16, #tpu.memory_space<vmem>>, vector<1x32x512xbf16>
    %116 = vector.shape_cast %115 : vector<1x32x512xbf16> to vector<32x512xbf16>
    %cst_115 = arith.constant dense<0.000000e+00> : vector<128x512xf32>
    %117 = tpu.matmul %114, %116, %cst_115 {dimension_numbers = #tpu.dot_dimension_numbers<[1], [0], [0], [1], [0, 0, 1, 1], [], []>} : vector<128x32xbf16>, vector<32x512xbf16>, vector<128x512xf32> -> vector<128x512xf32>
    %118 = arith.addf %111, %117 : vector<128x512xf32>
    %c1_116 = arith.constant 1 : index
    %c1_117 = arith.constant 1 : index
    %c0_118 = arith.constant 0 : index
    %c0_119 = arith.constant 0 : index
    %119 = vector.load %arg1[%c1_116, %c1_117, %c0_118, %c0_119] : memref<4x9x16x32xbf16, #tpu.memory_space<vmem>>, vector<1x8x16x32xbf16>
    %120 = vector.shape_cast %119 : vector<1x8x16x32xbf16> to vector<8x16x32xbf16>
    %121 = vector.shape_cast %120 : vector<8x16x32xbf16> to vector<128x32xbf16>
    %c3_120 = arith.constant 3 : index
    %c0_121 = arith.constant 0 : index
    %c0_122 = arith.constant 0 : index
    %122 = vector.load %arg2[%c3_120, %c0_121, %c0_122] : memref<5x32x512xbf16, #tpu.memory_space<vmem>>, vector<1x32x512xbf16>
    %123 = vector.shape_cast %122 : vector<1x32x512xbf16> to vector<32x512xbf16>
    %cst_123 = arith.constant dense<0.000000e+00> : vector<128x512xf32>
    %124 = tpu.matmul %121, %123, %cst_123 {dimension_numbers = #tpu.dot_dimension_numbers<[1], [0], [0], [1], [0, 0, 1, 1], [], []>} : vector<128x32xbf16>, vector<32x512xbf16>, vector<128x512xf32> -> vector<128x512xf32>
    %125 = arith.addf %118, %124 : vector<128x512xf32>
    %c2_124 = arith.constant 2 : index
    %c1_125 = arith.constant 1 : index
    %c0_126 = arith.constant 0 : index
    %c0_127 = arith.constant 0 : index
    %126 = vector.load %arg1[%c2_124, %c1_125, %c0_126, %c0_127] : memref<4x9x16x32xbf16, #tpu.memory_space<vmem>>, vector<1x8x16x32xbf16>
    %127 = vector.shape_cast %126 : vector<1x8x16x32xbf16> to vector<8x16x32xbf16>
    %128 = vector.shape_cast %127 : vector<8x16x32xbf16> to vector<128x32xbf16>
    %c4_128 = arith.constant 4 : index
    %c0_129 = arith.constant 0 : index
    %c0_130 = arith.constant 0 : index
    %129 = vector.load %arg2[%c4_128, %c0_129, %c0_130] : memref<5x32x512xbf16, #tpu.memory_space<vmem>>, vector<1x32x512xbf16>
    %130 = vector.shape_cast %129 : vector<1x32x512xbf16> to vector<32x512xbf16>
    %cst_131 = arith.constant dense<0.000000e+00> : vector<128x512xf32>
    %131 = tpu.matmul %128, %130, %cst_131 {dimension_numbers = #tpu.dot_dimension_numbers<[1], [0], [0], [1], [0, 0, 1, 1], [], []>} : vector<128x32xbf16>, vector<32x512xbf16>, vector<128x512xf32> -> vector<128x512xf32>
    %132 = arith.addf %125, %131 : vector<128x512xf32>
    %133 = vector.broadcast %2 : vector<1x512xf32> to vector<128x512xf32>
    %134 = arith.mulf %132, %133 : vector<128x512xf32>
    %135 = vector.broadcast %3 : vector<1x512xf32> to vector<128x512xf32>
    %136 = arith.addf %134, %135 : vector<128x512xf32>
    %cst_132 = arith.constant 0.000000e+00 : f32
    %137 = vector.broadcast %cst_132 : f32 to vector<128x512xf32>
    %138 = arith.maximumf %136, %137 : vector<128x512xf32>
    %139 = vector.extract_strided_slice %138 {offsets = [0, 0], sizes = [128, 256], strides = [1, 1]} : vector<128x512xf32> to vector<128x256xf32>
    %140 = vector.extract_strided_slice %138 {offsets = [0, 256], sizes = [128, 256], strides = [1, 1]} : vector<128x512xf32> to vector<128x256xf32>
    %141 = arith.maximumf %139, %140 : vector<128x256xf32>
    %c3_133 = arith.constant 3 : index
    %c0_134 = arith.constant 0 : index
    %c0_135 = arith.constant 0 : index
    %c0_136 = arith.constant 0 : index
    %142 = vector.load %arg1[%c3_133, %c0_134, %c0_135, %c0_136] : memref<4x9x16x32xbf16, #tpu.memory_space<vmem>>, vector<1x8x16x32xbf16>
    %143 = vector.shape_cast %142 : vector<1x8x16x32xbf16> to vector<8x16x32xbf16>
    %144 = vector.shape_cast %143 : vector<8x16x32xbf16> to vector<128x32xbf16>
    %c0_137 = arith.constant 0 : index
    %c0_138 = arith.constant 0 : index
    %c0_139 = arith.constant 0 : index
    %145 = vector.load %arg2[%c0_137, %c0_138, %c0_139] : memref<5x32x512xbf16, #tpu.memory_space<vmem>>, vector<1x32x512xbf16>
    %146 = vector.shape_cast %145 : vector<1x32x512xbf16> to vector<32x512xbf16>
    %cst_140 = arith.constant dense<0.000000e+00> : vector<128x512xf32>
    %147 = tpu.matmul %144, %146, %cst_140 {dimension_numbers = #tpu.dot_dimension_numbers<[1], [0], [0], [1], [0, 0, 1, 1], [], []>} : vector<128x32xbf16>, vector<32x512xbf16>, vector<128x512xf32> -> vector<128x512xf32>
    %c0_141 = arith.constant 0 : index
    %c1_142 = arith.constant 1 : index
    %c0_143 = arith.constant 0 : index
    %c0_144 = arith.constant 0 : index
    %148 = vector.load %arg1[%c0_141, %c1_142, %c0_143, %c0_144] : memref<4x9x16x32xbf16, #tpu.memory_space<vmem>>, vector<1x8x16x32xbf16>
    %149 = vector.shape_cast %148 : vector<1x8x16x32xbf16> to vector<8x16x32xbf16>
    %150 = vector.shape_cast %149 : vector<8x16x32xbf16> to vector<128x32xbf16>
    %c1_145 = arith.constant 1 : index
    %c0_146 = arith.constant 0 : index
    %c0_147 = arith.constant 0 : index
    %151 = vector.load %arg2[%c1_145, %c0_146, %c0_147] : memref<5x32x512xbf16, #tpu.memory_space<vmem>>, vector<1x32x512xbf16>
    %152 = vector.shape_cast %151 : vector<1x32x512xbf16> to vector<32x512xbf16>
    %cst_148 = arith.constant dense<0.000000e+00> : vector<128x512xf32>
    %153 = tpu.matmul %150, %152, %cst_148 {dimension_numbers = #tpu.dot_dimension_numbers<[1], [0], [0], [1], [0, 0, 1, 1], [], []>} : vector<128x32xbf16>, vector<32x512xbf16>, vector<128x512xf32> -> vector<128x512xf32>
    %154 = arith.addf %147, %153 : vector<128x512xf32>
    %c1_149 = arith.constant 1 : index
    %c1_150 = arith.constant 1 : index
    %c0_151 = arith.constant 0 : index
    %c0_152 = arith.constant 0 : index
    %155 = vector.load %arg1[%c1_149, %c1_150, %c0_151, %c0_152] : memref<4x9x16x32xbf16, #tpu.memory_space<vmem>>, vector<1x8x16x32xbf16>
    %156 = vector.shape_cast %155 : vector<1x8x16x32xbf16> to vector<8x16x32xbf16>
    %157 = vector.shape_cast %156 : vector<8x16x32xbf16> to vector<128x32xbf16>
    %c2_153 = arith.constant 2 : index
    %c0_154 = arith.constant 0 : index
    %c0_155 = arith.constant 0 : index
    %158 = vector.load %arg2[%c2_153, %c0_154, %c0_155] : memref<5x32x512xbf16, #tpu.memory_space<vmem>>, vector<1x32x512xbf16>
    %159 = vector.shape_cast %158 : vector<1x32x512xbf16> to vector<32x512xbf16>
    %cst_156 = arith.constant dense<0.000000e+00> : vector<128x512xf32>
    %160 = tpu.matmul %157, %159, %cst_156 {dimension_numbers = #tpu.dot_dimension_numbers<[1], [0], [0], [1], [0, 0, 1, 1], [], []>} : vector<128x32xbf16>, vector<32x512xbf16>, vector<128x512xf32> -> vector<128x512xf32>
    %161 = arith.addf %154, %160 : vector<128x512xf32>
    %c2_157 = arith.constant 2 : index
    %c1_158 = arith.constant 1 : index
    %c0_159 = arith.constant 0 : index
    %c0_160 = arith.constant 0 : index
    %162 = vector.load %arg1[%c2_157, %c1_158, %c0_159, %c0_160] : memref<4x9x16x32xbf16, #tpu.memory_space<vmem>>, vector<1x8x16x32xbf16>
    %163 = vector.shape_cast %162 : vector<1x8x16x32xbf16> to vector<8x16x32xbf16>
    %164 = vector.shape_cast %163 : vector<8x16x32xbf16> to vector<128x32xbf16>
    %c3_161 = arith.constant 3 : index
    %c0_162 = arith.constant 0 : index
    %c0_163 = arith.constant 0 : index
    %165 = vector.load %arg2[%c3_161, %c0_162, %c0_163] : memref<5x32x512xbf16, #tpu.memory_space<vmem>>, vector<1x32x512xbf16>
    %166 = vector.shape_cast %165 : vector<1x32x512xbf16> to vector<32x512xbf16>
    %cst_164 = arith.constant dense<0.000000e+00> : vector<128x512xf32>
    %167 = tpu.matmul %164, %166, %cst_164 {dimension_numbers = #tpu.dot_dimension_numbers<[1], [0], [0], [1], [0, 0, 1, 1], [], []>} : vector<128x32xbf16>, vector<32x512xbf16>, vector<128x512xf32> -> vector<128x512xf32>
    %168 = arith.addf %161, %167 : vector<128x512xf32>
    %c3_165 = arith.constant 3 : index
    %c1_166 = arith.constant 1 : index
    %c0_167 = arith.constant 0 : index
    %c0_168 = arith.constant 0 : index
    %169 = vector.load %arg1[%c3_165, %c1_166, %c0_167, %c0_168] : memref<4x9x16x32xbf16, #tpu.memory_space<vmem>>, vector<1x8x16x32xbf16>
    %170 = vector.shape_cast %169 : vector<1x8x16x32xbf16> to vector<8x16x32xbf16>
    %171 = vector.shape_cast %170 : vector<8x16x32xbf16> to vector<128x32xbf16>
    %c4_169 = arith.constant 4 : index
    %c0_170 = arith.constant 0 : index
    %c0_171 = arith.constant 0 : index
    %172 = vector.load %arg2[%c4_169, %c0_170, %c0_171] : memref<5x32x512xbf16, #tpu.memory_space<vmem>>, vector<1x32x512xbf16>
    %173 = vector.shape_cast %172 : vector<1x32x512xbf16> to vector<32x512xbf16>
    %cst_172 = arith.constant dense<0.000000e+00> : vector<128x512xf32>
    %174 = tpu.matmul %171, %173, %cst_172 {dimension_numbers = #tpu.dot_dimension_numbers<[1], [0], [0], [1], [0, 0, 1, 1], [], []>} : vector<128x32xbf16>, vector<32x512xbf16>, vector<128x512xf32> -> vector<128x512xf32>
    %175 = arith.addf %168, %174 : vector<128x512xf32>
    %176 = vector.broadcast %2 : vector<1x512xf32> to vector<128x512xf32>
    %177 = arith.mulf %175, %176 : vector<128x512xf32>
    %178 = vector.broadcast %3 : vector<1x512xf32> to vector<128x512xf32>
    %179 = arith.addf %177, %178 : vector<128x512xf32>
    %cst_173 = arith.constant 0.000000e+00 : f32
    %180 = vector.broadcast %cst_173 : f32 to vector<128x512xf32>
    %181 = arith.maximumf %179, %180 : vector<128x512xf32>
    %182 = vector.extract_strided_slice %181 {offsets = [0, 0], sizes = [128, 256], strides = [1, 1]} : vector<128x512xf32> to vector<128x256xf32>
    %183 = vector.extract_strided_slice %181 {offsets = [0, 256], sizes = [128, 256], strides = [1, 1]} : vector<128x512xf32> to vector<128x256xf32>
    %184 = arith.maximumf %182, %183 : vector<128x256xf32>
    %185 = arith.maximumf %141, %184 : vector<128x256xf32>
    %186 = arith.truncf %185 : vector<128x256xf32> to vector<128x256xbf16>
    %187 = vector.shape_cast %186 : vector<128x256xbf16> to vector<8x16x256xbf16>
    %188 = vector.extract_strided_slice %187 {offsets = [0, 0, 0], sizes = [7, 16, 224], strides = [1, 1, 1]} : vector<8x16x256xbf16> to vector<7x16x224xbf16>
    %c1_174 = arith.constant 1 : index
    %c1_175 = arith.constant 1 : index
    %c0_176 = arith.constant 0 : index
    %c32_177 = arith.constant 32 : index
    %189 = vector.load %arg9[%c1_174, %c1_175, %c0_176, %c32_177] : memref<2x10x16x288xbf16, #tpu.memory_space<vmem>>, vector<1x7x16x224xbf16>
    %190 = vector.shape_cast %189 : vector<1x7x16x224xbf16> to vector<7x16x224xbf16>
    %191 = vector.shape_cast %188 : vector<7x16x224xbf16> to vector<1x7x16x224xbf16>
    tpu.vector_store %arg9[%c1_174, %c1_175, %c0_176, %c32_177], %191 {strides = array<i32>} : memref<2x10x16x288xbf16, #tpu.memory_space<vmem>>, vector<1x7x16x224xbf16>,
    %c0_178 = arith.constant 0 : index
    %c0_179 = arith.constant 0 : index
    %c0_180 = arith.constant 0 : index
    %c0_181 = arith.constant 0 : index
    %192 = vector.load %arg9[%c0_178, %c0_179, %c0_180, %c0_181] : memref<2x10x16x288xbf16, #tpu.memory_space<vmem>>, vector<1x8x16x288xbf16>
    %193 = vector.shape_cast %192 : vector<1x8x16x288xbf16> to vector<8x16x288xbf16>
    %194 = vector.shape_cast %193 : vector<8x16x288xbf16> to vector<128x288xbf16>
    %c0_182 = arith.constant 0 : index
    %c0_183 = arith.constant 0 : index
    %c0_184 = arith.constant 0 : index
    %195 = vector.load %arg3[%c0_182, %c0_183, %c0_184] : memref<5x288x512xbf16, #tpu.memory_space<vmem>>, vector<1x288x512xbf16>
    %196 = vector.shape_cast %195 : vector<1x288x512xbf16> to vector<288x512xbf16>
    %cst_185 = arith.constant dense<0.000000e+00> : vector<128x512xf32>
    %197 = tpu.matmul %194, %196, %cst_185 {dimension_numbers = #tpu.dot_dimension_numbers<[1], [0], [0], [1], [0, 0, 1, 1], [], []>} : vector<128x288xbf16>, vector<288x512xbf16>, vector<128x512xf32> -> vector<128x512xf32>
    %c1_186 = arith.constant 1 : index
    %c0_187 = arith.constant 0 : index
    %c0_188 = arith.constant 0 : index
    %c0_189 = arith.constant 0 : index
    %198 = vector.load %arg9[%c1_186, %c0_187, %c0_188, %c0_189] : memref<2x10x16x288xbf16, #tpu.memory_space<vmem>>, vector<1x8x16x288xbf16>
    %199 = vector.shape_cast %198 : vector<1x8x16x288xbf16> to vector<8x16x288xbf16>
    %200 = vector.shape_cast %199 : vector<8x16x288xbf16> to vector<128x288xbf16>
    %c1_190 = arith.constant 1 : index
    %c0_191 = arith.constant 0 : index
    %c0_192 = arith.constant 0 : index
    %201 = vector.load %arg3[%c1_190, %c0_191, %c0_192] : memref<5x288x512xbf16, #tpu.memory_space<vmem>>, vector<1x288x512xbf16>
    %202 = vector.shape_cast %201 : vector<1x288x512xbf16> to vector<288x512xbf16>
    %cst_193 = arith.constant dense<0.000000e+00> : vector<128x512xf32>
    %203 = tpu.matmul %200, %202, %cst_193 {dimension_numbers = #tpu.dot_dimension_numbers<[1], [0], [0], [1], [0, 0, 1, 1], [], []>} : vector<128x288xbf16>, vector<288x512xbf16>, vector<128x512xf32> -> vector<128x512xf32>
    %204 = arith.addf %197, %203 : vector<128x512xf32>
    %c0_194 = arith.constant 0 : index
    %c1_195 = arith.constant 1 : index
    %c0_196 = arith.constant 0 : index
    %c0_197 = arith.constant 0 : index
    %205 = vector.load %arg9[%c0_194, %c1_195, %c0_196, %c0_197] : memref<2x10x16x288xbf16, #tpu.memory_space<vmem>>, vector<1x8x16x288xbf16>
    %206 = vector.shape_cast %205 : vector<1x8x16x288xbf16> to vector<8x16x288xbf16>
    %207 = vector.shape_cast %206 : vector<8x16x288xbf16> to vector<128x288xbf16>
    %c2_198 = arith.constant 2 : index
    %c0_199 = arith.constant 0 : index
    %c0_200 = arith.constant 0 : index
    %208 = vector.load %arg3[%c2_198, %c0_199, %c0_200] : memref<5x288x512xbf16, #tpu.memory_space<vmem>>, vector<1x288x512xbf16>
    %209 = vector.shape_cast %208 : vector<1x288x512xbf16> to vector<288x512xbf16>
    %cst_201 = arith.constant dense<0.000000e+00> : vector<128x512xf32>
    %210 = tpu.matmul %207, %209, %cst_201 {dimension_numbers = #tpu.dot_dimension_numbers<[1], [0], [0], [1], [0, 0, 1, 1], [], []>} : vector<128x288xbf16>, vector<288x512xbf16>, vector<128x512xf32> -> vector<128x512xf32>
    %211 = arith.addf %204, %210 : vector<128x512xf32>
    %c1_202 = arith.constant 1 : index
    %c1_203 = arith.constant 1 : index
    %c0_204 = arith.constant 0 : index
    %c0_205 = arith.constant 0 : index
    %212 = vector.load %arg9[%c1_202, %c1_203, %c0_204, %c0_205] : memref<2x10x16x288xbf16, #tpu.memory_space<vmem>>, vector<1x8x16x288xbf16>
    %213 = vector.shape_cast %212 : vector<1x8x16x288xbf16> to vector<8x16x288xbf16>
    %214 = vector.shape_cast %213 : vector<8x16x288xbf16> to vector<128x288xbf16>
    %c3_206 = arith.constant 3 : index
    %c0_207 = arith.constant 0 : index
    %c0_208 = arith.constant 0 : index
    %215 = vector.load %arg3[%c3_206, %c0_207, %c0_208] : memref<5x288x512xbf16, #tpu.memory_space<vmem>>, vector<1x288x512xbf16>
    %216 = vector.shape_cast %215 : vector<1x288x512xbf16> to vector<288x512xbf16>
    %cst_209 = arith.constant dense<0.000000e+00> : vector<128x512xf32>
    %217 = tpu.matmul %214, %216, %cst_209 {dimension_numbers = #tpu.dot_dimension_numbers<[1], [0], [0], [1], [0, 0, 1, 1], [], []>} : vector<128x288xbf16>, vector<288x512xbf16>, vector<128x512xf32> -> vector<128x512xf32>
    %218 = arith.addf %211, %217 : vector<128x512xf32>
    %c0_210 = arith.constant 0 : index
    %c2_211 = arith.constant 2 : index
    %c0_212 = arith.constant 0 : index
    %c0_213 = arith.constant 0 : index
    %219 = vector.load %arg9[%c0_210, %c2_211, %c0_212, %c0_213] : memref<2x10x16x288xbf16, #tpu.memory_space<vmem>>, vector<1x8x16x288xbf16>
    %220 = vector.shape_cast %219 : vector<1x8x16x288xbf16> to vector<8x16x288xbf16>
    %221 = vector.shape_cast %220 : vector<8x16x288xbf16> to vector<128x288xbf16>
    %c4_214 = arith.constant 4 : index
    %c0_215 = arith.constant 0 : index
    %c0_216 = arith.constant 0 : index
    %222 = vector.load %arg3[%c4_214, %c0_215, %c0_216] : memref<5x288x512xbf16, #tpu.memory_space<vmem>>, vector<1x288x512xbf16>
    %223 = vector.shape_cast %222 : vector<1x288x512xbf16> to vector<288x512xbf16>
    %cst_217 = arith.constant dense<0.000000e+00> : vector<128x512xf32>
    %224 = tpu.matmul %221, %223, %cst_217 {dimension_numbers = #tpu.dot_dimension_numbers<[1], [0], [0], [1], [0, 0, 1, 1], [], []>} : vector<128x288xbf16>, vector<288x512xbf16>, vector<128x512xf32> -> vector<128x512xf32>
    %225 = arith.addf %218, %224 : vector<128x512xf32>
    %226 = vector.broadcast %4 : vector<1x512xf32> to vector<128x512xf32>
    %227 = arith.mulf %225, %226 : vector<128x512xf32>
    %228 = vector.broadcast %5 : vector<1x512xf32> to vector<128x512xf32>
    %229 = arith.addf %227, %228 : vector<128x512xf32>
    %cst_218 = arith.constant 0.000000e+00 : f32
    %230 = vector.broadcast %cst_218 : f32 to vector<128x512xf32>
    %231 = arith.maximumf %229, %230 : vector<128x512xf32>
    %232 = vector.extract_strided_slice %231 {offsets = [0, 0], sizes = [128, 256], strides = [1, 1]} : vector<128x512xf32> to vector<128x256xf32>
    %233 = vector.extract_strided_slice %231 {offsets = [0, 256], sizes = [128, 256], strides = [1, 1]} : vector<128x512xf32> to vector<128x256xf32>
    %234 = arith.maximumf %232, %233 : vector<128x256xf32>
    %c1_219 = arith.constant 1 : index
    %c0_220 = arith.constant 0 : index
    %c0_221 = arith.constant 0 : index
    %c0_222 = arith.constant 0 : index
    %235 = vector.load %arg9[%c1_219, %c0_220, %c0_221, %c0_222] : memref<2x10x16x288xbf16, #tpu.memory_space<vmem>>, vector<1x8x16x288xbf16>
    %236 = vector.shape_cast %235 : vector<1x8x16x288xbf16> to vector<8x16x288xbf16>
    %237 = vector.shape_cast %236 : vector<8x16x288xbf16> to vector<128x288xbf16>
    %c0_223 = arith.constant 0 : index
    %c0_224 = arith.constant 0 : index
    %c0_225 = arith.constant 0 : index
    %238 = vector.load %arg3[%c0_223, %c0_224, %c0_225] : memref<5x288x512xbf16, #tpu.memory_space<vmem>>, vector<1x288x512xbf16>
    %239 = vector.shape_cast %238 : vector<1x288x512xbf16> to vector<288x512xbf16>
    %cst_226 = arith.constant dense<0.000000e+00> : vector<128x512xf32>
    %240 = tpu.matmul %237, %239, %cst_226 {dimension_numbers = #tpu.dot_dimension_numbers<[1], [0], [0], [1], [0, 0, 1, 1], [], []>} : vector<128x288xbf16>, vector<288x512xbf16>, vector<128x512xf32> -> vector<128x512xf32>
    %c0_227 = arith.constant 0 : index
    %c1_228 = arith.constant 1 : index
    %c0_229 = arith.constant 0 : index
    %c0_230 = arith.constant 0 : index
    %241 = vector.load %arg9[%c0_227, %c1_228, %c0_229, %c0_230] : memref<2x10x16x288xbf16, #tpu.memory_space<vmem>>, vector<1x8x16x288xbf16>
    %242 = vector.shape_cast %241 : vector<1x8x16x288xbf16> to vector<8x16x288xbf16>
    %243 = vector.shape_cast %242 : vector<8x16x288xbf16> to vector<128x288xbf16>
    %c1_231 = arith.constant 1 : index
    %c0_232 = arith.constant 0 : index
    %c0_233 = arith.constant 0 : index
    %244 = vector.load %arg3[%c1_231, %c0_232, %c0_233] : memref<5x288x512xbf16, #tpu.memory_space<vmem>>, vector<1x288x512xbf16>
    %245 = vector.shape_cast %244 : vector<1x288x512xbf16> to vector<288x512xbf16>
    %cst_234 = arith.constant dense<0.000000e+00> : vector<128x512xf32>
    %246 = tpu.matmul %243, %245, %cst_234 {dimension_numbers = #tpu.dot_dimension_numbers<[1], [0], [0], [1], [0, 0, 1, 1], [], []>} : vector<128x288xbf16>, vector<288x512xbf16>, vector<128x512xf32> -> vector<128x512xf32>
    %247 = arith.addf %240, %246 : vector<128x512xf32>
    %c1_235 = arith.constant 1 : index
    %c1_236 = arith.constant 1 : index
    %c0_237 = arith.constant 0 : index
    %c0_238 = arith.constant 0 : index
    %248 = vector.load %arg9[%c1_235, %c1_236, %c0_237, %c0_238] : memref<2x10x16x288xbf16, #tpu.memory_space<vmem>>, vector<1x8x16x288xbf16>
    %249 = vector.shape_cast %248 : vector<1x8x16x288xbf16> to vector<8x16x288xbf16>
    %250 = vector.shape_cast %249 : vector<8x16x288xbf16> to vector<128x288xbf16>
    %c2_239 = arith.constant 2 : index
    %c0_240 = arith.constant 0 : index
    %c0_241 = arith.constant 0 : index
    %251 = vector.load %arg3[%c2_239, %c0_240, %c0_241] : memref<5x288x512xbf16, #tpu.memory_space<vmem>>, vector<1x288x512xbf16>
    %252 = vector.shape_cast %251 : vector<1x288x512xbf16> to vector<288x512xbf16>
    %cst_242 = arith.constant dense<0.000000e+00> : vector<128x512xf32>
    %253 = tpu.matmul %250, %252, %cst_242 {dimension_numbers = #tpu.dot_dimension_numbers<[1], [0], [0], [1], [0, 0, 1, 1], [], []>} : vector<128x288xbf16>, vector<288x512xbf16>, vector<128x512xf32> -> vector<128x512xf32>
    %254 = arith.addf %247, %253 : vector<128x512xf32>
    %c0_243 = arith.constant 0 : index
    %c2_244 = arith.constant 2 : index
    %c0_245 = arith.constant 0 : index
    %c0_246 = arith.constant 0 : index
    %255 = vector.load %arg9[%c0_243, %c2_244, %c0_245, %c0_246] : memref<2x10x16x288xbf16, #tpu.memory_space<vmem>>, vector<1x8x16x288xbf16>
    %256 = vector.shape_cast %255 : vector<1x8x16x288xbf16> to vector<8x16x288xbf16>
    %257 = vector.shape_cast %256 : vector<8x16x288xbf16> to vector<128x288xbf16>
    %c3_247 = arith.constant 3 : index
    %c0_248 = arith.constant 0 : index
    %c0_249 = arith.constant 0 : index
    %258 = vector.load %arg3[%c3_247, %c0_248, %c0_249] : memref<5x288x512xbf16, #tpu.memory_space<vmem>>, vector<1x288x512xbf16>
    %259 = vector.shape_cast %258 : vector<1x288x512xbf16> to vector<288x512xbf16>
    %cst_250 = arith.constant dense<0.000000e+00> : vector<128x512xf32>
    %260 = tpu.matmul %257, %259, %cst_250 {dimension_numbers = #tpu.dot_dimension_numbers<[1], [0], [0], [1], [0, 0, 1, 1], [], []>} : vector<128x288xbf16>, vector<288x512xbf16>, vector<128x512xf32> -> vector<128x512xf32>
    %261 = arith.addf %254, %260 : vector<128x512xf32>
    %c1_251 = arith.constant 1 : index
    %c2_252 = arith.constant 2 : index
    %c0_253 = arith.constant 0 : index
    %c0_254 = arith.constant 0 : index
    %262 = vector.load %arg9[%c1_251, %c2_252, %c0_253, %c0_254] : memref<2x10x16x288xbf16, #tpu.memory_space<vmem>>, vector<1x8x16x288xbf16>
    %263 = vector.shape_cast %262 : vector<1x8x16x288xbf16> to vector<8x16x288xbf16>
    %264 = vector.shape_cast %263 : vector<8x16x288xbf16> to vector<128x288xbf16>
    %c4_255 = arith.constant 4 : index
    %c0_256 = arith.constant 0 : index
    %c0_257 = arith.constant 0 : index
    %265 = vector.load %arg3[%c4_255, %c0_256, %c0_257] : memref<5x288x512xbf16, #tpu.memory_space<vmem>>, vector<1x288x512xbf16>
    %266 = vector.shape_cast %265 : vector<1x288x512xbf16> to vector<288x512xbf16>
    %cst_258 = arith.constant dense<0.000000e+00> : vector<128x512xf32>
    %267 = tpu.matmul %264, %266, %cst_258 {dimension_numbers = #tpu.dot_dimension_numbers<[1], [0], [0], [1], [0, 0, 1, 1], [], []>} : vector<128x288xbf16>, vector<288x512xbf16>, vector<128x512xf32> -> vector<128x512xf32>
    %268 = arith.addf %261, %267 : vector<128x512xf32>
    %269 = vector.broadcast %4 : vector<1x512xf32> to vector<128x512xf32>
    %270 = arith.mulf %268, %269 : vector<128x512xf32>
    %271 = vector.broadcast %5 : vector<1x512xf32> to vector<128x512xf32>
    %272 = arith.addf %270, %271 : vector<128x512xf32>
    %cst_259 = arith.constant 0.000000e+00 : f32
    %273 = vector.broadcast %cst_259 : f32 to vector<128x512xf32>
    %274 = arith.maximumf %272, %273 : vector<128x512xf32>
    %275 = vector.extract_strided_slice %274 {offsets = [0, 0], sizes = [128, 256], strides = [1, 1]} : vector<128x512xf32> to vector<128x256xf32>
    %276 = vector.extract_strided_slice %274 {offsets = [0, 256], sizes = [128, 256], strides = [1, 1]} : vector<128x512xf32> to vector<128x256xf32>
    %277 = arith.maximumf %275, %276 : vector<128x256xf32>
    %278 = arith.maximumf %234, %277 : vector<128x256xf32>
    %279 = arith.truncf %278 : vector<128x256xf32> to vector<128x256xbf16>
    %280 = vector.shape_cast %279 : vector<128x256xbf16> to vector<8x16x256xbf16>
    %281 = vector.extract_strided_slice %280 {offsets = [0, 0, 0], sizes = [1, 16, 256], strides = [1, 1, 1]} : vector<8x16x256xbf16> to vector<1x16x256xbf16>
    %282 = vector.shape_cast %281 : vector<1x16x256xbf16> to vector<16x256xbf16>
    %c0_260 = arith.constant 0 : index
    %c0_261 = arith.constant 0 : index
    %c0_262 = arith.constant 0 : index
    %283 = vector.load %arg4[%c0_260, %c0_261, %c0_262] : memref<7x256x128xbf16, #tpu.memory_space<vmem>>, vector<1x256x128xbf16>
    %284 = vector.shape_cast %283 : vector<1x256x128xbf16> to vector<256x128xbf16>
    %cst_263 = arith.constant dense<0.000000e+00> : vector<16x128xf32>
    %285 = tpu.matmul %282, %284, %cst_263 {dimension_numbers = #tpu.dot_dimension_numbers<[1], [0], [0], [1], [0, 0, 1, 1], [], []>} : vector<16x256xbf16>, vector<256x128xbf16>, vector<16x128xf32> -> vector<16x128xf32>
    %286 = vector.extract_strided_slice %280 {offsets = [1, 0, 0], sizes = [1, 16, 256], strides = [1, 1, 1]} : vector<8x16x256xbf16> to vector<1x16x256xbf16>
    %287 = vector.shape_cast %286 : vector<1x16x256xbf16> to vector<16x256xbf16>
    %c1_264 = arith.constant 1 : index
    %c0_265 = arith.constant 0 : index
    %c0_266 = arith.constant 0 : index
    %288 = vector.load %arg4[%c1_264, %c0_265, %c0_266] : memref<7x256x128xbf16, #tpu.memory_space<vmem>>, vector<1x256x128xbf16>
    %289 = vector.shape_cast %288 : vector<1x256x128xbf16> to vector<256x128xbf16>
    %cst_267 = arith.constant dense<0.000000e+00> : vector<16x128xf32>
    %290 = tpu.matmul %287, %289, %cst_267 {dimension_numbers = #tpu.dot_dimension_numbers<[1], [0], [0], [1], [0, 0, 1, 1], [], []>} : vector<16x256xbf16>, vector<256x128xbf16>, vector<16x128xf32> -> vector<16x128xf32>
    %291 = arith.addf %285, %290 : vector<16x128xf32>
    %292 = vector.extract_strided_slice %280 {offsets = [2, 0, 0], sizes = [1, 16, 256], strides = [1, 1, 1]} : vector<8x16x256xbf16> to vector<1x16x256xbf16>
    %293 = vector.shape_cast %292 : vector<1x16x256xbf16> to vector<16x256xbf16>
    %c2_268 = arith.constant 2 : index
    %c0_269 = arith.constant 0 : index
    %c0_270 = arith.constant 0 : index
    %294 = vector.load %arg4[%c2_268, %c0_269, %c0_270] : memref<7x256x128xbf16, #tpu.memory_space<vmem>>, vector<1x256x128xbf16>
    %295 = vector.shape_cast %294 : vector<1x256x128xbf16> to vector<256x128xbf16>
    %cst_271 = arith.constant dense<0.000000e+00> : vector<16x128xf32>
    %296 = tpu.matmul %293, %295, %cst_271 {dimension_numbers = #tpu.dot_dimension_numbers<[1], [0], [0], [1], [0, 0, 1, 1], [], []>} : vector<16x256xbf16>, vector<256x128xbf16>, vector<16x128xf32> -> vector<16x128xf32>
    %297 = arith.addf %291, %296 : vector<16x128xf32>
    %298 = vector.extract_strided_slice %280 {offsets = [3, 0, 0], sizes = [1, 16, 256], strides = [1, 1, 1]} : vector<8x16x256xbf16> to vector<1x16x256xbf16>
    %299 = vector.shape_cast %298 : vector<1x16x256xbf16> to vector<16x256xbf16>
    %c3_272 = arith.constant 3 : index
    %c0_273 = arith.constant 0 : index
    %c0_274 = arith.constant 0 : index
    %300 = vector.load %arg4[%c3_272, %c0_273, %c0_274] : memref<7x256x128xbf16, #tpu.memory_space<vmem>>, vector<1x256x128xbf16>
    %301 = vector.shape_cast %300 : vector<1x256x128xbf16> to vector<256x128xbf16>
    %cst_275 = arith.constant dense<0.000000e+00> : vector<16x128xf32>
    %302 = tpu.matmul %299, %301, %cst_275 {dimension_numbers = #tpu.dot_dimension_numbers<[1], [0], [0], [1], [0, 0, 1, 1], [], []>} : vector<16x256xbf16>, vector<256x128xbf16>, vector<16x128xf32> -> vector<16x128xf32>
    %303 = arith.addf %297, %302 : vector<16x128xf32>
    %304 = vector.extract_strided_slice %280 {offsets = [4, 0, 0], sizes = [1, 16, 256], strides = [1, 1, 1]} : vector<8x16x256xbf16> to vector<1x16x256xbf16>
    %305 = vector.shape_cast %304 : vector<1x16x256xbf16> to vector<16x256xbf16>
    %c4_276 = arith.constant 4 : index
    %c0_277 = arith.constant 0 : index
    %c0_278 = arith.constant 0 : index
    %306 = vector.load %arg4[%c4_276, %c0_277, %c0_278] : memref<7x256x128xbf16, #tpu.memory_space<vmem>>, vector<1x256x128xbf16>
    %307 = vector.shape_cast %306 : vector<1x256x128xbf16> to vector<256x128xbf16>
    %cst_279 = arith.constant dense<0.000000e+00> : vector<16x128xf32>
    %308 = tpu.matmul %305, %307, %cst_279 {dimension_numbers = #tpu.dot_dimension_numbers<[1], [0], [0], [1], [0, 0, 1, 1], [], []>} : vector<16x256xbf16>, vector<256x128xbf16>, vector<16x128xf32> -> vector<16x128xf32>
    %309 = arith.addf %303, %308 : vector<16x128xf32>
    %310 = vector.extract_strided_slice %280 {offsets = [5, 0, 0], sizes = [1, 16, 256], strides = [1, 1, 1]} : vector<8x16x256xbf16> to vector<1x16x256xbf16>
    %311 = vector.shape_cast %310 : vector<1x16x256xbf16> to vector<16x256xbf16>
    %c5 = arith.constant 5 : index
    %c0_280 = arith.constant 0 : index
    %c0_281 = arith.constant 0 : index
    %312 = vector.load %arg4[%c5, %c0_280, %c0_281] : memref<7x256x128xbf16, #tpu.memory_space<vmem>>, vector<1x256x128xbf16>
    %313 = vector.shape_cast %312 : vector<1x256x128xbf16> to vector<256x128xbf16>
    %cst_282 = arith.constant dense<0.000000e+00> : vector<16x128xf32>
    %314 = tpu.matmul %311, %313, %cst_282 {dimension_numbers = #tpu.dot_dimension_numbers<[1], [0], [0], [1], [0, 0, 1, 1], [], []>} : vector<16x256xbf16>, vector<256x128xbf16>, vector<16x128xf32> -> vector<16x128xf32>
    %315 = arith.addf %309, %314 : vector<16x128xf32>
    %316 = vector.extract_strided_slice %280 {offsets = [6, 0, 0], sizes = [1, 16, 256], strides = [1, 1, 1]} : vector<8x16x256xbf16> to vector<1x16x256xbf16>
    %317 = vector.shape_cast %316 : vector<1x16x256xbf16> to vector<16x256xbf16>
    %c6 = arith.constant 6 : index
    %c0_283 = arith.constant 0 : index
    %c0_284 = arith.constant 0 : index
    %318 = vector.load %arg4[%c6, %c0_283, %c0_284] : memref<7x256x128xbf16, #tpu.memory_space<vmem>>, vector<1x256x128xbf16>
    %319 = vector.shape_cast %318 : vector<1x256x128xbf16> to vector<256x128xbf16>
    %cst_285 = arith.constant dense<0.000000e+00> : vector<16x128xf32>
    %320 = tpu.matmul %317, %319, %cst_285 {dimension_numbers = #tpu.dot_dimension_numbers<[1], [0], [0], [1], [0, 0, 1, 1], [], []>} : vector<16x256xbf16>, vector<256x128xbf16>, vector<16x128xf32> -> vector<16x128xf32>
    %321 = arith.addf %315, %320 : vector<16x128xf32>
    %c0_286 = arith.constant 0 : index
    %c0_287 = arith.constant 0 : index
    %322 = vector.load %arg7[%c0_286, %c0_287] : memref<1x128xf32, #tpu.memory_space<vmem>>, vector<1x128xf32>
    %323 = vector.broadcast %322 : vector<1x128xf32> to vector<16x128xf32>
    %324 = arith.addf %321, %323 : vector<16x128xf32>
    %c0_288 = arith.constant 0 : index
    %c0_289 = arith.constant 0 : index
    %325 = vector.load %arg8[%c0_288, %c0_289] : memref<16x128xf32, #tpu.memory_space<vmem>>, vector<16x128xf32>
    tpu.vector_store %arg8[%c0_288, %c0_289], %324 {strides = array<i32>} : memref<16x128xf32, #tpu.memory_space<vmem>>, vector<16x128xf32>,
    return
  }
  func.func @transform_0(%arg0: i32) -> (i32, i32, i32, i32) {
    %c0_i32 = arith.constant 0 : i32
    %c0_i32_0 = arith.constant 0 : i32
    %c0_i32_1 = arith.constant 0 : i32
    %c0_i32_2 = arith.constant 0 : i32
    return %c0_i32, %c0_i32_0, %arg0, %c0_i32_1 : i32, i32, i32, i32
  }
  func.func @transform_1(%arg0: i32) -> (i32, i32, i32) {
    %c0_i32 = arith.constant 0 : i32
    %c0_i32_0 = arith.constant 0 : i32
    %c0_i32_1 = arith.constant 0 : i32
    %c0_i32_2 = arith.constant 0 : i32
    return %c0_i32, %c0_i32_0, %c0_i32_1 : i32, i32, i32
  }
  func.func @transform_2(%arg0: i32) -> (i32, i32, i32) {
    %c0_i32 = arith.constant 0 : i32
    %c0_i32_0 = arith.constant 0 : i32
    %c0_i32_1 = arith.constant 0 : i32
    %c0_i32_2 = arith.constant 0 : i32
    return %c0_i32, %c0_i32_0, %c0_i32_1 : i32, i32, i32
  }
  func.func @transform_3(%arg0: i32) -> (i32, i32, i32) {
    %c0_i32 = arith.constant 0 : i32
    %c0_i32_0 = arith.constant 0 : i32
    %c0_i32_1 = arith.constant 0 : i32
    %c0_i32_2 = arith.constant 0 : i32
    return %c0_i32, %c0_i32_0, %c0_i32_1 : i32, i32, i32
  }
  func.func @transform_4(%arg0: i32) -> (i32, i32) {
    %c0_i32 = arith.constant 0 : i32
    %c0_i32_0 = arith.constant 0 : i32
    %c0_i32_1 = arith.constant 0 : i32
    return %c0_i32, %c0_i32_0 : i32, i32
  }
  func.func @transform_5(%arg0: i32) -> (i32, i32) {
    %c0_i32 = arith.constant 0 : i32
    %c0_i32_0 = arith.constant 0 : i32
    %c0_i32_1 = arith.constant 0 : i32
    return %c0_i32, %c0_i32_0 : i32, i32
  }
  func.func @transform_6(%arg0: i32) -> (i32, i32) {
    %c0_i32 = arith.constant 0 : i32
    %c0_i32_0 = arith.constant 0 : i32
    %c0_i32_1 = arith.constant 0 : i32
    return %c0_i32, %c0_i32_0 : i32, i32
  }
  func.func @transform_7(%arg0: i32) -> (i32, i32) {
    %c0_i32 = arith.constant 0 : i32
    %c0_i32_0 = arith.constant 0 : i32
    return %arg0, %c0_i32 : i32, i32
  }
}

</mosaic_0001>

<bundles_post_ra>
// kernel: convnet_forward.1
= control target key start
LH: loop header
LB: loop body
LE: loop exit
PB: predicated region body
PF: predicated region fallthrough
CT: control target
= control target key end

     0   :  { %12 = vsyncpa [#allocation4], 0  ;;  %s24989_s0 = inlined_call_operand.vmem [shape: bf16[4,9,16,32], index: 0, kind: input, shape index: {}]   ;;  %s24990_s1 = inlined_call_operand.hbm [shape: bf16[5,32,512], index: 1, kind: input, shape index: {}]   ;;  %s24991_s2 = inlined_call_operand.hbm [shape: bf16[5,288,512], index: 2, kind: input, shape index: {}]   ;;  %s24992_s3 = inlined_call_operand.hbm [shape: bf16[7,256,128], index: 3, kind: input, shape index: {}]   ;;  %s24993_s4 = inlined_call_operand.hbm [shape: f32[2,512], index: 4, kind: input, shape index: {}]   ;;  %s24994_s5 = inlined_call_operand.hbm [shape: f32[2,512], index: 5, kind: input, shape index: {}]   ;;  %s24995_s6 = inlined_call_operand.hbm [shape: f32[1,128], index: 6, kind: input, shape index: {}]   ;;  %s24996_s7 = inlined_call_operand.vmem [shape: f32[16,128], index: 7, kind: output, shape index: {}]  }
   0x1   :  { %13 = vsyncpa [#allocation6], 0 }
   0x2   :  { %14 = vsyncpa [#allocation9], 0 }
   0x3   :  { %15 = vsyncpa [#allocation12], 0  ;;  %s21529_s24 = smov [#allocation5]   ;;  %s21530_s26 = smov [#allocation8]  }
   0x4   :  { %s35_s25 = sshll.u32 %s21529_s24, 4  ;;  %s60_s27 = sshll.u32 %s21530_s26, 4  ;;  %s36_s25 = int_to_ptr.vmem [resolvable:$true] %s35_s25  ;;  %s61_s27 = int_to_ptr.vmem [resolvable:$true] %s60_s27 }
   0x5   :  { %s21389_s30 = scalar_lea.hbm %s24991_s2, 46080 }
   0x6   :  { %p21390_p0 = scmp.ne.s32.totalorder %s24991_s2, %s21389_s30  ;;  %p21393_p1 = scmp.lt.u32.totalorder %s21389_s30, %s24991_s2 }
   0x8   :  { %p21395_p2 = pnand %p21393_p1, %p21390_p0 }
   0xa   :  { %21398 = shalt.err (!%p21395_p2)
}
   0xb   :  { %s21399_s12 = scalar_lea.vmem %s36_s25, 46080  ;;  %p21404_p4 = scmp.lt.s32.totalorder %s36_s25, %s36_s25 }
   0xc   :  { %p21400_p3 = scmp.ne.s32.totalorder %s36_s25, %s21399_s12  ;;  %p21405_p5 = scmp.lt.s32.totalorder %s21399_s12, %s21399_s12 }
   0xe   :  { %p21406_p6 = por %p21405_p5, %p21404_p4 }
  0x10   :  { %p21407_p7 = pnand %p21406_p6, %p21400_p3 }
  0x12   :  { %21410 = shalt.err (!%p21407_p7)
}
  0x13   :  { %s21531_s13 = smov 256   ;;  %s21532_s14 = smov 16  }
  0x14   :  { %41 = dma.hbm_to_vmem [thread:$0]  %s24991_s2, 46080, %s36_s25, [#allocation6], %s21531_s13, %s21531_s13, %s21532_s14  }
  0x15   :  { %s21411_s19 = scalar_lea.hbm %s24993_s4, 128 }
  0x16   :  { %p21412_p8 = scmp.ne.s32.totalorder %s24993_s4, %s21411_s19  ;;  %p21415_p9 = scmp.lt.u32.totalorder %s21411_s19, %s24993_s4 }
  0x18   :  { %p21417_p10 = pnand %p21415_p9, %p21412_p8 }
  0x1a   :  { %21420 = shalt.err (!%p21417_p10)
}
  0x1b   :  { %s21421_s24 = scalar_lea.vmem %s61_s27, 128  ;;  %p21426_p12 = scmp.lt.s32.totalorder %s61_s27, %s61_s27 }
  0x1c   :  { %p21422_p11 = scmp.ne.s32.totalorder %s61_s27, %s21421_s24  ;;  %p21427_p13 = scmp.lt.s32.totalorder %s21421_s24, %s21421_s24 }
  0x1e   :  { %p21428_p0 = por %p21427_p13, %p21426_p12 }
  0x20   :  { %p21429_p1 = pnand %p21428_p0, %p21422_p11 }
  0x22   :  { %21432 = shalt.err (!%p21429_p1)
}
  0x23   :  { %63 = dma.hbm_to_vmem [thread:$0]  %s24993_s4, 128, %s61_s27, [#allocation9]  }
  0x24   :  { %s21533_s26 = smov [#allocation3]   ;;  %s21534_s29 = smov [#allocation7]  }
  0x25   :  { %s23_s28 = sshll.u32 %s21533_s26, 4  ;;  %s47_s30 = sshll.u32 %s21534_s29, 4  ;;  %s24_s28 = int_to_ptr.vmem [resolvable:$true] %s23_s28  ;;  %s21608_s30 = int_to_ptr.vmem [resolvable:$true] %s47_s30 }
  0x26   :  { %s21433_s10 = scalar_lea.hbm %s24990_s1, 5120 }
  0x27   :  { %p21434_p2 = scmp.ne.s32.totalorder %s24990_s1, %s21433_s10  ;;  %p21437_p3 = scmp.lt.u32.totalorder %s21433_s10, %s24990_s1 }
  0x29   :  { %p21439_p4 = pnand %p21437_p3, %p21434_p2 }
  0x2b   :  { %21442 = shalt.err (!%p21439_p4)
}
  0x2c   :  { %s21443_s4 = scalar_lea.vmem %s24_s28, 5120  ;;  %p21448_p6 = scmp.lt.s32.totalorder %s24_s28, %s24_s28 }
  0x2d   :  { %p21444_p5 = scmp.ne.s32.totalorder %s24_s28, %s21443_s4  ;;  %p21449_p7 = scmp.lt.s32.totalorder %s21443_s4, %s21443_s4 }
  0x2f   :  { %p21450_p8 = por %p21449_p7, %p21448_p6 }
  0x31   :  { %p21451_p9 = pnand %p21450_p8, %p21444_p5 }
  0x33   :  { %21454 = shalt.err (!%p21451_p9)
}
  0x34   :  { %29 = dma.hbm_to_vmem [thread:$0]  %s24990_s1, 5120, %s24_s28, [#allocation4], %s21531_s13, %s21531_s13, %s21532_s14  }
  0x35   :  { %s21455_s20 = scalar_lea.hbm %s24992_s3, 14336 }
  0x36   :  { %p21456_p10 = scmp.ne.s32.totalorder %s24992_s3, %s21455_s20  ;;  %p21459_p11 = scmp.lt.u32.totalorder %s21455_s20, %s24992_s3 }
  0x38   :  { %p21461_p12 = pnand %p21459_p11, %p21456_p10 }
  0x3a   :  { %21464 = shalt.err (!%p21461_p12)
}
  0x3b   :  { %s21465_s2 = scalar_lea.vmem %s21608_s30, 14336  ;;  %p21470_p0 = scmp.lt.s32.totalorder %s21608_s30, %s21608_s30 }
  0x3c   :  { %p21466_p13 = scmp.ne.s32.totalorder %s21608_s30, %s21465_s2  ;;  %p21471_p1 = scmp.lt.s32.totalorder %s21465_s2, %s21465_s2 }
  0x3e   :  { %p21472_p2 = por %p21471_p1, %p21470_p0 }
  0x40   :  { %p21473_p3 = pnand %p21472_p2, %p21466_p13 }
  0x42   :  { %21476 = shalt.err (!%p21473_p3)
}
  0x43   :  { %s21535_s1 = smov 64   ;;  %s21536_s13 = smov 4  }
  0x44   :  { %53 = dma.hbm_to_vmem [thread:$0]  %s24992_s3, 14336, %s21608_s30, [#allocation6], %s21535_s1, %s21535_s1, %s21536_s13  }
  0x45   :  { %s21537_s26 = smov [#allocation10]   ;;  %s21538_s29 = smov [#allocation11]  }
  0x46   :  { %s70_s28 = sshll.u32 %s21537_s26, 4  ;;  %s80_s8 = sshll.u32 %s21538_s29, 4  ;;  %s71_s28 = int_to_ptr.vmem [resolvable:$true] %s70_s28  ;;  %s81_s8 = int_to_ptr.vmem [resolvable:$true] %s80_s8 }
  0x47   :  { %s21477_s11 = scalar_lea.hbm %s24994_s5, 128 }
  0x48   :  { %p21478_p4 = scmp.ne.s32.totalorder %s24994_s5, %s21477_s11  ;;  %p21481_p5 = scmp.lt.u32.totalorder %s21477_s11, %s24994_s5 }
  0x4a   :  { %p21483_p6 = pnand %p21481_p5, %p21478_p4 }
  0x4c   :  { %21486 = shalt.err (!%p21483_p6)
}
  0x4d   :  { %s21487_s3 = scalar_lea.vmem %s71_s28, 128  ;;  %p21492_p8 = scmp.lt.s32.totalorder %s71_s28, %s71_s28 }
  0x4e   :  { %p21488_p7 = scmp.ne.s32.totalorder %s71_s28, %s21487_s3  ;;  %p21493_p9 = scmp.lt.s32.totalorder %s21487_s3, %s21487_s3 }
  0x50   :  { %p21494_p10 = por %p21493_p9, %p21492_p8 }
  0x52   :  { %p21495_p11 = pnand %p21494_p10, %p21488_p7 }
  0x54   :  { %21498 = shalt.err (!%p21495_p11)
}
  0x55   :  { %73 = dma.hbm_to_vmem [thread:$0]  %s24994_s5, 128, %s71_s28, [#allocation9]  }
  0x56   :  { %s21499_s19 = scalar_lea.hbm %s24995_s6, 16 }
  0x57   :  { %p21500_p12 = scmp.ne.s32.totalorder %s24995_s6, %s21499_s19  ;;  %p21503_p13 = scmp.lt.u32.totalorder %s21499_s19, %s24995_s6 }
  0x59   :  { %p21505_p0 = pnand %p21503_p13, %p21500_p12 }
  0x5b   :  { %21508 = shalt.err (!%p21505_p0)
}
  0x5c   :  { %s21509_s24 = scalar_lea.vmem %s81_s8, 16  ;;  %s21513_s2 = scalar_lea.vmem %s81_s8, 32 }
  0x5d   :  { %p21510_p1 = scmp.ne.s32.totalorder %s81_s8, %s21509_s24  ;;  %p21514_p2 = scmp.lt.s32.totalorder %s81_s8, %s81_s8 }
  0x5e   :  { %p21515_p3 = scmp.lt.s32.totalorder %s21513_s2, %s21509_s24 }
  0x60   :  { %p21516_p4 = por %p21515_p3, %p21514_p2 }
  0x62   :  { %p21517_p5 = pnand %p21516_p4, %p21510_p1 }
  0x64   :  { %21520 = shalt.err (!%p21517_p5)
}
  0x65   :  { %83 = dma.hbm_to_vmem [thread:$0]  %s24995_s6, 16, %s81_s8, [#allocation12]  }
  0x66   :  { %21521 = dma.done.wait [#allocation4], 5120  }
  0x67   :  { %21522 = vsyncadd [#allocation4], 4294962176 }
  0x68   :  { %21523 = dma.done.wait [#allocation6], 60416  }
  0x69   :  { %21524 = vsyncadd [#allocation6], 4294906880 }
  0x6a   :  { %21525 = dma.done.wait [#allocation9], 256  }
  0x6b   :  { %21526 = vsyncadd [#allocation9], 4294967040 }
  0x6c   :  { %21527 = dma.done.wait [#allocation12], 16  }
  0x6d   :  { %21528 = vsyncadd [#allocation12], 4294967280  ;;  %vm105_vm0 = vcmask 261120   ;;  %v21539_v0 = vmov 0   ;;  %v19945_v1 = vld [vmem:[#allocation3 + $0x44] ss:$16 sps:$4 sm:$0xff]  }
  0x6e   :  { %356 = vmatprep.mubr.bf16.mxu0 %v21539_v0  ;;  %103 = vst [vmem:[#allocation2] sm:$0xff] %v21539_v0  ;;  %107 = vst [vmem:[#allocation2 + $0x18] sm:$0xff] %v21539_v0  ;;  %416 = vmatprep.mubr.bf16.mxu1 %v21539_v0  ;;  %v19947_v2 = vld [vmem:[#allocation3 + $0x40] ss:$16 sps:$4 sm:$0xff]   ;;  %v19948_v3 = vld [vmem:[#allocation3 + $0x64] ss:$16 sps:$4 sm:$0xff]  }
  0x6f   :  { %110 = vst [vmem:[#allocation2 + $0x30] sm:$0xff] %v21539_v0  ;;  %113 = vst [vmem:[#allocation2 + $0x48] sm:$0xff] %v21539_v0  ;;  %324 = vmatprep.subr.bf16.mxu0 %v19945_v1  ;;  %18025 = vmatprep.subr.bf16.mxu1 %v19945_v1  ;;  %v19950_v4 = vld [vmem:[#allocation3 + $0x60] ss:$16 sps:$4 sm:$0xff]   ;;  %v19951_v5 = vld [vmem:[%s24989_s0 + $0x48] sm:$0xff]   ;;  %vm3956_vm1 = vcmask 1047808  }
  0x70   :  { %116 = vst [vmem:[#allocation2 + $0x60] sm:$0xff] %v21539_v0  ;;  %119 = vst [vmem:[#allocation2 + $0x78] sm:$0xff] %v21539_v0  ;;  %325 = vmatpush1.bf16.msra.mxu0 %v19947_v2  ;;  %18027 = vmatpush1.bf16.msra.mxu1 %v19947_v2  ;;  %v19955_v6 = vld [vmem:[#allocation3 + $0x4c] ss:$16 sps:$4 sm:$0xff]   ;;  %v19953_v8 = vld [vmem:[#allocation3 + $0x48] ss:$16 sps:$4 sm:$0xff]  }
  0x71   :  { %122 = vst [vmem:[#allocation2 + $0x90] sm:$0xff] %v21539_v0  ;;  %125 = vst [vmem:[#allocation2 + $0xa8] sm:$0xff] %v21539_v0  ;;  %326 = vmatprep.subr.bf16.mxu0 %v19948_v3  ;;  %18026 = vmatprep.subr.bf16.mxu1 %v19948_v3  ;;  %v21729_v7 = vld [vmem:[%s24989_s0 + $0x78] sm:$0xff]   ;;  %v19956_v11 = vld [vmem:[%s24989_s0 + $0x50] sm:$0xff]  }
  0x72   :  { %137 = vst [vmem:[#allocation2 + $0x108] sm:$0xff] %v21539_v0  ;;  %140 = vst [vmem:[#allocation2 + $0x120] sm:$0xff] %v21539_v0  ;;  %v19960_v9 = vld [vmem:[#allocation3 + $0x6c] ss:$16 sps:$4 sm:$0xff]   ;;  %v19958_v10 = vld [vmem:[#allocation3 + $0x68] ss:$16 sps:$4 sm:$0xff]  }
  0x73   :  { %143 = vst [vmem:[#allocation2 + $0x138] sm:$0xff] %v21539_v0  ;;  %146 = vst [vmem:[#allocation2 + $0x150] sm:$0xff] %v21539_v0  ;;  %v19964_v12 = vld [vmem:[#allocation3 + $0xc] ss:$16 sps:$4 sm:$0xff]   ;;  %v21742_v13 = vld [vmem:[%s24989_s0 + $0x80] sm:$0xff]  }
  0x74   :  { %149 = vst [vmem:[#allocation2 + $0x168] sm:$0xff] %v21539_v0  ;;  %152 = vst [vmem:[#allocation2 + $0x180] sm:$0xff] %v21539_v0  ;;  %327 = vmatpush1.bf16.msra.mxu0 %v19950_v4  ;;  %18028 = vmatpush1.bf16.msra.mxu1 %v19950_v4  ;;  %v19967_v14 = vld [vmem:[#allocation3] ss:$16 sps:$4 sm:$0xff]   ;;  %v19969_v15 = vld [vmem:[#allocation3 + $0x4] ss:$16 sps:$4 sm:$0xff]  }
  0x75   :  { %155 = vst [vmem:[#allocation2 + $0x198] sm:$0xff] %v21539_v0  ;;  %106 = vst.msk [vmem:[#allocation2 + $0x10] sm:$0xff] %vm105_vm0, %v21539_v0  ;;  %433 = vmatprep.subr.bf16.mxu1 %v19955_v6  ;;  %646 = vmatprep.subr.bf16.mxu0 %v19969_v15  ;;  %v19971_v16 = vld [vmem:[#allocation3 + $0x20] ss:$16 sps:$4 sm:$0xff]   ;;  %v19973_v17 = vld [vmem:[#allocation3 + $0x24] ss:$16 sps:$4 sm:$0xff]  }
  0x76   :  { %109 = vst.msk [vmem:[#allocation2 + $0x28] sm:$0xff] %vm105_vm0, %v21539_v0  ;;  %112 = vst.msk [vmem:[#allocation2 + $0x40] sm:$0xff] %vm105_vm0, %v21539_v0  ;;  %v19961_v18 = vld [vmem:[%s24989_s0 + $0x58] sm:$0xff]   ;;  %v19984_v21 = vld [vmem:[#allocation3 + $0x84] ss:$16 sps:$4 sm:$0xff]  }
  0x77   :  { %115 = vst.msk [vmem:[#allocation2 + $0x58] sm:$0xff] %vm105_vm0, %v21539_v0  ;;  %118 = vst.msk [vmem:[#allocation2 + $0x70] sm:$0xff] %vm105_vm0, %v21539_v0  ;;  %16598 = vmatmul.mubr.msk.bf16.vlgmr.msra.gmra.mrb[0].mxu0 %vm105_vm0, %v19951_v5  ;;  %16604 = vmatmul.mubr.msk.bf16.vlgmr.msra.gmra.mrb[0].mxu1 %vm105_vm0, %v21729_v7  ;;  %v19962_v19 = vld [vmem:[#allocation3 + $0x8] ss:$16 sps:$4 sm:$0xff]   ;;  %v19977_v20 = vld [vmem:[#allocation3 + $0x2c] ss:$16 sps:$4 sm:$0xff]  }
  0x78   :  { %121 = vst.msk [vmem:[#allocation2 + $0x88] sm:$0xff] %vm105_vm0, %v21539_v0  ;;  %124 = vst.msk [vmem:[#allocation2 + $0xa0] sm:$0xff] %vm105_vm0, %v21539_v0  ;;  %434 = vmatpush1.bf16.msra.mxu1 %v19953_v8  ;;  %366 = vmatprep.mubr.bf16.mxu0 %v21539_v0  ;;  %v19975_v22 = vld [vmem:[#allocation3 + $0x28] ss:$16 sps:$4 sm:$0xff]   ;;  %v19987_v23 = vld [vmem:[#allocation3 + $0x8c] ss:$16 sps:$4 sm:$0xff]  }
  0x79   :  { %127 = vst.msk [vmem:[#allocation2 + $0xb8] sm:$0xff] %vm105_vm0, %v21539_v0  ;;  %130 = vst.msk [vmem:[#allocation2 + $0xd0] sm:$0xff] %vm105_vm0, %v21539_v0  ;;  %426 = vmatprep.mubr.bf16.mxu1 %v21539_v0  ;;  %435 = vmatprep.subr.bf16.mxu1 %v19960_v9  ;;  %v19965_v24 = vld [vmem:[%s24989_s0 + $0x60] sm:$0xff]   ;;  %v19966_v25 = vld [vmem:[%s24989_s0 + $0x68] sm:$0xff]  }
  0x7a   :  { %133 = vst.msk [vmem:[#allocation2 + $0xe8] sm:$0xff] %vm105_vm0, %v21539_v0  ;;  %136 = vst.msk [vmem:[#allocation2 + $0x100] sm:$0xff] %vm105_vm0, %v21539_v0  ;;  %647 = vmatpush1.bf16.msra.mxu0 %v19967_v14  ;;  %v19970_v26 = vld [vmem:[%s24989_s0 + $0x70] sm:$0xff]   ;;  %v19974_v27 = vld [vmem:[%s24989_s0] sm:$0xff]  }
  0x7b   :  { %139 = vst.msk [vmem:[#allocation2 + $0x118] sm:$0xff] %vm105_vm0, %v21539_v0  ;;  %142 = vst.msk [vmem:[#allocation2 + $0x130] sm:$0xff] %vm105_vm0, %v21539_v0  ;;  %648 = vmatprep.subr.bf16.mxu0 %v19973_v17  ;;  %v19982_v28 = vld [vmem:[#allocation3 + $0x80] ss:$16 sps:$4 sm:$0xff]   ;;  %v19993_v29 = vld [vmem:[#allocation3 + $0xa4] ss:$16 sps:$4 sm:$0xff]  }
  0x7c   :  { %145 = vst.msk [vmem:[#allocation2 + $0x148] sm:$0xff] %vm105_vm0, %v21539_v0  ;;  %148 = vst.msk [vmem:[#allocation2 + $0x160] sm:$0xff] %vm105_vm0, %v21539_v0  ;;  %436 = vmatpush1.bf16.msra.mxu1 %v19958_v10  ;;  %v19991_v30 = vld [vmem:[#allocation3 + $0xa0] ss:$16 sps:$4 sm:$0xff]   ;;  %v20004_v31 = vld [vmem:[#allocation3 + $0xc4] ss:$16 sps:$4 sm:$0xff]  }
  0x7d   :  { %151 = vst.msk [vmem:[#allocation2 + $0x178] sm:$0xff] %vm105_vm0, %v21539_v0  ;;  %154 = vst.msk [vmem:[#allocation2 + $0x190] sm:$0xff] %vm105_vm0, %v21539_v0  ;;  %755 = vmatprep.subr.bf16.mxu1 %v19964_v12  ;;  %v19978_v32 = vld [vmem:[%s24989_s0 + $0x8] sm:$0xff]   ;;  %v19979_v33 = vld [vmem:[%s24989_s0 + $0x10] sm:$0xff]  }
  0x7e   :  { %157 = vst.msk [vmem:[#allocation2 + $0x1a8] sm:$0xff] %vm105_vm0, %v21539_v0  ;;  %160 = vst.msk [vmem:[#allocation2 + $0x1c0] sm:$0xff] %vm105_vm0, %v21539_v0  ;;  %649 = vmatpush1.bf16.msra.mxu0 %v19971_v16  ;;  %v19980_v34 = vld [vmem:[%s24989_s0 + $0x18] sm:$0xff]   ;;  %v19981_v35 = vld [vmem:[%s24989_s0 + $0x20] sm:$0xff]  }
  0x7f   :  { %163 = vst.msk [vmem:[#allocation2 + $0x1d8] sm:$0xff] %vm105_vm0, %v21539_v0  ;;  %16599 = vmatmul.mubr.msk.bf16.gmra.mrb[4].mxu0 %vm105_vm0, %v19956_v11  ;;  %16605 = vmatmul.mubr.msk.bf16.gmra.mrb[4].mxu1 %vm105_vm0, %v21742_v13  ;;  %v19985_v36 = vld [vmem:[#allocation3 + $0x88] ss:$16 sps:$4 sm:$0xff]   ;;  %v19997_v37 = vld [vmem:[#allocation3 + $0xac] ss:$16 sps:$4 sm:$0xff]   ;;  %v19989_v41 = vld [vmem:[%s24989_s0 + $0x30] sm:$0xff]  }
  0x80   :  { %376 = vmatprep.mubr.bf16.mxu0 %v21539_v0  ;;  %465 = vmatprep.mubr.bf16.mxu1 %v21539_v0  ;;  %v19995_v38 = vld [vmem:[#allocation3 + $0xa8] ss:$16 sps:$4 sm:$0xff]   ;;  %v20007_v39 = vld [vmem:[#allocation3 + $0xcc] ss:$16 sps:$4 sm:$0xff]   ;;  %v19994_v43 = vld [vmem:[%s24989_s0 + $0x90] sm:$0xff]  }
  0x81   :  { %994 = vmatprep.subr.bf16.mxu0 %v19984_v21  ;;  %v19988_v40 = vld [vmem:[%s24989_s0 + $0x28] sm:$0xff]   ;;  %v19990_v42 = vld [vmem:[%s24989_s0 + $0x38] sm:$0xff]   ;;  %v20002_v44 = vld [vmem:[#allocation3 + $0xc0] ss:$16 sps:$4 sm:$0xff]  }
  0x82   :  { %v20013_v45 = vld [vmem:[#allocation3 + $0xe4] ss:$16 sps:$4 sm:$0xff]   ;;  %v20011_v46 = vld [vmem:[#allocation3 + $0xe0] ss:$16 sps:$4 sm:$0xff]   ;;  %v19998_v48 = vld [vmem:[%s24989_s0 + $0x98] sm:$0xff]  }
  0x83   :  { %v20024_v47 = vld [vmem:[#allocation3 + $0x104] ss:$16 sps:$4 sm:$0xff]   ;;  %v20000_v51 = vld [vmem:[%s24989_s0 + $0xa8] sm:$0xff]   ;;  %v20008_v56 = vld [vmem:[%s24989_s0 + $0xb8] sm:$0xff]  }
  0x84   :  { %v19999_v49 = vld [vmem:[%s24989_s0 + $0xa0] sm:$0xff]   ;;  %v20001_v52 = vld [vmem:[%s24989_s0 + $0xb0] sm:$0xff]   ;;  %v20005_v53 = vld [vmem:[#allocation3 + $0xc8] ss:$16 sps:$4 sm:$0xff]  }
  0x85   :  { %v21854_v50 = vld [vmem:[#allocation2] sm:$0xff]  ;;  %v20017_v54 = vld [vmem:[#allocation3 + $0xec] ss:$16 sps:$4 sm:$0xff]   ;;  %v20015_v55 = vld [vmem:[#allocation3 + $0xe8] ss:$16 sps:$4 sm:$0xff]  }
  0x86   :  { %v20027_v57 = vld [vmem:[#allocation3 + $0x10c] ss:$16 sps:$4 sm:$0xff]   ;;  %v20009_v58 = vld [vmem:[%s24989_s0 + $0xc0] sm:$0xff]   ;;  %v20020_v3 = vld [vmem:[%s24989_s0 + $0xf0] sm:$0xff]  }
  0x87   :  { %16600 = vmatmul.mubr.msk.bf16.gmra.mrb[8].mxu0 %vm105_vm0, %v19961_v18  ;;  %16606 = vmatmul.mubr.msk.bf16.vlgmr.msra.gmra.mrb[8].mxu1 %vm105_vm0, %v19951_v5  ;;  %v20010_v59 = vld [vmem:[%s24989_s0 + $0xc8] sm:$0xff]   ;;  %v20014_v60 = vld [vmem:[%s24989_s0 + $0xd8] sm:$0xff]   ;;  %v20022_v61 = vld [vmem:[#allocation3 + $0x100] ss:$16 sps:$4 sm:$0xff]  }
  0x88   :  { %756 = vmatpush1.bf16.msra.mxu1 %v19962_v19  ;;  %386 = vmatprep.mubr.bf16.mxu0 %v21539_v0  ;;  %v20033_v62 = vld [vmem:[#allocation3 + $0x124] ss:$16 sps:$4 sm:$0xff]   ;;  %v20031_v63 = vld [vmem:[#allocation3 + $0x120] ss:$16 sps:$4 sm:$0xff]   ;;  %v20019_v2 = vld [vmem:[%s24989_s0 + $0xe8] sm:$0xff]  }
  0x89   :  { %475 = vmatprep.mubr.bf16.mxu1 %v21539_v0  ;;  %757 = vmatprep.subr.bf16.mxu1 %v19977_v20  ;;  %v20814_v1 = vld [vmem:[#allocation3 + $0x44] ss:$16 sps:$4 sm:$0xff]   ;;  %v20021_v4 = vld [vmem:[%s24989_s0 + $0xf8] sm:$0xff]   ;;  %v21949_v14 = vld [vmem:[%s24989_s0 + $0x108] sm:$0xff]  }
  0x8a   :  { %v20025_v5 = vld [vmem:[#allocation3 + $0x108] ss:$16 sps:$4 sm:$0xff]   ;;  %v20037_v6 = vld [vmem:[#allocation3 + $0x12c] ss:$16 sps:$4 sm:$0xff]   ;;  %v21931_v8 = vld [vmem:[%s24989_s0 + $0x100] sm:$0xff]  }
  0x8b   :  { %v21959_v19 = vld [vmem:[%s24989_s0 + $0x110] sm:$0xff]   ;;  %v21969_v20 = vld [vmem:[%s24989_s0 + $0x8] sm:$0xff]  }
  0x8c   :  { %758 = vmatpush1.bf16.msra.mxu1 %v19975_v22  ;;  %v21979_v21 = vld [vmem:[%s24989_s0 + $0x10] sm:$0xff]  }
  0x8d   :  { %1103 = vmatprep.subr.bf16.mxu1 %v19987_v23  ;;  %v20816_v22 = vld [vmem:[#allocation3 + $0x40] ss:$16 sps:$4 sm:$0xff]   ;;  %v20817_v23 = vld [vmem:[#allocation3 + $0x64] ss:$16 sps:$4 sm:$0xff]  }
  0x8f   :  { %16601 = vmatmul.mubr.msk.bf16.gmra.mrb[12].mxu0 %vm105_vm0, %v19965_v24  ;;  %16607 = vmatmul.mubr.msk.bf16.gmra.mrb[12].mxu1 %vm105_vm0, %v19956_v11 }
  0x90   :  { %396 = vmatprep.mubr.bf16.mxu0 %v21539_v0  ;;  %485 = vmatprep.mubr.bf16.mxu1 %v21539_v0 }
  0x97   :  { %16602 = vmatmul.mubr.msk.bf16.gmra.mrb[16].mxu0 %vm105_vm0, %v19966_v25  ;;  %16608 = vmatmul.mubr.msk.bf16.gmra.mrb[16].mxu1 %vm105_vm0, %v19961_v18 }
  0x98   :  { %406 = vmatprep.mubr.bf16.mxu0 %v21539_v0  ;;  %495 = vmatprep.mubr.bf16.mxu1 %v21539_v0 }
  0x9f   :  { %16603 = vmatmul.mubr.msk.bf16.gmra.mrb[20].mxu0 %vm105_vm0, %v19970_v26  ;;  %16609 = vmatmul.mubr.msk.bf16.gmra.mrb[20].mxu1 %vm105_vm0, %v19965_v24  ;;  %v20818_v24 = vld [vmem:[#allocation3 + $0x60] ss:$16 sps:$4 sm:$0xff]  }
  0xa0   :  { %505 = vmatprep.mubr.bf16.mxu1 %v21539_v0  ;;  %678 = vmatprep.mubr.bf16.mxu0 %v21539_v0 }
  0xa7   :  { %16610 = vmatmul.mubr.msk.bf16.gmra.mrb[24].mxu1 %vm105_vm0, %v19966_v25  ;;  %16630 = vmatmul.mubr.msk.bf16.vlgmr.msra.gmra.mrb[0].mxu0 %vm105_vm0, %v19974_v27  ;;  %v20819_v25 = vld [vmem:[#allocation3 + $0x4] ss:$16 sps:$4 sm:$0xff]  }
  0xa8   :  { %515 = vmatprep.mubr.bf16.mxu1 %v21539_v0  ;;  %688 = vmatprep.mubr.bf16.mxu0 %v21539_v0 }
  0xa9   :  { %995 = vmatpush1.bf16.msra.mxu0 %v19982_v28  ;;  %v22001_v28 = vld [vmem:[#allocation2] sm:$0xff] }
  0xaa   :  { %996 = vmatprep.subr.bf16.mxu0 %v19993_v29  ;;  %v20041_v29 = vld [vmem:[%s24989_s0 + $0x28] sm:$0xff]  }
  0xad   :  { %997 = vmatpush1.bf16.msra.mxu0 %v19991_v30  ;;  %v20821_v30 = vld [vmem:[#allocation3 + $0x48] ss:$16 sps:$4 sm:$0xff]  }
  0xae   :  { %1398 = vmatprep.subr.bf16.mxu0 %v20004_v31  ;;  %v20042_v31 = vld [vmem:[%s24989_s0 + $0x30] sm:$0xff]  }
  0xaf   :  { %16611 = vmatmul.mubr.msk.bf16.gmra.mrb[28].mxu1 %vm105_vm0, %v19970_v26  ;;  %16631 = vmatmul.mubr.msk.bf16.gmra.mrb[4].mxu0 %vm105_vm0, %v19978_v32  ;;  %v20039_v26 = vld [vmem:[%s24989_s0 + $0x18] sm:$0xff]  }
  0xb0   :  { %525 = vmatprep.mubr.bf16.mxu1 %v21539_v0  ;;  %698 = vmatprep.mubr.bf16.mxu0 %v21539_v0 }
  0xb7   :  { %16612 = vmatmul.mubr.msk.bf16.gmra.mrb[32].mxu1 %vm105_vm0, %v21729_v7  ;;  %16632 = vmatmul.mubr.msk.bf16.gmra.mrb[8].mxu0 %vm105_vm0, %v19979_v33  ;;  %v20035_v7 = vld [vmem:[#allocation3 + $0x128] ss:$16 sps:$4 sm:$0xff]  }
  0xb8   :  { %535 = vmatprep.mubr.bf16.mxu1 %v21539_v0  ;;  %708 = vmatprep.mubr.bf16.mxu0 %v21539_v0 }
  0xbf   :  { %16613 = vmatmul.mubr.msk.bf16.gmra.mrb[36].mxu1 %vm105_vm0, %v21742_v13  ;;  %16633 = vmatmul.mubr.msk.bf16.gmra.mrb[12].mxu0 %vm105_vm0, %v19980_v34  ;;  %v20815_v13 = vld [vmem:[#allocation3 + $0x4c] ss:$16 sps:$4 sm:$0xff]  }
  0xc0   :  { %718 = vmatprep.mubr.bf16.mxu0 %v21539_v0  ;;  %787 = vmatprep.mubr.bf16.mxu1 %v21539_v0 }
  0xc7   :  { %16634 = vmatmul.mubr.msk.bf16.gmra.mrb[16].mxu0 %vm105_vm0, %v19981_v35  ;;  %16638 = vmatmul.mubr.msk.bf16.vlgmr.msra.gmra.mrb[8].mxu1 %vm105_vm0, %v19974_v27  ;;  %v20040_v27 = vld [vmem:[%s24989_s0 + $0x20] sm:$0xff]  }
  0xc8   :  { %1104 = vmatpush1.bf16.msra.mxu1 %v19985_v36  ;;  %728 = vmatprep.mubr.bf16.mxu0 %v21539_v0 }
  0xc9   :  { %797 = vmatprep.mubr.bf16.mxu1 %v21539_v0  ;;  %1105 = vmatprep.subr.bf16.mxu1 %v19997_v37  ;;  %v20043_v37 = vld [vmem:[%s24989_s0 + $0x38] sm:$0xff]  }
  0xcc   :  { %1106 = vmatpush1.bf16.msra.mxu1 %v19995_v38 }
  0xcd   :  { %1507 = vmatprep.subr.bf16.mxu1 %v20007_v39 }
  0xcf   :  { %16635 = vmatmul.mubr.msk.bf16.gmra.mrb[20].mxu0 %vm105_vm0, %v19988_v40  ;;  %16639 = vmatmul.mubr.msk.bf16.gmra.mrb[12].mxu1 %vm105_vm0, %v19978_v32  ;;  %v20822_v32 = vld [vmem:[#allocation3 + $0x6c] ss:$16 sps:$4 sm:$0xff]  }
  0xd0   :  { %738 = vmatprep.mubr.bf16.mxu0 %v21539_v0  ;;  %807 = vmatprep.mubr.bf16.mxu1 %v21539_v0 }
  0xd7   :  { %16636 = vmatmul.mubr.msk.bf16.gmra.mrb[24].mxu0 %vm105_vm0, %v19989_v41  ;;  %16640 = vmatmul.mubr.msk.bf16.gmra.mrb[16].mxu1 %vm105_vm0, %v19979_v33  ;;  %v20823_v33 = vld [vmem:[#allocation3 + $0x68] ss:$16 sps:$4 sm:$0xff]  }
  0xd8   :  { %748 = vmatprep.mubr.bf16.mxu0 %v21539_v0  ;;  %817 = vmatprep.mubr.bf16.mxu1 %v21539_v0 }
  0xdf   :  { %16637 = vmatmul.mubr.msk.bf16.gmra.mrb[28].mxu0 %vm105_vm0, %v19990_v42  ;;  %16641 = vmatmul.mubr.msk.bf16.gmra.mrb[20].mxu1 %vm105_vm0, %v19980_v34  ;;  %v20824_v34 = vld [vmem:[#allocation3 + $0xc] ss:$16 sps:$4 sm:$0xff]  }
  0xe0   :  { %827 = vmatprep.mubr.bf16.mxu1 %v21539_v0  ;;  %1026 = vmatprep.mubr.bf16.mxu0 %v21539_v0 }
  0xe7   :  { %16642 = vmatmul.mubr.msk.bf16.gmra.mrb[24].mxu1 %vm105_vm0, %v19981_v35  ;;  %16678 = vmatmul.mubr.msk.bf16.vlgmr.msra.gmra.mrb[0].mxu0 %vm105_vm0, %v19994_v43 }
  0xe8   :  { %837 = vmatprep.mubr.bf16.mxu1 %v21539_v0  ;;  %1036 = vmatprep.mubr.bf16.mxu0 %v21539_v0 }
  0xe9   :  { %1399 = vmatpush1.bf16.msra.mxu0 %v20002_v44  ;;  %v20828_v44 = vld [vmem:[#allocation3 + $0x20] ss:$16 sps:$4 sm:$0xff]  }
  0xea   :  { %1400 = vmatprep.subr.bf16.mxu0 %v20013_v45  ;;  %v20829_v45 = vld [vmem:[#allocation3 + $0x84] ss:$16 sps:$4 sm:$0xff]  }
  0xed   :  { %1401 = vmatpush1.bf16.msra.mxu0 %v20011_v46  ;;  %v20830_v46 = vld [vmem:[%s24989_s0 + $0x98] sm:$0xff]  }
  0xee   :  { %1802 = vmatprep.subr.bf16.mxu0 %v20024_v47 }
  0xef   :  { %16643 = vmatmul.mubr.msk.bf16.gmra.mrb[28].mxu1 %vm105_vm0, %v19988_v40  ;;  %16679 = vmatmul.mubr.msk.bf16.gmra.mrb[4].mxu0 %vm105_vm0, %v19998_v48  ;;  %v22031_v40 = vld [vmem:[%s24989_s0 + $0x40] sm:$0xff]  }
  0xf0   :  { %847 = vmatprep.mubr.bf16.mxu1 %v21539_v0  ;;  %1046 = vmatprep.mubr.bf16.mxu0 %v21539_v0  ;;  %v20018_v0 = vld [vmem:[%s24989_s0 + $0xe0] sm:$0xff]  }
  0xf7   :  { %16644 = vmatmul.mubr.msk.bf16.gmra.mrb[32].mxu1 %vm105_vm0, %v19989_v41  ;;  %16680 = vmatmul.mubr.msk.bf16.gmra.mrb[8].mxu0 %vm105_vm0, %v19999_v49  ;;  %v20825_v41 = vld [vmem:[%s24989_s0 + $0x90] sm:$0xff]  }
  0xf8   :  { %857 = vmatprep.mubr.bf16.mxu1 %v21854_v50  ;;  %1056 = vmatprep.mubr.bf16.mxu0 %v21854_v50 }
  0xff   :  { %16645 = vmatmul.mubr.msk.bf16.gmra.mrb[40].mxu1 %vm105_vm0, %v19990_v42  ;;  %16681 = vmatmul.mubr.msk.bf16.gmra.mrb[12].mxu0 %vm105_vm0, %v20000_v51  ;;  %v20826_v42 = vld [vmem:[#allocation3] ss:$16 sps:$4 sm:$0xff]  }
 0x100   :  { %1066 = vmatprep.mubr.bf16.mxu0 %v21854_v50  ;;  %1135 = vmatprep.mubr.bf16.mxu1 %v21854_v50 }
 0x107   :  { %16682 = vmatmul.mubr.msk.bf16.gmra.mrb[16].mxu0 %vm105_vm0, %v20001_v52  ;;  %16686 = vmatmul.mubr.msk.bf16.vlgmr.msra.gmra.mrb[8].mxu1 %vm105_vm0, %v19994_v43  ;;  %v20827_v43 = vld [vmem:[#allocation3 + $0x24] ss:$16 sps:$4 sm:$0xff]  }
 0x108   :  { %1508 = vmatpush1.bf16.msra.mxu1 %v20005_v53  ;;  %1076 = vmatprep.mubr.bf16.mxu0 %v21854_v50  ;;  %v20833_v53 = vld [vmem:[%s24989_s0 + $0xb0] sm:$0xff]  }
 0x109   :  { %1145 = vmatprep.mubr.bf16.mxu1 %v21854_v50  ;;  %1509 = vmatprep.subr.bf16.mxu1 %v20017_v54  ;;  %v20834_v54 = vld [vmem:[#allocation3 + $0x8] ss:$16 sps:$4 sm:$0xff]  }
 0x10c   :  { %1510 = vmatpush1.bf16.msra.mxu1 %v20015_v55  ;;  %v20835_v55 = vld [vmem:[#allocation3 + $0x2c] ss:$16 sps:$4 sm:$0xff]  }
 0x10d   :  { %1911 = vmatprep.subr.bf16.mxu1 %v20027_v57  ;;  %v20837_v57 = vld [vmem:[#allocation3 + $0x8c] ss:$16 sps:$4 sm:$0xff]  }
 0x10f   :  { %16683 = vmatmul.mubr.msk.bf16.gmra.mrb[20].mxu0 %vm105_vm0, %v20008_v56  ;;  %16687 = vmatmul.mubr.msk.bf16.gmra.mrb[12].mxu1 %vm105_vm0, %v19998_v48 }
 0x110   :  { %1086 = vmatprep.mubr.bf16.mxu0 %v21854_v50  ;;  %1155 = vmatprep.mubr.bf16.mxu1 %v21854_v50 }
 0x117   :  { %16684 = vmatmul.mubr.msk.bf16.gmra.mrb[24].mxu0 %vm105_vm0, %v20009_v58  ;;  %16688 = vmatmul.mubr.msk.bf16.gmra.mrb[16].mxu1 %vm105_vm0, %v19999_v49 }
 0x118   :  { %1096 = vmatprep.mubr.bf16.mxu0 %v21854_v50  ;;  %1165 = vmatprep.mubr.bf16.mxu1 %v21854_v50 }
 0x11f   :  { %16685 = vmatmul.mubr.msk.bf16.gmra.mrb[32].mxu0 %vm105_vm0, %v20010_v59  ;;  %16689 = vmatmul.mubr.msk.bf16.gmra.mrb[20].mxu1 %vm105_vm0, %v20000_v51  ;;  %v20831_v51 = vld [vmem:[%s24989_s0 + $0xa0] sm:$0xff]  }
 0x120   :  { %1175 = vmatprep.mubr.bf16.mxu1 %v21854_v50  ;;  %1430 = vmatprep.mubr.bf16.mxu0 %v21854_v50 }
 0x127   :  { %16690 = vmatmul.mubr.msk.bf16.gmra.mrb[24].mxu1 %vm105_vm0, %v20001_v52  ;;  %16726 = vmatmul.mubr.msk.bf16.vlgmr.msra.gmra.mrb[0].mxu0 %vm105_vm0, %v20014_v60  ;;  %v20832_v52 = vld [vmem:[%s24989_s0 + $0xa8] sm:$0xff]  }
 0x128   :  { %1185 = vmatprep.mubr.bf16.mxu1 %v21854_v50  ;;  %1440 = vmatprep.mubr.bf16.mxu0 %v21854_v50 }
 0x129   :  { %1803 = vmatpush1.bf16.msra.mxu0 %v20022_v61 }
 0x12a   :  { %1804 = vmatprep.subr.bf16.mxu0 %v20033_v62 }
 0x12d   :  { %1805 = vmatpush1.bf16.msra.mxu0 %v20031_v63  ;;  %v20839_v63 = vld [vmem:[%s24989_s0 + $0xc0] sm:$0xff]  }
 0x12e   :  { %2314 = vmatprep.subr.bf16.mxu0 %v20814_v1  ;;  %v20841_v1 = vld [vmem:[%s24989_s0 + $0x48] sm:$0xff]  }
 0x12f   :  { %16691 = vmatmul.mubr.msk.bf16.gmra.mrb[28].mxu1 %vm105_vm0, %v20008_v56  ;;  %16727 = vmatmul.mubr.msk.bf16.gmra.mrb[4].mxu0 %vm105_vm0, %v20018_v0  ;;  %v20836_v56 = vld [vmem:[#allocation3 + $0x28] ss:$16 sps:$4 sm:$0xff]  }
 0x130   :  { %1195 = vmatprep.mubr.bf16.mxu1 %v21854_v50  ;;  %1450 = vmatprep.mubr.bf16.mxu0 %v21854_v50 }
 0x137   :  { %16692 = vmatmul.mubr.msk.bf16.gmra.mrb[32].mxu1 %vm105_vm0, %v20009_v58  ;;  %16728 = vmatmul.mubr.msk.bf16.gmra.mrb[8].mxu0 %vm105_vm0, %v20019_v2  ;;  %v20838_v58 = vld [vmem:[%s24989_s0 + $0xb8] sm:$0xff]  }
 0x138   :  { %1205 = vmatprep.mubr.bf16.mxu1 %v21854_v50  ;;  %1460 = vmatprep.mubr.bf16.mxu0 %v21854_v50 }
 0x13f   :  { %16693 = vmatmul.mubr.msk.bf16.gmra.mrb[44].mxu1 %vm105_vm0, %v20010_v59  ;;  %16729 = vmatmul.mubr.msk.bf16.gmra.mrb[12].mxu0 %vm105_vm0, %v20020_v3 }
 0x140   :  { %1470 = vmatprep.mubr.bf16.mxu0 %v21854_v50  ;;  %1539 = vmatprep.mubr.bf16.mxu1 %v21854_v50 }
 0x147   :  { %16730 = vmatmul.mubr.msk.bf16.gmra.mrb[16].mxu0 %vm105_vm0, %v20021_v4  ;;  %16734 = vmatmul.mubr.msk.bf16.vlgmr.msra.gmra.mrb[8].mxu1 %vm105_vm0, %v20014_v60 }
 0x148   :  { %1912 = vmatpush1.bf16.msra.mxu1 %v20025_v5  ;;  %1480 = vmatprep.mubr.bf16.mxu0 %v21854_v50  ;;  %v20845_v5 = vld [vmem:[#allocation3 + $0xc4] ss:$16 sps:$4 sm:$0xff]  }
 0x149   :  { %1549 = vmatprep.mubr.bf16.mxu1 %v21854_v50  ;;  %1913 = vmatprep.subr.bf16.mxu1 %v20037_v6  ;;  %v20846_v6 = vld [vmem:[%s24989_s0 + $0x50] sm:$0xff]  }
 0x14a   :  { %v21933_v9 = vpop.f32.mrb[0].mxu1 }
 0x14b   :  { %v21935_v10 = vpop.f32.mrb[1].mxu1 }
 0x14c   :  { %v21937_v11 = vpop.f32.mrb[2].mxu1  ;;  %1914 = vmatpush1.bf16.msra.mxu1 %v20035_v7 }
 0x14d   :  { %v21939_v12 = vpop.f32.mrb[3].mxu1  ;;  %2423 = vmatprep.subr.bf16.mxu1 %v20815_v13 }
 0x14f   :  { %16731 = vmatmul.mubr.msk.bf16.gmra.mrb[20].mxu0 %vm105_vm0, %v21931_v8  ;;  %16735 = vmatmul.mubr.msk.bf16.gmra.mrb[12].mxu1 %vm105_vm0, %v20018_v0  ;;  %v20840_v0 = vld [vmem:[%s24989_s0 + $0xc8] sm:$0xff]  }
 0x150   :  { %1490 = vmatprep.mubr.bf16.mxu0 %v21854_v50  ;;  %1559 = vmatprep.mubr.bf16.mxu1 %v21854_v50 }
 0x152   :  { %v428_v15 = vpop.f32.mrb[4].mxu1 }
 0x153   :  { %v429_v16 = vpop.f32.mrb[5].mxu1 }
 0x154   :  { %v430_v17 = vpop.f32.mrb[6].mxu1 }
 0x155   :  { %v431_v18 = vpop.f32.mrb[7].mxu1  ;;  %v20847_v17 = vld [vmem:[%s24989_s0 + $0x58] sm:$0xff]  }
 0x156   :  { %v20848_v18 = vld [vmem:[%s24989_s0 + $0x60] sm:$0xff]  }
 0x157   :  { %16732 = vmatmul.mubr.msk.bf16.gmra.mrb[24].mxu0 %vm105_vm0, %v21949_v14  ;;  %16736 = vmatmul.mubr.msk.bf16.gmra.mrb[16].mxu1 %vm105_vm0, %v20019_v2  ;;  %v20842_v2 = vld [vmem:[#allocation3 + $0x80] ss:$16 sps:$4 sm:$0xff]  }
 0x158   :  { %1500 = vmatprep.mubr.bf16.mxu0 %v21854_v50  ;;  %1569 = vmatprep.mubr.bf16.mxu1 %v21854_v50 }
 0x15f   :  { %16733 = vmatmul.mubr.msk.bf16.gmra.mrb[36].mxu0 %vm105_vm0, %v21959_v19  ;;  %16737 = vmatmul.mubr.msk.bf16.gmra.mrb[20].mxu1 %vm105_vm0, %v20020_v3  ;;  %v20843_v3 = vld [vmem:[#allocation3 + $0xa4] ss:$16 sps:$4 sm:$0xff]  }
 0x160   :  { %1579 = vmatprep.mubr.bf16.mxu1 %v21854_v50  ;;  %1834 = vmatprep.mubr.bf16.mxu0 %v21854_v50 }
 0x167   :  { %16738 = vmatmul.mubr.msk.bf16.gmra.mrb[24].mxu1 %vm105_vm0, %v20021_v4  ;;  %16774 = vmatmul.mubr.msk.bf16.vlgmr.msra.gmra.mrb[0].mxu0 %vm105_vm0, %v21969_v20  ;;  %v20844_v4 = vld [vmem:[#allocation3 + $0xa0] ss:$16 sps:$4 sm:$0xff]  }
 0x168   :  { %1589 = vmatprep.mubr.bf16.mxu1 %v21854_v50  ;;  %1844 = vmatprep.mubr.bf16.mxu0 %v21854_v50 }
 0x169   :  { %2315 = vmatpush1.bf16.msra.mxu0 %v20816_v22  ;;  %v20849_v22 = vld [vmem:[%s24989_s0 + $0x68] sm:$0xff]  }
 0x16a   :  { %2316 = vmatprep.subr.bf16.mxu0 %v20817_v23  ;;  %v20850_v23 = vld [vmem:[#allocation3 + $0x88] ss:$16 sps:$4 sm:$0xff]  }
 0x16d   :  { %2317 = vmatpush1.bf16.msra.mxu0 %v20818_v24  ;;  %v20851_v24 = vld [vmem:[#allocation3 + $0xac] ss:$16 sps:$4 sm:$0xff]  }
 0x16e   :  { %2532 = vmatprep.subr.bf16.mxu0 %v20819_v25  ;;  %v20852_v25 = vld [vmem:[#allocation3 + $0xa8] ss:$16 sps:$4 sm:$0xff]  }
 0x16f   :  { %16739 = vmatmul.mubr.msk.bf16.gmra.mrb[28].mxu1 %vm105_vm0, %v21931_v8  ;;  %16775 = vmatmul.mubr.msk.bf16.gmra.mrb[4].mxu0 %vm105_vm0, %v21979_v21 }
 0x170   :  { %1599 = vmatprep.mubr.bf16.mxu1 %v21854_v50  ;;  %1854 = vmatprep.mubr.bf16.mxu0 %v21854_v50 }
 0x177   :  { %16740 = vmatmul.mubr.msk.bf16.gmra.mrb[32].mxu1 %vm105_vm0, %v21949_v14  ;;  %16776 = vmatmul.mubr.msk.bf16.gmra.mrb[8].mxu0 %vm105_vm0, %v20039_v26 }
 0x178   :  { %1609 = vmatprep.mubr.bf16.mxu1 %v21854_v50  ;;  %1864 = vmatprep.mubr.bf16.mxu0 %v21854_v50 }
 0x17f   :  { %16741 = vmatmul.mubr.msk.bf16.gmra.mrb[48].mxu1 %vm105_vm0, %v21959_v19  ;;  %16777 = vmatmul.mubr.msk.bf16.gmra.mrb[12].mxu0 %vm105_vm0, %v20040_v27 }
 0x180   :  { %1874 = vmatprep.mubr.bf16.mxu0 %v22001_v28  ;;  %1943 = vmatprep.mubr.bf16.mxu1 %v22001_v28 }
 0x187   :  { %16778 = vmatmul.mubr.msk.bf16.gmra.mrb[16].mxu0 %vm105_vm0, %v20041_v29  ;;  %16782 = vmatmul.mubr.msk.bf16.vlgmr.msra.gmra.mrb[8].mxu1 %vm105_vm0, %v21969_v20 }
 0x188   :  { %2424 = vmatpush1.bf16.msra.mxu1 %v20821_v30  ;;  %1884 = vmatprep.mubr.bf16.mxu0 %v22001_v28 }
 0x189   :  { %1953 = vmatprep.mubr.bf16.mxu1 %v22001_v28  ;;  %2425 = vmatprep.subr.bf16.mxu1 %v20822_v32 }
 0x18c   :  { %2426 = vmatpush1.bf16.msra.mxu1 %v20823_v33  ;;  %v20855_v33 = vld [vmem:[%s24989_s0 + $0x78] sm:$0xff]  }
 0x18d   :  { %2641 = vmatprep.subr.bf16.mxu1 %v20824_v34  ;;  %v20856_v34 = vld [vmem:[%s24989_s0 + $0x80] sm:$0xff]  }
 0x18f   :  { %16779 = vmatmul.mubr.msk.bf16.gmra.mrb[20].mxu0 %vm105_vm0, %v20042_v31  ;;  %16783 = vmatmul.mubr.msk.bf16.gmra.mrb[12].mxu1 %vm105_vm0, %v21979_v21 }
 0x190   :  { %1894 = vmatprep.mubr.bf16.mxu0 %v22001_v28  ;;  %1963 = vmatprep.mubr.bf16.mxu1 %v22001_v28 }
 0x192   :  { %v537_v35 = vpop.f32.mrb[36].mxu1 }
 0x193   :  { %v538_v36 = vpop.f32.mrb[37].mxu1  ;;  %v20857_v35 = vld [vmem:[%s24989_s0 + $0xd8] sm:$0xff]  }
 0x194   :  { %v539_v38 = vpop.f32.mrb[38].mxu1  ;;  %v20858_v36 = vld [vmem:[#allocation3 + $0xc0] ss:$16 sps:$4 sm:$0xff]  }
 0x195   :  { %v540_v39 = vpop.f32.mrb[39].mxu1  ;;  %v20860_v38 = vld [vmem:[#allocation3 + $0xe0] ss:$16 sps:$4 sm:$0xff]  }
 0x196   :  { %v20861_v39 = vld [vmem:[#allocation3 + $0x104] ss:$16 sps:$4 sm:$0xff]  }
 0x197   :  { %16780 = vmatmul.mubr.msk.bf16.gmra.mrb[24].mxu0 %vm105_vm0, %v20043_v37  ;;  %16784 = vmatmul.mubr.msk.bf16.gmra.mrb[16].mxu1 %vm105_vm0, %v20039_v26  ;;  %v20853_v26 = vld [vmem:[#allocation3 + $0xcc] ss:$16 sps:$4 sm:$0xff]  }
 0x198   :  { %1904 = vmatprep.mubr.bf16.mxu0 %v22001_v28  ;;  %1973 = vmatprep.mubr.bf16.mxu1 %v22001_v28 }
 0x19f   :  { %16781 = vmatmul.mubr.msk.bf16.gmra.mrb[40].mxu0 %vm105_vm0, %v22031_v40  ;;  %16785 = vmatmul.mubr.msk.bf16.gmra.mrb[20].mxu1 %vm105_vm0, %v20040_v27  ;;  %v20854_v27 = vld [vmem:[%s24989_s0 + $0x70] sm:$0xff]  }
 0x1a0   :  { %1983 = vmatprep.mubr.bf16.mxu1 %v22001_v28  ;;  %2346 = vmatprep.mubr.bf16.mxu0 %v22001_v28 }
 0x1a7   :  { %16786 = vmatmul.mubr.msk.bf16.gmra.mrb[24].mxu1 %vm105_vm0, %v20041_v29  ;;  %16790 = vmatmul.mubr.msk.bf16.vlgmr.msra.gmra.mrb[44].mxu0 %vm105_vm0, %v20825_v41 }
 0x1a8   :  { %1993 = vmatprep.mubr.bf16.mxu1 %v22001_v28  ;;  %2356 = vmatprep.mubr.bf16.mxu0 %v22001_v28 }
 0x1a9   :  { %2533 = vmatpush1.bf16.msra.mxu0 %v20826_v42 }
 0x1aa   :  { %2534 = vmatprep.subr.bf16.mxu0 %v20827_v43 }
 0x1ad   :  { %2535 = vmatpush1.bf16.msra.mxu0 %v20828_v44 }
 0x1ae   :  { %2750 = vmatprep.subr.bf16.mxu0 %v20829_v45 }
 0x1af   :  { %16787 = vmatmul.mubr.msk.bf16.gmra.mrb[28].mxu1 %vm105_vm0, %v20042_v31  ;;  %16791 = vmatmul.mubr.msk.bf16.gmra.mrb[48].mxu0 %vm105_vm0, %v20830_v46 }
 0x1b0   :  { %2003 = vmatprep.mubr.bf16.mxu1 %v22001_v28  ;;  %2366 = vmatprep.mubr.bf16.mxu0 %v22001_v28 }
 0x1b2   :  { %v750_v47 = vpop.f32.mrb[28].mxu0 }
 0x1b3   :  { %v751_v48 = vpop.f32.mrb[29].mxu0 }
 0x1b4   :  { %v752_v49 = vpop.f32.mrb[30].mxu0 }
 0x1b5   :  { %v753_v50 = vpop.f32.mrb[31].mxu0 }
 0x1b7   :  { %16788 = vmatmul.mubr.msk.bf16.gmra.mrb[32].mxu1 %vm105_vm0, %v20043_v37  ;;  %16792 = vmatmul.mubr.msk.bf16.gmra.mrb[52].mxu0 %vm105_vm0, %v20831_v51  ;;  %v20859_v37 = vld [vmem:[#allocation3 + $0xe4] ss:$16 sps:$4 sm:$0xff]  }
 0x1b8   :  { %2013 = vmatprep.mubr.bf16.mxu1 %v22001_v28  ;;  %2376 = vmatprep.mubr.bf16.mxu0 %v22001_v28 }
 0x1bf   :  { %16789 = vmatmul.mubr.msk.bf16.gmra.mrb[52].mxu1 %vm105_vm0, %v22031_v40  ;;  %16793 = vmatmul.mubr.msk.bf16.gmra.mrb[56].mxu0 %vm105_vm0, %v20832_v52 }
 0x1c0   :  { %2386 = vmatprep.mubr.bf16.mxu0 %v22001_v28  ;;  %2455 = vmatprep.mubr.bf16.mxu1 %v22001_v28 }
 0x1c7   :  { %16794 = vmatmul.mubr.msk.bf16.gmra.mrb[60].mxu0 %vm105_vm0, %v20833_v53  ;;  %16798 = vmatmul.mubr.msk.bf16.vlgmr.msra.gmra.mrb[56].mxu1 %vm105_vm0, %v20825_v41  ;;  %v20862_v41 = vld [vmem:[%s24989_s0 + $0xe0] sm:$0xff]  }
 0x1c8   :  { %2642 = vmatpush1.bf16.msra.mxu1 %v20834_v54  ;;  %2396 = vmatprep.mubr.bf16.mxu0 %v22001_v28 }
 0x1c9   :  { %2465 = vmatprep.mubr.bf16.mxu1 %v22001_v28  ;;  %2643 = vmatprep.subr.bf16.mxu1 %v20835_v55 }
 0x1cc   :  { %2644 = vmatpush1.bf16.msra.mxu1 %v20836_v56  ;;  %v22195_v56 = vld [vmem:[%s24989_s0 + $0xf8] sm:$0xff]  }
 0x1cd   :  { %2859 = vmatprep.subr.bf16.mxu1 %v20837_v57  ;;  %v2077_v57 = vlaneseq }
 0x1cf   :  { %16795 = vmatmul.mubr.msk.bf16.gmra.mrb[64].mxu0 %vm105_vm0, %v20838_v58  ;;  %16799 = vmatmul.mubr.msk.bf16.gmra.mrb[60].mxu1 %vm105_vm0, %v20830_v46  ;;  %v20863_v46 = vld [vmem:[%s24989_s0 + $0xe8] sm:$0xff]  }
 0x1d0   :  { %2406 = vmatprep.mubr.bf16.mxu0 %v22001_v28  ;;  %2475 = vmatprep.mubr.bf16.mxu1 %v22001_v28 }
 0x1d2   :  { %v859_v59 = vpop.f32.mrb[40].mxu1 }
 0x1d3   :  { %v860_v60 = vpop.f32.mrb[41].mxu1  ;;  %v20867_v59 = vld [vmem:[#allocation3 + $0xec] ss:$16 sps:$4 sm:$0xff]  }
 0x1d4   :  { %v861_v61 = vpop.f32.mrb[42].mxu1 }
 0x1d5   :  { %v862_v62 = vpop.f32.mrb[43].mxu1 }
 0x1d6   :  { %v2078_v62 = vshrl.u32 %v2077_v57, 7 }
 0x1d7   :  { %16796 = vmatmul.mubr.msk.bf16.gmra.mrb[68].mxu0 %vm105_vm0, %v20839_v63  ;;  %16800 = vmatmul.mubr.msk.bf16.gmra.mrb[64].mxu1 %vm105_vm0, %v20831_v51  ;;  %v22178_v51 = vld [vmem:[%s24989_s0 + $0xf0] sm:$0xff]  }
 0x1d8   :  { %2416 = vmatprep.mubr.bf16.mxu0 %v22001_v28  ;;  %2485 = vmatprep.mubr.bf16.mxu1 %v22001_v28 }
 0x1df   :  { %16797 = vmatmul.mubr.msk.bf16.gmra.mrb[72].mxu0 %vm105_vm0, %v20840_v0  ;;  %16801 = vmatmul.mubr.msk.bf16.gmra.mrb[68].mxu1 %vm105_vm0, %v20832_v52 }
 0x1e0   :  { %2495 = vmatprep.mubr.bf16.mxu1 %v22001_v28  ;;  %2564 = vmatprep.mubr.bf16.mxu0 %v22001_v28 }
 0x1e7   :  { %16802 = vmatmul.mubr.msk.bf16.gmra.mrb[72].mxu1 %vm105_vm0, %v20833_v53  ;;  %16806 = vmatmul.mubr.msk.bf16.vlgmr.msra.gmra.mrb[44].mxu0 %vm105_vm0, %v20841_v1 }
 0x1e8   :  { %2505 = vmatprep.mubr.bf16.mxu1 %v22001_v28  ;;  %2574 = vmatprep.mubr.bf16.mxu0 %v22001_v28 }
 0x1e9   :  { %2751 = vmatpush1.bf16.msra.mxu0 %v20842_v2  ;;  %v20869_v2 = vld [vmem:[#allocation3 + $0x10c] ss:$16 sps:$4 sm:$0xff]  }
 0x1ea   :  { %2752 = vmatprep.subr.bf16.mxu0 %v20843_v3  ;;  %v22213_v3 = vsub.s32 0, %v2078_v62 }
 0x1ec   :  { %25017 = vst [vmem:[#allocation17_spill] sm:$0xff] %v22213_v3 }
 0x1ed   :  { %2753 = vmatpush1.bf16.msra.mxu0 %v20844_v4  ;;  %v164_v4 = vld [vmem:[#allocation8] ss:$2 sm:$0xf] }
 0x1ee   :  { %3024 = vmatprep.subr.bf16.mxu0 %v20845_v5  ;;  %v22217_v5 = vsub.s32 1, %v2078_v62 }
 0x1ef   :  { %16803 = vmatmul.mubr.msk.bf16.gmra.mrb[76].mxu1 %vm105_vm0, %v20838_v58  ;;  %16807 = vmatmul.mubr.msk.bf16.gmra.mrb[48].mxu0 %vm105_vm0, %v20846_v6  ;;  %v20866_v58 = vld [vmem:[#allocation3 + $0xc8] ss:$16 sps:$4 sm:$0xff]  }
 0x1f0   :  { %2515 = vmatprep.mubr.bf16.mxu1 %v22001_v28  ;;  %2584 = vmatprep.mubr.bf16.mxu0 %v22001_v28  ;;  %25018 = vst [vmem:[#allocation18_spill] sm:$0xff] %v22217_v5 }
 0x1f2   :  { %v1098_v7 = vpop.f32.mrb[32].mxu0 }
 0x1f3   :  { %v1099_v13 = vpop.f32.mrb[33].mxu0 }
 0x1f4   :  { %v1100_v15 = vpop.f32.mrb[34].mxu0 }
 0x1f5   :  { %v1101_v16 = vpop.f32.mrb[35].mxu0 }
 0x1f6   :  { %v22224_v16 = vrot.slane %v164_v4, %v22213_v3 }
 0x1f7   :  { %16804 = vmatmul.mubr.msk.bf16.gmra.mrb[80].mxu1 %vm105_vm0, %v20839_v63  ;;  %16808 = vmatmul.mubr.msk.bf16.gmra.mrb[52].mxu0 %vm105_vm0, %v20847_v17 }
 0x1f8   :  { %2525 = vmatprep.mubr.bf16.mxu1 %v22001_v28  ;;  %2594 = vmatprep.mubr.bf16.mxu0 %v22001_v28 }
 0x1ff   :  { %16805 = vmatmul.mubr.msk.bf16.gmra.mrb[84].mxu1 %vm105_vm0, %v20840_v0  ;;  %16809 = vmatmul.mubr.msk.bf16.gmra.mrb[56].mxu0 %vm105_vm0, %v20848_v18  ;;  %v20868_v0 = vld [vmem:[#allocation3 + $0xe8] ss:$16 sps:$4 sm:$0xff]  }
 0x200   :  { %2604 = vmatprep.mubr.bf16.mxu0 %v22001_v28  ;;  %2673 = vmatprep.mubr.bf16.mxu1 %v22001_v28 }
 0x207   :  { %16810 = vmatmul.mubr.msk.bf16.gmra.mrb[60].mxu0 %vm105_vm0, %v20849_v22  ;;  %16814 = vmatmul.mubr.msk.bf16.vlgmr.msra.gmra.mrb[56].mxu1 %vm105_vm0, %v20841_v1 }
 0x208   :  { %2860 = vmatpush1.bf16.msra.mxu1 %v20850_v23  ;;  %2614 = vmatprep.mubr.bf16.mxu0 %v22001_v28  ;;  %v22231_v23 = vrot.slane %v164_v4, %v22217_v5 }
 0x209   :  { %2683 = vmatprep.mubr.bf16.mxu1 %v22001_v28  ;;  %2861 = vmatprep.subr.bf16.mxu1 %v20851_v24  ;;  %v22233_v24 = vsub.s32 3, %v2078_v62 }
 0x20b   :  { %25020 = vst [vmem:[#allocation20_spill] sm:$0xff] %v22233_v24 }
 0x20c   :  { %2862 = vmatpush1.bf16.msra.mxu1 %v20852_v25 }
 0x20d   :  { %3133 = vmatprep.subr.bf16.mxu1 %v20853_v26 }
 0x20f   :  { %16811 = vmatmul.mubr.msk.bf16.gmra.mrb[64].mxu0 %vm105_vm0, %v20854_v27  ;;  %16815 = vmatmul.mubr.msk.bf16.gmra.mrb[60].mxu1 %vm105_vm0, %v20846_v6 }
 0x210   :  { %2624 = vmatprep.mubr.bf16.mxu0 %v22001_v28  ;;  %2693 = vmatprep.mubr.bf16.mxu1 %v22001_v28 }
 0x212   :  { %v1207_v29 = vpop.f32.mrb[44].mxu1 }
 0x213   :  { %v1208_v30 = vpop.f32.mrb[45].mxu1 }
 0x214   :  { %v1209_v31 = vpop.f32.mrb[46].mxu1 }
 0x215   :  { %v1210_v32 = vpop.f32.mrb[47].mxu1 }
 0x216   :  { %v22253_v32 = vrot.slane %v164_v4, %v22233_v24 }
 0x217   :  { %16812 = vmatmul.mubr.msk.bf16.gmra.mrb[68].mxu0 %vm105_vm0, %v20855_v33  ;;  %16816 = vmatmul.mubr.msk.bf16.gmra.mrb[64].mxu1 %vm105_vm0, %v20847_v17 }
 0x218   :  { %2634 = vmatprep.mubr.bf16.mxu0 %v22001_v28  ;;  %2703 = vmatprep.mubr.bf16.mxu1 %v22001_v28 }
 0x21f   :  { %16813 = vmatmul.mubr.msk.bf16.gmra.mrb[76].mxu0 %vm105_vm0, %v20856_v34  ;;  %16817 = vmatmul.mubr.msk.bf16.gmra.mrb[68].mxu1 %vm105_vm0, %v20848_v18 }
 0x220   :  { %2713 = vmatprep.mubr.bf16.mxu1 %v22001_v28  ;;  %2782 = vmatprep.mubr.bf16.mxu0 %v22001_v28 }
 0x227   :  { %16818 = vmatmul.mubr.msk.bf16.gmra.mrb[72].mxu1 %vm105_vm0, %v20849_v22  ;;  %16822 = vmatmul.mubr.msk.bf16.vlgmr.msra.gmra.mrb[44].mxu0 %vm105_vm0, %v20857_v35  ;;  %v166_v22 = vld [vmem:[#allocation8 + $0x1] ss:$2 sm:$0xf] }
 0x228   :  { %2723 = vmatprep.mubr.bf16.mxu1 %v22001_v28  ;;  %2792 = vmatprep.mubr.bf16.mxu0 %v22001_v28  ;;  %v22248_v31 = vrot.slane %v166_v22, %v22217_v5 }
 0x229   :  { %3025 = vmatpush1.bf16.msra.mxu0 %v20858_v36 }
 0x22a   :  { %3026 = vmatprep.subr.bf16.mxu0 %v20859_v37  ;;  %v22263_v37 = vrot.slane %v166_v22, %v22233_v24 }
 0x22d   :  { %3027 = vmatpush1.bf16.msra.mxu0 %v20860_v38 }
 0x22e   :  { %3379 = vmatprep.subr.bf16.mxu0 %v20861_v39 }
 0x22f   :  { %16819 = vmatmul.mubr.msk.bf16.gmra.mrb[76].mxu1 %vm105_vm0, %v20854_v27  ;;  %16823 = vmatmul.mubr.msk.bf16.gmra.mrb[48].mxu0 %vm105_vm0, %v20862_v41  ;;  %v22241_v27 = vrot.slane %v166_v22, %v22213_v3 }
 0x230   :  { %2733 = vmatprep.mubr.bf16.mxu1 %v22001_v28  ;;  %2802 = vmatprep.mubr.bf16.mxu0 %v22001_v28 }
 0x232   :  { %v1502_v42 = vpop.f32.mrb[36].mxu0 }
 0x233   :  { %v1503_v43 = vpop.f32.mrb[37].mxu0 }
 0x234   :  { %v1504_v44 = vpop.f32.mrb[38].mxu0 }
 0x235   :  { %v1505_v45 = vpop.f32.mrb[39].mxu0 }
 0x237   :  { %16820 = vmatmul.mubr.msk.bf16.gmra.mrb[80].mxu1 %vm105_vm0, %v20855_v33  ;;  %16824 = vmatmul.mubr.msk.bf16.gmra.mrb[52].mxu0 %vm105_vm0, %v20863_v46 }
 0x238   :  { %2743 = vmatprep.mubr.bf16.mxu1 %v22001_v28  ;;  %2812 = vmatprep.mubr.bf16.mxu0 %v22001_v28 }
 0x23a   :  { %v1836_v47 = vpop.f32.mrb[0].mxu0 }
 0x23b   :  { %v1838_v48 = vpop.f32.mrb[1].mxu0  ;;  %v2097_v30 = vmul.f32 %v22224_v16, %v1836_v47 }
 0x23c   :  { %v1840_v49 = vpop.f32.mrb[2].mxu0 }
 0x23d   :  { %v22172_v50 = vpop.f32.mrb[3].mxu0  ;;  %v2174_v43 = vadd.f32 %v22241_v27, %v2097_v30 }
 0x23e   :  { %v2102_v38 = vmul.f32 %v22231_v23, %v22172_v50 }
 0x23f   :  { %16821 = vmatmul.mubr.msk.bf16.gmra.mrb[88].mxu1 %vm105_vm0, %v20856_v34  ;;  %16825 = vmatmul.mubr.msk.bf16.gmra.mrb[56].mxu0 %vm105_vm0, %v22178_v51  ;;  %v2101_v34 = vmul.f32 %v22224_v16, %v1840_v49 }
 0x240   :  { %2822 = vmatprep.mubr.bf16.mxu0 %v22001_v28  ;;  %2891 = vmatprep.mubr.bf16.mxu1 %v22001_v28 }
 0x242   :  { %v22184_v52 = vpop.f32.mrb[4].mxu0 }
 0x243   :  { %v22186_v53 = vpop.f32.mrb[5].mxu0 }
 0x244   :  { %v22188_v54 = vpop.f32.mrb[6].mxu0 }
 0x245   :  { %v22190_v55 = vpop.f32.mrb[7].mxu0 }
 0x247   :  { %16826 = vmatmul.mubr.msk.bf16.gmra.mrb[60].mxu0 %vm105_vm0, %v22195_v56  ;;  %16830 = vmatmul.mubr.msk.bf16.vlgmr.msra.gmra.mrb[56].mxu1 %vm105_vm0, %v20857_v35 }
 0x248   :  { %3134 = vmatpush1.bf16.msra.mxu1 %v20866_v58  ;;  %2832 = vmatprep.mubr.bf16.mxu0 %v22001_v28  ;;  %v2178_v58 = vadd.f32 %v22241_v27, %v2101_v34  ;;  %v2109_v34 = vmul.f32 %v22224_v16, %v22188_v54 }
 0x249   :  { %2901 = vmatprep.mubr.bf16.mxu1 %v22001_v28  ;;  %3135 = vmatprep.subr.bf16.mxu1 %v20867_v59 }
 0x24a   :  { %v22202_v60 = vpop.f32.mrb[8].mxu0  ;;  %v2234_v30 = vmax.f32 %v2178_v58, 0.0 }
 0x24b   :  { %v22204_v61 = vpop.f32.mrb[9].mxu0 }
 0x24c   :  { %v22206_v63 = vpop.f32.mrb[10].mxu0  ;;  %3136 = vmatpush1.bf16.msra.mxu1 %v20868_v0  ;;  %v2179_v0 = vadd.f32 %v22248_v31, %v2102_v38 }
 0x24d   :  { %v22208_v1 = vpop.f32.mrb[11].mxu0  ;;  %3488 = vmatprep.subr.bf16.mxu1 %v20869_v2 }
 0x24e   :  { %v2235_v38 = vmax.f32 %v2179_v0, 0.0 }
 0x24f   :  { %16827 = vmatmul.mubr.msk.bf16.gmra.mrb[64].mxu0 %vm105_vm0, %v21931_v8  ;;  %16831 = vmatmul.mubr.msk.bf16.gmra.mrb[60].mxu1 %vm105_vm0, %v20862_v41  ;;  %v22226_v8 = vsub.s32 2, %v2078_v62 }
 0x250   :  { %2842 = vmatprep.mubr.bf16.mxu0 %v22001_v28  ;;  %2911 = vmatprep.mubr.bf16.mxu1 %v22001_v28 }
 0x251   :  { %25019 = vst [vmem:[#allocation19_spill] sm:$0xff] %v22226_v8  ;;  %v22244_v29 = vrot.slane %v164_v4, %v22226_v8  ;;  %v22257_v33 = vrot.slane %v166_v22, %v22226_v8  ;;  %v2230_v4 = vmax.f32 %v2174_v43, 0.0  ;;  %v2110_v43 = vmul.f32 %v22231_v23, %v22190_v55 }
 0x252   :  { %v1611_v6 = vpop.f32.mrb[48].mxu1  ;;  %v22219_v7 = vpop.f32.mrb[12].mxu0 }
 0x253   :  { %v1612_v13 = vpop.f32.mrb[49].mxu1  ;;  %v22221_v15 = vpop.f32.mrb[13].mxu0 }
 0x254   :  { %v1613_v17 = vpop.f32.mrb[50].mxu1  ;;  %v22228_v18 = vpop.f32.mrb[14].mxu0  ;;  %v2105_v13 = vmul.f32 %v22224_v16, %v22184_v52 }
 0x255   :  { %v1614_v25 = vpop.f32.mrb[51].mxu1  ;;  %v22235_v26 = vpop.f32.mrb[15].mxu0 }
 0x257   :  { %16828 = vmatmul.mubr.msk.bf16.gmra.mrb[68].mxu0 %vm105_vm0, %v21949_v14  ;;  %16832 = vmatmul.mubr.msk.bf16.gmra.mrb[64].mxu1 %vm105_vm0, %v20863_v46  ;;  %v2098_v14 = vmul.f32 %v22231_v23, %v1838_v48 }
 0x258   :  { %2852 = vmatprep.mubr.bf16.mxu0 %v22001_v28  ;;  %2921 = vmatprep.mubr.bf16.mxu1 %v22001_v28 }
 0x259   :  { %v2175_v47 = vadd.f32 %v22248_v31, %v2098_v14 }
 0x25a   :  { %v22260_v35 = vpop.f32.mrb[16].mxu0  ;;  %v1945_v36 = vpop.f32.mrb[8].mxu1 }
 0x25b   :  { %v22267_v39 = vpop.f32.mrb[17].mxu0  ;;  %v1947_v41 = vpop.f32.mrb[9].mxu1  ;;  %v2099_v42 = vmul.f32 %v22244_v29, %v1945_v36  ;;  %v2231_v22 = vmax.f32 %v2175_v47, 0.0 }
 0x25c   :  { %v22271_v44 = vpop.f32.mrb[18].mxu0  ;;  %v1949_v45 = vpop.f32.mrb[10].mxu1  ;;  %v2100_v46 = vmul.f32 %v22253_v32, %v1947_v41 }
 0x25d   :  { %v22275_v48 = vpop.f32.mrb[19].mxu0  ;;  %v1951_v49 = vpop.f32.mrb[11].mxu1  ;;  %v2103_v57 = vmul.f32 %v22244_v29, %v1949_v45  ;;  %v2176_v50 = vadd.f32 %v22257_v33, %v2099_v42 }
 0x25e   :  { %v2104_v59 = vmul.f32 %v22253_v32, %v1951_v49  ;;  %v2177_v62 = vadd.f32 %v22263_v37, %v2100_v46  ;;  %v2182_v49 = vadd.f32 %v22241_v27, %v2105_v13 }
 0x25f   :  { %16829 = vmatmul.mubr.msk.bf16.gmra.mrb[80].mxu0 %vm105_vm0, %v21959_v19  ;;  %16833 = vmatmul.mubr.msk.bf16.gmra.mrb[68].mxu1 %vm105_vm0, %v22178_v51  ;;  %v2180_v2 = vadd.f32 %v22257_v33, %v2103_v57  ;;  %v2232_v6 = vmax.f32 %v2176_v50, 0.0  ;;  %v2106_v19 = vmul.f32 %v22231_v23, %v22186_v53 }
 0x260   :  { %2931 = vmatprep.mubr.bf16.mxu1 %v22001_v28  ;;  %3056 = vmatprep.mubr.bf16.mxu0 %v22001_v28  ;;  %v2181_v17 = vadd.f32 %v22263_v37, %v2104_v59  ;;  %v2233_v25 = vmax.f32 %v2177_v62, 0.0 }
 0x261   :  { %v2236_v51 = vmax.f32 %v2180_v2, 0.0  ;;  %v22295_v14 = vmax.f32 %v2230_v4, %v2232_v6  ;;  %v2183_v59 = vadd.f32 %v22248_v31, %v2106_v19  ;;  %v2186_v4 = vadd.f32 %v22241_v27, %v2109_v34 }
 0x262   :  { %v22299_v36 = vpop.f32.mrb[20].mxu0  ;;  %v1955_v52 = vpop.f32.mrb[12].mxu1  ;;  %v2237_v41 = vmax.f32 %v2181_v17, 0.0  ;;  %v22301_v42 = vmax.f32 %v2231_v22, %v2233_v25  ;;  %v2187_v17 = vadd.f32 %v22248_v31, %v2110_v43  ;;  %v2238_v25 = vmax.f32 %v2182_v49, 0.0  ;;  %v20871_v49 = vld [vmem:[#allocation3 + $0x124] ss:$16 sps:$4 sm:$0xff]  }
 0x263   :  { %v22305_v45 = vpop.f32.mrb[21].mxu0  ;;  %v1957_v53 = vpop.f32.mrb[13].mxu1  ;;  %v22307_v46 = vmax.f32 %v2234_v30, %v2236_v51  ;;  %v2107_v47 = vmul.f32 %v22244_v29, %v1955_v52  ;;  %v2113_v30 = vmul.f32 %v22224_v16, %v22202_v60  ;;  %v2239_v34 = vmax.f32 %v2183_v59, 0.0 }
 0x264   :  { %v22311_v54 = vpop.f32.mrb[22].mxu0  ;;  %v1959_v57 = vpop.f32.mrb[14].mxu1  ;;  %v22313_v50 = vmax.f32 %v2235_v38, %v2237_v41  ;;  %v2108_v58 = vmul.f32 %v22253_v32, %v1957_v53  ;;  %v20870_v38 = vld [vmem:[#allocation3 + $0x100] ss:$16 sps:$4 sm:$0xff]   ;;  %v2117_v60 = vmul.f32 %v22224_v16, %v22206_v63 }
 0x265   :  { %v22317_v62 = vpop.f32.mrb[23].mxu0  ;;  %v1961_v55 = vpop.f32.mrb[15].mxu1  ;;  %v2111_v0 = vmul.f32 %v22244_v29, %v1959_v57  ;;  %v2184_v2 = vadd.f32 %v22257_v33, %v2107_v47  ;;  %v20052_v57 = vld [vmem:[#allocation3 + $0x44] ss:$16 sps:$4 sm:$0xff]  }
 0x266   :  { %v2112_v6 = vmul.f32 %v22253_v32, %v1961_v55  ;;  %v2185_v13 = vadd.f32 %v22263_v37, %v2108_v58  ;;  %v2243_v58 = vmax.f32 %v2187_v17, 0.0 }
 0x267   :  { %16834 = vmatmul.mubr.msk.bf16.gmra.mrb[72].mxu1 %vm105_vm0, %v22195_v56  ;;  %16838 = vmatmul.mubr.msk.bf16.vlgmr.msra.gmra.mrb[44].mxu0 %vm105_vm0, %v21969_v20  ;;  %v2188_v22 = vadd.f32 %v22257_v33, %v2111_v0  ;;  %v2240_v19 = vmax.f32 %v2184_v2, 0.0  ;;  %v2114_v56 = vmul.f32 %v22231_v23, %v22204_v61  ;;  %v2242_v20 = vmax.f32 %v2186_v4, 0.0 }
 0x268   :  { %2941 = vmatprep.mubr.bf16.mxu1 %v22001_v28  ;;  %3066 = vmatprep.mubr.bf16.mxu0 %v22001_v28  ;;  %v2189_v51 = vadd.f32 %v22263_v37, %v2112_v6  ;;  %v2241_v52 = vmax.f32 %v2185_v13, 0.0  ;;  %v2118_v61 = vmul.f32 %v22231_v23, %v22208_v1  ;;  %v2190_v13 = vadd.f32 %v22241_v27, %v2113_v30 }
 0x269   :  { %3380 = vmatpush1.bf16.msra.mxu0 %v20870_v38  ;;  %v2244_v41 = vmax.f32 %v2188_v22, 0.0  ;;  %v22337_v43 = vmax.f32 %v2238_v25, %v2240_v19  ;;  %v20872_v38 = vld [vmem:[#allocation3 + $0x120] ss:$16 sps:$4 sm:$0xff]  }
 0x26a   :  { %v1896_v53 = vpop.f32.mrb[24].mxu0  ;;  %v1965_v47 = vpop.f32.mrb[16].mxu1  ;;  %3381 = vmatprep.subr.bf16.mxu0 %v20871_v49  ;;  %v2245_v59 = vmax.f32 %v2189_v51, 0.0  ;;  %v22341_v55 = vmax.f32 %v2239_v34, %v2241_v52 }
 0x26b   :  { %v22346_v0 = vadd.f32 %v1896_v53, %v21933_v9  ;;  %v1898_v2 = vpop.f32.mrb[25].mxu0  ;;  %v1967_v4 = vpop.f32.mrb[17].mxu1  ;;  %v22348_v6 = vmax.f32 %v2242_v20, %v2244_v41  ;;  %v2115_v63 = vmul.f32 %v22244_v29, %v1965_v47  ;;  %v2191_v9 = vadd.f32 %v22248_v31, %v2114_v56  ;;  %v20873_v47 = vld [vmem:[%s24989_s0 + $0x100] sm:$0xff]  }
 0x26c   :  { %v22353_v22 = vadd.f32 %v1898_v2, %v21935_v10  ;;  %v1900_v17 = vpop.f32.mrb[26].mxu0  ;;  %v1969_v25 = vpop.f32.mrb[18].mxu1  ;;  %v22355_v19 = vmax.f32 %v2243_v58, %v2245_v59  ;;  %v2116_v1 = vmul.f32 %v22253_v32, %v1967_v4  ;;  %v2194_v20 = vadd.f32 %v22241_v27, %v2117_v60 }
 0x26d   :  { %v22360_v51 = vadd.f32 %v1900_v17, %v21937_v11  ;;  %v1902_v34 = vpop.f32.mrb[27].mxu0  ;;  %v1971_v52 = vpop.f32.mrb[19].mxu1  ;;  %3382 = vmatpush1.bf16.msra.mxu0 %v20872_v38  ;;  %v2119_v30 = vmul.f32 %v22244_v29, %v1969_v25  ;;  %v2192_v10 = vadd.f32 %v22257_v33, %v2115_v63  ;;  %v2195_v11 = vadd.f32 %v22248_v31, %v2118_v61 }
 0x26e   :  { %v22366_v41 = vadd.f32 %v1902_v34, %v21939_v12  ;;  %4123 = vmatprep.subr.bf16.mxu0 %v20052_v57  ;;  %v2120_v53 = vmul.f32 %v22253_v32, %v1971_v52  ;;  %v2193_v56 = vadd.f32 %v22263_v37, %v2116_v1  ;;  %v2246_v12 = vmax.f32 %v2190_v13, 0.0 }
 0x26f   :  { %16835 = vmatmul.mubr.msk.bf16.gmra.mrb[76].mxu1 %vm105_vm0, %v20873_v47  ;;  %16839 = vmatmul.mubr.msk.bf16.gmra.mrb[48].mxu0 %vm105_vm0, %v21979_v21  ;;  %v2196_v60 = vadd.f32 %v22257_v33, %v2119_v30  ;;  %v2248_v49 = vmax.f32 %v2192_v10, 0.0  ;;  %v2121_v57 = vmul.f32 %v22224_v16, %v22219_v7  ;;  %v2247_v59 = vmax.f32 %v2191_v9, 0.0 }
 0x270   :  { %2951 = vmatprep.mubr.bf16.mxu1 %v22001_v28  ;;  %3076 = vmatprep.mubr.bf16.mxu0 %v22001_v28  ;;  %v2197_v58 = vadd.f32 %v22263_v37, %v2120_v53  ;;  %v2249_v61 = vmax.f32 %v2193_v56, 0.0  ;;  %v2122_v2 = vmul.f32 %v22231_v23, %v22221_v15  ;;  %v2250_v4 = vmax.f32 %v2194_v20, 0.0 }
 0x271   :  { %v2252_v21 = vmax.f32 %v2196_v60, 0.0  ;;  %v22385_v63 = vmax.f32 %v2246_v12, %v2248_v49  ;;  %v2125_v13 = vmul.f32 %v22224_v16, %v22228_v18  ;;  %v2251_v25 = vmax.f32 %v2195_v11, 0.0 }
 0x272   :  { %v1975_v17 = vpop.f32.mrb[20].mxu1  ;;  %v1906_v7 = vpop.f32.mrb[40].mxu0  ;;  %v2253_v1 = vmax.f32 %v2197_v58, 0.0  ;;  %v22389_v34 = vmax.f32 %v2247_v59, %v2249_v61  ;;  %v2126_v9 = vmul.f32 %v22231_v23, %v22235_v26  ;;  %v2198_v10 = vadd.f32 %v22241_v27, %v2121_v57 }
 0x273   :  { %v1977_v52 = vpop.f32.mrb[21].mxu1  ;;  %v1907_v38 = vpop.f32.mrb[41].mxu0  ;;  %v22393_v30 = vmax.f32 %v2250_v4, %v2252_v21  ;;  %v2123_v15 = vmul.f32 %v22244_v29, %v1975_v17  ;;  %v2199_v11 = vadd.f32 %v22248_v31, %v2122_v2  ;;  %v2202_v49 = vadd.f32 %v22241_v27, %v2125_v13  ;;  %v20874_v2 = vld [vmem:[%s24989_s0 + $0x108] sm:$0xff]   ;;  %v22416_v4 = vld [vmem:[%s24989_s0 + $0x18] sm:$0xff]  }
 0x274   :  { %v1979_v20 = vpop.f32.mrb[22].mxu1  ;;  %v1908_v53 = vpop.f32.mrb[42].mxu0  ;;  %v22397_v18 = vmax.f32 %v2251_v25, %v2253_v1  ;;  %v2124_v56 = vmul.f32 %v22253_v32, %v1977_v52  ;;  %v2203_v59 = vadd.f32 %v22248_v31, %v2126_v9  ;;  %v2129_v61 = vmul.f32 %v22224_v16, %v22260_v35 }
 0x275   :  { %v1981_v47 = vpop.f32.mrb[23].mxu1  ;;  %v1909_v60 = vpop.f32.mrb[43].mxu0  ;;  %v2127_v26 = vmul.f32 %v22244_v29, %v1979_v20  ;;  %v2200_v12 = vadd.f32 %v22257_v33, %v2123_v15  ;;  %v2254_v13 = vmax.f32 %v2198_v10, 0.0  ;;  %v2130_v35 = vmul.f32 %v22231_v23, %v22267_v39 }
 0x276   :  { %v2128_v58 = vmul.f32 %v22253_v32, %v1981_v47  ;;  %v2201_v57 = vadd.f32 %v22263_v37, %v2124_v56  ;;  %v2255_v25 = vmax.f32 %v2199_v11, 0.0  ;;  %v2133_v9 = vmul.f32 %v22224_v16, %v22271_v44 }
 0x277   :  { %16836 = vmatmul.mubr.msk.bf16.gmra.mrb[80].mxu1 %vm105_vm0, %v20874_v2  ;;  %16840 = vmatmul.mubr.msk.bf16.gmra.mrb[52].mxu0 %vm105_vm0, %v22416_v4  ;;  %v2204_v21 = vadd.f32 %v22257_v33, %v2127_v26  ;;  %v2256_v17 = vmax.f32 %v2200_v12, 0.0  ;;  %v2258_v52 = vmax.f32 %v2202_v49, 0.0  ;;  %v2134_v10 = vmul.f32 %v22231_v23, %v22275_v48 }
 0x278   :  { %2961 = vmatprep.mubr.bf16.mxu1 %v22001_v28  ;;  %3086 = vmatprep.mubr.bf16.mxu0 %v22001_v28  ;;  %v2205_v7 = vadd.f32 %v22263_v37, %v2128_v58  ;;  %v2257_v1 = vmax.f32 %v2201_v57, 0.0  ;;  %v2259_v39 = vmax.f32 %v2203_v59, 0.0  ;;  %v2206_v47 = vadd.f32 %v22241_v27, %v2129_v61 }
 0x279   :  { %v2260_v38 = vmax.f32 %v2204_v21, 0.0  ;;  %v22428_v15 = vmax.f32 %v2254_v13, %v2256_v17  ;;  %v2207_v44 = vadd.f32 %v22248_v31, %v2130_v35  ;;  %v2210_v48 = vadd.f32 %v22241_v27, %v2133_v9  ;;  %v22458_v9 = vld [vmem:[%s24989_s0 + $0x20] sm:$0xff]  }
 0x27a   :  { %v1985_v20 = vpop.f32.mrb[24].mxu1  ;;  %v2261_v53 = vmax.f32 %v2205_v7, 0.0  ;;  %v22432_v56 = vmax.f32 %v2255_v25, %v2257_v1  ;;  %v2211_v61 = vadd.f32 %v22248_v31, %v2134_v10  ;;  %v2262_v17 = vmax.f32 %v2206_v47, 0.0  ;;  %v20876_v1 = vld [vmem:[%s24989_s0 + $0x110] sm:$0xff]  }
 0x27b   :  { %v2131_v11 = vmul.f32 %v22244_v29, %v1985_v20  ;;  %v1987_v60 = vpop.f32.mrb[25].mxu1  ;;  %v22436_v26 = vmax.f32 %v2258_v52, %v2260_v38  ;;  %v2137_v35 = vmul.f32 %v22224_v16, %v22299_v36  ;;  %v2263_v52 = vmax.f32 %v2207_v44, 0.0 }
 0x27c   :  { %v2132_v12 = vmul.f32 %v22253_v32, %v1987_v60  ;;  %v1989_v49 = vpop.f32.mrb[26].mxu1  ;;  %v22440_v58 = vmax.f32 %v2259_v39, %v2261_v53  ;;  %v2138_v36 = vmul.f32 %v22231_v23, %v22305_v45  ;;  %v2266_v20 = vmax.f32 %v2210_v48, 0.0 }
 0x27d   :  { %v2208_v57 = vadd.f32 %v22257_v33, %v2131_v11  ;;  %v2135_v59 = vmul.f32 %v22244_v29, %v1989_v49  ;;  %v1991_v2 = vpop.f32.mrb[27].mxu1  ;;  %v2141_v39 = vmul.f32 %v22224_v16, %v22311_v54  ;;  %v2267_v11 = vmax.f32 %v2211_v61, 0.0 }
 0x27e   :  { %25021 = vst [vmem:[#allocation21_spill] sm:$0xff] %v22440_v58  ;;  %v2209_v21 = vadd.f32 %v22263_v37, %v2132_v12  ;;  %v2136_v13 = vmul.f32 %v22253_v32, %v1991_v2  ;;  %v2142_v60 = vmul.f32 %v22231_v23, %v22317_v62  ;;  %v2214_v49 = vadd.f32 %v22241_v27, %v2137_v35 }
 0x27f   :  { %v2264_v7 = vmax.f32 %v2208_v57, 0.0  ;;  %v2212_v25 = vadd.f32 %v22257_v33, %v2135_v59  ;;  %16837 = vmatmul.mubr.msk.bf16.gmra.mrb[92].mxu1 %vm105_vm0, %v20876_v1  ;;  %16841 = vmatmul.mubr.msk.bf16.gmra.mrb[56].mxu0 %vm105_vm0, %v22458_v9  ;;  %v2215_v54 = vadd.f32 %v22248_v31, %v2138_v36  ;;  %v2218_v62 = vadd.f32 %v22241_v27, %v2141_v39 }
 0x280   :  { %v2265_v38 = vmax.f32 %v2209_v21, 0.0  ;;  %v2213_v10 = vadd.f32 %v22263_v37, %v2136_v13  ;;  %3096 = vmatprep.mubr.bf16.mxu0 %v22001_v28  ;;  %3165 = vmatprep.mubr.bf16.mxu1 %v22001_v28  ;;  %v2219_v35 = vadd.f32 %v22248_v31, %v2142_v60  ;;  %v2270_v1 = vmax.f32 %v2214_v49, 0.0  ;;  %v20880_v60 = vld [vmem:[#allocation3 + $0x108] ss:$16 sps:$4 sm:$0xff]  }
 0x281   :  { %v2268_v53 = vmax.f32 %v2212_v25, 0.0  ;;  %v22469_v47 = vmax.f32 %v2262_v17, %v2264_v7  ;;  %v2271_v39 = vmax.f32 %v2215_v54, 0.0  ;;  %v2149_v49 = vmul.f32 %v22360_v51, %v22224_v16  ;;  %v20055_v54 = vld [vmem:[#allocation3 + $0x4c] ss:$16 sps:$4 sm:$0xff]  }
 0x282   :  { %v2269_v44 = vmax.f32 %v2213_v10, 0.0  ;;  %v1995_v45 = vpop.f32.mrb[28].mxu1  ;;  %v22473_v12 = vmax.f32 %v2263_v52, %v2265_v38  ;;  %v2145_v52 = vmul.f32 %v22346_v0, %v22224_v16  ;;  %v22495_v10 = vld [vmem:[%s24989_s0 + $0x28] sm:$0xff]   ;;  %v2146_v0 = vmul.f32 %v22353_v22, %v22231_v23 }
 0x283   :  { %25022 = vst [vmem:[#allocation22_spill] sm:$0xff] %v22469_v47  ;;  %v2139_v57 = vmul.f32 %v22244_v29, %v1995_v45  ;;  %v1997_v28 = vpop.f32.mrb[29].mxu1  ;;  %v22477_v48 = vmax.f32 %v2266_v20, %v2268_v53  ;;  %v20879_v20 = vld [vmem:[%s24989_s0 + $0x8] sm:$0xff]   ;;  %v2274_v45 = vmax.f32 %v2218_v62, 0.0 }
 0x284   :  { %25023 = vst [vmem:[#allocation23_spill] sm:$0xff] %v22473_v12  ;;  %v2140_v59 = vmul.f32 %v22253_v32, %v1997_v28  ;;  %v1999_v2 = vpop.f32.mrb[30].mxu1  ;;  %v22481_v61 = vmax.f32 %v2267_v11, %v2269_v44  ;;  %v22506_v44 = vld [vmem:[#allocation2] sm:$0xff]  ;;  %v20882_v28 = vld [vmem:[#allocation3 + $0x12c] ss:$16 sps:$4 sm:$0xff]   ;;  %v2222_v62 = vadd.f32 %v22241_v27, %v2145_v52 }
 0x285   :  { %25024 = vst [vmem:[#allocation24_spill] sm:$0xff] %v22477_v48  ;;  %v2216_v21 = vadd.f32 %v22257_v33, %v2139_v57  ;;  %v2143_v13 = vmul.f32 %v22244_v29, %v1999_v2  ;;  %v2001_v17 = vpop.f32.mrb[31].mxu1  ;;  %v2150_v2 = vmul.f32 %v22366_v41, %v22231_v23  ;;  %v2226_v41 = vadd.f32 %v22241_v27, %v2149_v49  ;;  %v20884_v49 = vld [vmem:[%s24989_s0 + $0x30] sm:$0xff]  }
 0x286   :  { %25025 = vst [vmem:[#allocation25_spill] sm:$0xff] %v22481_v61  ;;  %v2217_v7 = vadd.f32 %v22263_v37, %v2140_v59  ;;  %v2144_v25 = vmul.f32 %v22253_v32, %v2001_v17  ;;  %v2275_v59 = vmax.f32 %v2219_v35, 0.0  ;;  %v20883_v35 = vld [vmem:[#allocation3 + $0x128] ss:$16 sps:$4 sm:$0xff]  }
 0x287   :  { %v2272_v36 = vmax.f32 %v2216_v21, 0.0  ;;  %v2220_v38 = vadd.f32 %v22257_v33, %v2143_v13  ;;  %16842 = vmatmul.mubr.msk.bf16.gmra.mrb[60].mxu0 %vm105_vm0, %v22495_v10  ;;  %16846 = vmatmul.mubr.msk.bf16.vlgmr.msra.gmra.mrb[56].mxu1 %vm105_vm0, %v20879_v20 }
 0x288   :  { %v2273_v53 = vmax.f32 %v2217_v7, 0.0  ;;  %v2221_v11 = vadd.f32 %v22263_v37, %v2144_v25  ;;  %3489 = vmatpush1.bf16.msra.mxu1 %v20880_v60  ;;  %3106 = vmatprep.mubr.bf16.mxu0 %v22506_v44 }
 0x289   :  { %v2276_v57 = vmax.f32 %v2220_v38, 0.0  ;;  %3175 = vmatprep.mubr.bf16.mxu1 %v22506_v44  ;;  %3490 = vmatprep.subr.bf16.mxu1 %v20882_v28  ;;  %v22512_v22 = vmax.f32 %v2270_v1, %v2272_v36  ;;  %v2223_v38 = vadd.f32 %v22248_v31, %v2146_v0 }
 0x28a   :  { %v2277_v21 = vmax.f32 %v2221_v11, 0.0  ;;  %v2005_v13 = vpop.f32.mrb[32].mxu1  ;;  %v22516_v17 = vmax.f32 %v2271_v39, %v2273_v53  ;;  %v2227_v11 = vadd.f32 %v22248_v31, %v2150_v2 }
 0x28b   :  { %25026 = vst [vmem:[#allocation26_spill] sm:$0xff] %v22512_v22  ;;  %v2147_v51 = vmul.f32 %v22244_v29, %v2005_v13  ;;  %v2007_v7 = vpop.f32.mrb[33].mxu1  ;;  %v22520_v25 = vmax.f32 %v2274_v45, %v2276_v57  ;;  %v2278_v45 = vmax.f32 %v2222_v62, 0.0  ;;  %v2282_v13 = vmax.f32 %v2226_v41, 0.0  ;;  %v20045_v41 = vld [vmem:[%s24989_s0 + $0x50] sm:$0xff]  }
 0x28c   :  { %25027 = vst [vmem:[#allocation27_spill] sm:$0xff] %v22516_v17  ;;  %v2148_v1 = vmul.f32 %v22253_v32, %v2007_v7  ;;  %v2009_v36 = vpop.f32.mrb[34].mxu1  ;;  %3491 = vmatpush1.bf16.msra.mxu1 %v20883_v35  ;;  %v22524_v20 = vmax.f32 %v2275_v59, %v2277_v21  ;;  %v2279_v59 = vmax.f32 %v2223_v38, 0.0  ;;  %v2283_v7 = vmax.f32 %v2227_v11, 0.0  ;;  %v20050_v11 = vld [vmem:[#allocation3 + $0x40] ss:$16 sps:$4 sm:$0xff]  }
 0x28d   :  { %25028 = vst [vmem:[#allocation28_spill] sm:$0xff] %v22520_v25  ;;  %v2224_v39 = vadd.f32 %v22257_v33, %v2147_v51  ;;  %v2151_v52 = vmul.f32 %v22244_v29, %v2009_v36  ;;  %v2011_v53 = vpop.f32.mrb[35].mxu1  ;;  %4232 = vmatprep.subr.bf16.mxu1 %v20055_v54  ;;  %v20885_v54 = vld [vmem:[%s24989_s0 + $0x10] sm:$0xff]  }
 0x28e   :  { %25029 = vst [vmem:[#allocation29_spill] sm:$0xff] %v22524_v20  ;;  %v2225_v60 = vadd.f32 %v22263_v37, %v2148_v1  ;;  %v2152_v0 = vmul.f32 %v22253_v32, %v2011_v53 }
 0x28f   :  { %v2280_v57 = vmax.f32 %v2224_v39, 0.0  ;;  %v2228_v28 = vadd.f32 %v22257_v33, %v2151_v52  ;;  %16843 = vmatmul.mubr.msk.bf16.gmra.mrb[64].mxu0 %vm105_vm0, %v20884_v49  ;;  %16847 = vmatmul.mubr.msk.bf16.gmra.mrb[60].mxu1 %vm105_vm0, %v20885_v54 }
 0x290   :  { %v2281_v2 = vmax.f32 %v2225_v60, 0.0  ;;  %v2229_v21 = vadd.f32 %v22263_v37, %v2152_v0  ;;  %3116 = vmatprep.mubr.bf16.mxu0 %v22506_v44  ;;  %3185 = vmatprep.mubr.bf16.mxu1 %v22506_v44  ;;  %v20886_v0 = vld [vmem:[%s24989_s0 + $0x38] sm:$0xff]  }
 0x291   :  { %v2284_v62 = vmax.f32 %v2228_v28, 0.0  ;;  %v22544_v51 = vmax.f32 %v2278_v45, %v2280_v57  ;;  %v20046_v45 = vld [vmem:[%s24989_s0 + $0x58] sm:$0xff]   ;;  %v20047_v57 = vld [vmem:[%s24989_s0 + $0x60] sm:$0xff]  }
 0x292   :  { %v2285_v1 = vmax.f32 %v2229_v21, 0.0  ;;  %v2015_v36 = vpop.f32.mrb[52].mxu1  ;;  %v22546_v35 = vmax.f32 %v2279_v59, %v2281_v2  ;;  %v20887_v2 = vld [vmem:[%s24989_s0 + $0x40] sm:$0xff]   ;;  %v20049_v21 = vld [vmem:[%s24989_s0 + $0x70] sm:$0xff]  }
 0x293   :  { %25030 = vst [vmem:[#allocation30_spill] sm:$0xff] %v22544_v51  ;;  %v2016_v39 = vpop.f32.mrb[53].mxu1  ;;  %v22548_v52 = vmax.f32 %v2282_v13, %v2284_v62  ;;  %v20053_v13 = vld [vmem:[#allocation3 + $0x48] ss:$16 sps:$4 sm:$0xff]   ;;  %v20065_v62 = vld [vmem:[#allocation3 + $0x6c] ss:$16 sps:$4 sm:$0xff]  }
 0x294   :  { %25031 = vst [vmem:[#allocation31_spill] sm:$0xff] %v22546_v35  ;;  %v2017_v38 = vpop.f32.mrb[54].mxu1  ;;  %v22550_v53 = vmax.f32 %v2283_v7, %v2285_v1  ;;  %v20063_v7 = vld [vmem:[#allocation3 + $0x68] ss:$16 sps:$4 sm:$0xff]   ;;  %v20075_v1 = vld [vmem:[#allocation3 + $0xc] ss:$16 sps:$4 sm:$0xff]  }
 0x295   :  { %25032 = vst [vmem:[#allocation32_spill] sm:$0xff] %v22548_v52  ;;  %v2018_v60 = vpop.f32.mrb[55].mxu1  ;;  %v20056_v36 = vld [vmem:[%s24989_s0 + $0x78] sm:$0xff]  }
 0x296   :  { %25033 = vst [vmem:[#allocation33_spill] sm:$0xff] %v22550_v53  ;;  %v20057_v60 = vld [vmem:[%s24989_s0 + $0x80] sm:$0xff]  }
 0x297   :  { %16844 = vmatmul.mubr.msk.bf16.gmra.mrb[68].mxu0 %vm105_vm0, %v20886_v0  ;;  %16848 = vmatmul.mubr.msk.bf16.gmra.mrb[64].mxu1 %vm105_vm0, %v22416_v4  ;;  %v20061_v4 = vld [vmem:[#allocation3 + $0x64] ss:$16 sps:$4 sm:$0xff]  }
 0x298   :  { %3126 = vmatprep.mubr.bf16.mxu0 %v22506_v44  ;;  %3195 = vmatprep.mubr.bf16.mxu1 %v22506_v44 }
 0x29f   :  { %16845 = vmatmul.mubr.msk.bf16.gmra.mrb[84].mxu0 %vm105_vm0, %v22031_v40  ;;  %16849 = vmatmul.mubr.msk.bf16.gmra.mrb[68].mxu1 %vm105_vm0, %v22458_v9  ;;  %v20059_v40 = vld [vmem:[#allocation3 + $0x60] ss:$16 sps:$4 sm:$0xff]   ;;  %v20072_v9 = vld [vmem:[#allocation3 + $0x4] ss:$16 sps:$4 sm:$0xff]  }
 0x2a0   :  { %3205 = vmatprep.mubr.bf16.mxu1 %v22506_v44  ;;  %3411 = vmatprep.mubr.bf16.mxu0 %v22506_v44 }
 0x2a7   :  { %16850 = vmatmul.mubr.msk.bf16.gmra.mrb[72].mxu1 %vm105_vm0, %v22495_v10  ;;  %16878 = vmatmul.mubr.msk.bf16.vlgmr.msra.gmra.mrb[44].mxu0 %vm105_vm0, %v20045_v41 }
 0x2a8   :  { %3215 = vmatprep.mubr.bf16.mxu1 %v22506_v44  ;;  %3421 = vmatprep.mubr.bf16.mxu0 %v22506_v44 }
 0x2a9   :  { %4124 = vmatpush1.bf16.msra.mxu0 %v20050_v11  ;;  %v20058_v11 = vld [vmem:[%s24989_s0 + $0x88] sm:$0xff]  }
 0x2aa   :  { %4125 = vmatprep.subr.bf16.mxu0 %v20061_v4  ;;  %v20062_v4 = vld [vmem:[%s24989_s0 + $0xd8] sm:$0xff]  }
 0x2ad   :  { %4126 = vmatpush1.bf16.msra.mxu0 %v20059_v40  ;;  %v20070_v40 = vld [vmem:[#allocation3] ss:$16 sps:$4 sm:$0xff]  }
 0x2ae   :  { %4445 = vmatprep.subr.bf16.mxu0 %v20072_v9  ;;  %v20081_v9 = vld [vmem:[#allocation3 + $0x24] ss:$16 sps:$4 sm:$0xff]  }
 0x2af   :  { %16851 = vmatmul.mubr.msk.bf16.gmra.mrb[76].mxu1 %vm105_vm0, %v20884_v49  ;;  %16879 = vmatmul.mubr.msk.bf16.gmra.mrb[48].mxu0 %vm105_vm0, %v20046_v45  ;;  %v20048_v49 = vld [vmem:[%s24989_s0 + $0x68] sm:$0xff]  }
 0x2b0   :  { %3225 = vmatprep.mubr.bf16.mxu1 %v22506_v44  ;;  %3431 = vmatprep.mubr.bf16.mxu0 %v22506_v44 }
 0x2b2   :  { %v2418_v10 = vpop.f32.mrb[72].mxu0 }
 0x2b3   :  { %v2419_v28 = vpop.f32.mrb[73].mxu0  ;;  %v20092_v10 = vld [vmem:[#allocation3 + $0x84] ss:$16 sps:$4 sm:$0xff]  }
 0x2b4   :  { %v2420_v54 = vpop.f32.mrb[74].mxu0 }
 0x2b5   :  { %v2421_v59 = vpop.f32.mrb[75].mxu0  ;;  %v20067_v54 = vld [vmem:[%s24989_s0 + $0xe8] sm:$0xff]  }
 0x2b7   :  { %16852 = vmatmul.mubr.msk.bf16.gmra.mrb[80].mxu1 %vm105_vm0, %v20886_v0  ;;  %16880 = vmatmul.mubr.msk.bf16.gmra.mrb[52].mxu0 %vm105_vm0, %v20047_v57 }
 0x2b8   :  { %3235 = vmatprep.mubr.bf16.mxu1 %v22506_v44  ;;  %3441 = vmatprep.mubr.bf16.mxu0 %v22506_v44 }
 0x2bf   :  { %16853 = vmatmul.mubr.msk.bf16.gmra.mrb[96].mxu1 %vm105_vm0, %v20887_v2  ;;  %16881 = vmatmul.mubr.msk.bf16.gmra.mrb[56].mxu0 %vm105_vm0, %v20048_v49 }
 0x2c0   :  { %3451 = vmatprep.mubr.bf16.mxu0 %v22506_v44  ;;  %3520 = vmatprep.mubr.bf16.mxu1 %v22506_v44 }
 0x2c7   :  { %16882 = vmatmul.mubr.msk.bf16.gmra.mrb[60].mxu0 %vm105_vm0, %v20049_v21  ;;  %16886 = vmatmul.mubr.msk.bf16.vlgmr.msra.gmra.mrb[56].mxu1 %vm105_vm0, %v20045_v41 }
 0x2c8   :  { %4233 = vmatpush1.bf16.msra.mxu1 %v20053_v13  ;;  %3461 = vmatprep.mubr.bf16.mxu0 %v22506_v44  ;;  %v20069_v13 = vld [vmem:[%s24989_s0 + $0xf8] sm:$0xff]  }
 0x2c9   :  { %3530 = vmatprep.mubr.bf16.mxu1 %v22506_v44  ;;  %4234 = vmatprep.subr.bf16.mxu1 %v20065_v62  ;;  %v20073_v62 = vld [vmem:[#allocation3 + $0x8] ss:$16 sps:$4 sm:$0xff]  }
 0x2cc   :  { %4235 = vmatpush1.bf16.msra.mxu1 %v20063_v7  ;;  %v20085_v7 = vld [vmem:[#allocation3 + $0x2c] ss:$16 sps:$4 sm:$0xff]  }
 0x2cd   :  { %4554 = vmatprep.subr.bf16.mxu1 %v20075_v1  ;;  %v20083_v1 = vld [vmem:[#allocation3 + $0x28] ss:$16 sps:$4 sm:$0xff]  }
 0x2cf   :  { %16883 = vmatmul.mubr.msk.bf16.gmra.mrb[64].mxu0 %vm105_vm0, %v20056_v36  ;;  %16887 = vmatmul.mubr.msk.bf16.gmra.mrb[60].mxu1 %vm105_vm0, %v20046_v45  ;;  %v20079_v45 = vld [vmem:[#allocation3 + $0x20] ss:$16 sps:$4 sm:$0xff]  }
 0x2d0   :  { %3471 = vmatprep.mubr.bf16.mxu0 %v22506_v44  ;;  %3540 = vmatprep.mubr.bf16.mxu1 %v22506_v44 }
 0x2d2   :  { %v2527_v39 = vpop.f32.mrb[84].mxu1 }
 0x2d3   :  { %v2528_v38 = vpop.f32.mrb[85].mxu1  ;;  %v20076_v39 = vld [vmem:[%s24989_s0 + $0x100] sm:$0xff]  }
 0x2d4   :  { %v2529_v0 = vpop.f32.mrb[86].mxu1 }
 0x2d5   :  { %v2530_v41 = vpop.f32.mrb[87].mxu1  ;;  %v20077_v0 = vld [vmem:[%s24989_s0 + $0x108] sm:$0xff]  }
 0x2d7   :  { %16884 = vmatmul.mubr.msk.bf16.gmra.mrb[68].mxu0 %vm105_vm0, %v20057_v60  ;;  %16888 = vmatmul.mubr.msk.bf16.gmra.mrb[64].mxu1 %vm105_vm0, %v20047_v57  ;;  %v20066_v57 = vld [vmem:[%s24989_s0 + $0xe0] sm:$0xff]  }
 0x2d8   :  { %3481 = vmatprep.mubr.bf16.mxu0 %v22506_v44  ;;  %3550 = vmatprep.mubr.bf16.mxu1 %v22506_v44 }
 0x2df   :  { %16885 = vmatmul.mubr.msk.bf16.gmra.mrb[88].mxu0 %vm105_vm0, %v20058_v11  ;;  %16889 = vmatmul.mubr.msk.bf16.gmra.mrb[68].mxu1 %vm105_vm0, %v20048_v49 }
 0x2e0   :  { %3560 = vmatprep.mubr.bf16.mxu1 %v22506_v44  ;;  %4155 = vmatprep.mubr.bf16.mxu0 %v22506_v44 }
 0x2e7   :  { %16890 = vmatmul.mubr.msk.bf16.gmra.mrb[72].mxu1 %vm105_vm0, %v20049_v21  ;;  %16942 = vmatmul.mubr.msk.bf16.vlgmr.msra.gmra.mrb[92].mxu0 %vm105_vm0, %v20062_v4  ;;  %v20068_v21 = vld [vmem:[%s24989_s0 + $0xf0] sm:$0xff]  }
 0x2e8   :  { %3570 = vmatprep.mubr.bf16.mxu1 %v22506_v44  ;;  %4165 = vmatprep.mubr.bf16.mxu0 %v22506_v44 }
 0x2e9   :  { %4446 = vmatpush1.bf16.msra.mxu0 %v20070_v40  ;;  %v20082_v40 = vld [vmem:[%s24989_s0 + $0x90] sm:$0xff]  }
 0x2ea   :  { %4447 = vmatprep.subr.bf16.mxu0 %v20081_v9  ;;  %v20090_v9 = vld [vmem:[#allocation3 + $0x80] ss:$16 sps:$4 sm:$0xff]  }
 0x2ed   :  { %4448 = vmatpush1.bf16.msra.mxu0 %v20079_v45  ;;  %v20101_v45 = vld [vmem:[#allocation3 + $0xa4] ss:$16 sps:$4 sm:$0xff]  }
 0x2ee   :  { %4791 = vmatprep.subr.bf16.mxu0 %v20092_v10  ;;  %v20099_v10 = vld [vmem:[#allocation3 + $0xa0] ss:$16 sps:$4 sm:$0xff]  }
 0x2ef   :  { %16891 = vmatmul.mubr.msk.bf16.gmra.mrb[76].mxu1 %vm105_vm0, %v20056_v36  ;;  %16943 = vmatmul.mubr.msk.bf16.gmra.mrb[96].mxu0 %vm105_vm0, %v20066_v57  ;;  %v20095_v36 = vld [vmem:[#allocation3 + $0x8c] ss:$16 sps:$4 sm:$0xff]  }
 0x2f0   :  { %3580 = vmatprep.mubr.bf16.mxu1 %v22506_v44  ;;  %4175 = vmatprep.mubr.bf16.mxu0 %v22506_v44 }
 0x2f2   :  { %v2636_v28 = vpop.f32.mrb[76].mxu0 }
 0x2f3   :  { %v2637_v59 = vpop.f32.mrb[77].mxu0  ;;  %v20086_v28 = vld [vmem:[%s24989_s0 + $0x98] sm:$0xff]  }
 0x2f4   :  { %v2638_v49 = vpop.f32.mrb[78].mxu0  ;;  %v20087_v59 = vld [vmem:[%s24989_s0 + $0xa0] sm:$0xff]  }
 0x2f5   :  { %v2639_v2 = vpop.f32.mrb[79].mxu0 }
 0x2f7   :  { %16892 = vmatmul.mubr.msk.bf16.gmra.mrb[80].mxu1 %vm105_vm0, %v20057_v60  ;;  %16944 = vmatmul.mubr.msk.bf16.gmra.mrb[100].mxu0 %vm105_vm0, %v20067_v54 }
 0x2f8   :  { %3590 = vmatprep.mubr.bf16.mxu1 %v22506_v44  ;;  %4185 = vmatprep.mubr.bf16.mxu0 %v22506_v44 }
 0x2ff   :  { %16893 = vmatmul.mubr.msk.bf16.gmra.mrb[100].mxu1 %vm105_vm0, %v20058_v11  ;;  %16945 = vmatmul.mubr.msk.bf16.gmra.mrb[104].mxu0 %vm105_vm0, %v20068_v21 }
 0x300   :  { %4195 = vmatprep.mubr.bf16.mxu0 %v22506_v44  ;;  %4264 = vmatprep.mubr.bf16.mxu1 %v22506_v44 }
 0x307   :  { %16946 = vmatmul.mubr.msk.bf16.gmra.mrb[108].mxu0 %vm105_vm0, %v20069_v13  ;;  %16950 = vmatmul.mubr.msk.bf16.vlgmr.msra.gmra.mrb[104].mxu1 %vm105_vm0, %v20062_v4  ;;  %v20078_v4 = vld [vmem:[%s24989_s0 + $0x110] sm:$0xff]  }
 0x308   :  { %4555 = vmatpush1.bf16.msra.mxu1 %v20073_v62  ;;  %4205 = vmatprep.mubr.bf16.mxu0 %v22506_v44  ;;  %v20089_v62 = vld [vmem:[%s24989_s0 + $0xb0] sm:$0xff]  }
 0x309   :  { %4274 = vmatprep.mubr.bf16.mxu1 %v22506_v44  ;;  %4556 = vmatprep.subr.bf16.mxu1 %v20085_v7  ;;  %v20093_v7 = vld [vmem:[#allocation3 + $0x88] ss:$16 sps:$4 sm:$0xff]  }
 0x30c   :  { %4557 = vmatpush1.bf16.msra.mxu1 %v20083_v1  ;;  %v20105_v1 = vld [vmem:[#allocation3 + $0xac] ss:$16 sps:$4 sm:$0xff]  }
 0x30d   :  { %4900 = vmatprep.subr.bf16.mxu1 %v20095_v36  ;;  %v20103_v36 = vld [vmem:[#allocation3 + $0xa8] ss:$16 sps:$4 sm:$0xff]  }
 0x30f   :  { %16947 = vmatmul.mubr.msk.bf16.gmra.mrb[112].mxu0 %vm105_vm0, %v20076_v39  ;;  %16951 = vmatmul.mubr.msk.bf16.gmra.mrb[108].mxu1 %vm105_vm0, %v20066_v57  ;;  %v20112_v57 = vld [vmem:[#allocation3 + $0xc4] ss:$16 sps:$4 sm:$0xff]  }
 0x310   :  { %4215 = vmatprep.mubr.bf16.mxu0 %v22506_v44  ;;  %4284 = vmatprep.mubr.bf16.mxu1 %v22506_v44 }
 0x312   :  { %v2745_v38 = vpop.f32.mrb[88].mxu1 }
 0x313   :  { %v2746_v60 = vpop.f32.mrb[89].mxu1  ;;  %v20096_v38 = vld [vmem:[%s24989_s0 + $0xb8] sm:$0xff]  }
 0x314   :  { %v2747_v41 = vpop.f32.mrb[90].mxu1 }
 0x315   :  { %v2748_v11 = vpop.f32.mrb[91].mxu1  ;;  %v20097_v41 = vld [vmem:[%s24989_s0 + $0xc0] sm:$0xff]  }
 0x317   :  { %16948 = vmatmul.mubr.msk.bf16.gmra.mrb[116].mxu0 %vm105_vm0, %v20077_v0  ;;  %16952 = vmatmul.mubr.msk.bf16.gmra.mrb[112].mxu1 %vm105_vm0, %v20067_v54 }
 0x318   :  { %4225 = vmatprep.mubr.bf16.mxu0 %v22506_v44  ;;  %4294 = vmatprep.mubr.bf16.mxu1 %v22506_v44 }
 0x31f   :  { %16949 = vmatmul.mubr.msk.bf16.gmra.mrb[120].mxu0 %vm105_vm0, %v20078_v4  ;;  %16953 = vmatmul.mubr.msk.bf16.gmra.mrb[116].mxu1 %vm105_vm0, %v20068_v21 }
 0x320   :  { %4304 = vmatprep.mubr.bf16.mxu1 %v22506_v44  ;;  %4477 = vmatprep.mubr.bf16.mxu0 %v22506_v44 }
 0x327   :  { %16954 = vmatmul.mubr.msk.bf16.gmra.mrb[120].mxu1 %vm105_vm0, %v20069_v13  ;;  %16974 = vmatmul.mubr.msk.bf16.vlgmr.msra.gmra.mrb[92].mxu0 %vm105_vm0, %v20082_v40  ;;  %v20088_v13 = vld [vmem:[%s24989_s0 + $0xa8] sm:$0xff]  }
 0x328   :  { %4314 = vmatprep.mubr.bf16.mxu1 %v22506_v44  ;;  %4487 = vmatprep.mubr.bf16.mxu0 %v22506_v44 }
 0x329   :  { %4792 = vmatpush1.bf16.msra.mxu0 %v20090_v9  ;;  %v22741_v9 = vld [vmem:[%s24989_s0 + $0x8] sm:$0xff]  }
 0x32a   :  { %4793 = vmatprep.subr.bf16.mxu0 %v20101_v45  ;;  %25034 = vst [vmem:[#allocation34_spill] sm:$0xff] %v22741_v9  ;;  %v20110_v45 = vld [vmem:[#allocation3 + $0xc0] ss:$16 sps:$4 sm:$0xff]  }
 0x32d   :  { %4794 = vmatpush1.bf16.msra.mxu0 %v20099_v10  ;;  %v20121_v10 = vld [vmem:[#allocation3 + $0xe4] ss:$16 sps:$4 sm:$0xff]  }
 0x32e   :  { %5193 = vmatprep.subr.bf16.mxu0 %v20112_v57  ;;  %v20119_v57 = vld [vmem:[#allocation3 + $0xe0] ss:$16 sps:$4 sm:$0xff]  }
 0x32f   :  { %16955 = vmatmul.mubr.msk.bf16.gmra.mrb[124].mxu1 %vm105_vm0, %v20076_v39  ;;  %16975 = vmatmul.mubr.msk.bf16.gmra.mrb[96].mxu0 %vm105_vm0, %v20086_v28  ;;  %v20115_v39 = vld [vmem:[#allocation3 + $0xcc] ss:$16 sps:$4 sm:$0xff]  }
 0x330   :  { %4324 = vmatprep.mubr.bf16.mxu1 %v22506_v44  ;;  %4497 = vmatprep.mubr.bf16.mxu0 %v22506_v44 }
 0x332   :  { %v2854_v54 = vpop.f32.mrb[80].mxu0 }
 0x333   :  { %v2855_v49 = vpop.f32.mrb[81].mxu0  ;;  %v22751_v54 = vld [vmem:[%s24989_s0 + $0x10] sm:$0xff]  }
 0x334   :  { %v2856_v2 = vpop.f32.mrb[82].mxu0  ;;  %25035 = vst [vmem:[#allocation35_spill] sm:$0xff] %v22751_v54 }
 0x335   :  { %v2857_v21 = vpop.f32.mrb[83].mxu0  ;;  %v22761_v2 = vld [vmem:[%s24989_s0 + $0x18] sm:$0xff]  }
 0x336   :  { %25036 = vst [vmem:[#allocation36_spill] sm:$0xff] %v22761_v2 }
 0x337   :  { %16956 = vmatmul.mubr.msk.bf16.gmra.mrb[128].mxu1 %vm105_vm0, %v20077_v0  ;;  %16976 = vmatmul.mubr.msk.bf16.gmra.mrb[100].mxu0 %vm105_vm0, %v20087_v59 }
 0x338   :  { %4334 = vmatprep.mubr.bf16.mxu1 %v22506_v44  ;;  %4507 = vmatprep.mubr.bf16.mxu0 %v22506_v44 }
 0x33f   :  { %16957 = vmatmul.mubr.msk.bf16.gmra.mrb[132].mxu1 %vm105_vm0, %v20078_v4  ;;  %16977 = vmatmul.mubr.msk.bf16.gmra.mrb[104].mxu0 %vm105_vm0, %v20088_v13 }
 0x340   :  { %4517 = vmatprep.mubr.bf16.mxu0 %v22506_v44  ;;  %4586 = vmatprep.mubr.bf16.mxu1 %v22506_v44 }
 0x347   :  { %16978 = vmatmul.mubr.msk.bf16.gmra.mrb[108].mxu0 %vm105_vm0, %v20089_v62  ;;  %16982 = vmatmul.mubr.msk.bf16.vlgmr.msra.gmra.mrb[104].mxu1 %vm105_vm0, %v20082_v40  ;;  %v20098_v40 = vld [vmem:[%s24989_s0 + $0xc8] sm:$0xff]  }
 0x348   :  { %4901 = vmatpush1.bf16.msra.mxu1 %v20093_v7  ;;  %4527 = vmatprep.mubr.bf16.mxu0 %v22506_v44 }
 0x349   :  { %4596 = vmatprep.mubr.bf16.mxu1 %v22506_v44  ;;  %4902 = vmatprep.subr.bf16.mxu1 %v20105_v1  ;;  %v22771_v1 = vld [vmem:[%s24989_s0 + $0x20] sm:$0xff]  }
 0x34a   :  { %25037 = vst [vmem:[#allocation37_spill] sm:$0xff] %v22771_v1 }
 0x34c   :  { %4903 = vmatpush1.bf16.msra.mxu1 %v20103_v36 }
 0x34d   :  { %5302 = vmatprep.subr.bf16.mxu1 %v20115_v39 }
 0x34f   :  { %16979 = vmatmul.mubr.msk.bf16.gmra.mrb[112].mxu0 %vm105_vm0, %v20096_v38  ;;  %16983 = vmatmul.mubr.msk.bf16.gmra.mrb[108].mxu1 %vm105_vm0, %v20086_v28  ;;  %v20132_v28 = vld [vmem:[#allocation3 + $0x104] ss:$16 sps:$4 sm:$0xff]  }
 0x350   :  { %4537 = vmatprep.mubr.bf16.mxu0 %v22506_v44  ;;  %4606 = vmatprep.mubr.bf16.mxu1 %v22506_v44 }
 0x352   :  { %v2963_v60 = vpop.f32.mrb[92].mxu1 }
 0x353   :  { %v2964_v0 = vpop.f32.mrb[93].mxu1 }
 0x354   :  { %v2965_v11 = vpop.f32.mrb[94].mxu1  ;;  %v22781_v0 = vld [vmem:[%s24989_s0 + $0x28] sm:$0xff]  }
 0x355   :  { %v2966_v4 = vpop.f32.mrb[95].mxu1  ;;  %25038 = vst [vmem:[#allocation38_spill] sm:$0xff] %v22781_v0  ;;  %v20113_v11 = vld [vmem:[#allocation3 + $0xc8] ss:$16 sps:$4 sm:$0xff]  }
 0x357   :  { %16980 = vmatmul.mubr.msk.bf16.gmra.mrb[116].mxu0 %vm105_vm0, %v20097_v41  ;;  %16984 = vmatmul.mubr.msk.bf16.gmra.mrb[112].mxu1 %vm105_vm0, %v20087_v59 }
 0x358   :  { %4547 = vmatprep.mubr.bf16.mxu0 %v22506_v44  ;;  %4616 = vmatprep.mubr.bf16.mxu1 %v22506_v44 }
 0x35f   :  { %16981 = vmatmul.mubr.msk.bf16.gmra.mrb[124].mxu0 %vm105_vm0, %v20098_v40  ;;  %16985 = vmatmul.mubr.msk.bf16.gmra.mrb[116].mxu1 %vm105_vm0, %v20088_v13 }
 0x360   :  { %4626 = vmatprep.mubr.bf16.mxu1 %v22506_v44  ;;  %4823 = vmatprep.mubr.bf16.mxu0 %v22506_v44 }
 0x367   :  { %16986 = vmatmul.mubr.msk.bf16.gmra.mrb[120].mxu1 %vm105_vm0, %v20089_v62  ;;  %17022 = vmatmul.mubr.msk.bf16.vlgmr.msra.gmra.mrb[92].mxu0 %vm105_vm0, %v22741_v9 }
 0x368   :  { %4636 = vmatprep.mubr.bf16.mxu1 %v22506_v44  ;;  %4833 = vmatprep.mubr.bf16.mxu0 %v22506_v44 }
 0x369   :  { %5194 = vmatpush1.bf16.msra.mxu0 %v20110_v45  ;;  %v20125_v45 = vld [vmem:[#allocation3 + $0xec] ss:$16 sps:$4 sm:$0xff]  }
 0x36a   :  { %5195 = vmatprep.subr.bf16.mxu0 %v20121_v10  ;;  %v20135_v10 = vld [vmem:[#allocation3 + $0x10c] ss:$16 sps:$4 sm:$0xff]  }
 0x36d   :  { %5196 = vmatpush1.bf16.msra.mxu0 %v20119_v57 }
 0x36e   :  { %5596 = vmatprep.subr.bf16.mxu0 %v20132_v28 }
 0x36f   :  { %16987 = vmatmul.mubr.msk.bf16.gmra.mrb[124].mxu1 %vm105_vm0, %v20096_v38  ;;  %17023 = vmatmul.mubr.msk.bf16.gmra.mrb[96].mxu0 %vm105_vm0, %v22751_v54 }
 0x370   :  { %4646 = vmatprep.mubr.bf16.mxu1 %v22506_v44  ;;  %4843 = vmatprep.mubr.bf16.mxu0 %v22506_v44 }
 0x372   :  { %v3128_v59 = vpop.f32.mrb[84].mxu0 }
 0x373   :  { %v3129_v49 = vpop.f32.mrb[85].mxu0  ;;  %v22792_v59 = vld [vmem:[%s24989_s0 + $0x30] sm:$0xff]  }
 0x374   :  { %v3130_v21 = vpop.f32.mrb[86].mxu0 }
 0x375   :  { %v3131_v13 = vpop.f32.mrb[87].mxu0 }
 0x377   :  { %16988 = vmatmul.mubr.msk.bf16.gmra.mrb[128].mxu1 %vm105_vm0, %v20097_v41  ;;  %17024 = vmatmul.mubr.msk.bf16.gmra.mrb[100].mxu0 %vm105_vm0, %v22761_v2 }
 0x378   :  { %4656 = vmatprep.mubr.bf16.mxu1 %v22506_v44  ;;  %4853 = vmatprep.mubr.bf16.mxu0 %v22506_v44 }
 0x37a   :  { %v3413_v62 = vpop.f32.mrb[44].mxu0 }
 0x37b   :  { %v3415_v7 = vpop.f32.mrb[45].mxu0 }
 0x37c   :  { %v3417_v36 = vpop.f32.mrb[46].mxu0  ;;  %v3654_v5 = vmul.f32 %v3415_v7, %v22231_v23 }
 0x37d   :  { %v3419_v39 = vpop.f32.mrb[47].mxu0  ;;  %v3657_v8 = vmul.f32 %v3417_v36, %v22224_v16 }
 0x37e   :  { %v3710_v7 = vadd.f32 %v3654_v5, %v22248_v31 }
 0x37f   :  { %16989 = vmatmul.mubr.msk.bf16.gmra.mrb[136].mxu1 %vm105_vm0, %v20098_v40  ;;  %17025 = vmatmul.mubr.msk.bf16.gmra.mrb[104].mxu0 %vm105_vm0, %v22771_v1  ;;  %v20123_v40 = vld [vmem:[#allocation3 + $0xe8] ss:$16 sps:$4 sm:$0xff]   ;;  %v3713_v36 = vadd.f32 %v3657_v8, %v22241_v27  ;;  %v22839_v8 = vld [vmem:[%s24989_s0 + $0x40] sm:$0xff]  }
 0x380   :  { %4863 = vmatprep.mubr.bf16.mxu0 %v22506_v44  ;;  %4932 = vmatprep.mubr.bf16.mxu1 %v22506_v44  ;;  %25039 = vst [vmem:[#allocation39_spill] sm:$0xff] %v22839_v8 }
 0x381   :  { %v3769_v51 = vmax.f32 %v3713_v36, 0.0 }
 0x382   :  { %v3423_v38 = vpop.f32.mrb[48].mxu0 }
 0x383   :  { %v3425_v60 = vpop.f32.mrb[49].mxu0 }
 0x384   :  { %v3427_v41 = vpop.f32.mrb[50].mxu0  ;;  %v3662_v52 = vmul.f32 %v3425_v60, %v22231_v23 }
 0x385   :  { %v3429_v4 = vpop.f32.mrb[51].mxu0 }
 0x386   :  { %v3666_v25 = vmul.f32 %v3429_v4, %v22231_v23 }
 0x387   :  { %17026 = vmatmul.mubr.msk.bf16.gmra.mrb[108].mxu0 %vm105_vm0, %v22781_v0  ;;  %17030 = vmatmul.mubr.msk.bf16.vlgmr.msra.gmra.mrb[104].mxu1 %vm105_vm0, %v22741_v9 }
 0x388   :  { %5303 = vmatpush1.bf16.msra.mxu1 %v20113_v11  ;;  %4873 = vmatprep.mubr.bf16.mxu0 %v22506_v44 }
 0x389   :  { %4942 = vmatprep.mubr.bf16.mxu1 %v22506_v44  ;;  %5304 = vmatprep.subr.bf16.mxu1 %v20125_v45  ;;  %v3653_v45 = vmul.f32 %v3413_v62, %v22224_v16 }
 0x38a   :  { %v3433_v57 = vpop.f32.mrb[52].mxu0 }
 0x38b   :  { %v3435_v28 = vpop.f32.mrb[53].mxu0  ;;  %v3709_v62 = vadd.f32 %v3653_v45, %v22241_v27  ;;  %v3669_v36 = vmul.f32 %v3433_v57, %v22224_v16 }
 0x38c   :  { %v3437_v49 = vpop.f32.mrb[54].mxu0  ;;  %5305 = vmatpush1.bf16.msra.mxu1 %v20123_v40 }
 0x38d   :  { %v22794_v21 = vpop.f32.mrb[55].mxu0  ;;  %5705 = vmatprep.subr.bf16.mxu1 %v20135_v10  ;;  %v22810_v10 = vld [vmem:[%s24989_s0 + $0x38] sm:$0xff]  }
 0x38f   :  { %17027 = vmatmul.mubr.msk.bf16.gmra.mrb[112].mxu0 %vm105_vm0, %v22792_v59  ;;  %17031 = vmatmul.mubr.msk.bf16.gmra.mrb[108].mxu1 %vm105_vm0, %v22751_v54 }
 0x390   :  { %4883 = vmatprep.mubr.bf16.mxu0 %v22506_v44  ;;  %4952 = vmatprep.mubr.bf16.mxu1 %v22506_v44 }
 0x392   :  { %v3237_v13 = vpop.f32.mrb[96].mxu1  ;;  %v22802_v11 = vpop.f32.mrb[56].mxu0 }
 0x393   :  { %v3238_v24 = vpop.f32.mrb[97].mxu1  ;;  %v22805_v40 = vpop.f32.mrb[57].mxu0 }
 0x394   :  { %v3239_v3 = vpop.f32.mrb[98].mxu1  ;;  %v22814_v54 = vpop.f32.mrb[58].mxu0  ;;  %v3658_v24 = vmul.f32 %v3419_v39, %v22231_v23  ;;  %v3765_v39 = vmax.f32 %v3709_v62, 0.0 }
 0x395   :  { %v3240_v13 = vpop.f32.mrb[99].mxu1  ;;  %v22816_v9 = vpop.f32.mrb[59].mxu0  ;;  %v3661_v3 = vmul.f32 %v3423_v38, %v22224_v16  ;;  %v3766_v38 = vmax.f32 %v3710_v7, 0.0 }
 0x396   :  { %v3714_v53 = vadd.f32 %v3658_v24, %v22248_v31 }
 0x397   :  { %17028 = vmatmul.mubr.msk.bf16.gmra.mrb[116].mxu0 %vm105_vm0, %v22810_v10  ;;  %17032 = vmatmul.mubr.msk.bf16.gmra.mrb[112].mxu1 %vm105_vm0, %v22761_v2  ;;  %v22842_v20 = vadd.f32 %v3661_v3, %v22241_v27  ;;  %v3670_v3 = vmul.f32 %v3435_v28, %v22231_v23  ;;  %v3673_v28 = vmul.f32 %v3437_v49, %v22224_v16 }
 0x398   :  { %4893 = vmatprep.mubr.bf16.mxu0 %v22506_v44  ;;  %4962 = vmatprep.mubr.bf16.mxu1 %v22506_v44  ;;  %v3770_v12 = vmax.f32 %v3714_v53, 0.0 }
 0x399   :  { %v22882_v49 = vadd.f32 %v3670_v3, %v22248_v31 }
 0x39a   :  { %v22829_v13 = vpop.f32.mrb[60].mxu0  ;;  %v3522_v45 = vpop.f32.mrb[56].mxu1 }
 0x39b   :  { %v3655_v2 = vmul.f32 %v3522_v45, %v22244_v29  ;;  %v22834_v35 = vpop.f32.mrb[61].mxu0  ;;  %v3524_v5 = vpop.f32.mrb[57].mxu1  ;;  %v3665_v45 = vmul.f32 %v3427_v41, %v22224_v16  ;;  %v22858_v41 = vadd.f32 %v3662_v52, %v22248_v31 }
 0x39c   :  { %v3656_v62 = vmul.f32 %v3524_v5, %v22253_v32  ;;  %v22845_v24 = vpop.f32.mrb[62].mxu0  ;;  %v3526_v60 = vpop.f32.mrb[58].mxu1 }
 0x39d   :  { %v3711_v17 = vadd.f32 %v3655_v2, %v22257_v33  ;;  %v3659_v22 = vmul.f32 %v3526_v60, %v22244_v29  ;;  %v22851_v61 = vpop.f32.mrb[63].mxu0  ;;  %v3528_v7 = vpop.f32.mrb[59].mxu1 }
 0x39e   :  { %v3712_v5 = vadd.f32 %v3656_v62, %v22263_v37  ;;  %v3660_v48 = vmul.f32 %v3528_v7, %v22253_v32  ;;  %v22879_v7 = vadd.f32 %v3669_v36, %v22241_v27  ;;  %v22894_v36 = vld [vmem:[%s24989_s0 + $0x50] sm:$0xff]  }
 0x39f   :  { %v3767_v4 = vmax.f32 %v3711_v17, 0.0  ;;  %v3715_v2 = vadd.f32 %v3659_v22, %v22257_v33  ;;  %17029 = vmatmul.mubr.msk.bf16.gmra.mrb[128].mxu0 %vm105_vm0, %v22839_v8  ;;  %17033 = vmatmul.mubr.msk.bf16.gmra.mrb[116].mxu1 %vm105_vm0, %v22771_v1  ;;  %v22871_v17 = vadd.f32 %v3665_v45, %v22241_v27  ;;  %v22874_v22 = vadd.f32 %v3666_v25, %v22248_v31 }
 0x3a0   :  { %v3768_v62 = vmax.f32 %v3712_v5, 0.0  ;;  %v3716_v60 = vadd.f32 %v3660_v48, %v22263_v37  ;;  %4972 = vmatprep.mubr.bf16.mxu1 %v22506_v44  ;;  %5225 = vmatprep.mubr.bf16.mxu0 %v22506_v44  ;;  %v3674_v45 = vmul.f32 %v22794_v21, %v22231_v23  ;;  %v3774_v8 = vmax.f32 %v22858_v41, 0.0 }
 0x3a1   :  { %v3771_v52 = vmax.f32 %v3715_v2, 0.0  ;;  %v22876_v53 = vmax.f32 %v3765_v39, %v3767_v4  ;;  %v22899_v2 = vadd.f32 %v3673_v28, %v22241_v27  ;;  %v3777_v58 = vmax.f32 %v22871_v17, 0.0 }
 0x3a2   :  { %v3772_v48 = vmax.f32 %v3716_v60, 0.0  ;;  %v22884_v5 = vpop.f32.mrb[64].mxu0  ;;  %v3532_v57 = vpop.f32.mrb[60].mxu1  ;;  %v3822_v1 = vmax.f32 %v3766_v38, %v3768_v62  ;;  %v3678_v17 = vmul.f32 %v22805_v40, %v22231_v23 }
 0x3a3   :  { %v3663_v25 = vmul.f32 %v3532_v57, %v22244_v29  ;;  %v22889_v47 = vpop.f32.mrb[65].mxu0  ;;  %v3534_v39 = vpop.f32.mrb[61].mxu1  ;;  %v3823_v3 = vmax.f32 %v3769_v51, %v3771_v52  ;;  %v3849_v4 = vmax.f32 %v22295_v14, %v22876_v53  ;;  %v20130_v53 = vld [vmem:[#allocation3 + $0x100] ss:$16 sps:$4 sm:$0xff]  }
 0x3a4   :  { %v3664_v38 = vmul.f32 %v3534_v39, %v22253_v32  ;;  %v22902_v21 = vpop.f32.mrb[66].mxu0  ;;  %v3536_v57 = vpop.f32.mrb[62].mxu1  ;;  %v3824_v62 = vmax.f32 %v3770_v12, %v3772_v48  ;;  %v3850_v60 = vmax.f32 %v22301_v42, %v3822_v1  ;;  %v20141_v1 = vld [vmem:[#allocation3 + $0x124] ss:$16 sps:$4 sm:$0xff]  }
 0x3a5   :  { %25040 = vst [vmem:[#allocation40_spill] sm:$0xff] %v22902_v21  ;;  %v3719_v51 = vadd.f32 %v3663_v25, %v22257_v33  ;;  %v3667_v52 = vmul.f32 %v3536_v57, %v22244_v29  ;;  %v22909_v14 = vpop.f32.mrb[67].mxu0  ;;  %v3538_v28 = vpop.f32.mrb[63].mxu1  ;;  %v3677_v21 = vmul.f32 %v22802_v11, %v22224_v16  ;;  %v22927_v57 = vadd.f32 %v3674_v45, %v22248_v31 }
 0x3a6   :  { %v3720_v12 = vadd.f32 %v3664_v38, %v22263_v37  ;;  %v3668_v42 = vmul.f32 %v3538_v28, %v22253_v32  ;;  %v3851_v41 = vmax.f32 %v22307_v46, %v3823_v3  ;;  %v3852_v39 = vmax.f32 %v22313_v50, %v3824_v62 }
 0x3a7   :  { %v3775_v48 = vmax.f32 %v3719_v51, 0.0  ;;  %v3723_v25 = vadd.f32 %v3667_v52, %v22257_v33  ;;  %17034 = vmatmul.mubr.msk.bf16.gmra.mrb[120].mxu1 %vm105_vm0, %v22781_v0  ;;  %17070 = vmatmul.mubr.msk.bf16.vlgmr.msra.gmra.mrb[92].mxu0 %vm105_vm0, %v22894_v36  ;;  %v20139_v52 = vld [vmem:[#allocation3 + $0x120] ss:$16 sps:$4 sm:$0xff]   ;;  %v22935_v11 = vadd.f32 %v3677_v21, %v22241_v27  ;;  %v3681_v45 = vmul.f32 %v22814_v54, %v22224_v16  ;;  %v22954_v54 = vld [vmem:[%s24989_s0 + $0x58] sm:$0xff]  }
 0x3a8   :  { %v3776_v28 = vmax.f32 %v3720_v12, 0.0  ;;  %4982 = vmatprep.mubr.bf16.mxu1 %v22506_v44  ;;  %5235 = vmatprep.mubr.bf16.mxu0 %v22506_v44  ;;  %v3724_v51 = vadd.f32 %v3668_v42, %v22263_v37  ;;  %v22956_v21 = vpack.c.bf16 %v3851_v41, %v3849_v4  ;;  %v22958_v62 = vpack.c.bf16 %v3852_v39, %v3850_v60 }
 0x3a9   :  { %v3779_v40 = vmax.f32 %v3723_v25, 0.0  ;;  %5597 = vmatpush1.bf16.msra.mxu0 %v20130_v53  ;;  %v25041_v25 = vmax.f32 %v22842_v20, 0.0  ;;  %v22946_v53 = vadd.f32 %v3678_v17, %v22248_v31  ;;  %v3682_v20 = vmul.f32 %v22816_v9, %v22231_v23 }
 0x3aa   :  { %v22939_v12 = vpop.f32.mrb[68].mxu0  ;;  %v3542_v38 = vpop.f32.mrb[64].mxu1  ;;  %5598 = vmatprep.subr.bf16.mxu0 %v20141_v1  ;;  %v22943_v42 = vmax.f32 %v3774_v8, %v3776_v28  ;;  %25042 = vst [vmem:[#allocation41_spill] sm:$0xff] %v22956_v21  ;;  %25043 = vst [vmem:[#allocation42_spill] sm:$0xff] %v22958_v62  ;;  %v3685_v28 = vmul.f32 %v22829_v13, %v22224_v16  ;;  %v3786_v9 = vmax.f32 %v22927_v57, 0.0 }
 0x3ab   :  { %v3825_v0 = vmax.f32 %v25041_v25, %v3775_v48  ;;  %v3671_v46 = vmul.f32 %v3542_v38, %v22244_v29  ;;  %v22949_v50 = vpop.f32.mrb[69].mxu0  ;;  %v3544_v3 = vpop.f32.mrb[65].mxu1  ;;  %v3827_v48 = vmax.f32 %v3777_v58, %v3779_v40  ;;  %v3780_v25 = vmax.f32 %v3724_v51, 0.0 }
 0x3ac   :  { %v3672_v8 = vmul.f32 %v3544_v3, %v22253_v32  ;;  %v22963_v1 = vpop.f32.mrb[70].mxu0  ;;  %v3546_v17 = vpop.f32.mrb[66].mxu1  ;;  %v22978_v40 = vadd.f32 %v3681_v45, %v22241_v27  ;;  %v22986_v57 = vadd.f32 %v3682_v20, %v22248_v31  ;;  %v22994_v45 = vadd.f32 %v3685_v28, %v22241_v27 }
 0x3ad   :  { %v3853_v38 = vmax.f32 %v22337_v43, %v3825_v0  ;;  %v3727_v4 = vadd.f32 %v3671_v46, %v22257_v33  ;;  %v3675_v60 = vmul.f32 %v3546_v17, %v22244_v29  ;;  %v22970_v39 = vpop.f32.mrb[71].mxu0  ;;  %v3548_v41 = vpop.f32.mrb[67].mxu1  ;;  %5599 = vmatpush1.bf16.msra.mxu0 %v20139_v52  ;;  %v20888_v0 = vld [vmem:[#allocation3 + $0x44] ss:$16 sps:$4 sm:$0xff]   ;;  %v3686_v52 = vmul.f32 %v22834_v35, %v22231_v23 }
 0x3ae   :  { %v3728_v58 = vadd.f32 %v3672_v8, %v22263_v37  ;;  %v3676_v43 = vmul.f32 %v3548_v41, %v22253_v32  ;;  %6066 = vmatprep.subr.bf16.mxu0 %v20888_v0  ;;  %v25044_v41 = vmax.f32 %v22874_v22, 0.0  ;;  %v3689_v0 = vmul.f32 %v22845_v24, %v22224_v16 }
 0x3af   :  { %v3783_v51 = vmax.f32 %v3727_v4, 0.0  ;;  %v3731_v46 = vadd.f32 %v3675_v60, %v22257_v33  ;;  %17035 = vmatmul.mubr.msk.bf16.gmra.mrb[124].mxu1 %vm105_vm0, %v22792_v59  ;;  %17071 = vmatmul.mubr.msk.bf16.gmra.mrb[96].mxu0 %vm105_vm0, %v22954_v54  ;;  %v3855_v60 = vmax.f32 %v22348_v6, %v3827_v48  ;;  %v25045_v3 = vmax.f32 %v22879_v7, 0.0  ;;  %v23009_v6 = vld [vmem:[%s24989_s0 + $0x60] sm:$0xff]  }
 0x3b0   :  { %v3784_v8 = vmax.f32 %v3728_v58, 0.0  ;;  %v3732_v17 = vadd.f32 %v3676_v43, %v22263_v37  ;;  %4992 = vmatprep.mubr.bf16.mxu1 %v22506_v44  ;;  %5245 = vmatprep.mubr.bf16.mxu0 %v22506_v44  ;;  %v3828_v20 = vmax.f32 %v25044_v41, %v3780_v25  ;;  %v3854_v43 = vmax.f32 %v22341_v55, %v22943_v42 }
 0x3b1   :  { %v3787_v4 = vmax.f32 %v3731_v46, 0.0  ;;  %v3829_v62 = vmax.f32 %v25045_v3, %v3783_v51  ;;  %v23011_v48 = vpack.c.bf16 %v3855_v60, %v3853_v38  ;;  %v25047_v25 = vmax.f32 %v22899_v2, 0.0 }
 0x3b2   :  { %v3788_v35 = vmax.f32 %v3732_v17, 0.0  ;;  %v3552_v58 = vpop.f32.mrb[68].mxu1  ;;  %v3483_v13 = vpop.f32.mrb[88].mxu0  ;;  %v3856_v24 = vmax.f32 %v22355_v19, %v3828_v20  ;;  %v25048_v51 = vmax.f32 %v22882_v49, 0.0 }
 0x3b3   :  { %v3679_v28 = vmul.f32 %v3552_v58, %v22244_v29  ;;  %v3554_v46 = vpop.f32.mrb[69].mxu1  ;;  %v3484_v22 = vpop.f32.mrb[89].mxu0  ;;  %25046 = vst [vmem:[#allocation43_spill] sm:$0xff] %v23011_v48  ;;  %v3831_v13 = vmax.f32 %v25047_v25, %v3787_v4  ;;  %v3857_v3 = vmax.f32 %v22385_v63, %v3829_v62  ;;  %v3793_v62 = vmax.f32 %v22978_v40, 0.0 }
 0x3b4   :  { %v3680_v55 = vmul.f32 %v3554_v46, %v22253_v32  ;;  %v3556_v7 = vpop.f32.mrb[70].mxu1  ;;  %v3485_v42 = vpop.f32.mrb[90].mxu0  ;;  %v3830_v17 = vmax.f32 %v25048_v51, %v3784_v8  ;;  %v3832_v41 = vmax.f32 %v3786_v9, %v3788_v35  ;;  %v23022_v19 = vpack.c.bf16 %v3856_v24, %v3854_v43 }
 0x3b5   :  { %v3735_v58 = vadd.f32 %v3679_v28, %v22257_v33  ;;  %v3683_v38 = vmul.f32 %v3556_v7, %v22244_v29  ;;  %v3558_v60 = vpop.f32.mrb[71].mxu1  ;;  %v3486_v22 = vpop.f32.mrb[91].mxu0  ;;  %v3859_v2 = vmax.f32 %v22393_v30, %v3831_v13  ;;  %v3742_v35 = vadd.f32 %v3686_v52, %v22248_v31 }
 0x3b6   :  { %25049 = vst [vmem:[#allocation44_spill] sm:$0xff] %v23022_v19  ;;  %v3736_v4 = vadd.f32 %v3680_v55, %v22263_v37  ;;  %v3684_v20 = vmul.f32 %v3558_v60, %v22253_v32  ;;  %v3858_v63 = vmax.f32 %v22389_v34, %v3830_v17  ;;  %v3860_v49 = vmax.f32 %v22397_v18, %v3832_v41  ;;  %v23040_v18 = vld [vmem:[#allocation2] sm:$0xff] }
 0x3b7   :  { %v3791_v9 = vmax.f32 %v3735_v58, 0.0  ;;  %v3739_v8 = vadd.f32 %v3683_v38, %v22257_v33  ;;  %17036 = vmatmul.mubr.msk.bf16.gmra.mrb[128].mxu1 %vm105_vm0, %v22810_v10  ;;  %17072 = vmatmul.mubr.msk.bf16.gmra.mrb[100].mxu0 %vm105_vm0, %v23009_v6  ;;  %v23035_v30 = vpack.c.bf16 %v3859_v2, %v3857_v3  ;;  %v3794_v28 = vmax.f32 %v22986_v57, 0.0 }
 0x3b8   :  { %v3792_v43 = vmax.f32 %v3736_v4, 0.0  ;;  %v3740_v34 = vadd.f32 %v3684_v20, %v22263_v37  ;;  %5002 = vmatprep.mubr.bf16.mxu1 %v22506_v44  ;;  %5255 = vmatprep.mubr.bf16.mxu0 %v23040_v18  ;;  %v23043_v40 = vpack.c.bf16 %v3860_v49, %v3858_v63  ;;  %v3690_v46 = vmul.f32 %v22851_v61, %v22231_v23  ;;  %v23060_v61 = vld [vmem:[%s24989_s0 + $0x68] sm:$0xff]   ;;  %v25054_v49 = vld [vmem:[#allocation21_spill] sm:$0xff] }
 0x3b9   :  { %25050 = vst [vmem:[#allocation45_spill] sm:$0xff] %v23035_v30  ;;  %v3795_v24 = vmax.f32 %v3739_v8, 0.0  ;;  %v25052_v25 = vmax.f32 %v22935_v11, 0.0  ;;  %v3797_v13 = vmax.f32 %v22994_v45, 0.0  ;;  %v3745_v55 = vadd.f32 %v3689_v0, %v22241_v27  ;;  %v25055_v8 = vld [vmem:[#allocation39_spill] sm:$0xff] }
 0x3ba   :  { %25051 = vst [vmem:[#allocation46_spill] sm:$0xff] %v23043_v40  ;;  %v3796_v44 = vmax.f32 %v3740_v34, 0.0  ;;  %v3562_v7 = vpop.f32.mrb[72].mxu1  ;;  %v25053_v42 = vmax.f32 %v22946_v53, 0.0  ;;  %v3693_v51 = vmul.f32 %v22884_v5, %v22224_v16  ;;  %v3798_v0 = vmax.f32 %v3742_v35, 0.0  ;;  %v25057_v35 = vld [vmem:[#allocation40_spill] sm:$0xff] }
 0x3bb   :  { %v3833_v52 = vmax.f32 %v25052_v25, %v3791_v9  ;;  %v3687_v57 = vmul.f32 %v3562_v7, %v22244_v29  ;;  %v3564_v17 = vpop.f32.mrb[73].mxu1  ;;  %v3835_v11 = vmax.f32 %v3793_v62, %v3795_v24  ;;  %v3694_v5 = vmul.f32 %v22889_v47, %v22231_v23  ;;  %v20932_v40 = vld [vmem:[#allocation3 + $0x124] ss:$16 sps:$4 sm:$0xff]  }
 0x3bc   :  { %v3834_v3 = vmax.f32 %v25053_v42, %v3792_v43  ;;  %v3688_v41 = vmul.f32 %v3564_v17, %v22253_v32  ;;  %v3566_v58 = vpop.f32.mrb[74].mxu1  ;;  %v3836_v53 = vmax.f32 %v3794_v28, %v3796_v44  ;;  %v3746_v20 = vadd.f32 %v3690_v46, %v22248_v31 }
 0x3bd   :  { %v3861_v45 = vmax.f32 %v22428_v15, %v3833_v52  ;;  %v3743_v60 = vadd.f32 %v3687_v57, %v22257_v33  ;;  %v3691_v22 = vmul.f32 %v3566_v58, %v22244_v29  ;;  %v3568_v2 = vpop.f32.mrb[75].mxu1  ;;  %v3863_v4 = vmax.f32 %v22436_v26, %v3835_v11  ;;  %v25059_v58 = vld [vmem:[#allocation22_spill] sm:$0xff] }
 0x3be   :  { %v3862_v38 = vmax.f32 %v22432_v56, %v3834_v3  ;;  %v3744_v15 = vadd.f32 %v3688_v41, %v22263_v37  ;;  %v3692_v63 = vmul.f32 %v3568_v2, %v22253_v32  ;;  %v3864_v62 = vmax.f32 %v25054_v49, %v3836_v53  ;;  %v23096_v41 = vld [vmem:[%s24989_s0 + $0x70] sm:$0xff]  }
 0x3bf   :  { %v3749_v56 = vadd.f32 %v3693_v51, %v22241_v27  ;;  %v3799_v9 = vmax.f32 %v3743_v60, 0.0  ;;  %v3747_v47 = vadd.f32 %v3691_v22, %v22257_v33  ;;  %17037 = vmatmul.mubr.msk.bf16.gmra.mrb[140].mxu1 %vm105_vm0, %v25055_v8  ;;  %17073 = vmatmul.mubr.msk.bf16.gmra.mrb[104].mxu0 %vm105_vm0, %v23060_v61  ;;  %v23080_v26 = vpack.c.bf16 %v3863_v4, %v3861_v45  ;;  %v25061_v49 = vld [vmem:[#allocation24_spill] sm:$0xff] }
 0x3c0   :  { %v3697_v43 = vmul.f32 %v25057_v35, %v22224_v16  ;;  %v3800_v34 = vmax.f32 %v3744_v15, 0.0  ;;  %v3748_v28 = vadd.f32 %v3692_v63, %v22263_v37  ;;  %5265 = vmatprep.mubr.bf16.mxu0 %v23040_v18  ;;  %5334 = vmatprep.mubr.bf16.mxu1 %v23040_v18  ;;  %v23087_v46 = vpack.c.bf16 %v3864_v62, %v3862_v38  ;;  %v20145_v63 = vld [vmem:[#allocation3 + $0x12c] ss:$16 sps:$4 sm:$0xff]   ;;  %v25062_v35 = vld [vmem:[#allocation25_spill] sm:$0xff] }
 0x3c1   :  { %25056 = vst [vmem:[#allocation21_spill] sm:$0xff] %v23080_v26  ;;  %v3801_v24 = vmax.f32 %v3745_v55, 0.0  ;;  %v3750_v25 = vadd.f32 %v3694_v5, %v22248_v31  ;;  %v3803_v52 = vmax.f32 %v3747_v47, 0.0  ;;  %v3837_v44 = vmax.f32 %v3797_v13, %v3799_v9  ;;  %v20133_v5 = vld [vmem:[#allocation3 + $0x108] ss:$16 sps:$4 sm:$0xff]  }
 0x3c2   :  { %25058 = vst [vmem:[#allocation39_spill] sm:$0xff] %v23087_v46  ;;  %v3802_v7 = vmax.f32 %v3746_v20, 0.0  ;;  %v3698_v42 = vmul.f32 %v22909_v14, %v22231_v23  ;;  %v3804_v3 = vmax.f32 %v3748_v28, 0.0  ;;  %v3572_v51 = vpop.f32.mrb[76].mxu1  ;;  %v3838_v57 = vmax.f32 %v3798_v0, %v3800_v34  ;;  %v25060_v0 = vld [vmem:[#allocation23_spill] sm:$0xff] }
 0x3c3   :  { %v3805_v17 = vmax.f32 %v3749_v56, 0.0  ;;  %v3695_v11 = vmul.f32 %v3572_v51, %v22244_v29  ;;  %v3574_v45 = vpop.f32.mrb[77].mxu1  ;;  %v3839_v55 = vmax.f32 %v3801_v24, %v3803_v52  ;;  %v3865_v53 = vmax.f32 %v25059_v58, %v3837_v44 }
 0x3c4   :  { %v3753_v13 = vadd.f32 %v3697_v43, %v22241_v27  ;;  %v3696_v38 = vmul.f32 %v3574_v45, %v22253_v32  ;;  %v3576_v14 = vpop.f32.mrb[78].mxu1  ;;  %v3840_v60 = vmax.f32 %v3802_v7, %v3804_v3  ;;  %v3866_v22 = vmax.f32 %v25060_v0, %v3838_v57 }
 0x3c5   :  { %v3806_v2 = vmax.f32 %v3750_v25, 0.0  ;;  %v3751_v4 = vadd.f32 %v3695_v11, %v22257_v33  ;;  %v3699_v20 = vmul.f32 %v3576_v14, %v22244_v29  ;;  %v3578_v15 = vpop.f32.mrb[79].mxu1  ;;  %v3867_v62 = vmax.f32 %v25061_v49, %v3839_v55 }
 0x3c6   :  { %v3754_v56 = vadd.f32 %v3698_v42, %v22248_v31  ;;  %v3752_v9 = vadd.f32 %v3696_v38, %v22263_v37  ;;  %v3700_v47 = vmul.f32 %v3578_v15, %v22253_v32  ;;  %v3868_v43 = vmax.f32 %v25062_v35, %v3840_v60 }
 0x3c7   :  { %v3701_v34 = vmul.f32 %v22939_v12, %v22224_v16  ;;  %v3807_v28 = vmax.f32 %v3751_v4, 0.0  ;;  %v3755_v24 = vadd.f32 %v3699_v20, %v22257_v33  ;;  %17074 = vmatmul.mubr.msk.bf16.gmra.mrb[108].mxu0 %vm105_vm0, %v23096_v41  ;;  %17078 = vmatmul.mubr.msk.bf16.vlgmr.msra.gmra.mrb[104].mxu1 %vm105_vm0, %v22894_v36  ;;  %v23116_v25 = vpack.c.bf16 %v3867_v62, %v3865_v53  ;;  %v20143_v12 = vld [vmem:[#allocation3 + $0x128] ss:$16 sps:$4 sm:$0xff]  }
 0x3c8   :  { %v3702_v52 = vmul.f32 %v22949_v50, %v22231_v23  ;;  %v3808_v44 = vmax.f32 %v3752_v9, 0.0  ;;  %v3756_v7 = vadd.f32 %v3700_v47, %v22263_v37  ;;  %5706 = vmatpush1.bf16.msra.mxu1 %v20133_v5  ;;  %5275 = vmatprep.mubr.bf16.mxu0 %v23040_v18  ;;  %v23122_v42 = vpack.c.bf16 %v3868_v43, %v3866_v22  ;;  %v25066_v4 = vld [vmem:[#allocation27_spill] sm:$0xff]  ;;  %v25067_v9 = vld [vmem:[#allocation28_spill] sm:$0xff] }
 0x3c9   :  { %25063 = vst [vmem:[#allocation40_spill] sm:$0xff] %v23116_v25  ;;  %v3809_v3 = vmax.f32 %v3753_v13, 0.0  ;;  %v3705_v51 = vmul.f32 %v22963_v1, %v22224_v16  ;;  %v3841_v57 = vmax.f32 %v3805_v17, %v3807_v28  ;;  %v3811_v11 = vmax.f32 %v3755_v24, 0.0  ;;  %5344 = vmatprep.mubr.bf16.mxu1 %v23040_v18  ;;  %5707 = vmatprep.subr.bf16.mxu1 %v20145_v63  ;;  %v23134_v1 = vld [vmem:[%s24989_s0 + $0x78] sm:$0xff]  }
 0x3ca   :  { %25064 = vst [vmem:[#allocation22_spill] sm:$0xff] %v23122_v42  ;;  %v3810_v45 = vmax.f32 %v3754_v56, 0.0  ;;  %v3706_v50 = vmul.f32 %v22970_v39, %v22231_v23  ;;  %v3842_v55 = vmax.f32 %v3806_v2, %v3808_v44  ;;  %v3812_v58 = vmax.f32 %v3756_v7, 0.0  ;;  %v3582_v53 = vpop.f32.mrb[80].mxu1  ;;  %v25065_v17 = vld [vmem:[#allocation26_spill] sm:$0xff]  ;;  %v25068_v28 = vld [vmem:[#allocation29_spill] sm:$0xff] }
 0x3cb   :  { %v3757_v38 = vadd.f32 %v3701_v34, %v22241_v27  ;;  %v3843_v14 = vmax.f32 %v3809_v3, %v3811_v11  ;;  %v3703_v13 = vmul.f32 %v3582_v53, %v22244_v29  ;;  %v3584_v5 = vpop.f32.mrb[81].mxu1  ;;  %v3869_v60 = vmax.f32 %v25065_v17, %v3841_v57  ;;  %v20890_v56 = vld [vmem:[#allocation3 + $0x4c] ss:$16 sps:$4 sm:$0xff]   ;;  %v23163_v17 = vld [vmem:[%s24989_s0 + $0x80] sm:$0xff]  }
 0x3cc   :  { %v3758_v0 = vadd.f32 %v3702_v52, %v22248_v31  ;;  %v3844_v22 = vmax.f32 %v3810_v45, %v3812_v58  ;;  %v3704_v39 = vmul.f32 %v3584_v5, %v22253_v32  ;;  %v3586_v2 = vpop.f32.mrb[82].mxu1  ;;  %5708 = vmatpush1.bf16.msra.mxu1 %v20143_v12  ;;  %v3870_v20 = vmax.f32 %v25066_v4, %v3842_v55 }
 0x3cd   :  { %v3761_v15 = vadd.f32 %v3705_v51, %v22241_v27  ;;  %v3759_v63 = vadd.f32 %v3703_v13, %v22257_v33  ;;  %v3707_v49 = vmul.f32 %v3586_v2, %v22244_v29  ;;  %v3588_v62 = vpop.f32.mrb[83].mxu1  ;;  %6175 = vmatprep.subr.bf16.mxu1 %v20890_v56  ;;  %v3871_v47 = vmax.f32 %v25067_v9, %v3843_v14  ;;  %v25072_v2 = vld [vmem:[#allocation31_spill] sm:$0xff] }
 0x3ce   :  { %v3762_v35 = vadd.f32 %v3706_v50, %v22248_v31  ;;  %v3760_v43 = vadd.f32 %v3704_v39, %v22263_v37  ;;  %v3708_v34 = vmul.f32 %v3588_v62, %v22253_v32  ;;  %v3872_v24 = vmax.f32 %v25068_v28, %v3844_v22  ;;  %v23204_v28 = vld [vmem:[%s24989_s0 + $0xa0] sm:$0xff]  }
 0x3cf   :  { %v3813_v52 = vmax.f32 %v3757_v38, 0.0  ;;  %v3815_v44 = vmax.f32 %v3759_v63, 0.0  ;;  %v3763_v7 = vadd.f32 %v3707_v49, %v22257_v33  ;;  %17075 = vmatmul.mubr.msk.bf16.gmra.mrb[112].mxu0 %vm105_vm0, %v23134_v1  ;;  %17079 = vmatmul.mubr.msk.bf16.gmra.mrb[108].mxu1 %vm105_vm0, %v22954_v54  ;;  %v23153_v12 = vpack.c.bf16 %v3871_v47, %v3869_v60  ;;  %v25071_v60 = vld [vmem:[#allocation30_spill] sm:$0xff]  ;;  %v25074_v49 = vld [vmem:[#allocation33_spill] sm:$0xff]  ;;  %v23182_v47 = vld [vmem:[%s24989_s0 + $0x88] sm:$0xff]  }
 0x3d0   :  { %v3814_v3 = vmax.f32 %v3758_v0, 0.0  ;;  %v3816_v51 = vmax.f32 %v3760_v43, 0.0  ;;  %v3764_v57 = vadd.f32 %v3708_v34, %v22263_v37  ;;  %5285 = vmatprep.mubr.bf16.mxu0 %v23040_v18  ;;  %5354 = vmatprep.mubr.bf16.mxu1 %v23040_v18  ;;  %v23158_v11 = vpack.c.bf16 %v3872_v24, %v3870_v20  ;;  %v20891_v43 = vld [vmem:[#allocation3 + $0x40] ss:$16 sps:$4 sm:$0xff]   ;;  %v20892_v34 = vld [vmem:[#allocation3 + $0x64] ss:$16 sps:$4 sm:$0xff]  }
 0x3d1   :  { %25069 = vst [vmem:[#allocation23_spill] sm:$0xff] %v23153_v12  ;;  %v3817_v45 = vmax.f32 %v3761_v15, 0.0  ;;  %v3845_v50 = vmax.f32 %v3813_v52, %v3815_v44  ;;  %v3819_v55 = vmax.f32 %v3763_v7, 0.0  ;;  %v3818_v58 = vmax.f32 %v3762_v35, 0.0  ;;  %v25073_v15 = vld [vmem:[#allocation32_spill] sm:$0xff]  ;;  %v23193_v35 = vld [vmem:[%s24989_s0 + $0x98] sm:$0xff]  }
 0x3d2   :  { %25070 = vst [vmem:[#allocation24_spill] sm:$0xff] %v23158_v11  ;;  %v3846_v53 = vmax.f32 %v3814_v3, %v3816_v51  ;;  %v3820_v38 = vmax.f32 %v3764_v57, 0.0  ;;  %v3592_v14 = vpop.f32.mrb[100].mxu1  ;;  %v20893_v24 = vld [vmem:[#allocation3 + $0x60] ss:$16 sps:$4 sm:$0xff]   ;;  %v23215_v7 = vld [vmem:[%s24989_s0 + $0xa8] sm:$0xff]  }
 0x3d3   :  { %v3847_v13 = vmax.f32 %v3817_v45, %v3819_v55  ;;  %v3593_v5 = vpop.f32.mrb[101].mxu1  ;;  %v3873_v0 = vmax.f32 %v25071_v60, %v3845_v50  ;;  %v20894_v52 = vld [vmem:[#allocation3 + $0x4] ss:$16 sps:$4 sm:$0xff]   ;;  %v23237_v50 = vld [vmem:[%s24989_s0 + $0xb8] sm:$0xff]   ;;  %v23259_v60 = vld [vmem:[%s24989_s0 + $0xc8] sm:$0xff]  }
 0x3d4   :  { %v3848_v22 = vmax.f32 %v3818_v58, %v3820_v38  ;;  %v3594_v39 = vpop.f32.mrb[102].mxu1  ;;  %v3874_v4 = vmax.f32 %v25072_v2, %v3846_v53  ;;  %v23226_v45 = vld [vmem:[%s24989_s0 + $0xb0] sm:$0xff]   ;;  %v20895_v55 = vld [vmem:[#allocation3 + $0x48] ss:$16 sps:$4 sm:$0xff]   ;;  %v20896_v58 = vld [vmem:[#allocation3 + $0x6c] ss:$16 sps:$4 sm:$0xff]  }
 0x3d5   :  { %v3595_v20 = vpop.f32.mrb[103].mxu1  ;;  %v3875_v63 = vmax.f32 %v25073_v15, %v3847_v13  ;;  %v23248_v53 = vld [vmem:[%s24989_s0 + $0xc0] sm:$0xff]   ;;  %v20897_v38 = vld [vmem:[#allocation3 + $0x68] ss:$16 sps:$4 sm:$0xff]   ;;  %v20898_v14 = vld [vmem:[#allocation3 + $0xc] ss:$16 sps:$4 sm:$0xff]  }
 0x3d6   :  { %v3876_v62 = vmax.f32 %v25074_v49, %v3848_v22  ;;  %v23270_v39 = vld [vmem:[%s24989_s0 + $0xd0] sm:$0xff]   ;;  %v25077_v2 = vld [vmem:[#allocation34_spill] sm:$0xff]  ;;  %v25078_v49 = vld [vmem:[#allocation35_spill] sm:$0xff] }
 0x3d7   :  { %17076 = vmatmul.mubr.msk.bf16.gmra.mrb[116].mxu0 %vm105_vm0, %v23163_v17  ;;  %17080 = vmatmul.mubr.msk.bf16.gmra.mrb[112].mxu1 %vm105_vm0, %v23009_v6  ;;  %v23173_v56 = vpack.c.bf16 %v3875_v63, %v3873_v0  ;;  %v20900_v20 = vld [vmem:[#allocation3 + $0x24] ss:$16 sps:$4 sm:$0xff]   ;;  %v20901_v15 = vld [vmem:[#allocation3 + $0x20] ss:$16 sps:$4 sm:$0xff]  }
 0x3d8   :  { %5295 = vmatprep.mubr.bf16.mxu0 %v23040_v18  ;;  %5364 = vmatprep.mubr.bf16.mxu1 %v23040_v18  ;;  %v23177_v9 = vpack.c.bf16 %v3876_v62, %v3874_v4  ;;  %v20899_v4 = vld [vmem:[#allocation3] ss:$16 sps:$4 sm:$0xff]   ;;  %v20902_v63 = vld [vmem:[#allocation3 + $0x84] ss:$16 sps:$4 sm:$0xff]  }
 0x3d9   :  { %25075 = vst [vmem:[#allocation25_spill] sm:$0xff] %v23173_v56 }
 0x3da   :  { %25076 = vst [vmem:[#allocation26_spill] sm:$0xff] %v23177_v9 }
 0x3df   :  { %17077 = vmatmul.mubr.msk.bf16.gmra.mrb[132].mxu0 %vm105_vm0, %v23182_v47  ;;  %17081 = vmatmul.mubr.msk.bf16.gmra.mrb[116].mxu1 %vm105_vm0, %v23060_v61 }
 0x3e0   :  { %5374 = vmatprep.mubr.bf16.mxu1 %v23040_v18  ;;  %5628 = vmatprep.mubr.bf16.mxu0 %v23040_v18 }
 0x3e7   :  { %17082 = vmatmul.mubr.msk.bf16.gmra.mrb[120].mxu1 %vm105_vm0, %v23096_v41  ;;  %17118 = vmatmul.mubr.msk.bf16.vlgmr.msra.gmra.mrb[92].mxu0 %vm105_vm0, %v23193_v35 }
 0x3e8   :  { %5384 = vmatprep.mubr.bf16.mxu1 %v23040_v18  ;;  %5638 = vmatprep.mubr.bf16.mxu0 %v23040_v18 }
 0x3e9   :  { %6067 = vmatpush1.bf16.msra.mxu0 %v20891_v43 }
 0x3ea   :  { %6068 = vmatprep.subr.bf16.mxu0 %v20892_v34 }
 0x3ed   :  { %6069 = vmatpush1.bf16.msra.mxu0 %v20893_v24 }
 0x3ee   :  { %6284 = vmatprep.subr.bf16.mxu0 %v20894_v52  ;;  %v25079_v52 = vld [vmem:[#allocation36_spill] sm:$0xff] }
 0x3ef   :  { %17083 = vmatmul.mubr.msk.bf16.gmra.mrb[124].mxu1 %vm105_vm0, %v23134_v1  ;;  %17119 = vmatmul.mubr.msk.bf16.gmra.mrb[96].mxu0 %vm105_vm0, %v23204_v28 }
 0x3f0   :  { %5394 = vmatprep.mubr.bf16.mxu1 %v23040_v18  ;;  %5648 = vmatprep.mubr.bf16.mxu0 %v23040_v18 }
 0x3f2   :  { %v4227_v44 = vpop.f32.mrb[120].mxu0 }
 0x3f3   :  { %v4228_v3 = vpop.f32.mrb[121].mxu0  ;;  %v25080_v44 = vld [vmem:[#allocation37_spill] sm:$0xff] }
 0x3f4   :  { %v4229_v51 = vpop.f32.mrb[122].mxu0  ;;  %v25081_v3 = vld [vmem:[#allocation38_spill] sm:$0xff] }
 0x3f5   :  { %v4230_v57 = vpop.f32.mrb[123].mxu0  ;;  %v20903_v51 = vld [vmem:[#allocation3 + $0x8] ss:$16 sps:$4 sm:$0xff]  }
 0x3f6   :  { %v20904_v57 = vld [vmem:[#allocation3 + $0x2c] ss:$16 sps:$4 sm:$0xff]  }
 0x3f7   :  { %17084 = vmatmul.mubr.msk.bf16.gmra.mrb[128].mxu1 %vm105_vm0, %v23163_v17  ;;  %17120 = vmatmul.mubr.msk.bf16.gmra.mrb[100].mxu0 %vm105_vm0, %v23215_v7 }
 0x3f8   :  { %5404 = vmatprep.mubr.bf16.mxu1 %v23040_v18  ;;  %5658 = vmatprep.mubr.bf16.mxu0 %v23040_v18 }
 0x3ff   :  { %17085 = vmatmul.mubr.msk.bf16.gmra.mrb[144].mxu1 %vm105_vm0, %v23182_v47  ;;  %17121 = vmatmul.mubr.msk.bf16.gmra.mrb[104].mxu0 %vm105_vm0, %v23226_v45 }
 0x400   :  { %5668 = vmatprep.mubr.bf16.mxu0 %v23040_v18  ;;  %5737 = vmatprep.mubr.bf16.mxu1 %v23040_v18 }
 0x407   :  { %17122 = vmatmul.mubr.msk.bf16.gmra.mrb[108].mxu0 %vm105_vm0, %v23237_v50  ;;  %17126 = vmatmul.mubr.msk.bf16.vlgmr.msra.gmra.mrb[104].mxu1 %vm105_vm0, %v23193_v35 }
 0x408   :  { %6176 = vmatpush1.bf16.msra.mxu1 %v20895_v55  ;;  %5678 = vmatprep.mubr.bf16.mxu0 %v23040_v18  ;;  %v20905_v55 = vld [vmem:[#allocation3 + $0x28] ss:$16 sps:$4 sm:$0xff]  }
 0x409   :  { %5747 = vmatprep.mubr.bf16.mxu1 %v23040_v18  ;;  %6177 = vmatprep.subr.bf16.mxu1 %v20896_v58  ;;  %v20906_v58 = vld [vmem:[#allocation3 + $0x8c] ss:$16 sps:$4 sm:$0xff]  }
 0x40c   :  { %6178 = vmatpush1.bf16.msra.mxu1 %v20897_v38 }
 0x40d   :  { %6393 = vmatprep.subr.bf16.mxu1 %v20898_v14 }
 0x40f   :  { %17123 = vmatmul.mubr.msk.bf16.gmra.mrb[112].mxu0 %vm105_vm0, %v23248_v53  ;;  %17127 = vmatmul.mubr.msk.bf16.gmra.mrb[108].mxu1 %vm105_vm0, %v23204_v28 }
 0x410   :  { %5688 = vmatprep.mubr.bf16.mxu0 %v23040_v18  ;;  %5757 = vmatprep.mubr.bf16.mxu1 %v23040_v18 }
 0x412   :  { %v4336_v13 = vpop.f32.mrb[132].mxu1 }
 0x413   :  { %v4337_v5 = vpop.f32.mrb[133].mxu1 }
 0x414   :  { %v4338_v0 = vpop.f32.mrb[134].mxu1 }
 0x415   :  { %v4339_v22 = vpop.f32.mrb[135].mxu1  ;;  %v20907_v0 = vld [vmem:[%s24989_s0 + $0xd8] sm:$0xff]  }
 0x416   :  { %v20908_v22 = vld [vmem:[#allocation3 + $0x80] ss:$16 sps:$4 sm:$0xff]  }
 0x417   :  { %17124 = vmatmul.mubr.msk.bf16.gmra.mrb[116].mxu0 %vm105_vm0, %v23259_v60  ;;  %17128 = vmatmul.mubr.msk.bf16.gmra.mrb[112].mxu1 %vm105_vm0, %v23215_v7 }
 0x418   :  { %5698 = vmatprep.mubr.bf16.mxu0 %v23040_v18  ;;  %5767 = vmatprep.mubr.bf16.mxu1 %v23040_v18 }
 0x41f   :  { %17125 = vmatmul.mubr.msk.bf16.gmra.mrb[136].mxu0 %vm105_vm0, %v23270_v39  ;;  %17129 = vmatmul.mubr.msk.bf16.gmra.mrb[116].mxu1 %vm105_vm0, %v23226_v45 }
 0x420   :  { %5777 = vmatprep.mubr.bf16.mxu1 %v23040_v18  ;;  %6098 = vmatprep.mubr.bf16.mxu0 %v23040_v18 }
 0x427   :  { %17130 = vmatmul.mubr.msk.bf16.gmra.mrb[120].mxu1 %vm105_vm0, %v23237_v50  ;;  %17134 = vmatmul.mubr.msk.bf16.vlgmr.msra.gmra.mrb[140].mxu0 %vm105_vm0, %v25077_v2 }
 0x428   :  { %5787 = vmatprep.mubr.bf16.mxu1 %v23040_v18  ;;  %6108 = vmatprep.mubr.bf16.mxu0 %v23040_v18 }
 0x429   :  { %6285 = vmatpush1.bf16.msra.mxu0 %v20899_v4  ;;  %v20910_v4 = vld [vmem:[#allocation3 + $0xa0] ss:$16 sps:$4 sm:$0xff]  }
 0x42a   :  { %6286 = vmatprep.subr.bf16.mxu0 %v20900_v20  ;;  %v20911_v20 = vld [vmem:[#allocation3 + $0xc4] ss:$16 sps:$4 sm:$0xff]  }
 0x42d   :  { %6287 = vmatpush1.bf16.msra.mxu0 %v20901_v15  ;;  %v20912_v15 = vld [vmem:[%s24989_s0 + $0xe0] sm:$0xff]  }
 0x42e   :  { %6502 = vmatprep.subr.bf16.mxu0 %v20902_v63 }
 0x42f   :  { %17131 = vmatmul.mubr.msk.bf16.gmra.mrb[124].mxu1 %vm105_vm0, %v23248_v53  ;;  %17135 = vmatmul.mubr.msk.bf16.gmra.mrb[144].mxu0 %vm105_vm0, %v25078_v49 }
 0x430   :  { %5797 = vmatprep.mubr.bf16.mxu1 %v23040_v18  ;;  %6118 = vmatprep.mubr.bf16.mxu0 %v23040_v18 }
 0x432   :  { %v4549_v62 = vpop.f32.mrb[124].mxu0 }
 0x433   :  { %v4550_v43 = vpop.f32.mrb[125].mxu0 }
 0x434   :  { %v4551_v34 = vpop.f32.mrb[126].mxu0 }
 0x435   :  { %v4552_v24 = vpop.f32.mrb[127].mxu0  ;;  %v20914_v34 = vld [vmem:[%s24989_s0 + $0xf0] sm:$0xff]  }
 0x436   :  { %v20916_v24 = vld [vmem:[#allocation3 + $0x88] ss:$16 sps:$4 sm:$0xff]  }
 0x437   :  { %17132 = vmatmul.mubr.msk.bf16.gmra.mrb[128].mxu1 %vm105_vm0, %v23259_v60  ;;  %17136 = vmatmul.mubr.msk.bf16.gmra.mrb[148].mxu0 %vm105_vm0, %v25079_v52 }
 0x438   :  { %5807 = vmatprep.mubr.bf16.mxu1 %v23040_v18  ;;  %6128 = vmatprep.mubr.bf16.mxu0 %v23040_v18 }
 0x43f   :  { %17133 = vmatmul.mubr.msk.bf16.gmra.mrb[148].mxu1 %vm105_vm0, %v23270_v39  ;;  %17137 = vmatmul.mubr.msk.bf16.gmra.mrb[152].mxu0 %vm105_vm0, %v25080_v44 }
 0x440   :  { %6138 = vmatprep.mubr.bf16.mxu0 %v23040_v18  ;;  %6207 = vmatprep.mubr.bf16.mxu1 %v23040_v18 }
 0x447   :  { %17138 = vmatmul.mubr.msk.bf16.gmra.mrb[156].mxu0 %vm105_vm0, %v25081_v3  ;;  %17142 = vmatmul.mubr.msk.bf16.vlgmr.msra.gmra.mrb[152].mxu1 %vm105_vm0, %v25077_v2  ;;  %v20909_v2 = vld [vmem:[#allocation3 + $0xa4] ss:$16 sps:$4 sm:$0xff]  }
 0x448   :  { %6394 = vmatpush1.bf16.msra.mxu1 %v20903_v51  ;;  %6148 = vmatprep.mubr.bf16.mxu0 %v23040_v18 }
 0x449   :  { %6217 = vmatprep.mubr.bf16.mxu1 %v23040_v18  ;;  %6395 = vmatprep.subr.bf16.mxu1 %v20904_v57 }
 0x44c   :  { %6396 = vmatpush1.bf16.msra.mxu1 %v20905_v55 }
 0x44d   :  { %6611 = vmatprep.subr.bf16.mxu1 %v20906_v58 }
 0x44f   :  { %17139 = vmatmul.mubr.msk.bf16.gmra.mrb[160].mxu0 %vm105_vm0, %v22792_v59  ;;  %17143 = vmatmul.mubr.msk.bf16.gmra.mrb[156].mxu1 %vm105_vm0, %v25078_v49 }
 0x450   :  { %6158 = vmatprep.mubr.bf16.mxu0 %v23040_v18  ;;  %6227 = vmatprep.mubr.bf16.mxu1 %v23040_v18 }
 0x452   :  { %v4658_v38 = vpop.f32.mrb[136].mxu1 }
 0x453   :  { %v4659_v14 = vpop.f32.mrb[137].mxu1  ;;  %v20921_v38 = vld [vmem:[%s24989_s0 + $0x108] sm:$0xff]  }
 0x454   :  { %v4660_v13 = vpop.f32.mrb[138].mxu1  ;;  %v20922_v14 = vld [vmem:[%s24989_s0 + $0x110] sm:$0xff]  }
 0x455   :  { %v4661_v5 = vpop.f32.mrb[139].mxu1  ;;  %v20923_v13 = vld [vmem:[#allocation3 + $0xc0] ss:$16 sps:$4 sm:$0xff]  }
 0x456   :  { %v20924_v5 = vld [vmem:[#allocation3 + $0xe4] ss:$16 sps:$4 sm:$0xff]  }
 0x457   :  { %17140 = vmatmul.mubr.msk.bf16.gmra.mrb[164].mxu0 %vm105_vm0, %v22810_v10  ;;  %17144 = vmatmul.mubr.msk.bf16.gmra.mrb[160].mxu1 %vm105_vm0, %v25079_v52  ;;  %v20918_v52 = vld [vmem:[#allocation3 + $0xa8] ss:$16 sps:$4 sm:$0xff]  }
 0x458   :  { %6168 = vmatprep.mubr.bf16.mxu0 %v23040_v18  ;;  %6237 = vmatprep.mubr.bf16.mxu1 %v23040_v18 }
 0x45f   :  { %17141 = vmatmul.mubr.msk.bf16.gmra.mrb[168].mxu0 %vm105_vm0, %v25055_v8  ;;  %17145 = vmatmul.mubr.msk.bf16.gmra.mrb[164].mxu1 %vm105_vm0, %v25080_v44  ;;  %v20919_v44 = vld [vmem:[#allocation3 + $0xcc] ss:$16 sps:$4 sm:$0xff]  }
 0x460   :  { %6247 = vmatprep.mubr.bf16.mxu1 %v23040_v18  ;;  %6316 = vmatprep.mubr.bf16.mxu0 %v23040_v18 }
 0x467   :  { %17146 = vmatmul.mubr.msk.bf16.gmra.mrb[168].mxu1 %vm105_vm0, %v25081_v3  ;;  %17150 = vmatmul.mubr.msk.bf16.vlgmr.msra.gmra.mrb[140].mxu0 %vm105_vm0, %v20907_v0  ;;  %v20920_v3 = vld [vmem:[%s24989_s0 + $0x100] sm:$0xff]  }
 0x468   :  { %6257 = vmatprep.mubr.bf16.mxu1 %v23040_v18  ;;  %6326 = vmatprep.mubr.bf16.mxu0 %v23040_v18 }
 0x469   :  { %6503 = vmatpush1.bf16.msra.mxu0 %v20908_v22  ;;  %v20926_v22 = vld [vmem:[#allocation3 + $0x104] ss:$16 sps:$4 sm:$0xff]  }
 0x46a   :  { %6504 = vmatprep.subr.bf16.mxu0 %v20909_v2 }
 0x46d   :  { %6505 = vmatpush1.bf16.msra.mxu0 %v20910_v4 }
 0x46e   :  { %6776 = vmatprep.subr.bf16.mxu0 %v20911_v20 }
 0x46f   :  { %17147 = vmatmul.mubr.msk.bf16.gmra.mrb[172].mxu1 %vm105_vm0, %v22792_v59  ;;  %17151 = vmatmul.mubr.msk.bf16.gmra.mrb[144].mxu0 %vm105_vm0, %v20912_v15  ;;  %v20913_v59 = vld [vmem:[%s24989_s0 + $0xe8] sm:$0xff]  }
 0x470   :  { %6267 = vmatprep.mubr.bf16.mxu1 %v23040_v18  ;;  %6336 = vmatprep.mubr.bf16.mxu0 %v23040_v18 }
 0x472   :  { %v4895_v63 = vpop.f32.mrb[128].mxu0 }
 0x473   :  { %v4896_v49 = vpop.f32.mrb[129].mxu0 }
 0x474   :  { %v4897_v62 = vpop.f32.mrb[130].mxu0 }
 0x475   :  { %v4898_v43 = vpop.f32.mrb[131].mxu0 }
 0x477   :  { %17148 = vmatmul.mubr.msk.bf16.gmra.mrb[176].mxu1 %vm105_vm0, %v22810_v10  ;;  %17152 = vmatmul.mubr.msk.bf16.gmra.mrb[148].mxu0 %vm105_vm0, %v20913_v59  ;;  %v20915_v10 = vld [vmem:[%s24989_s0 + $0xf8] sm:$0xff]  }
 0x478   :  { %6277 = vmatprep.mubr.bf16.mxu1 %v23040_v18  ;;  %6346 = vmatprep.mubr.bf16.mxu0 %v23040_v18 }
 0x47f   :  { %17149 = vmatmul.mubr.msk.bf16.gmra.mrb[180].mxu1 %vm105_vm0, %v25055_v8  ;;  %17153 = vmatmul.mubr.msk.bf16.gmra.mrb[152].mxu0 %vm105_vm0, %v20914_v34  ;;  %v20917_v8 = vld [vmem:[#allocation3 + $0xac] ss:$16 sps:$4 sm:$0xff]  }
 0x480   :  { %6356 = vmatprep.mubr.bf16.mxu0 %v23040_v18  ;;  %6425 = vmatprep.mubr.bf16.mxu1 %v23040_v18 }
 0x487   :  { %17154 = vmatmul.mubr.msk.bf16.gmra.mrb[156].mxu0 %vm105_vm0, %v20915_v10  ;;  %17158 = vmatmul.mubr.msk.bf16.vlgmr.msra.gmra.mrb[152].mxu1 %vm105_vm0, %v20907_v0  ;;  %v20925_v0 = vld [vmem:[#allocation3 + $0xe0] ss:$16 sps:$4 sm:$0xff]  }
 0x488   :  { %6612 = vmatpush1.bf16.msra.mxu1 %v20916_v24  ;;  %6366 = vmatprep.mubr.bf16.mxu0 %v23040_v18 }
 0x489   :  { %6435 = vmatprep.mubr.bf16.mxu1 %v23040_v18  ;;  %6613 = vmatprep.subr.bf16.mxu1 %v20917_v8  ;;  %v20927_v8 = vld [vmem:[#allocation3 + $0xc8] ss:$16 sps:$4 sm:$0xff]  }
 0x48c   :  { %6614 = vmatpush1.bf16.msra.mxu1 %v20918_v52  ;;  %v20928_v52 = vld [vmem:[#allocation3 + $0xec] ss:$16 sps:$4 sm:$0xff]  }
 0x48d   :  { %6885 = vmatprep.subr.bf16.mxu1 %v20919_v44 }
 0x48f   :  { %17155 = vmatmul.mubr.msk.bf16.gmra.mrb[160].mxu0 %vm105_vm0, %v20920_v3  ;;  %17159 = vmatmul.mubr.msk.bf16.gmra.mrb[156].mxu1 %vm105_vm0, %v20912_v15 }
 0x490   :  { %6376 = vmatprep.mubr.bf16.mxu0 %v23040_v18  ;;  %6445 = vmatprep.mubr.bf16.mxu1 %v23040_v18 }
 0x492   :  { %v5004_v51 = vpop.f32.mrb[140].mxu1 }
 0x493   :  { %v5005_v57 = vpop.f32.mrb[141].mxu1 }
 0x494   :  { %v5006_v55 = vpop.f32.mrb[142].mxu1  ;;  %v20929_v57 = vld [vmem:[#allocation3 + $0xe8] ss:$16 sps:$4 sm:$0xff]  }
 0x495   :  { %v5007_v58 = vpop.f32.mrb[143].mxu1 }
 0x496   :  { %v20930_v58 = vld [vmem:[#allocation3 + $0x10c] ss:$16 sps:$4 sm:$0xff]  }
 0x497   :  { %17156 = vmatmul.mubr.msk.bf16.gmra.mrb[164].mxu0 %vm105_vm0, %v20921_v38  ;;  %17160 = vmatmul.mubr.msk.bf16.gmra.mrb[160].mxu1 %vm105_vm0, %v20913_v59 }
 0x498   :  { %6386 = vmatprep.mubr.bf16.mxu0 %v23040_v18  ;;  %6455 = vmatprep.mubr.bf16.mxu1 %v23040_v18 }
 0x49f   :  { %17157 = vmatmul.mubr.msk.bf16.gmra.mrb[172].mxu0 %vm105_vm0, %v20922_v14  ;;  %17161 = vmatmul.mubr.msk.bf16.gmra.mrb[164].mxu1 %vm105_vm0, %v20914_v34 }
 0x4a0   :  { %6465 = vmatprep.mubr.bf16.mxu1 %v23040_v18  ;;  %6534 = vmatprep.mubr.bf16.mxu0 %v23040_v18 }
 0x4a7   :  { %17162 = vmatmul.mubr.msk.bf16.gmra.mrb[168].mxu1 %vm105_vm0, %v20915_v10  ;;  %17166 = vmatmul.mubr.msk.bf16.vlgmr.msra.gmra.mrb[140].mxu0 %vm105_vm0, %v22894_v36 }
 0x4a8   :  { %6475 = vmatprep.mubr.bf16.mxu1 %v23040_v18  ;;  %6544 = vmatprep.mubr.bf16.mxu0 %v23040_v18 }
 0x4a9   :  { %6777 = vmatpush1.bf16.msra.mxu0 %v20923_v13 }
 0x4aa   :  { %6778 = vmatprep.subr.bf16.mxu0 %v20924_v5 }
 0x4ad   :  { %6779 = vmatpush1.bf16.msra.mxu0 %v20925_v0 }
 0x4ae   :  { %7131 = vmatprep.subr.bf16.mxu0 %v20926_v22 }
 0x4af   :  { %17163 = vmatmul.mubr.msk.bf16.gmra.mrb[172].mxu1 %vm105_vm0, %v20920_v3  ;;  %17167 = vmatmul.mubr.msk.bf16.gmra.mrb[144].mxu0 %vm105_vm0, %v22954_v54 }
 0x4b0   :  { %6485 = vmatprep.mubr.bf16.mxu1 %v23040_v18  ;;  %6554 = vmatprep.mubr.bf16.mxu0 %v23040_v18 }
 0x4b2   :  { %v5297_v2 = vpop.f32.mrb[132].mxu0 }
 0x4b3   :  { %v5298_v4 = vpop.f32.mrb[133].mxu0 }
 0x4b4   :  { %v5299_v20 = vpop.f32.mrb[134].mxu0 }
 0x4b5   :  { %v5300_v15 = vpop.f32.mrb[135].mxu0 }
 0x4b7   :  { %17164 = vmatmul.mubr.msk.bf16.gmra.mrb[176].mxu1 %vm105_vm0, %v20921_v38  ;;  %17168 = vmatmul.mubr.msk.bf16.gmra.mrb[148].mxu0 %vm105_vm0, %v23009_v6 }
 0x4b8   :  { %6495 = vmatprep.mubr.bf16.mxu1 %v23040_v18  ;;  %6564 = vmatprep.mubr.bf16.mxu0 %v23040_v18 }
 0x4ba   :  { %v5630_v63 = vpop.f32.mrb[92].mxu0 }
 0x4bb   :  { %v5632_v49 = vpop.f32.mrb[93].mxu0  ;;  %v5870_v4 = vmul.f32 %v5630_v63, %v22224_v16 }
 0x4bc   :  { %v5634_v62 = vpop.f32.mrb[94].mxu0 }
 0x4bd   :  { %v5636_v43 = vpop.f32.mrb[95].mxu0  ;;  %v5874_v20 = vmul.f32 %v5634_v62, %v22224_v16  ;;  %v5926_v63 = vadd.f32 %v5870_v4, %v22241_v27 }
 0x4be   :  { %v5875_v15 = vmul.f32 %v5636_v43, %v22231_v23 }
 0x4bf   :  { %17165 = vmatmul.mubr.msk.bf16.gmra.mrb[184].mxu1 %vm105_vm0, %v20922_v14  ;;  %17169 = vmatmul.mubr.msk.bf16.gmra.mrb[152].mxu0 %vm105_vm0, %v23060_v61  ;;  %v5930_v62 = vadd.f32 %v5874_v20, %v22241_v27  ;;  %v5982_v11 = vmax.f32 %v5926_v63, 0.0 }
 0x4c0   :  { %6574 = vmatprep.mubr.bf16.mxu0 %v23040_v18  ;;  %6643 = vmatprep.mubr.bf16.mxu1 %v23040_v18 }
 0x4c2   :  { %v5640_v59 = vpop.f32.mrb[96].mxu0 }
 0x4c3   :  { %v23406_v34 = vpop.f32.mrb[97].mxu0 }
 0x4c4   :  { %v23408_v10 = vpop.f32.mrb[98].mxu0 }
 0x4c5   :  { %v23410_v24 = vpop.f32.mrb[99].mxu0  ;;  %v5882_v63 = vmul.f32 %v23408_v10, %v22224_v16 }
 0x4c7   :  { %17170 = vmatmul.mubr.msk.bf16.gmra.mrb[156].mxu0 %vm105_vm0, %v23096_v41  ;;  %17174 = vmatmul.mubr.msk.bf16.vlgmr.msra.gmra.mrb[152].mxu1 %vm105_vm0, %v22894_v36 }
 0x4c8   :  { %6886 = vmatpush1.bf16.msra.mxu1 %v20927_v8  ;;  %6584 = vmatprep.mubr.bf16.mxu0 %v23040_v18 }
 0x4c9   :  { %6653 = vmatprep.mubr.bf16.mxu1 %v23040_v18  ;;  %6887 = vmatprep.subr.bf16.mxu1 %v20928_v52 }
 0x4ca   :  { %v23418_v44 = vpop.f32.mrb[100].mxu0 }
 0x4cb   :  { %v23420_v3 = vpop.f32.mrb[101].mxu0 }
 0x4cc   :  { %v23422_v51 = vpop.f32.mrb[102].mxu0  ;;  %6888 = vmatpush1.bf16.msra.mxu1 %v20929_v57 }
 0x4cd   :  { %v23424_v55 = vpop.f32.mrb[103].mxu0  ;;  %7240 = vmatprep.subr.bf16.mxu1 %v20930_v58 }
 0x4cf   :  { %17171 = vmatmul.mubr.msk.bf16.gmra.mrb[160].mxu0 %vm105_vm0, %v23134_v1  ;;  %17175 = vmatmul.mubr.msk.bf16.gmra.mrb[156].mxu1 %vm105_vm0, %v22954_v54  ;;  %v5871_v54 = vmul.f32 %v5632_v49, %v22231_v23 }
 0x4d0   :  { %6594 = vmatprep.mubr.bf16.mxu0 %v23040_v18  ;;  %6663 = vmatprep.mubr.bf16.mxu1 %v23040_v18 }
 0x4d1   :  { %v5927_v49 = vadd.f32 %v5871_v54, %v22248_v31 }
 0x4d2   :  { %v5406_v36 = vpop.f32.mrb[144].mxu1  ;;  %v23432_v38 = vpop.f32.mrb[104].mxu0 }
 0x4d3   :  { %v5407_v14 = vpop.f32.mrb[145].mxu1  ;;  %v23434_v13 = vpop.f32.mrb[105].mxu0  ;;  %v5983_v20 = vmax.f32 %v5927_v49, 0.0  ;;  %v5894_v30 = vmul.f32 %v23432_v38, %v22224_v16 }
 0x4d4   :  { %v5408_v5 = vpop.f32.mrb[146].mxu1  ;;  %v23436_v0 = vpop.f32.mrb[106].mxu0 }
 0x4d5   :  { %v5409_v22 = vpop.f32.mrb[147].mxu1  ;;  %v23438_v2 = vpop.f32.mrb[107].mxu0  ;;  %v5950_v19 = vadd.f32 %v5894_v30, %v22241_v27 }
 0x4d7   :  { %17172 = vmatmul.mubr.msk.bf16.gmra.mrb[164].mxu0 %vm105_vm0, %v23163_v17  ;;  %17176 = vmatmul.mubr.msk.bf16.gmra.mrb[160].mxu1 %vm105_vm0, %v23009_v6 }
 0x4d8   :  { %6604 = vmatprep.mubr.bf16.mxu0 %v23040_v18  ;;  %6673 = vmatprep.mubr.bf16.mxu1 %v23040_v18 }
 0x4da   :  { %v23450_v8 = vpop.f32.mrb[108].mxu0  ;;  %v5739_v52 = vpop.f32.mrb[104].mxu1 }
 0x4db   :  { %v5872_v57 = vmul.f32 %v5739_v52, %v22244_v29  ;;  %v23454_v58 = vpop.f32.mrb[109].mxu0  ;;  %v5741_v6 = vpop.f32.mrb[105].mxu1  ;;  %v5931_v52 = vadd.f32 %v5875_v15, %v22248_v31  ;;  %v5879_v15 = vmul.f32 %v23406_v34, %v22231_v23 }
 0x4dc   :  { %v5873_v36 = vmul.f32 %v5741_v6, %v22253_v32  ;;  %v23458_v14 = vpop.f32.mrb[110].mxu0  ;;  %v5743_v5 = vpop.f32.mrb[106].mxu1  ;;  %v5878_v6 = vmul.f32 %v5640_v59, %v22224_v16  ;;  %v5986_v59 = vmax.f32 %v5930_v62, 0.0 }
 0x4dd   :  { %v5928_v43 = vadd.f32 %v5872_v57, %v22257_v33  ;;  %v5876_v22 = vmul.f32 %v5743_v5, %v22244_v29  ;;  %v23463_v9 = vpop.f32.mrb[111].mxu0  ;;  %v5745_v4 = vpop.f32.mrb[107].mxu1 }
 0x4de   :  { %v5929_v56 = vadd.f32 %v5873_v36, %v22263_v37  ;;  %v5877_v54 = vmul.f32 %v5745_v4, %v22253_v32 }
 0x4df   :  { %v5984_v12 = vmax.f32 %v5928_v43, 0.0  ;;  %v5932_v42 = vadd.f32 %v5876_v22, %v22257_v33  ;;  %17173 = vmatmul.mubr.msk.bf16.gmra.mrb[176].mxu0 %vm105_vm0, %v23182_v47  ;;  %17177 = vmatmul.mubr.msk.bf16.gmra.mrb[164].mxu1 %vm105_vm0, %v23060_v61  ;;  %v5987_v22 = vmax.f32 %v5931_v52, 0.0  ;;  %v5883_v61 = vmul.f32 %v23410_v24, %v22231_v23 }
 0x4e0   :  { %v5985_v57 = vmax.f32 %v5929_v56, 0.0  ;;  %v5933_v36 = vadd.f32 %v5877_v54, %v22263_v37  ;;  %6683 = vmatprep.mubr.bf16.mxu1 %v23040_v18  ;;  %6808 = vmatprep.mubr.bf16.mxu0 %v23040_v18  ;;  %v5934_v54 = vadd.f32 %v5878_v6, %v22241_v27 }
 0x4e1   :  { %v23481_v5 = vmax.f32 %v5982_v11, %v5984_v12  ;;  %v5988_v43 = vmax.f32 %v5932_v42, 0.0  ;;  %v5935_v42 = vadd.f32 %v5879_v15, %v22248_v31 }
 0x4e2   :  { %v23485_v49 = vmax.f32 %v5983_v20, %v5985_v57  ;;  %v5989_v56 = vmax.f32 %v5933_v36, 0.0  ;;  %v23487_v34 = vpop.f32.mrb[112].mxu0  ;;  %v5749_v4 = vpop.f32.mrb[108].mxu1  ;;  %v5938_v57 = vadd.f32 %v5882_v63, %v22241_v27 }
 0x4e3   :  { %v23490_v25 = vmax.f32 %v5986_v59, %v5988_v43  ;;  %v5880_v62 = vmul.f32 %v5749_v4, %v22244_v29  ;;  %v23493_v10 = vpop.f32.mrb[113].mxu0  ;;  %v5751_v12 = vpop.f32.mrb[109].mxu1  ;;  %v5939_v4 = vadd.f32 %v5883_v61, %v22248_v31  ;;  %v5887_v61 = vmul.f32 %v23420_v3, %v22231_v23 }
 0x4e4   :  { %v23496_v11 = vmax.f32 %v5987_v22, %v5989_v56  ;;  %v5881_v24 = vmul.f32 %v5751_v12, %v22253_v32  ;;  %v23499_v52 = vpop.f32.mrb[114].mxu0  ;;  %v5753_v20 = vpop.f32.mrb[110].mxu1  ;;  %v5990_v56 = vmax.f32 %v5934_v54, 0.0  ;;  %v5886_v12 = vmul.f32 %v23418_v44, %v22224_v16 }
 0x4e5   :  { %v5936_v6 = vadd.f32 %v5880_v62, %v22257_v33  ;;  %v5884_v36 = vmul.f32 %v5753_v20, %v22244_v29  ;;  %v23504_v59 = vpop.f32.mrb[115].mxu0  ;;  %v5755_v43 = vpop.f32.mrb[111].mxu1  ;;  %v5991_v62 = vmax.f32 %v5935_v42, 0.0  ;;  %v5994_v44 = vmax.f32 %v5938_v57, 0.0 }
 0x4e6   :  { %v5937_v15 = vadd.f32 %v5881_v24, %v22263_v37  ;;  %v5885_v22 = vmul.f32 %v5755_v43, %v22253_v32  ;;  %v5890_v54 = vmul.f32 %v23422_v51, %v22224_v16  ;;  %v5995_v42 = vmax.f32 %v5939_v4, 0.0 }
 0x4e7   :  { %v5992_v46 = vmax.f32 %v5936_v6, 0.0  ;;  %v5940_v63 = vadd.f32 %v5884_v36, %v22257_v33  ;;  %17178 = vmatmul.mubr.msk.bf16.gmra.mrb[168].mxu1 %vm105_vm0, %v23096_v41  ;;  %17182 = vmatmul.mubr.msk.bf16.vlgmr.msra.gmra.mrb[140].mxu0 %vm105_vm0, %v23193_v35  ;;  %v20931_v36 = vld [vmem:[#allocation3 + $0x100] ss:$16 sps:$4 sm:$0xff]   ;;  %v5891_v3 = vmul.f32 %v23424_v55, %v22231_v23  ;;  %v5942_v57 = vadd.f32 %v5886_v12, %v22241_v27 }
 0x4e8   :  { %v5993_v24 = vmax.f32 %v5937_v15, 0.0  ;;  %v5941_v20 = vadd.f32 %v5885_v22, %v22263_v37  ;;  %6693 = vmatprep.mubr.bf16.mxu1 %v23040_v18  ;;  %6818 = vmatprep.mubr.bf16.mxu0 %v23040_v18 }
 0x4e9   :  { %v23523_v6 = vmax.f32 %v5990_v56, %v5992_v46  ;;  %v5996_v41 = vmax.f32 %v5940_v63, 0.0  ;;  %7132 = vmatpush1.bf16.msra.mxu0 %v20931_v36  ;;  %v5943_v63 = vadd.f32 %v5887_v61, %v22248_v31  ;;  %v20933_v36 = vld [vmem:[#allocation3 + $0x120] ss:$16 sps:$4 sm:$0xff]   ;;  %v5947_v61 = vadd.f32 %v5891_v3, %v22248_v31 }
 0x4ea   :  { %v23527_v43 = vmax.f32 %v5991_v62, %v5993_v24  ;;  %v5997_v15 = vmax.f32 %v5941_v20, 0.0  ;;  %v23529_v22 = vpop.f32.mrb[116].mxu0  ;;  %v5759_v26 = vpop.f32.mrb[112].mxu1  ;;  %7133 = vmatprep.subr.bf16.mxu0 %v20932_v40  ;;  %v5946_v40 = vadd.f32 %v5890_v54, %v22241_v27  ;;  %v5895_v3 = vmul.f32 %v23434_v13, %v22231_v23 }
 0x4eb   :  { %v23532_v51 = vmax.f32 %v5994_v44, %v5996_v41  ;;  %v5888_v46 = vmul.f32 %v5759_v26, %v22244_v29  ;;  %v23535_v56 = vpop.f32.mrb[117].mxu0  ;;  %v5761_v4 = vpop.f32.mrb[113].mxu1 }
 0x4ec   :  { %v23538_v55 = vmax.f32 %v5995_v42, %v5997_v15  ;;  %v5889_v62 = vmul.f32 %v5761_v4, %v22253_v32  ;;  %v23541_v24 = vpop.f32.mrb[118].mxu0  ;;  %v5763_v20 = vpop.f32.mrb[114].mxu1  ;;  %v5998_v4 = vmax.f32 %v5942_v57, 0.0  ;;  %v6002_v38 = vmax.f32 %v5946_v40, 0.0 }
 0x4ed   :  { %v5944_v12 = vadd.f32 %v5888_v46, %v22257_v33  ;;  %v5892_v44 = vmul.f32 %v5763_v20, %v22244_v29  ;;  %v23546_v41 = vpop.f32.mrb[119].mxu0  ;;  %v5765_v26 = vpop.f32.mrb[115].mxu1  ;;  %7134 = vmatpush1.bf16.msra.mxu0 %v20933_v36  ;;  %v5999_v20 = vmax.f32 %v5943_v63, 0.0  ;;  %v5898_v57 = vmul.f32 %v23436_v0, %v22224_v16 }
 0x4ee   :  { %v5945_v42 = vadd.f32 %v5889_v62, %v22263_v37  ;;  %v5893_v15 = vmul.f32 %v5765_v26, %v22253_v32  ;;  %v5899_v63 = vmul.f32 %v23438_v2, %v22231_v23 }
 0x4ef   :  { %v6000_v54 = vmax.f32 %v5944_v12, 0.0  ;;  %v5948_v46 = vadd.f32 %v5892_v44, %v22257_v33  ;;  %17179 = vmatmul.mubr.msk.bf16.gmra.mrb[172].mxu1 %vm105_vm0, %v23134_v1  ;;  %17183 = vmatmul.mubr.msk.bf16.gmra.mrb[144].mxu0 %vm105_vm0, %v23204_v28  ;;  %v6003_v44 = vmax.f32 %v5947_v61, 0.0 }
 0x4f0   :  { %v6001_v62 = vmax.f32 %v5945_v42, 0.0  ;;  %v5949_v26 = vadd.f32 %v5893_v15, %v22263_v37  ;;  %6703 = vmatprep.mubr.bf16.mxu1 %v23040_v18  ;;  %6828 = vmatprep.mubr.bf16.mxu0 %v23040_v18 }
 0x4f1   :  { %v23565_v12 = vmax.f32 %v5998_v4, %v6000_v54  ;;  %v6004_v1 = vmax.f32 %v5948_v46, 0.0  ;;  %v5951_v4 = vadd.f32 %v5895_v3, %v22248_v31 }
 0x4f2   :  { %v23569_v36 = vmax.f32 %v5999_v20, %v6001_v62  ;;  %v6005_v13 = vmax.f32 %v5949_v26, 0.0  ;;  %v5769_v42 = vpop.f32.mrb[116].mxu1  ;;  %v5700_v15 = vpop.f32.mrb[136].mxu0  ;;  %v5954_v20 = vadd.f32 %v5898_v57, %v22241_v27 }
 0x4f3   :  { %v23572_v48 = vmax.f32 %v6002_v38, %v6004_v1  ;;  %v5896_v18 = vmul.f32 %v5769_v42, %v22244_v29  ;;  %v5771_v40 = vpop.f32.mrb[117].mxu1  ;;  %v5701_v0 = vpop.f32.mrb[137].mxu0  ;;  %v5955_v1 = vadd.f32 %v5899_v63, %v22248_v31  ;;  %v6007_v57 = vmax.f32 %v5951_v4, 0.0 }
 0x4f4   :  { %v23576_v54 = vmax.f32 %v6003_v44, %v6005_v13  ;;  %v5897_v61 = vmul.f32 %v5771_v40, %v22253_v32  ;;  %v5773_v2 = vpop.f32.mrb[118].mxu1  ;;  %v5702_v46 = vpop.f32.mrb[138].mxu0  ;;  %v6006_v44 = vmax.f32 %v5950_v19, 0.0  ;;  %v5902_v13 = vmul.f32 %v23450_v8, %v22224_v16  ;;  %v23595_v19 = vld [vmem:[#allocation2] sm:$0xff] }
 0x4f5   :  { %v5952_v62 = vadd.f32 %v5896_v18, %v22257_v33  ;;  %v5900_v30 = vmul.f32 %v5773_v2, %v22244_v29  ;;  %v5775_v26 = vpop.f32.mrb[119].mxu1  ;;  %v5703_v38 = vpop.f32.mrb[139].mxu0  ;;  %v5903_v63 = vmul.f32 %v23454_v58, %v22231_v23  ;;  %v6010_v8 = vmax.f32 %v5954_v20, 0.0 }
 0x4f6   :  { %v5953_v42 = vadd.f32 %v5897_v61, %v22263_v37  ;;  %v5901_v3 = vmul.f32 %v5775_v26, %v22253_v32  ;;  %v6011_v4 = vmax.f32 %v5955_v1, 0.0  ;;  %v5907_v58 = vmul.f32 %v23463_v9, %v22231_v23 }
 0x4f7   :  { %v6008_v15 = vmax.f32 %v5952_v62, 0.0  ;;  %v5956_v40 = vadd.f32 %v5900_v30, %v22257_v33  ;;  %17180 = vmatmul.mubr.msk.bf16.gmra.mrb[176].mxu1 %vm105_vm0, %v23163_v17  ;;  %17184 = vmatmul.mubr.msk.bf16.gmra.mrb[148].mxu0 %vm105_vm0, %v23215_v7  ;;  %v5906_v17 = vmul.f32 %v23458_v14, %v22224_v16  ;;  %v5958_v26 = vadd.f32 %v5902_v13, %v22241_v27 }
 0x4f8   :  { %v6009_v18 = vmax.f32 %v5953_v42, 0.0  ;;  %v5957_v0 = vadd.f32 %v5901_v3, %v22263_v37  ;;  %6713 = vmatprep.mubr.bf16.mxu1 %v23595_v19  ;;  %6838 = vmatprep.mubr.bf16.mxu0 %v23595_v19  ;;  %v5959_v14 = vadd.f32 %v5903_v63, %v22248_v31  ;;  %v5963_v13 = vadd.f32 %v5907_v58, %v22248_v31 }
 0x4f9   :  { %v23601_v61 = vmax.f32 %v6006_v44, %v6008_v15  ;;  %v6012_v2 = vmax.f32 %v5956_v40, 0.0  ;;  %v5962_v9 = vadd.f32 %v5906_v17, %v22241_v27  ;;  %v5910_v63 = vmul.f32 %v23487_v34, %v22224_v16 }
 0x4fa   :  { %v23605_v46 = vmax.f32 %v6007_v57, %v6009_v18  ;;  %v6013_v62 = vmax.f32 %v5957_v0, 0.0  ;;  %v5779_v30 = vpop.f32.mrb[120].mxu1  ;;  %v6015_v17 = vmax.f32 %v5959_v14, 0.0  ;;  %v5911_v58 = vmul.f32 %v23493_v10, %v22231_v23 }
 0x4fb   :  { %v23608_v38 = vmax.f32 %v6010_v8, %v6012_v2  ;;  %v5904_v20 = vmul.f32 %v5779_v30, %v22244_v29  ;;  %v5781_v42 = vpop.f32.mrb[121].mxu1  ;;  %v6014_v8 = vmax.f32 %v5958_v26, 0.0  ;;  %v6018_v34 = vmax.f32 %v5962_v9, 0.0 }
 0x4fc   :  { %v23612_v3 = vmax.f32 %v6011_v4, %v6013_v62  ;;  %v5905_v1 = vmul.f32 %v5781_v42, %v22253_v32  ;;  %v5783_v44 = vpop.f32.mrb[122].mxu1  ;;  %v5914_v26 = vmul.f32 %v23499_v52, %v22224_v16  ;;  %v6019_v42 = vmax.f32 %v5963_v13, 0.0 }
 0x4fd   :  { %v5960_v15 = vadd.f32 %v5904_v20, %v22257_v33  ;;  %v5908_v40 = vmul.f32 %v5783_v44, %v22244_v29  ;;  %v5785_v57 = vpop.f32.mrb[123].mxu1  ;;  %v5915_v14 = vmul.f32 %v23504_v59, %v22231_v23  ;;  %v5967_v52 = vadd.f32 %v5911_v58, %v22248_v31 }
 0x4fe   :  { %v5961_v18 = vadd.f32 %v5905_v1, %v22263_v37  ;;  %v5909_v0 = vmul.f32 %v5785_v57, %v22253_v32  ;;  %v5970_v59 = vadd.f32 %v5914_v26, %v22241_v27  ;;  %v5918_v58 = vmul.f32 %v23529_v22, %v22224_v16 }
 0x4ff   :  { %v6016_v2 = vmax.f32 %v5960_v15, 0.0  ;;  %v5964_v4 = vadd.f32 %v5908_v40, %v22257_v33  ;;  %17181 = vmatmul.mubr.msk.bf16.gmra.mrb[188].mxu1 %vm105_vm0, %v23182_v47  ;;  %17185 = vmatmul.mubr.msk.bf16.gmra.mrb[152].mxu0 %vm105_vm0, %v23226_v45  ;;  %v5966_v15 = vadd.f32 %v5910_v63, %v22241_v27  ;;  %v5971_v63 = vadd.f32 %v5915_v14, %v22248_v31 }
 0x500   :  { %v6017_v62 = vmax.f32 %v5961_v18, 0.0  ;;  %v5965_v30 = vadd.f32 %v5909_v0, %v22263_v37  ;;  %6848 = vmatprep.mubr.bf16.mxu0 %v23595_v19  ;;  %6917 = vmatprep.mubr.bf16.mxu1 %v23595_v19  ;;  %v6023_v26 = vmax.f32 %v5967_v52, 0.0  ;;  %v6026_v22 = vmax.f32 %v5970_v59, 0.0 }
 0x501   :  { %v23635_v20 = vmax.f32 %v6014_v8, %v6016_v2  ;;  %v6020_v47 = vmax.f32 %v5964_v4, 0.0  ;;  %v6027_v52 = vmax.f32 %v5971_v63, 0.0  ;;  %v5974_v59 = vadd.f32 %v5918_v58, %v22241_v27 }
 0x502   :  { %v23639_v1 = vmax.f32 %v6015_v17, %v6017_v62  ;;  %v6021_v10 = vmax.f32 %v5965_v30, 0.0  ;;  %v5789_v44 = vpop.f32.mrb[124].mxu1  ;;  %v6022_v30 = vmax.f32 %v5966_v15, 0.0  ;;  %v5922_v15 = vmul.f32 %v23541_v24, %v22224_v16 }
 0x503   :  { %v23642_v40 = vmax.f32 %v6018_v34, %v6020_v47  ;;  %v5912_v9 = vmul.f32 %v5789_v44, %v22244_v29  ;;  %v5791_v57 = vpop.f32.mrb[125].mxu1  ;;  %v20935_v44 = vld [vmem:[#allocation3 + $0x108] ss:$16 sps:$4 sm:$0xff]  }
 0x504   :  { %25082 = vst [vmem:[#allocation27_spill] sm:$0xff] %v23639_v1  ;;  %v23646_v18 = vmax.f32 %v6019_v42, %v6021_v10  ;;  %v5913_v13 = vmul.f32 %v5791_v57, %v22253_v32  ;;  %v5793_v0 = vpop.f32.mrb[126].mxu1  ;;  %v5919_v42 = vmul.f32 %v23535_v56, %v22231_v23  ;;  %v5923_v56 = vmul.f32 %v23546_v41, %v22231_v23 }
 0x505   :  { %25083 = vst [vmem:[#allocation28_spill] sm:$0xff] %v23642_v40  ;;  %v5968_v8 = vadd.f32 %v5912_v9, %v22257_v33  ;;  %v5916_v2 = vmul.f32 %v5793_v0, %v22244_v29  ;;  %v5795_v4 = vpop.f32.mrb[127].mxu1  ;;  %v5978_v41 = vadd.f32 %v5922_v15, %v22241_v27 }
 0x506   :  { %25084 = vst [vmem:[#allocation29_spill] sm:$0xff] %v23646_v18  ;;  %v5969_v17 = vadd.f32 %v5913_v13, %v22263_v37  ;;  %v5917_v62 = vmul.f32 %v5795_v4, %v22253_v32 }
 0x507   :  { %v6024_v34 = vmax.f32 %v5968_v8, 0.0  ;;  %v5972_v47 = vadd.f32 %v5916_v2, %v22257_v33  ;;  %17186 = vmatmul.mubr.msk.bf16.gmra.mrb[156].mxu0 %vm105_vm0, %v23237_v50  ;;  %17190 = vmatmul.mubr.msk.bf16.vlgmr.msra.gmra.mrb[152].mxu1 %vm105_vm0, %v23193_v35  ;;  %v20936_v35 = vld [vmem:[#allocation3 + $0x12c] ss:$16 sps:$4 sm:$0xff]  }
 0x508   :  { %v6025_v14 = vmax.f32 %v5969_v17, 0.0  ;;  %v5973_v10 = vadd.f32 %v5917_v62, %v22263_v37  ;;  %7241 = vmatpush1.bf16.msra.mxu1 %v20935_v44  ;;  %6858 = vmatprep.mubr.bf16.mxu0 %v23595_v19  ;;  %v5975_v17 = vadd.f32 %v5919_v42, %v22248_v31  ;;  %v6030_v44 = vmax.f32 %v5974_v59, 0.0 }
 0x509   :  { %v23668_v9 = vmax.f32 %v6022_v30, %v6024_v34  ;;  %v6028_v57 = vmax.f32 %v5972_v47, 0.0  ;;  %6927 = vmatprep.mubr.bf16.mxu1 %v23595_v19  ;;  %7242 = vmatprep.subr.bf16.mxu1 %v20936_v35  ;;  %v20937_v34 = vld [vmem:[#allocation3 + $0x128] ss:$16 sps:$4 sm:$0xff]  }
 0x50a   :  { %v23673_v13 = vmax.f32 %v6023_v26, %v6025_v14  ;;  %v6029_v0 = vmax.f32 %v5973_v10, 0.0  ;;  %v5799_v8 = vpop.f32.mrb[128].mxu1  ;;  %v5979_v14 = vadd.f32 %v5923_v56, %v22248_v31  ;;  %v6031_v15 = vmax.f32 %v5975_v17, 0.0 }
 0x50b   :  { %25085 = vst [vmem:[#allocation30_spill] sm:$0xff] %v23668_v9  ;;  %v23676_v2 = vmax.f32 %v6026_v22, %v6028_v57  ;;  %v5920_v24 = vmul.f32 %v5799_v8, %v22244_v29  ;;  %v5801_v4 = vpop.f32.mrb[129].mxu1  ;;  %v6034_v56 = vmax.f32 %v5978_v41, 0.0  ;;  %v20153_v41 = vld [vmem:[%s24989_s0 + $0xe0] sm:$0xff]  }
 0x50c   :  { %25086 = vst [vmem:[#allocation31_spill] sm:$0xff] %v23673_v13  ;;  %v23680_v62 = vmax.f32 %v6027_v52, %v6029_v0  ;;  %v5921_v63 = vmul.f32 %v5801_v4, %v22253_v32  ;;  %v5803_v30 = vpop.f32.mrb[130].mxu1  ;;  %7243 = vmatpush1.bf16.msra.mxu1 %v20937_v34  ;;  %v6035_v59 = vmax.f32 %v5979_v14, 0.0  ;;  %v20251_v9 = vld [vmem:[#allocation5 + $0x420] ss:$16 sps:$4 sm:$0xff]  }
 0x50d   :  { %25087 = vst [vmem:[#allocation32_spill] sm:$0xff] %v23676_v2  ;;  %v5976_v47 = vadd.f32 %v5920_v24, %v22257_v33  ;;  %v5924_v58 = vmul.f32 %v5803_v30, %v22244_v29  ;;  %v5805_v26 = vpop.f32.mrb[131].mxu1 }
 0x50e   :  { %25088 = vst [vmem:[#allocation33_spill] sm:$0xff] %v23680_v62  ;;  %v5977_v10 = vadd.f32 %v5921_v63, %v22263_v37  ;;  %v5925_v42 = vmul.f32 %v5805_v26, %v22253_v32  ;;  %v20253_v62 = vld [vmem:[#allocation5 + $0x424] ss:$16 sps:$4 sm:$0xff]  }
 0x50f   :  { %v6032_v22 = vmax.f32 %v5976_v47, 0.0  ;;  %v5980_v57 = vadd.f32 %v5924_v58, %v22257_v33  ;;  %17187 = vmatmul.mubr.msk.bf16.gmra.mrb[160].mxu0 %vm105_vm0, %v23248_v53  ;;  %17191 = vmatmul.mubr.msk.bf16.gmra.mrb[156].mxu1 %vm105_vm0, %v23204_v28 }
 0x510   :  { %v6033_v35 = vmax.f32 %v5977_v10, 0.0  ;;  %v5981_v52 = vadd.f32 %v5925_v42, %v22263_v37  ;;  %6868 = vmatprep.mubr.bf16.mxu0 %v23595_v19  ;;  %6937 = vmatprep.mubr.bf16.mxu1 %v23595_v19 }
 0x511   :  { %v23697_v0 = vmax.f32 %v6030_v44, %v6032_v22  ;;  %v6036_v8 = vmax.f32 %v5980_v57, 0.0  ;;  %v20159_v44 = vld [vmem:[%s24989_s0 + $0x110] sm:$0xff]  }
 0x512   :  { %v23699_v24 = vmax.f32 %v6031_v15, %v6033_v35  ;;  %v6037_v4 = vmax.f32 %v5981_v52, 0.0  ;;  %v5809_v63 = vpop.f32.mrb[148].mxu1 }
 0x513   :  { %25089 = vst [vmem:[#allocation34_spill] sm:$0xff] %v23697_v0  ;;  %v23701_v30 = vmax.f32 %v6034_v56, %v6036_v8  ;;  %v5810_v28 = vpop.f32.mrb[149].mxu1 }
 0x514   :  { %25090 = vst [vmem:[#allocation35_spill] sm:$0xff] %v23699_v24  ;;  %v23703_v17 = vmax.f32 %v6035_v59, %v6037_v4  ;;  %v5811_v34 = vpop.f32.mrb[150].mxu1 }
 0x515   :  { %25091 = vst [vmem:[#allocation36_spill] sm:$0xff] %v23701_v30  ;;  %v5812_v47 = vpop.f32.mrb[151].mxu1 }
 0x516   :  { %25092 = vst [vmem:[#allocation37_spill] sm:$0xff] %v23703_v17  ;;  %v20247_v17 = vld [vmem:[#allocation5 + $0x404] ss:$16 sps:$4 sm:$0xff]  }
 0x517   :  { %17188 = vmatmul.mubr.msk.bf16.gmra.mrb[164].mxu0 %vm105_vm0, %v23259_v60  ;;  %17192 = vmatmul.mubr.msk.bf16.gmra.mrb[160].mxu1 %vm105_vm0, %v23215_v7  ;;  %v20154_v7 = vld [vmem:[%s24989_s0 + $0xe8] sm:$0xff]  }
 0x518   :  { %6878 = vmatprep.mubr.bf16.mxu0 %v23595_v19  ;;  %6947 = vmatprep.mubr.bf16.mxu1 %v23595_v19 }
 0x51f   :  { %17189 = vmatmul.mubr.msk.bf16.gmra.mrb[180].mxu0 %vm105_vm0, %v23270_v39  ;;  %17193 = vmatmul.mubr.msk.bf16.gmra.mrb[164].mxu1 %vm105_vm0, %v23226_v45 }
 0x520   :  { %6957 = vmatprep.mubr.bf16.mxu1 %v23595_v19  ;;  %7163 = vmatprep.mubr.bf16.mxu0 %v23595_v19 }
 0x527   :  { %17194 = vmatmul.mubr.msk.bf16.gmra.mrb[168].mxu1 %vm105_vm0, %v23237_v50  ;;  %17222 = vmatmul.mubr.msk.bf16.vlgmr.msra.gmra.mrb[140].mxu0 %vm105_vm0, %v20153_v41  ;;  %v20155_v50 = vld [vmem:[%s24989_s0 + $0xf0] sm:$0xff]  }
 0x528   :  { %6967 = vmatprep.mubr.bf16.mxu1 %v23595_v19  ;;  %7173 = vmatprep.mubr.bf16.mxu0 %v23595_v19 }
 0x52f   :  { %17195 = vmatmul.mubr.msk.bf16.gmra.mrb[172].mxu1 %vm105_vm0, %v23248_v53  ;;  %17223 = vmatmul.mubr.msk.bf16.gmra.mrb[144].mxu0 %vm105_vm0, %v20154_v7  ;;  %v20156_v53 = vld [vmem:[%s24989_s0 + $0xf8] sm:$0xff]  }
 0x530   :  { %6977 = vmatprep.mubr.bf16.mxu1 %v23595_v19  ;;  %7183 = vmatprep.mubr.bf16.mxu0 %v23595_v19 }
 0x532   :  { %v6170_v45 = vpop.f32.mrb[168].mxu0 }
 0x533   :  { %v6171_v58 = vpop.f32.mrb[169].mxu0 }
 0x534   :  { %v6172_v26 = vpop.f32.mrb[170].mxu0 }
 0x535   :  { %v6173_v14 = vpop.f32.mrb[171].mxu0  ;;  %v20160_v26 = vld [vmem:[#allocation5 + $0x240] ss:$16 sps:$4 sm:$0xff]  }
 0x536   :  { %v20162_v14 = vld [vmem:[#allocation5 + $0x244] ss:$16 sps:$4 sm:$0xff]  }
 0x537   :  { %17196 = vmatmul.mubr.msk.bf16.gmra.mrb[176].mxu1 %vm105_vm0, %v23259_v60  ;;  %17224 = vmatmul.mubr.msk.bf16.gmra.mrb[148].mxu0 %vm105_vm0, %v20155_v50  ;;  %v20157_v60 = vld [vmem:[%s24989_s0 + $0x100] sm:$0xff]  }
 0x538   :  { %6987 = vmatprep.mubr.bf16.mxu1 %v23595_v19  ;;  %7193 = vmatprep.mubr.bf16.mxu0 %v23595_v19 }
 0x539   :  { %8299 = vmatprep.subr.bf16.mxu0 %v20162_v14  ;;  %v20195_v14 = vld [vmem:[#allocation5 + $0x2ec] ss:$16 sps:$4 sm:$0xff]  }
 0x53a   :  { %8300 = vmatpush1.bf16.msra.mxu0 %v20160_v26  ;;  %v20193_v26 = vld [vmem:[#allocation5 + $0x2e8] ss:$16 sps:$4 sm:$0xff]  }
 0x53f   :  { %17197 = vmatmul.mubr.msk.bf16.gmra.mrb[192].mxu1 %vm105_vm0, %v23270_v39  ;;  %17225 = vmatmul.mubr.msk.bf16.gmra.mrb[152].mxu0 %vm105_vm0, %v20156_v53  ;;  %v20158_v39 = vld [vmem:[%s24989_s0 + $0x108] sm:$0xff]  }
 0x540   :  { %7203 = vmatprep.mubr.bf16.mxu0 %v23595_v19  ;;  %7272 = vmatprep.mubr.bf16.mxu1 %v23595_v19 }
 0x547   :  { %17226 = vmatmul.mubr.msk.bf16.gmra.mrb[156].mxu0 %vm105_vm0, %v20157_v60  ;;  %17230 = vmatmul.mubr.msk.bf16.vlgmr.msra.gmra.mrb[152].mxu1 %vm105_vm0, %v20153_v41 }
 0x548   :  { %7213 = vmatprep.mubr.bf16.mxu0 %v23595_v19  ;;  %7282 = vmatprep.mubr.bf16.mxu1 %v23595_v19 }
 0x54f   :  { %17227 = vmatmul.mubr.msk.bf16.gmra.mrb[160].mxu0 %vm105_vm0, %v20158_v39  ;;  %17231 = vmatmul.mubr.msk.bf16.gmra.mrb[156].mxu1 %vm105_vm0, %v20154_v7 }
 0x550   :  { %7223 = vmatprep.mubr.bf16.mxu0 %v23595_v19  ;;  %7292 = vmatprep.mubr.bf16.mxu1 %v23595_v19 }
 0x552   :  { %v6279_v10 = vpop.f32.mrb[180].mxu1 }
 0x553   :  { %v6280_v42 = vpop.f32.mrb[181].mxu1  ;;  %v20168_v10 = vld [vmem:[#allocation5 + $0x264] ss:$16 sps:$4 sm:$0xff]  }
 0x554   :  { %v6281_v22 = vpop.f32.mrb[182].mxu1  ;;  %v20169_v42 = vld [vmem:[#allocation5 + $0x268] ss:$16 sps:$4 sm:$0xff]   ;;  %8301 = vmatprep.subr.bf16.mxu0 %v20168_v10 }
 0x555   :  { %v6282_v57 = vpop.f32.mrb[183].mxu1  ;;  %v20172_v22 = vld [vmem:[#allocation5 + $0x280] ss:$16 sps:$4 sm:$0xff]   ;;  %v20199_v10 = vld [vmem:[#allocation5 + $0x308] ss:$16 sps:$4 sm:$0xff]  }
 0x556   :  { %v20174_v57 = vld [vmem:[#allocation5 + $0x284] ss:$16 sps:$4 sm:$0xff]  }
 0x557   :  { %17228 = vmatmul.mubr.msk.bf16.gmra.mrb[164].mxu0 %vm105_vm0, %v20159_v44  ;;  %17232 = vmatmul.mubr.msk.bf16.gmra.mrb[160].mxu1 %vm105_vm0, %v20155_v50 }
 0x558   :  { %7302 = vmatprep.mubr.bf16.mxu1 %v23595_v19  ;;  %7233 = vmatprep.mubr.bf16.mxu0 %v23595_v19 }
 0x55f   :  { %17233 = vmatmul.mubr.msk.bf16.gmra.mrb[164].mxu1 %vm105_vm0, %v20156_v53  ;;  %v20163_v53 = vld [vmem:[#allocation5 + $0x248] ss:$16 sps:$4 sm:$0xff]  }
 0x560   :  { %7312 = vmatprep.mubr.bf16.mxu1 %v23595_v19 }
 0x567   :  { %17234 = vmatmul.mubr.msk.bf16.gmra.mrb[168].mxu1 %vm105_vm0, %v20157_v60  ;;  %v20165_v60 = vld [vmem:[#allocation5 + $0x24c] ss:$16 sps:$4 sm:$0xff]  }
 0x568   :  { %7322 = vmatprep.mubr.bf16.mxu1 %v23595_v19  ;;  %8517 = vmatprep.subr.bf16.mxu1 %v20165_v60  ;;  %v20201_v60 = vld [vmem:[#allocation5 + $0x30c] ss:$16 sps:$4 sm:$0xff]  }
 0x569   :  { %8518 = vmatpush1.bf16.msra.mxu1 %v20163_v53  ;;  %v20198_v53 = vld [vmem:[#allocation5 + $0x304] ss:$16 sps:$4 sm:$0xff]  }
 0x56f   :  { %17235 = vmatmul.mubr.msk.bf16.gmra.mrb[172].mxu1 %vm105_vm0, %v20158_v39  ;;  %v20166_v39 = vld [vmem:[#allocation5 + $0x260] ss:$16 sps:$4 sm:$0xff]  }
 0x570   :  { %7332 = vmatprep.mubr.bf16.mxu1 %v23595_v19  ;;  %8302 = vmatpush1.bf16.msra.mxu0 %v20166_v39  ;;  %v20196_v39 = vld [vmem:[#allocation5 + $0x300] ss:$16 sps:$4 sm:$0xff]  }
 0x571   :  { %8303 = vmatprep.subr.bf16.mxu0 %v20174_v57  ;;  %v20244_v57 = vld [vmem:[%s24989_s0 + $0x118] sm:$0xff]   ;;  %s21540_s0 = smov 32  }
 0x572   :  { %v6388_v15 = vpop.f32.mrb[172].mxu0  ;;  %17229 = vmatmul.mubr.msk.bf16.gmra.mrb[184].mxu0 %vm105_vm0, %v20244_v57 }
 0x573   :  { %v6389_v35 = vpop.f32.mrb[173].mxu0  ;;  %v20175_v15 = vld [vmem:[#allocation5 + $0x288] ss:$16 sps:$4 sm:$0xff]   ;;  %8331 = vmatprep.mubr.bf16.mxu0 %v23595_v19 }
 0x574   :  { %v6390_v52 = vpop.f32.mrb[174].mxu0  ;;  %v20177_v35 = vld [vmem:[#allocation5 + $0x28c] ss:$16 sps:$4 sm:$0xff]   ;;  %8304 = vmatpush1.bf16.msra.mxu0 %v20172_v22 }
 0x575   :  { %v6391_v56 = vpop.f32.mrb[175].mxu0  ;;  %v20178_v52 = vld [vmem:[#allocation5 + $0x2a0] ss:$16 sps:$4 sm:$0xff]   ;;  %v20207_v22 = vld [vmem:[#allocation5 + $0x32c] ss:$16 sps:$4 sm:$0xff]  }
 0x576   :  { %v20180_v56 = vld [vmem:[#allocation5 + $0x2a4] ss:$16 sps:$4 sm:$0xff]  }
 0x577   :  { %17236 = vmatmul.mubr.msk.bf16.gmra.mrb[176].mxu1 %vm105_vm0, %v20159_v44  ;;  %v20171_v44 = vld [vmem:[#allocation5 + $0x26c] ss:$16 sps:$4 sm:$0xff]   ;;  %8305 = vmatprep.subr.bf16.mxu0 %v20180_v56 }
 0x578   :  { %7342 = vmatprep.mubr.bf16.mxu1 %v23595_v19  ;;  %8519 = vmatprep.subr.bf16.mxu1 %v20171_v44 }
 0x579   :  { %8520 = vmatpush1.bf16.msra.mxu1 %v20169_v42  ;;  %8306 = vmatpush1.bf16.msra.mxu0 %v20178_v52  ;;  %v20204_v42 = vld [vmem:[#allocation5 + $0x324] ss:$16 sps:$4 sm:$0xff]   ;;  %v20202_v52 = vld [vmem:[#allocation5 + $0x320] ss:$16 sps:$4 sm:$0xff]  }
 0x57a   :  { %8521 = vmatprep.subr.bf16.mxu1 %v20177_v35 }
 0x57d   :  { %8522 = vmatpush1.bf16.msra.mxu1 %v20175_v15 }
 0x57f   :  { %17237 = vmatmul.mubr.msk.bf16.gmra.mrb[196].mxu1 %vm105_vm0, %v20244_v57 }
 0x580   :  { %8549 = vmatprep.mubr.bf16.mxu1 %v23595_v19 }
 0x592   :  { %v6497_v8 = vpop.f32.mrb[184].mxu1 }
 0x593   :  { %v6498_v59 = vpop.f32.mrb[185].mxu1  ;;  %v20181_v8 = vld [vmem:[#allocation5 + $0x2a8] ss:$16 sps:$4 sm:$0xff]  }
 0x594   :  { %v6499_v4 = vpop.f32.mrb[186].mxu1  ;;  %v20183_v59 = vld [vmem:[#allocation5 + $0x2ac] ss:$16 sps:$4 sm:$0xff]  }
 0x595   :  { %v6500_v63 = vpop.f32.mrb[187].mxu1  ;;  %8523 = vmatprep.subr.bf16.mxu1 %v20183_v59  ;;  %v20184_v4 = vld [vmem:[#allocation5 + $0x2c0] ss:$16 sps:$4 sm:$0xff]   ;;  %v20210_v59 = vld [vmem:[#allocation5 + $0x344] ss:$16 sps:$4 sm:$0xff]  }
 0x596   :  { %8524 = vmatpush1.bf16.msra.mxu1 %v20181_v8  ;;  %v20186_v63 = vld [vmem:[#allocation5 + $0x2c4] ss:$16 sps:$4 sm:$0xff]   ;;  %v20205_v8 = vld [vmem:[#allocation5 + $0x328] ss:$16 sps:$4 sm:$0xff]  }
 0x597   :  { %8307 = vmatprep.subr.bf16.mxu0 %v20186_v63  ;;  %v20208_v63 = vld [vmem:[#allocation5 + $0x340] ss:$16 sps:$4 sm:$0xff]  }
 0x598   :  { %8308 = vmatpush1.bf16.msra.mxu0 %v20184_v4  ;;  %v20213_v4 = vld [vmem:[#allocation5 + $0x34c] ss:$16 sps:$4 sm:$0xff]  }
 0x5b2   :  { %v6606_v28 = vpop.f32.mrb[176].mxu0 }
 0x5b3   :  { %v6607_v34 = vpop.f32.mrb[177].mxu0  ;;  %v20187_v28 = vld [vmem:[#allocation5 + $0x2c8] ss:$16 sps:$4 sm:$0xff]  }
 0x5b4   :  { %v6608_v47 = vpop.f32.mrb[178].mxu0 }
 0x5b5   :  { %v6609_v41 = vpop.f32.mrb[179].mxu0  ;;  %v20189_v47 = vld [vmem:[#allocation5 + $0x2cc] ss:$16 sps:$4 sm:$0xff]  }
 0x5b6   :  { %8525 = vmatprep.subr.bf16.mxu1 %v20189_v47 }
 0x5b7   :  { %8526 = vmatpush1.bf16.msra.mxu1 %v20187_v28  ;;  %v20211_v28 = vld [vmem:[#allocation5 + $0x348] ss:$16 sps:$4 sm:$0xff]  }
 0x5b8   :  { %8527 = vmatprep.subr.bf16.mxu1 %v20195_v14  ;;  %v20222_v14 = vld [vmem:[#allocation5 + $0x384] ss:$16 sps:$4 sm:$0xff]  }
 0x5bb   :  { %8528 = vmatpush1.bf16.msra.mxu1 %v20193_v26  ;;  %v20217_v26 = vld [vmem:[#allocation5 + $0x368] ss:$16 sps:$4 sm:$0xff]  }
 0x5bc   :  { %8529 = vmatprep.subr.bf16.mxu1 %v20201_v60  ;;  %v20220_v60 = vld [vmem:[#allocation5 + $0x380] ss:$16 sps:$4 sm:$0xff]  }
 0x5bf   :  { %8530 = vmatpush1.bf16.msra.mxu1 %v20199_v10  ;;  %v20228_v10 = vld [vmem:[#allocation5 + $0x3a4] ss:$16 sps:$4 sm:$0xff]  }
 0x5c0   :  { %8531 = vmatprep.subr.bf16.mxu1 %v20207_v22  ;;  %v20231_v22 = vld [vmem:[#allocation5 + $0x3ac] ss:$16 sps:$4 sm:$0xff]  }
 0x5c3   :  { %8532 = vmatpush1.bf16.msra.mxu1 %v20205_v8  ;;  %v20226_v8 = vld [vmem:[#allocation5 + $0x3a0] ss:$16 sps:$4 sm:$0xff]  }
 0x5c4   :  { %8533 = vmatprep.subr.bf16.mxu1 %v20213_v4  ;;  %v20229_v4 = vld [vmem:[#allocation5 + $0x3a8] ss:$16 sps:$4 sm:$0xff]  }
 0x5c7   :  { %8534 = vmatpush1.bf16.msra.mxu1 %v20211_v28  ;;  %v20237_v28 = vld [vmem:[#allocation5 + $0x3cc] ss:$16 sps:$4 sm:$0xff]  }
 0x5d2   :  { %v6715_v7 = vpop.f32.mrb[188].mxu1 }
 0x5d3   :  { %v6716_v45 = vpop.f32.mrb[189].mxu1 }
 0x5d4   :  { %v6717_v50 = vpop.f32.mrb[190].mxu1 }
 0x5d5   :  { %v6718_v58 = vpop.f32.mrb[191].mxu1  ;;  %v20190_v50 = vld [vmem:[#allocation5 + $0x2e0] ss:$16 sps:$4 sm:$0xff]  }
 0x5d6   :  { %v20192_v58 = vld [vmem:[#allocation5 + $0x2e4] ss:$16 sps:$4 sm:$0xff]  }
 0x5d7   :  { %8309 = vmatprep.subr.bf16.mxu0 %v20192_v58 }
 0x5d8   :  { %8310 = vmatpush1.bf16.msra.mxu0 %v20190_v50  ;;  %v20214_v50 = vld [vmem:[#allocation5 + $0x360] ss:$16 sps:$4 sm:$0xff]  }
 0x5d9   :  { %8311 = vmatprep.subr.bf16.mxu0 %v20198_v53  ;;  %v20225_v53 = vld [vmem:[#allocation5 + $0x38c] ss:$16 sps:$4 sm:$0xff]  }
 0x5dc   :  { %8312 = vmatpush1.bf16.msra.mxu0 %v20196_v39  ;;  %v20223_v39 = vld [vmem:[#allocation5 + $0x388] ss:$16 sps:$4 sm:$0xff]  }
 0x5dd   :  { %8313 = vmatprep.subr.bf16.mxu0 %v20204_v42 }
 0x5e0   :  { %8314 = vmatpush1.bf16.msra.mxu0 %v20202_v52 }
 0x5e1   :  { %8315 = vmatprep.subr.bf16.mxu0 %v20210_v59 }
 0x5e4   :  { %8316 = vmatpush1.bf16.msra.mxu0 %v20208_v63  ;;  %v20234_v63 = vld [vmem:[#allocation5 + $0x3c4] ss:$16 sps:$4 sm:$0xff]  }
 0x5f2   :  { %v6880_v34 = vpop.f32.mrb[180].mxu0 }
 0x5f3   :  { %v6881_v41 = vpop.f32.mrb[181].mxu0  ;;  %v20216_v34 = vld [vmem:[#allocation5 + $0x364] ss:$16 sps:$4 sm:$0xff]  }
 0x5f4   :  { %v6882_v7 = vpop.f32.mrb[182].mxu0  ;;  %v20219_v41 = vld [vmem:[#allocation5 + $0x36c] ss:$16 sps:$4 sm:$0xff]   ;;  %8317 = vmatprep.subr.bf16.mxu0 %v20216_v34  ;;  %v20232_v34 = vld [vmem:[#allocation5 + $0x3c0] ss:$16 sps:$4 sm:$0xff]  }
 0x5f5   :  { %v6883_v45 = vpop.f32.mrb[183].mxu0  ;;  %8535 = vmatprep.subr.bf16.mxu1 %v20219_v41  ;;  %8318 = vmatpush1.bf16.msra.mxu0 %v20214_v50  ;;  %v20235_v41 = vld [vmem:[#allocation5 + $0x3c8] ss:$16 sps:$4 sm:$0xff]   ;;  %v20240_v50 = vld [vmem:[#allocation5 + $0x3e4] ss:$16 sps:$4 sm:$0xff]  }
 0x5f6   :  { %8536 = vmatpush1.bf16.msra.mxu1 %v20217_v26  ;;  %8319 = vmatprep.subr.bf16.mxu0 %v20222_v14 }
 0x5f7   :  { %8537 = vmatprep.subr.bf16.mxu1 %v20225_v53  ;;  %v20243_v53 = vld [vmem:[#allocation5 + $0x3ec] ss:$16 sps:$4 sm:$0xff]  }
 0x5f9   :  { %8320 = vmatpush1.bf16.msra.mxu0 %v20220_v60 }
 0x5fa   :  { %v23778_v44 = vpop.f32.mrb[140].mxu0  ;;  %8538 = vmatpush1.bf16.msra.mxu1 %v20223_v39  ;;  %8321 = vmatprep.subr.bf16.mxu0 %v20228_v10 }
 0x5fb   :  { %v23783_v15 = vpop.f32.mrb[141].mxu0  ;;  %8539 = vmatprep.subr.bf16.mxu1 %v20231_v22  ;;  %v7405_v60 = vmul.f32 %v23778_v44, %v22224_v16 }
 0x5fc   :  { %v23785_v35 = vpop.f32.mrb[142].mxu0  ;;  %v7406_v22 = vmul.f32 %v23783_v15, %v22231_v23 }
 0x5fd   :  { %v23788_v56 = vpop.f32.mrb[143].mxu0  ;;  %8322 = vmatpush1.bf16.msra.mxu0 %v20226_v8  ;;  %v7409_v44 = vmul.f32 %v23785_v35, %v22224_v16  ;;  %v7461_v30 = vadd.f32 %v7405_v60, %v22241_v27 }
 0x5fe   :  { %8540 = vmatpush1.bf16.msra.mxu1 %v20229_v4  ;;  %8323 = vmatprep.subr.bf16.mxu0 %v20234_v63  ;;  %v20238_v4 = vld [vmem:[#allocation5 + $0x3e0] ss:$16 sps:$4 sm:$0xff]   ;;  %v7410_v15 = vmul.f32 %v23788_v56, %v22231_v23 }
 0x5ff   :  { %8541 = vmatprep.subr.bf16.mxu1 %v20237_v28  ;;  %v20241_v28 = vld [vmem:[#allocation5 + $0x3e8] ss:$16 sps:$4 sm:$0xff]   ;;  %v7465_v60 = vadd.f32 %v7409_v44, %v22241_v27 }
 0x601   :  { %8324 = vmatpush1.bf16.msra.mxu0 %v20232_v34  ;;  %v7521_v2 = vmax.f32 %v7465_v60, 0.0 }
 0x602   :  { %v23793_v47 = vpop.f32.mrb[144].mxu0  ;;  %8542 = vmatpush1.bf16.msra.mxu1 %v20235_v41  ;;  %8325 = vmatprep.subr.bf16.mxu0 %v20240_v50 }
 0x603   :  { %v7177_v7 = vpop.f32.mrb[145].mxu0  ;;  %8543 = vmatprep.subr.bf16.mxu1 %v20243_v53  ;;  %v7413_v34 = vmul.f32 %v23793_v47, %v22224_v16  ;;  %v20248_v53 = vld [vmem:[#allocation5 + $0x408] ss:$16 sps:$4 sm:$0xff]   ;;  %v7517_v47 = vmax.f32 %v7461_v30, 0.0 }
 0x604   :  { %v7179_v45 = vpop.f32.mrb[146].mxu0  ;;  %v7414_v41 = vmul.f32 %v7177_v7, %v22231_v23 }
 0x605   :  { %v7181_v58 = vpop.f32.mrb[147].mxu0  ;;  %v7417_v50 = vmul.f32 %v7179_v45, %v22224_v16  ;;  %8326 = vmatpush1.bf16.msra.mxu0 %v20238_v4  ;;  %v23831_v7 = vadd.f32 %v7413_v34, %v22241_v27 }
 0x606   :  { %v7418_v35 = vmul.f32 %v7181_v58, %v22231_v23  ;;  %8544 = vmatpush1.bf16.msra.mxu1 %v20241_v28  ;;  %8327 = vmatprep.subr.bf16.mxu0 %v20247_v17  ;;  %v23837_v17 = vadd.f32 %v7414_v41, %v22248_v31 }
 0x607   :  { %v23840_v44 = vadd.f32 %v7417_v50, %v22241_v27 }
 0x608   :  { %v23846_v34 = vadd.f32 %v7418_v35, %v22248_v31 }
 0x60a   :  { %v23795_v42 = vpop.f32.mrb[148].mxu0 }
 0x60b   :  { %v23797_v57 = vpop.f32.mrb[149].mxu0 }
 0x60c   :  { %v23799_v52 = vpop.f32.mrb[150].mxu0 }
 0x60d   :  { %v23801_v59 = vpop.f32.mrb[151].mxu0 }
 0x612   :  { %v6989_v26 = vpop.f32.mrb[192].mxu1  ;;  %v23803_v14 = vpop.f32.mrb[152].mxu0 }
 0x613   :  { %v6990_v39 = vpop.f32.mrb[193].mxu1  ;;  %v23807_v10 = vpop.f32.mrb[153].mxu0 }
 0x614   :  { %v6991_v8 = vpop.f32.mrb[194].mxu1  ;;  %v23811_v21 = vpop.f32.mrb[154].mxu0  ;;  %v20250_v39 = vld [vmem:[#allocation5 + $0x40c] ss:$16 sps:$4 sm:$0xff]  }
 0x615   :  { %v6992_v63 = vpop.f32.mrb[195].mxu1  ;;  %v23813_v26 = vpop.f32.mrb[155].mxu0  ;;  %v7462_v8 = vadd.f32 %v7406_v22, %v22248_v31  ;;  %8545 = vmatprep.subr.bf16.mxu1 %v20250_v39  ;;  %v7466_v22 = vadd.f32 %v7410_v15, %v22248_v31 }
 0x616   :  { %v20245_v63 = vld [vmem:[#allocation5 + $0x400] ss:$16 sps:$4 sm:$0xff]   ;;  %8546 = vmatpush1.bf16.msra.mxu1 %v20248_v53  ;;  %v7526_v53 = vmax.f32 %v23837_v17, 0.0 }
 0x617   :  { %v7518_v28 = vmax.f32 %v7462_v8, 0.0  ;;  %8328 = vmatpush1.bf16.msra.mxu0 %v20245_v63  ;;  %v7422_v63 = vmul.f32 %v23797_v57, %v22231_v23  ;;  %v7522_v18 = vmax.f32 %v7466_v22, 0.0 }
 0x618   :  { %8329 = vmatprep.subr.bf16.mxu0 %v20253_v62  ;;  %v7425_v62 = vmul.f32 %v23799_v52, %v22224_v16 }
 0x61a   :  { %v23827_v24 = vpop.f32.mrb[156].mxu0  ;;  %v7274_v56 = vpop.f32.mrb[152].mxu1 }
 0x61b   :  { %v7407_v45 = vmul.f32 %v7274_v56, %v22244_v29  ;;  %v23834_v4 = vpop.f32.mrb[157].mxu0  ;;  %v7276_v58 = vpop.f32.mrb[153].mxu1  ;;  %v7421_v56 = vmul.f32 %v23795_v42, %v22224_v16  ;;  %v20254_v42 = vld [vmem:[#allocation5 + $0x428] ss:$16 sps:$4 sm:$0xff]   ;;  %8330 = vmatpush1.bf16.msra.mxu0 %v20251_v9 }
 0x61c   :  { %v7408_v39 = vmul.f32 %v7276_v58, %v22253_v32  ;;  %v23843_v30 = vpop.f32.mrb[158].mxu0  ;;  %v7278_v15 = vpop.f32.mrb[154].mxu1  ;;  %v20256_v58 = vld [vmem:[#allocation5 + $0x42c] ss:$16 sps:$4 sm:$0xff]  }
 0x61d   :  { %v7463_v8 = vadd.f32 %v7407_v45, %v22257_v33  ;;  %v7411_v41 = vmul.f32 %v7278_v15, %v22244_v29  ;;  %v23852_v0 = vpop.f32.mrb[159].mxu0  ;;  %v7280_v50 = vpop.f32.mrb[155].mxu1  ;;  %v7525_v45 = vmax.f32 %v23831_v7, 0.0  ;;  %8547 = vmatprep.subr.bf16.mxu1 %v20256_v58 }
 0x61e   :  { %v7464_v35 = vadd.f32 %v7408_v39, %v22263_v37  ;;  %v7412_v13 = vmul.f32 %v7280_v50, %v22253_v32  ;;  %v23865_v50 = vadd.f32 %v7421_v56, %v22241_v27  ;;  %8548 = vmatpush1.bf16.msra.mxu1 %v20254_v42  ;;  %8332 = vmatmul.mubr.bf16.vlgmr.msra.gmra.mrb[188].mxu0 %v23595_v19 }
 0x61f   :  { %v7519_v15 = vmax.f32 %v7463_v8, 0.0  ;;  %v7467_v40 = vadd.f32 %v7411_v41, %v22257_v33  ;;  %v23868_v8 = vadd.f32 %v7422_v63, %v22248_v31 }
 0x620   :  { %v7520_v1 = vmax.f32 %v7464_v35, 0.0  ;;  %v7468_v57 = vadd.f32 %v7412_v13, %v22263_v37  ;;  %v7426_v13 = vmul.f32 %v23801_v59, %v22231_v23 }
 0x621   :  { %v7573_v22 = vmax.f32 %v7517_v47, %v7519_v15  ;;  %v7523_v7 = vmax.f32 %v7467_v40, 0.0  ;;  %8550 = vmatmul.mubr.bf16.vlgmr.msra.gmra.mrb[200].mxu1 %v23595_v19  ;;  %v20262_v19 = vld [vmem:[#allocation5 + $0x44c] ss:$16 sps:$4 sm:$0xff]  }
 0x622   :  { %v23872_v17 = vmax.f32 %v7518_v28, %v7520_v1  ;;  %v7524_v41 = vmax.f32 %v7468_v57, 0.0  ;;  %v23874_v58 = vpop.f32.mrb[160].mxu0  ;;  %v7284_v9 = vpop.f32.mrb[156].mxu1  ;;  %v7429_v1 = vmul.f32 %v23803_v14, %v22224_v16  ;;  %v20259_v14 = vld [vmem:[#allocation5 + $0x444] ss:$16 sps:$4 sm:$0xff]   ;;  %8626 = vmatprep.subr.bf16.mxu1 %v20262_v19 }
 0x623   :  { %v7575_v56 = vmax.f32 %v7521_v2, %v7523_v7  ;;  %v7415_v47 = vmul.f32 %v7284_v9, %v22244_v29  ;;  %v23879_v40 = vpop.f32.mrb[161].mxu0  ;;  %v7286_v35 = vpop.f32.mrb[157].mxu1  ;;  %v7601_v63 = vmax.f32 %v23481_v5, %v7573_v22  ;;  %v20257_v7 = vld [vmem:[#allocation5 + $0x440] ss:$16 sps:$4 sm:$0xff]   ;;  %8408 = vmatprep.subr.bf16.mxu0 %v20259_v14 }
 0x624   :  { %v7576_v52 = vmax.f32 %v7522_v18, %v7524_v41  ;;  %v7416_v28 = vmul.f32 %v7286_v35, %v22253_v32  ;;  %v23886_v42 = vpop.f32.mrb[162].mxu0  ;;  %v7288_v15 = vpop.f32.mrb[158].mxu1  ;;  %v7602_v2 = vmax.f32 %v23485_v49, %v23872_v17  ;;  %v7533_v18 = vmax.f32 %v23865_v50, 0.0  ;;  %v20260_v17 = vld [vmem:[#allocation5 + $0x448] ss:$16 sps:$4 sm:$0xff]   ;;  %8409 = vmatpush1.bf16.msra.mxu0 %v20257_v7 }
 0x625   :  { %v7471_v59 = vadd.f32 %v7415_v47, %v22257_v33  ;;  %v7419_v5 = vmul.f32 %v7288_v15, %v22244_v29  ;;  %v23893_v57 = vpop.f32.mrb[163].mxu0  ;;  %v7290_v22 = vpop.f32.mrb[159].mxu1  ;;  %v7430_v41 = vmul.f32 %v23807_v10, %v22231_v23  ;;  %v7534_v47 = vmax.f32 %v23868_v8, 0.0  ;;  %8627 = vmatpush1.bf16.msra.mxu1 %v20260_v17 }
 0x626   :  { %v7472_v9 = vadd.f32 %v7416_v28, %v22263_v37  ;;  %v7420_v49 = vmul.f32 %v7290_v22, %v22253_v32  ;;  %v23902_v35 = vadd.f32 %v7425_v62, %v22241_v27  ;;  %v23906_v50 = vadd.f32 %v7426_v13, %v22248_v31 }
 0x627   :  { %v7527_v15 = vmax.f32 %v7471_v59, 0.0  ;;  %v7475_v39 = vadd.f32 %v7419_v5, %v22257_v33  ;;  %v23909_v10 = vadd.f32 %v7429_v1, %v22241_v27  ;;  %v7433_v8 = vmul.f32 %v23811_v21, %v22224_v16 }
 0x628   :  { %v7528_v28 = vmax.f32 %v7472_v9, 0.0  ;;  %v7476_v22 = vadd.f32 %v7420_v49, %v22263_v37  ;;  %v7603_v59 = vmax.f32 %v23490_v25, %v7575_v56  ;;  %v23916_v5 = vadd.f32 %v7430_v41, %v22248_v31 }
 0x629   :  { %v7577_v62 = vmax.f32 %v7525_v45, %v7527_v15  ;;  %v7531_v60 = vmax.f32 %v7475_v39, 0.0  ;;  %v7604_v49 = vmax.f32 %v23496_v11, %v7576_v52  ;;  %v7434_v7 = vmul.f32 %v23813_v26, %v22231_v23 }
 0x62a   :  { %v7578_v13 = vmax.f32 %v7526_v53, %v7528_v28  ;;  %v7532_v14 = vmax.f32 %v7476_v22, 0.0  ;;  %v23918_v1 = vpop.f32.mrb[164].mxu0  ;;  %v7294_v9 = vpop.f32.mrb[160].mxu1  ;;  %v25093_v21 = vmax.f32 %v23840_v44, 0.0  ;;  %v7629_v39 = vpack.c.bf16 %v7603_v59, %v7601_v63 }
 0x62b   :  { %v7423_v25 = vmul.f32 %v7294_v9, %v22244_v29  ;;  %v23926_v56 = vpop.f32.mrb[165].mxu0  ;;  %v7296_v41 = vpop.f32.mrb[161].mxu1  ;;  %v7437_v53 = vmul.f32 %v23827_v24, %v22224_v16  ;;  %v25094_v17 = vmax.f32 %v23846_v34, 0.0  ;;  %v7630_v15 = vpack.c.bf16 %v7604_v49, %v7602_v2 }
 0x62c   :  { %v7579_v45 = vmax.f32 %v25093_v21, %v7531_v60  ;;  %v7424_v11 = vmul.f32 %v7296_v41, %v22253_v32  ;;  %v23933_v52 = vpop.f32.mrb[166].mxu0  ;;  %v7298_v26 = vpop.f32.mrb[162].mxu1  ;;  %v7537_v44 = vmax.f32 %v23902_v35, 0.0  ;;  %v7538_v60 = vmax.f32 %v23906_v50, 0.0  ;;  %7657 = vrot.lane.b32.xlu0 %v7629_v39, %s21540_s0 }
 0x62d   :  { %v7580_v19 = vmax.f32 %v25094_v17, %v7532_v14  ;;  %v7479_v63 = vadd.f32 %v7423_v25, %v22257_v33  ;;  %v7427_v24 = vmul.f32 %v7298_v26, %v22244_v29  ;;  %v23940_v28 = vpop.f32.mrb[167].mxu0  ;;  %v7300_v34 = vpop.f32.mrb[163].mxu1  ;;  %v7541_v22 = vmax.f32 %v23909_v10, 0.0 }
 0x62e   :  { %v7438_v59 = vmul.f32 %v23834_v4, %v22231_v23  ;;  %v7480_v2 = vadd.f32 %v7424_v11, %v22263_v37  ;;  %v7428_v35 = vmul.f32 %v7300_v34, %v22253_v32  ;;  %v7542_v50 = vmax.f32 %v23916_v5, 0.0 }
 0x62f   :  { %v7489_v14 = vadd.f32 %v7433_v8, %v22241_v27  ;;  %v7535_v9 = vmax.f32 %v7479_v63, 0.0  ;;  %v7483_v49 = vadd.f32 %v7427_v24, %v22257_v33  ;;  %v7490_v21 = vadd.f32 %v7434_v7, %v22248_v31 }
 0x630   :  { %v23952_v39 = vadd.f32 %v7437_v53, %v22241_v27  ;;  %v7536_v10 = vmax.f32 %v7480_v2, 0.0  ;;  %v7484_v25 = vadd.f32 %v7428_v35, %v22263_v37  ;;  %v7441_v4 = vmul.f32 %v23843_v30, %v22224_v16  ;;  %7659 = vrot.lane.b32.xlu0 %v7630_v15, %s21540_s0 }
 0x631   :  { %v7581_v41 = vmax.f32 %v7533_v18, %v7535_v9  ;;  %v7539_v17 = vmax.f32 %v7483_v49, 0.0  ;;  %v7605_v8 = vmax.f32 %v23523_v6, %v7577_v62  ;;  %v23960_v5 = vadd.f32 %v7438_v59, %v22248_v31 }
 0x632   :  { %v7582_v11 = vmax.f32 %v7534_v47, %v7536_v10  ;;  %v7540_v7 = vmax.f32 %v7484_v25, 0.0  ;;  %v7607_v53 = vmax.f32 %v23532_v51, %v7579_v45  ;;  %v7304_v26 = vpop.f32.mrb[164].mxu1  ;;  %v7606_v30 = vmax.f32 %v23527_v43, %v7578_v13 }
 0x633   :  { %v7583_v63 = vmax.f32 %v7537_v44, %v7539_v17  ;;  %v7431_v24 = vmul.f32 %v7304_v26, %v22244_v29  ;;  %v7306_v34 = vpop.f32.mrb[165].mxu1  ;;  %v7608_v18 = vmax.f32 %v23538_v55, %v7580_v19  ;;  %v7609_v59 = vmax.f32 %v23565_v12, %v7581_v41 }
 0x634   :  { %v7584_v2 = vmax.f32 %v7538_v60, %v7540_v7  ;;  %v7631_v15 = vpack.c.bf16 %v7607_v53, %v7605_v8  ;;  %v7432_v6 = vmul.f32 %v7306_v34, %v22253_v32  ;;  %v7308_v62 = vpop.f32.mrb[166].mxu1  ;;  %v7610_v13 = vmax.f32 %v23569_v36, %v7582_v11 }
 0x635   :  { %v7487_v47 = vadd.f32 %v7431_v24, %v22257_v33  ;;  %v7435_v51 = vmul.f32 %v7308_v62, %v22244_v29  ;;  %v7310_v45 = vpop.f32.mrb[167].mxu1  ;;  %v7632_v44 = vpack.c.bf16 %v7608_v18, %v7606_v30  ;;  %v7611_v35 = vmax.f32 %v23572_v48, %v7583_v63 }
 0x636   :  { %7661 = vrot.lane.b32.xlu1 %v7631_v15, %s21540_s0  ;;  %v7488_v43 = vadd.f32 %v7432_v6, %v22263_v37  ;;  %v7436_v55 = vmul.f32 %v7310_v45, %v22253_v32  ;;  %v7612_v19 = vmax.f32 %v23576_v54, %v7584_v2  ;;  %v7442_v12 = vmul.f32 %v23852_v0, %v22231_v23 }
 0x637   :  { %v7543_v60 = vmax.f32 %v7487_v47, 0.0  ;;  %v7491_v9 = vadd.f32 %v7435_v51, %v22257_v33  ;;  %v7633_v49 = vpack.c.bf16 %v7611_v35, %v7609_v59  ;;  %v7545_v10 = vmax.f32 %v7489_v14, 0.0 }
 0x638   :  { %v7544_v25 = vmax.f32 %v7488_v43, 0.0  ;;  %v7492_v48 = vadd.f32 %v7436_v55, %v22263_v37  ;;  %v7634_v41 = vpack.c.bf16 %v7612_v19, %v7610_v13  ;;  %v7546_v17 = vmax.f32 %v7490_v21, 0.0 }
 0x639   :  { %v7549_v8 = vmax.f32 %v23952_v39, 0.0  ;;  %v7585_v7 = vmax.f32 %v7541_v22, %v7543_v60  ;;  %v7547_v53 = vmax.f32 %v7491_v9, 0.0  ;;  %7665 = vrot.lane.b32.xlu0 %v7633_v49, %s21540_s0  ;;  %v7550_v36 = vmax.f32 %v23960_v5, 0.0 }
 0x63a   :  { %v7497_v54 = vadd.f32 %v7441_v4, %v22241_v27  ;;  %v7586_v0 = vmax.f32 %v7542_v50, %v7544_v25  ;;  %v7548_v11 = vmax.f32 %v7492_v48, 0.0  ;;  %7663 = vrot.lane.b32.xlu1 %v7632_v44, %s21540_s0  ;;  %v7314_v14 = vpop.f32.mrb[168].mxu1  ;;  %v7498_v26 = vadd.f32 %v7442_v12, %v22248_v31  ;;  %v20265_v12 = vld [vmem:[#allocation5 + $0x464] ss:$16 sps:$4 sm:$0xff]   ;;  %v20268_v25 = vld [vmem:[#allocation5 + $0x46c] ss:$16 sps:$4 sm:$0xff]  }
 0x63b   :  { %v7587_v63 = vmax.f32 %v7545_v10, %v7547_v53  ;;  %v7439_v21 = vmul.f32 %v7314_v14, %v22244_v29  ;;  %v7316_v24 = vpop.f32.mrb[169].mxu1  ;;  %v7613_v22 = vmax.f32 %v23601_v61, %v7585_v7  ;;  %v7445_v39 = vmul.f32 %v23874_v58, %v22224_v16  ;;  %v20266_v10 = vld [vmem:[#allocation5 + $0x468] ss:$16 sps:$4 sm:$0xff]   ;;  %8410 = vmatprep.subr.bf16.mxu0 %v20265_v12 }
 0x63c   :  { %v7588_v34 = vmax.f32 %v7546_v17, %v7548_v11  ;;  %v7440_v5 = vmul.f32 %v7316_v24, %v22253_v32  ;;  %v7318_v4 = vpop.f32.mrb[170].mxu1  ;;  %v7614_v50 = vmax.f32 %v23605_v46, %v7586_v0  ;;  %v7446_v30 = vmul.f32 %v23879_v40, %v22231_v23  ;;  %v25095_v0 = vld [vmem:[#allocation27_spill] sm:$0xff]  ;;  %8628 = vmatprep.subr.bf16.mxu1 %v20268_v25  ;;  %v25096_v24 = vld [vmem:[#allocation28_spill] sm:$0xff] }
 0x63d   :  { %v7495_v18 = vadd.f32 %v7439_v21, %v22257_v33  ;;  %v7443_v2 = vmul.f32 %v7318_v4, %v22244_v29  ;;  %v7320_v15 = vpop.f32.mrb[171].mxu1  ;;  %v7615_v6 = vmax.f32 %v23608_v38, %v7587_v63  ;;  %v7553_v61 = vmax.f32 %v7497_v54, 0.0  ;;  %8629 = vmatpush1.bf16.msra.mxu1 %v20266_v10 }
 0x63e   :  { %7667 = vrot.lane.b32.xlu1 %v7634_v41, %s21540_s0  ;;  %v7496_v58 = vadd.f32 %v7440_v5, %v22263_v37  ;;  %v7444_v62 = vmul.f32 %v7320_v15, %v22253_v32  ;;  %v7616_v59 = vmax.f32 %v23612_v3, %v7588_v34  ;;  %v7449_v46 = vmul.f32 %v23886_v42, %v22224_v16  ;;  %v20263_v3 = vld [vmem:[#allocation5 + $0x460] ss:$16 sps:$4 sm:$0xff]  }
 0x63f   :  { %v7551_v40 = vmax.f32 %v7495_v18, 0.0  ;;  %v7499_v47 = vadd.f32 %v7443_v2, %v22257_v33  ;;  %v7635_v51 = vpack.c.bf16 %v7615_v6, %v7613_v22  ;;  %v7501_v45 = vadd.f32 %v7445_v39, %v22241_v27  ;;  %8411 = vmatpush1.bf16.msra.mxu0 %v20263_v3  ;;  %v25097_v5 = vld [vmem:[#allocation29_spill] sm:$0xff] }
 0x640   :  { %v7552_v44 = vmax.f32 %v7496_v58, 0.0  ;;  %v7500_v38 = vadd.f32 %v7444_v62, %v22263_v37  ;;  %v7636_v35 = vpack.c.bf16 %v7616_v59, %v7614_v50  ;;  %v7554_v43 = vmax.f32 %v7498_v26, 0.0 }
 0x641   :  { %v7502_v55 = vadd.f32 %v7446_v30, %v22248_v31  ;;  %v7589_v13 = vmax.f32 %v7549_v8, %v7551_v40  ;;  %v7555_v19 = vmax.f32 %v7499_v47, 0.0  ;;  %7669 = vrot.lane.b32.xlu0 %v7635_v51, %s21540_s0  ;;  %v7450_v42 = vmul.f32 %v23893_v57, %v22231_v23 }
 0x642   :  { %v7590_v60 = vmax.f32 %v7550_v36, %v7552_v44  ;;  %v7556_v9 = vmax.f32 %v7500_v38, 0.0  ;;  %v7324_v49 = vpop.f32.mrb[172].mxu1  ;;  %7671 = vrot.lane.b32.xlu1 %v7636_v35, %s21540_s0  ;;  %v7505_v48 = vadd.f32 %v7449_v46, %v22241_v27  ;;  %v7557_v53 = vmax.f32 %v7501_v45, 0.0 }
 0x643   :  { %v7591_v41 = vmax.f32 %v7553_v61, %v7555_v19  ;;  %v7447_v17 = vmul.f32 %v7324_v49, %v22244_v29  ;;  %v7326_v8 = vpop.f32.mrb[173].mxu1  ;;  %v7617_v7 = vmax.f32 %v23635_v20, %v7589_v13  ;;  %v7558_v14 = vmax.f32 %v7502_v55, 0.0  ;;  %v25100_v49 = vld [vmem:[#allocation32_spill] sm:$0xff] }
 0x644   :  { %v7592_v54 = vmax.f32 %v7554_v43, %v7556_v9  ;;  %v7448_v57 = vmul.f32 %v7326_v8, %v22253_v32  ;;  %v7328_v36 = vpop.f32.mrb[174].mxu1  ;;  %v7618_v11 = vmax.f32 %v25095_v0, %v7590_v60  ;;  %v7506_v20 = vadd.f32 %v7450_v42, %v22248_v31 }
 0x645   :  { %v7503_v26 = vadd.f32 %v7447_v17, %v22257_v33  ;;  %v7451_v63 = vmul.f32 %v7328_v36, %v22244_v29  ;;  %v7330_v21 = vpop.f32.mrb[175].mxu1  ;;  %v7619_v22 = vmax.f32 %v25096_v24, %v7591_v41  ;;  %v7453_v50 = vmul.f32 %v23918_v1, %v22224_v16  ;;  %v25101_v17 = vld [vmem:[#allocation33_spill] sm:$0xff]  ;;  %v25102_v24 = vld [vmem:[#allocation34_spill] sm:$0xff] }
 0x646   :  { %v7504_v39 = vadd.f32 %v7448_v57, %v22263_v37  ;;  %v7452_v34 = vmul.f32 %v7330_v21, %v22253_v32  ;;  %v7620_v4 = vmax.f32 %v25097_v5, %v7592_v54  ;;  %v7454_v15 = vmul.f32 %v23926_v56, %v22231_v23 }
 0x647   :  { %v7559_v30 = vmax.f32 %v7503_v26, 0.0  ;;  %v7507_v18 = vadd.f32 %v7451_v63, %v22257_v33  ;;  %v7637_v2 = vpack.c.bf16 %v7619_v22, %v7617_v7  ;;  %v7561_v62 = vmax.f32 %v7505_v48, 0.0 }
 0x648   :  { %v7560_v6 = vmax.f32 %v7504_v39, 0.0  ;;  %v7508_v61 = vadd.f32 %v7452_v34, %v22263_v37  ;;  %v7638_v58 = vpack.c.bf16 %v7620_v4, %v7618_v11  ;;  %v7457_v59 = vmul.f32 %v23933_v52, %v22224_v16  ;;  %v25098_v16 = vld [vmem:[#allocation30_spill] sm:$0xff]  ;;  %v25104_v34 = vld [vmem:[#allocation36_spill] sm:$0xff] }
 0x649   :  { %v7593_v46 = vmax.f32 %v7557_v53, %v7559_v30  ;;  %v7563_v40 = vmax.f32 %v7507_v18, 0.0  ;;  %7673 = vrot.lane.b32.xlu0 %v7637_v2, %s21540_s0  ;;  %v7562_v1 = vmax.f32 %v7506_v20, 0.0  ;;  %v7458_v47 = vmul.f32 %v23940_v28, %v22231_v23  ;;  %v25099_v23 = vld [vmem:[#allocation31_spill] sm:$0xff]  ;;  %v25106_v18 = vld [vmem:[#allocation41_spill] sm:$0xff]  ;;  %v25107_v2 = vld [vmem:[#allocation42_spill] sm:$0xff] }
 0x64a   :  { %v7594_v51 = vmax.f32 %v7558_v14, %v7560_v6  ;;  %v7564_v45 = vmax.f32 %v7508_v61, 0.0  ;;  %v7334_v44 = vpop.f32.mrb[176].mxu1  ;;  %7675 = vrot.lane.b32.xlu1 %v7638_v58, %s21540_s0  ;;  %v7509_v56 = vadd.f32 %v7453_v50, %v22241_v27  ;;  %v7510_v55 = vadd.f32 %v7454_v15, %v22248_v31  ;;  %v25103_v20 = vld [vmem:[#allocation35_spill] sm:$0xff]  ;;  %v20274_v61 = vld [vmem:[#allocation5 + $0xc] ss:$16 sps:$4 sm:$0xff]  }
 0x64b   :  { %v7595_v38 = vmax.f32 %v7561_v62, %v7563_v40  ;;  %v7455_v35 = vmul.f32 %v7334_v44, %v22244_v29  ;;  %v7336_v43 = vpop.f32.mrb[177].mxu1  ;;  %v7621_v52 = vmax.f32 %v25098_v16, %v7593_v46  ;;  %v7513_v12 = vadd.f32 %v7457_v59, %v22241_v27  ;;  %v25108_v15 = vld [vmem:[#allocation43_spill] sm:$0xff]  ;;  %v25109_v58 = vld [vmem:[#allocation44_spill] sm:$0xff]  ;;  %9337 = vmatprep.subr.bf16.mxu1 %v20274_v61  ;;  %v25110_v62 = vld [vmem:[#allocation45_spill] sm:$0xff] }
 0x64c   :  { %v7596_v13 = vmax.f32 %v7562_v1, %v7564_v45  ;;  %v7456_v19 = vmul.f32 %v7336_v43, %v22253_v32  ;;  %v7338_v3 = vpop.f32.mrb[178].mxu1  ;;  %v7622_v28 = vmax.f32 %v25099_v23, %v7594_v51  ;;  %v7514_v25 = vadd.f32 %v7458_v47, %v22248_v31  ;;  %v20271_v6 = vld [vmem:[#allocation5 + $0x4] ss:$16 sps:$4 sm:$0xff]   ;;  %v25111_v59 = vld [vmem:[#allocation46_spill] sm:$0xff]  ;;  %v25114_v1 = vld [vmem:[#allocation40_spill] sm:$0xff] }
 0x64d   :  { %v7511_v42 = vadd.f32 %v7455_v35, %v22257_v33  ;;  %v7459_v60 = vmul.f32 %v7338_v3, %v22244_v29  ;;  %v7340_v9 = vpop.f32.mrb[179].mxu1  ;;  %v7623_v10 = vmax.f32 %v25100_v49, %v7595_v38  ;;  %v7565_v7 = vmax.f32 %v7509_v56, 0.0  ;;  %9119 = vmatprep.subr.bf16.mxu0 %v20271_v6  ;;  %v25112_v46 = vld [vmem:[#allocation21_spill] sm:$0xff]  ;;  %v25113_v40 = vld [vmem:[#allocation39_spill] sm:$0xff]  ;;  %v25115_v47 = vld [vmem:[#allocation22_spill] sm:$0xff] }
 0x64e   :  { %v7512_v48 = vadd.f32 %v7456_v19, %v22263_v37  ;;  %v7460_v41 = vmul.f32 %v7340_v9, %v22253_v32  ;;  %v7624_v8 = vmax.f32 %v25101_v17, %v7596_v13  ;;  %v7566_v57 = vmax.f32 %v7510_v55, 0.0  ;;  %v25116_v51 = vld [vmem:[#allocation23_spill] sm:$0xff]  ;;  %v25117_v45 = vld [vmem:[#allocation24_spill] sm:$0xff]  ;;  %v25118_v44 = vld [vmem:[#allocation25_spill] sm:$0xff] }
 0x64f   :  { %v7567_v53 = vmax.f32 %v7511_v42, 0.0  ;;  %v7515_v54 = vadd.f32 %v7459_v60, %v22257_v33  ;;  %v7639_v27 = vpack.c.bf16 %v7623_v10, %v7621_v52  ;;  %v7569_v11 = vmax.f32 %v7513_v12, 0.0  ;;  %v25119_v56 = vld [vmem:[#allocation26_spill] sm:$0xff] }
 0x650   :  { %v7568_v36 = vmax.f32 %v7512_v48, 0.0  ;;  %v7516_v29 = vadd.f32 %v7460_v41, %v22263_v37  ;;  %v7640_v0 = vpack.c.bf16 %v7624_v8, %v7622_v28  ;;  %v7570_v31 = vmax.f32 %v7514_v25, 0.0  ;;  %v25105_v37 = vld [vmem:[#allocation37_spill] sm:$0xff] }
 0x651   :  { %v7597_v14 = vmax.f32 %v7565_v7, %v7567_v53  ;;  %v7571_v26 = vmax.f32 %v7515_v54, 0.0  ;;  %7677 = vrot.lane.b32.xlu0 %v7639_v27, %s21540_s0  ;;  %v20272_v6 = vld [vmem:[#allocation5 + $0x8] ss:$16 sps:$4 sm:$0xff]  }
 0x652   :  { %v7598_v63 = vmax.f32 %v7566_v57, %v7568_v36  ;;  %v7572_v32 = vmax.f32 %v7516_v29, 0.0  ;;  %7679 = vrot.lane.b32.xlu1 %v7640_v0, %s21540_s0  ;;  %v7344_v29 = vpop.f32.mrb[196].mxu1 }
 0x653   :  { %v7599_v21 = vmax.f32 %v7569_v11, %v7571_v26  ;;  %v7625_v22 = vmax.f32 %v25102_v24, %v7597_v14  ;;  %v7345_v11 = vpop.f32.mrb[197].mxu1  ;;  %v7235_v26 = vpop.f32.mrb[184].mxu0  ;;  %v20319_v29 = vld [vmem:[#allocation5 + $0x104] ss:$16 sps:$4 sm:$0xff]  }
 0x654   :  { %v7600_v33 = vmax.f32 %v7570_v31, %v7572_v32  ;;  %v7626_v39 = vmax.f32 %v25103_v20, %v7598_v63  ;;  %v7346_v31 = vpop.f32.mrb[198].mxu1  ;;  %v7236_v63 = vpop.f32.mrb[185].mxu0  ;;  %v7832_v11 = vld [vmem:[#allocation2 + $0x160] sm:$0xff] }
 0x655   :  { %v7627_v5 = vmax.f32 %v25104_v34, %v7599_v21  ;;  %v7347_v32 = vpop.f32.mrb[199].mxu1  ;;  %v7237_v24 = vpop.f32.mrb[186].mxu0  ;;  %v20317_v26 = vld [vmem:[#allocation5 + $0x100] ss:$16 sps:$4 sm:$0xff]   ;;  %v20320_v31 = vld [vmem:[#allocation5 + $0x108] ss:$16 sps:$4 sm:$0xff]  }
 0x656   :  { %v7628_v4 = vmax.f32 %v25105_v37, %v7600_v33  ;;  %v7238_v33 = vpop.f32.mrb[187].mxu0  ;;  %v20325_v63 = vld [vmem:[#allocation5 + $0x124] ss:$16 sps:$4 sm:$0xff]   ;;  %v20328_v32 = vld [vmem:[#allocation5 + $0x12c] ss:$16 sps:$4 sm:$0xff]  }
 0x657   :  { %v7641_v50 = vpack.c.bf16 %v7627_v5, %v7625_v22  ;;  %v20326_v24 = vld [vmem:[#allocation5 + $0x128] ss:$16 sps:$4 sm:$0xff]   ;;  %v20334_v33 = vld [vmem:[#allocation5 + $0x14c] ss:$16 sps:$4 sm:$0xff]  }
 0x658   :  { %v7642_v30 = vpack.c.bf16 %v7628_v4, %v7626_v39  ;;  %v24116_v4 = vld [vmem:[#allocation2] sm:$0xff] }
 0x659   :  { %7681 = vrot.lane.b32.xlu0 %v7641_v50, %s21540_s0 }
 0x65a   :  { %7683 = vrot.lane.b32.xlu1 %v7642_v30, %s21540_s0 }
 0x65d   :  { %3905 = vrot.lane.b32.xlu0 %v25106_v18, %s21540_s0 }
 0x65e   :  { %3907 = vrot.lane.b32.xlu1 %v25107_v2, %s21540_s0  ;;  %v7820_v2 = vld [vmem:[#allocation2 + $0x100] sm:$0xff] }
 0x661   :  { %3909 = vrot.lane.b32.xlu0 %v25108_v15, %s21540_s0  ;;  %v20269_v15 = vld [vmem:[#allocation5] ss:$16 sps:$4 sm:$0xff]  }
 0x662   :  { %3911 = vrot.lane.b32.xlu1 %v25109_v58, %s21540_s0  ;;  %v20277_v58 = vld [vmem:[#allocation5 + $0x24] ss:$16 sps:$4 sm:$0xff]  }
 0x665   :  { %3913 = vrot.lane.b32.xlu0 %v25110_v62, %s21540_s0  ;;  %v20280_v62 = vld [vmem:[#allocation5 + $0x2c] ss:$16 sps:$4 sm:$0xff]  }
 0x666   :  { %3915 = vrot.lane.b32.xlu1 %v25111_v59, %s21540_s0 }
 0x669   :  { %3917 = vrot.lane.b32.xlu0 %v25112_v46, %s21540_s0 }
 0x66a   :  { %3919 = vrot.lane.b32.xlu1 %v25113_v40, %s21540_s0  ;;  %v20275_v40 = vld [vmem:[#allocation5 + $0x20] ss:$16 sps:$4 sm:$0xff]  }
 0x66d   :  { %3921 = vrot.lane.b32.xlu0 %v25114_v1, %s21540_s0  ;;  %v20278_v1 = vld [vmem:[#allocation5 + $0x28] ss:$16 sps:$4 sm:$0xff]  }
 0x66e   :  { %3923 = vrot.lane.b32.xlu1 %v25115_v47, %s21540_s0 }
 0x671   :  { %3925 = vrot.lane.b32.xlu0 %v25116_v51, %s21540_s0  ;;  %v20283_v51 = vld [vmem:[#allocation5 + $0x44] ss:$16 sps:$4 sm:$0xff]  }
 0x672   :  { %3927 = vrot.lane.b32.xlu1 %v25117_v45, %s21540_s0  ;;  %v20286_v45 = vld [vmem:[#allocation5 + $0x4c] ss:$16 sps:$4 sm:$0xff]  }
 0x675   :  { %3929 = vrot.lane.b32.xlu0 %v25118_v44, %s21540_s0 }
 0x676   :  { %3931 = vrot.lane.b32.xlu1 %v25119_v56, %s21540_s0 }
 0x69e   :  { %v7658_v38 = vpop.permute.xlu0 %7657 }
 0x69f   :  { %7707 = vst.msk [vmem:[#allocation2 + $0x108] sm:$0xff] %vm3956_vm1, %v7658_v38 }
 0x6a2   :  { %v7660_v35 = vpop.permute.xlu0 %7659 }
 0x6a3   :  { %v7685_v43 = vsel %vm105_vm0, %v7658_v38, %v7660_v35  ;;  %v7823_v38 = vld [vmem:[#allocation2 + $0x118] sm:$0xff]  ;;  %v20281_v35 = vld [vmem:[#allocation5 + $0x40] ss:$16 sps:$4 sm:$0xff]  }
 0x6a4   :  { %7708 = vst [vmem:[#allocation2 + $0x110] sm:$0xff] %v7685_v43  ;;  %8341 = vmatprep.mubr.bf16.mxu0 %v7685_v43  ;;  %8559 = vmatprep.mubr.bf16.mxu1 %v7685_v43  ;;  %v20284_v43 = vld [vmem:[#allocation5 + $0x48] ss:$16 sps:$4 sm:$0xff]  }
 0x6a6   :  { %v7821_v16 = vld [vmem:[#allocation2 + $0x108] sm:$0xff] }
 0x6a7   :  { %8342 = vmatmul.mubr.bf16.gmra.mrb[192].mxu0 %v7821_v16  ;;  %8560 = vmatmul.mubr.bf16.gmra.mrb[204].mxu1 %v7821_v16 }
 0x6a8   :  { %v7662_v52 = vpop.permute.xlu1 %7661 }
 0x6a9   :  { %7709 = vst.msk [vmem:[#allocation2 + $0x120] sm:$0xff] %vm3956_vm1, %v7662_v52 }
 0x6ab   :  { %v7666_v55 = vpop.permute.xlu0 %7665 }
 0x6ac   :  { %v7664_v13 = vpop.permute.xlu1 %7663  ;;  %7711 = vst.msk [vmem:[#allocation2 + $0x138] sm:$0xff] %vm3956_vm1, %v7666_v55 }
 0x6ad   :  { %v7686_v19 = vsel %vm105_vm0, %v7662_v52, %v7664_v13  ;;  %v20289_v52 = vld [vmem:[#allocation5 + $0x64] ss:$16 sps:$4 sm:$0xff]  }
 0x6ae   :  { %7710 = vst [vmem:[#allocation2 + $0x128] sm:$0xff] %v7686_v19  ;;  %8351 = vmatprep.mubr.bf16.mxu0 %v7686_v19  ;;  %8569 = vmatprep.mubr.bf16.mxu1 %v7686_v19 }
 0x6b0   :  { %v7668_v3 = vpop.permute.xlu1 %7667  ;;  %v7824_v23 = vld [vmem:[#allocation2 + $0x120] sm:$0xff] }
 0x6b1   :  { %v7687_v28 = vsel %vm105_vm0, %v7666_v55, %v7668_v3  ;;  %8352 = vmatmul.mubr.bf16.gmra.mrb[196].mxu0 %v7824_v23  ;;  %8570 = vmatmul.mubr.bf16.gmra.mrb[208].mxu1 %v7824_v23  ;;  %v20292_v55 = vld [vmem:[#allocation5 + $0x6c] ss:$16 sps:$4 sm:$0xff]   ;;  %v20287_v3 = vld [vmem:[#allocation5 + $0x60] ss:$16 sps:$4 sm:$0xff]   ;;  %v20290_v23 = vld [vmem:[#allocation5 + $0x68] ss:$16 sps:$4 sm:$0xff]  }
 0x6b2   :  { %7712 = vst [vmem:[#allocation2 + $0x140] sm:$0xff] %v7687_v28  ;;  %8361 = vmatprep.mubr.bf16.mxu0 %v7687_v28  ;;  %8579 = vmatprep.mubr.bf16.mxu1 %v7687_v28  ;;  %v20295_v28 = vld [vmem:[#allocation5 + $0x84] ss:$16 sps:$4 sm:$0xff]  }
 0x6b3   :  { %v7670_v12 = vpop.permute.xlu0 %7669  ;;  %v7827_v9 = vld [vmem:[#allocation2 + $0x138] sm:$0xff] }
 0x6b4   :  { %7713 = vst.msk [vmem:[#allocation2 + $0x150] sm:$0xff] %vm3956_vm1, %v7670_v12  ;;  %v7672_v42 = vpop.permute.xlu1 %7671 }
 0x6b5   :  { %v7688_v60 = vsel %vm105_vm0, %v7670_v12, %v7672_v42  ;;  %v20298_v12 = vld [vmem:[#allocation5 + $0x8c] ss:$16 sps:$4 sm:$0xff]   ;;  %v7826_v42 = vld [vmem:[#allocation2 + $0x130] sm:$0xff] }
 0x6b6   :  { %7714 = vst [vmem:[#allocation2 + $0x158] sm:$0xff] %v7688_v60 }
 0x6b9   :  { %8362 = vmatmul.mubr.bf16.gmra.mrb[200].mxu0 %v7827_v9  ;;  %8580 = vmatmul.mubr.bf16.gmra.mrb[212].mxu1 %v7827_v9  ;;  %v20296_v9 = vld [vmem:[#allocation5 + $0x88] ss:$16 sps:$4 sm:$0xff]  }
 0x6ba   :  { %8371 = vmatprep.mubr.bf16.mxu0 %v7688_v60  ;;  %8589 = vmatprep.mubr.bf16.mxu1 %v7688_v60  ;;  %v20293_v60 = vld [vmem:[#allocation5 + $0x80] ss:$16 sps:$4 sm:$0xff]  }
 0x6bb   :  { %v7674_v49 = vpop.permute.xlu0 %7673  ;;  %v7830_v48 = vld [vmem:[#allocation2 + $0x150] sm:$0xff] }
 0x6bc   :  { %7715 = vst.msk [vmem:[#allocation2 + $0x168] sm:$0xff] %vm3956_vm1, %v7674_v49  ;;  %v7676_v10 = vpop.permute.xlu1 %7675 }
 0x6bd   :  { %v7689_v25 = vsel %vm105_vm0, %v7674_v49, %v7676_v10  ;;  %v20301_v49 = vld [vmem:[#allocation5 + $0xa4] ss:$16 sps:$4 sm:$0xff]   ;;  %v20304_v10 = vld [vmem:[#allocation5 + $0xac] ss:$16 sps:$4 sm:$0xff]  }
 0x6be   :  { %7716 = vst [vmem:[#allocation2 + $0x170] sm:$0xff] %v7689_v25 }
 0x6c1   :  { %8372 = vmatmul.mubr.bf16.gmra.mrb[204].mxu0 %v7830_v48  ;;  %8590 = vmatmul.mubr.bf16.gmra.mrb[216].mxu1 %v7830_v48  ;;  %v20302_v48 = vld [vmem:[#allocation5 + $0xa8] ss:$16 sps:$4 sm:$0xff]  }
 0x6c2   :  { %8381 = vmatprep.mubr.bf16.mxu0 %v7689_v25  ;;  %8599 = vmatprep.mubr.bf16.mxu1 %v7689_v25  ;;  %v20299_v25 = vld [vmem:[#allocation5 + $0xa0] ss:$16 sps:$4 sm:$0xff]  }
 0x6c3   :  { %v7678_v41 = vpop.permute.xlu0 %7677  ;;  %v7833_v7 = vld [vmem:[#allocation2 + $0x168] sm:$0xff] }
 0x6c4   :  { %7717 = vst.msk [vmem:[#allocation2 + $0x180] sm:$0xff] %vm3956_vm1, %v7678_v41  ;;  %v7680_v17 = vpop.permute.xlu1 %7679 }
 0x6c5   :  { %v7690_v8 = vsel %vm105_vm0, %v7678_v41, %v7680_v17  ;;  %v20307_v41 = vld [vmem:[#allocation5 + $0xc4] ss:$16 sps:$4 sm:$0xff]   ;;  %v20310_v17 = vld [vmem:[#allocation5 + $0xcc] ss:$16 sps:$4 sm:$0xff]  }
 0x6c6   :  { %7718 = vst [vmem:[#allocation2 + $0x188] sm:$0xff] %v7690_v8 }
 0x6c9   :  { %8382 = vmatmul.mubr.bf16.gmra.mrb[208].mxu0 %v7833_v7  ;;  %8600 = vmatmul.mubr.bf16.gmra.mrb[220].mxu1 %v7833_v7  ;;  %v20305_v7 = vld [vmem:[#allocation5 + $0xc0] ss:$16 sps:$4 sm:$0xff]  }
 0x6ca   :  { %8391 = vmatprep.mubr.bf16.mxu0 %v7690_v8  ;;  %8609 = vmatprep.mubr.bf16.mxu1 %v7690_v8  ;;  %v7829_v8 = vld [vmem:[#allocation2 + $0x148] sm:$0xff] }
 0x6cb   :  { %v7682_v53 = vpop.permute.xlu0 %7681  ;;  %v7836_v57 = vld [vmem:[#allocation2 + $0x180] sm:$0xff] }
 0x6cc   :  { %7719 = vst.msk [vmem:[#allocation2 + $0x198] sm:$0xff] %vm3956_vm1, %v7682_v53  ;;  %v7684_v54 = vpop.permute.xlu1 %7683 }
 0x6cd   :  { %v7691_v27 = vsel %vm105_vm0, %v7682_v53, %v7684_v54  ;;  %v20308_v53 = vld [vmem:[#allocation5 + $0xc8] ss:$16 sps:$4 sm:$0xff]   ;;  %v20313_v54 = vld [vmem:[#allocation5 + $0xe4] ss:$16 sps:$4 sm:$0xff]  }
 0x6ce   :  { %7720 = vst [vmem:[#allocation2 + $0x1a0] sm:$0xff] %v7691_v27 }
 0x6cf   :  { %v3906_v36 = vpop.permute.xlu0 %3905 }
 0x6d0   :  { %3957 = vst.msk [vmem:[#allocation2 + $0x18] sm:$0xff] %vm3956_vm1, %v3906_v36  ;;  %v3908_v0 = vpop.permute.xlu1 %3907 }
 0x6d1   :  { %v24103_v14 = vsel %vm105_vm0, %v3906_v36, %v3908_v0  ;;  %8392 = vmatmul.mubr.bf16.gmra.mrb[212].mxu0 %v7836_v57  ;;  %8610 = vmatmul.mubr.bf16.gmra.mrb[224].mxu1 %v7836_v57  ;;  %v20311_v57 = vld [vmem:[#allocation5 + $0xe0] ss:$16 sps:$4 sm:$0xff]   ;;  %v20314_v36 = vld [vmem:[#allocation5 + $0xe8] ss:$16 sps:$4 sm:$0xff]   ;;  %v20322_v0 = vld [vmem:[#allocation5 + $0x10c] ss:$16 sps:$4 sm:$0xff]  }
 0x6d2   :  { %3958 = vst [vmem:[#allocation2 + $0x20] sm:$0xff] %v24103_v14  ;;  %8401 = vmatprep.mubr.bf16.mxu0 %v7691_v27  ;;  %8619 = vmatprep.mubr.bf16.mxu1 %v7691_v27  ;;  %v20316_v27 = vld [vmem:[#allocation5 + $0xec] ss:$16 sps:$4 sm:$0xff]  }
 0x6d3   :  { %v3910_v21 = vpop.permute.xlu0 %3909  ;;  %v7839_v39 = vld [vmem:[#allocation2 + $0x198] sm:$0xff] }
 0x6d4   :  { %3959 = vst.msk [vmem:[#allocation2 + $0x30] sm:$0xff] %vm3956_vm1, %v3910_v21  ;;  %v3912_v22 = vpop.permute.xlu1 %3911 }
 0x6d5   :  { %v24108_v20 = vsel %vm105_vm0, %v3910_v21, %v3912_v22  ;;  %v20323_v21 = vld [vmem:[#allocation5 + $0x120] ss:$16 sps:$4 sm:$0xff]   ;;  %v20331_v22 = vld [vmem:[#allocation5 + $0x144] ss:$16 sps:$4 sm:$0xff]  }
 0x6d6   :  { %3960 = vst [vmem:[#allocation2 + $0x38] sm:$0xff] %v24108_v20 }
 0x6d7   :  { %v3914_v34 = vpop.permute.xlu0 %3913 }
 0x6d8   :  { %3961 = vst.msk [vmem:[#allocation2 + $0x48] sm:$0xff] %vm3956_vm1, %v3914_v34  ;;  %v3916_v5 = vpop.permute.xlu1 %3915 }
 0x6d9   :  { %v24113_v37 = vsel %vm105_vm0, %v3914_v34, %v3916_v5  ;;  %8402 = vmatmul.mubr.bf16.gmra.mrb[216].mxu0 %v7839_v39  ;;  %8620 = vmatmul.mubr.bf16.gmra.mrb[228].mxu1 %v7839_v39  ;;  %v7835_v39 = vld [vmem:[#allocation2 + $0x178] sm:$0xff]  ;;  %v20329_v34 = vld [vmem:[#allocation5 + $0x140] ss:$16 sps:$4 sm:$0xff]  }
 0x6da   :  { %3962 = vst [vmem:[#allocation2 + $0x50] sm:$0xff] %v24113_v37  ;;  %8440 = vmatprep.mubr.bf16.mxu0 %v24116_v4  ;;  %8658 = vmatprep.mubr.bf16.mxu1 %v24116_v4  ;;  %v20332_v5 = vld [vmem:[#allocation5 + $0x148] ss:$16 sps:$4 sm:$0xff]  }
 0x6db   :  { %v3918_v50 = vpop.permute.xlu0 %3917 }
 0x6dc   :  { %3963 = vst.msk [vmem:[#allocation2 + $0x60] sm:$0xff] %vm3956_vm1, %v3918_v50  ;;  %v3920_v30 = vpop.permute.xlu1 %3919 }
 0x6dd   :  { %v24122_v18 = vsel %vm105_vm0, %v3918_v50, %v3920_v30  ;;  %v20337_v50 = vld [vmem:[#allocation5 + $0x164] ss:$16 sps:$4 sm:$0xff]   ;;  %v20340_v30 = vld [vmem:[#allocation5 + $0x16c] ss:$16 sps:$4 sm:$0xff]  }
 0x6de   :  { %3964 = vst [vmem:[#allocation2 + $0x68] sm:$0xff] %v24122_v18 }
 0x6df   :  { %v3922_v61 = vpop.permute.xlu0 %3921 }
 0x6e0   :  { %3965 = vst.msk [vmem:[#allocation2 + $0x78] sm:$0xff] %vm3956_vm1, %v3922_v61  ;;  %v3924_v59 = vpop.permute.xlu1 %3923 }
 0x6e1   :  { %v24127_v46 = vsel %vm105_vm0, %v3922_v61, %v3924_v59  ;;  %17310 = vmatmul.mubr.msk.bf16.vlgmr.msra.gmra.mrb[188].mxu0 %vm105_vm0, %v7820_v2  ;;  %17318 = vmatmul.mubr.msk.bf16.vlgmr.msra.gmra.mrb[200].mxu1 %vm105_vm0, %v7820_v2  ;;  %v20335_v2 = vld [vmem:[#allocation5 + $0x160] ss:$16 sps:$4 sm:$0xff]   ;;  %v20346_v61 = vld [vmem:[#allocation5 + $0x18c] ss:$16 sps:$4 sm:$0xff]   ;;  %v20344_v59 = vld [vmem:[#allocation5 + $0x188] ss:$16 sps:$4 sm:$0xff]  }
 0x6e2   :  { %3966 = vst [vmem:[#allocation2 + $0x80] sm:$0xff] %v24127_v46  ;;  %9120 = vmatpush1.bf16.msra.mxu0 %v20269_v15  ;;  %9338 = vmatpush1.bf16.msra.mxu1 %v20272_v6  ;;  %v20338_v15 = vld [vmem:[#allocation5 + $0x168] ss:$16 sps:$4 sm:$0xff]   ;;  %v20343_v6 = vld [vmem:[#allocation5 + $0x184] ss:$16 sps:$4 sm:$0xff]  }
 0x6e3   :  { %v3926_v47 = vpop.permute.xlu0 %3925  ;;  %9121 = vmatprep.subr.bf16.mxu0 %v20277_v58  ;;  %9339 = vmatprep.subr.bf16.mxu1 %v20280_v62  ;;  %v7838_v58 = vld [vmem:[#allocation2 + $0x190] sm:$0xff] }
 0x6e4   :  { %3967 = vst.msk [vmem:[#allocation2 + $0x90] sm:$0xff] %vm3956_vm1, %v3926_v47  ;;  %v3928_v44 = vpop.permute.xlu1 %3927  ;;  %8450 = vmatprep.mubr.bf16.mxu0 %v24116_v4  ;;  %8668 = vmatprep.mubr.bf16.mxu1 %v24116_v4  ;;  %v20341_v62 = vld [vmem:[#allocation5 + $0x180] ss:$16 sps:$4 sm:$0xff]  }
 0x6e5   :  { %v24136_v56 = vsel %vm105_vm0, %v3926_v47, %v3928_v44  ;;  %v20347_v47 = vld [vmem:[#allocation5 + $0x1a0] ss:$16 sps:$4 sm:$0xff]   ;;  %v20358_v44 = vld [vmem:[#allocation5 + $0x1cc] ss:$16 sps:$4 sm:$0xff]  }
 0x6e6   :  { %3968 = vst [vmem:[#allocation2 + $0x98] sm:$0xff] %v24136_v56  ;;  %9122 = vmatpush1.bf16.msra.mxu0 %v20275_v40  ;;  %9340 = vmatpush1.bf16.msra.mxu1 %v20278_v1  ;;  %v20349_v40 = vld [vmem:[#allocation5 + $0x1a4] ss:$16 sps:$4 sm:$0xff]   ;;  %v20352_v1 = vld [vmem:[#allocation5 + $0x1ac] ss:$16 sps:$4 sm:$0xff]  }
 0x6e7   :  { %v3930_v16 = vpop.permute.xlu0 %3929  ;;  %9123 = vmatprep.subr.bf16.mxu0 %v20283_v51  ;;  %9341 = vmatprep.subr.bf16.mxu1 %v20286_v45  ;;  %v20350_v51 = vld [vmem:[#allocation5 + $0x1a8] ss:$16 sps:$4 sm:$0xff]   ;;  %v20355_v45 = vld [vmem:[#allocation5 + $0x1c4] ss:$16 sps:$4 sm:$0xff]  }
 0x6e8   :  { %3969 = vst.msk [vmem:[#allocation2 + $0xa8] sm:$0xff] %vm3956_vm1, %v3930_v16  ;;  %v3932_v13 = vpop.permute.xlu1 %3931 }
 0x6e9   :  { %v24141_v19 = vsel %vm105_vm0, %v3930_v16, %v3932_v13  ;;  %17311 = vmatmul.mubr.msk.bf16.gmra.mrb[192].mxu0 %vm105_vm0, %v7823_v38  ;;  %17319 = vmatmul.mubr.msk.bf16.gmra.mrb[204].mxu1 %vm105_vm0, %v7823_v38  ;;  %v7841_v38 = vld [vmem:[#allocation2 + $0x1a8] sm:$0xff]  ;;  %v20361_v16 = vld [vmem:[#allocation5 + $0x1e4] ss:$16 sps:$4 sm:$0xff]  }
 0x6ea   :  { %3970 = vst [vmem:[#allocation2 + $0xb0] sm:$0xff] %v24141_v19  ;;  %9124 = vmatpush1.bf16.msra.mxu0 %v20281_v35  ;;  %9342 = vmatpush1.bf16.msra.mxu1 %v20284_v43  ;;  %v20353_v35 = vld [vmem:[#allocation5 + $0x1c0] ss:$16 sps:$4 sm:$0xff]   ;;  %v20356_v43 = vld [vmem:[#allocation5 + $0x1c8] ss:$16 sps:$4 sm:$0xff]  }
 0x6eb   :  { %9125 = vmatprep.subr.bf16.mxu0 %v20289_v52  ;;  %9343 = vmatprep.subr.bf16.mxu1 %v20292_v55  ;;  %v20364_v52 = vld [vmem:[#allocation5 + $0x1ec] ss:$16 sps:$4 sm:$0xff]   ;;  %v20359_v55 = vld [vmem:[#allocation5 + $0x1e0] ss:$16 sps:$4 sm:$0xff]   ;;  %v20362_v13 = vld [vmem:[#allocation5 + $0x1e8] ss:$16 sps:$4 sm:$0xff]  }
 0x6ec   :  { %8460 = vmatprep.mubr.bf16.mxu0 %v24116_v4  ;;  %8678 = vmatprep.mubr.bf16.mxu1 %v24116_v4 }
 0x6ee   :  { %9126 = vmatpush1.bf16.msra.mxu0 %v20287_v3  ;;  %9344 = vmatpush1.bf16.msra.mxu1 %v20290_v23  ;;  %v20367_v3 = vld [vmem:[#allocation5 + $0x204] ss:$16 sps:$4 sm:$0xff]   ;;  %v20370_v23 = vld [vmem:[#allocation5 + $0x20c] ss:$16 sps:$4 sm:$0xff]  }
 0x6ef   :  { %9127 = vmatprep.subr.bf16.mxu0 %v20295_v28  ;;  %9345 = vmatprep.subr.bf16.mxu1 %v20298_v12  ;;  %v20365_v28 = vld [vmem:[#allocation5 + $0x200] ss:$16 sps:$4 sm:$0xff]   ;;  %v20368_v12 = vld [vmem:[#allocation5 + $0x208] ss:$16 sps:$4 sm:$0xff]  }
 0x6f1   :  { %17312 = vmatmul.mubr.msk.bf16.gmra.mrb[196].mxu0 %vm105_vm0, %v7826_v42  ;;  %17320 = vmatmul.mubr.msk.bf16.gmra.mrb[208].mxu1 %vm105_vm0, %v7826_v42  ;;  %v20373_v42 = vld [vmem:[#allocation5 + $0x224] ss:$16 sps:$4 sm:$0xff]  }
 0x6f2   :  { %9128 = vmatpush1.bf16.msra.mxu0 %v20293_v60  ;;  %9346 = vmatpush1.bf16.msra.mxu1 %v20296_v9  ;;  %v20376_v60 = vld [vmem:[#allocation5 + $0x22c] ss:$16 sps:$4 sm:$0xff]   ;;  %v20371_v9 = vld [vmem:[#allocation5 + $0x220] ss:$16 sps:$4 sm:$0xff]  }
 0x6f3   :  { %9129 = vmatprep.subr.bf16.mxu0 %v20301_v49  ;;  %9347 = vmatprep.subr.bf16.mxu1 %v20304_v10  ;;  %v20374_v49 = vld [vmem:[#allocation5 + $0x228] ss:$16 sps:$4 sm:$0xff]   ;;  %v20379_v10 = vld [vmem:[#allocation5 + $0x484] ss:$16 sps:$4 sm:$0xff]  }
 0x6f4   :  { %8470 = vmatprep.mubr.bf16.mxu0 %v24116_v4  ;;  %8688 = vmatprep.mubr.bf16.mxu1 %v24116_v4 }
 0x6f6   :  { %9130 = vmatpush1.bf16.msra.mxu0 %v20299_v25  ;;  %9348 = vmatpush1.bf16.msra.mxu1 %v20302_v48  ;;  %v20382_v25 = vld [vmem:[#allocation5 + $0x48c] ss:$16 sps:$4 sm:$0xff]  }
 0x6f7   :  { %9131 = vmatprep.subr.bf16.mxu0 %v20307_v41  ;;  %9349 = vmatprep.subr.bf16.mxu1 %v20310_v17  ;;  %v24176_v48 = vld [vmem:[#allocation2 + $0x18] sm:$0xff]  ;;  %v24188_v41 = vld [vmem:[#allocation2 + $0x48] sm:$0xff]  ;;  %v20377_v17 = vld [vmem:[#allocation5 + $0x480] ss:$16 sps:$4 sm:$0xff]  }
 0x6f9   :  { %17313 = vmatmul.mubr.msk.bf16.gmra.mrb[200].mxu0 %vm105_vm0, %v7829_v8  ;;  %17321 = vmatmul.mubr.msk.bf16.gmra.mrb[212].mxu1 %vm105_vm0, %v7829_v8  ;;  %v20380_v8 = vld [vmem:[#allocation5 + $0x488] ss:$16 sps:$4 sm:$0xff]  }
 0x6fa   :  { %9132 = vmatpush1.bf16.msra.mxu0 %v20305_v7  ;;  %9350 = vmatpush1.bf16.msra.mxu1 %v20308_v53  ;;  %v20385_v7 = vld [vmem:[#allocation5 + $0x4a4] ss:$16 sps:$4 sm:$0xff]   ;;  %v20388_v53 = vld [vmem:[#allocation5 + $0x4ac] ss:$16 sps:$4 sm:$0xff]  }
 0x6fb   :  { %9133 = vmatprep.subr.bf16.mxu0 %v20313_v54  ;;  %9351 = vmatprep.subr.bf16.mxu1 %v20316_v27  ;;  %v20386_v54 = vld [vmem:[#allocation5 + $0x4a8] ss:$16 sps:$4 sm:$0xff]   ;;  %v20391_v27 = vld [vmem:[#allocation5 + $0x4c4] ss:$16 sps:$4 sm:$0xff]  }
 0x6fc   :  { %8480 = vmatprep.mubr.bf16.mxu0 %v24116_v4  ;;  %8698 = vmatprep.mubr.bf16.mxu1 %v24116_v4 }
 0x6fe   :  { %9134 = vmatpush1.bf16.msra.mxu0 %v20311_v57  ;;  %9352 = vmatpush1.bf16.msra.mxu1 %v20314_v36  ;;  %v20394_v57 = vld [vmem:[#allocation5 + $0x4cc] ss:$16 sps:$4 sm:$0xff]  }
 0x6ff   :  { %9135 = vmatprep.subr.bf16.mxu0 %v20319_v29  ;;  %9353 = vmatprep.subr.bf16.mxu1 %v20322_v0  ;;  %v24222_v36 = vld [vmem:[#allocation2 + $0x28] sm:$0xff]  ;;  %v20389_v29 = vld [vmem:[#allocation5 + $0x4c0] ss:$16 sps:$4 sm:$0xff]  }
 0x700   :  { %v20392_v0 = vld [vmem:[#allocation5 + $0x4c8] ss:$16 sps:$4 sm:$0xff]  }
 0x701   :  { %17314 = vmatmul.mubr.msk.bf16.gmra.mrb[204].mxu0 %vm105_vm0, %v7832_v11  ;;  %17322 = vmatmul.mubr.msk.bf16.gmra.mrb[216].mxu1 %vm105_vm0, %v7832_v11  ;;  %v20397_v11 = vld [vmem:[#allocation5 + $0x4e4] ss:$16 sps:$4 sm:$0xff]  }
 0x702   :  { %9136 = vmatpush1.bf16.msra.mxu0 %v20317_v26  ;;  %9354 = vmatpush1.bf16.msra.mxu1 %v20320_v31  ;;  %v20400_v26 = vld [vmem:[#allocation5 + $0x4ec] ss:$16 sps:$4 sm:$0xff]   ;;  %v20395_v31 = vld [vmem:[#allocation5 + $0x4e0] ss:$16 sps:$4 sm:$0xff]  }
 0x703   :  { %9137 = vmatprep.subr.bf16.mxu0 %v20325_v63  ;;  %9355 = vmatprep.subr.bf16.mxu1 %v20328_v32  ;;  %v20398_v63 = vld [vmem:[#allocation5 + $0x4e8] ss:$16 sps:$4 sm:$0xff]   ;;  %v20403_v32 = vld [vmem:[#allocation5 + $0x504] ss:$16 sps:$4 sm:$0xff]  }
 0x704   :  { %8490 = vmatprep.mubr.bf16.mxu0 %v24116_v4  ;;  %8708 = vmatprep.mubr.bf16.mxu1 %v24116_v4 }
 0x706   :  { %9138 = vmatpush1.bf16.msra.mxu0 %v20323_v21  ;;  %9356 = vmatpush1.bf16.msra.mxu1 %v20326_v24  ;;  %v20406_v21 = vld [vmem:[#allocation5 + $0x50c] ss:$16 sps:$4 sm:$0xff]   ;;  %v24230_v24 = vld [vmem:[#allocation2 + $0x40] sm:$0xff] }
 0x707   :  { %9139 = vmatprep.subr.bf16.mxu0 %v20331_v22  ;;  %9357 = vmatprep.subr.bf16.mxu1 %v20334_v33  ;;  %v20401_v22 = vld [vmem:[#allocation5 + $0x500] ss:$16 sps:$4 sm:$0xff]   ;;  %v20404_v33 = vld [vmem:[#allocation5 + $0x508] ss:$16 sps:$4 sm:$0xff]  }
 0x709   :  { %17315 = vmatmul.mubr.msk.bf16.gmra.mrb[208].mxu0 %vm105_vm0, %v7835_v39  ;;  %17323 = vmatmul.mubr.msk.bf16.gmra.mrb[220].mxu1 %vm105_vm0, %v7835_v39  ;;  %v20409_v39 = vld [vmem:[#allocation5 + $0x524] ss:$16 sps:$4 sm:$0xff]  }
 0x70a   :  { %9140 = vmatpush1.bf16.msra.mxu0 %v20329_v34  ;;  %9358 = vmatpush1.bf16.msra.mxu1 %v20332_v5  ;;  %v20412_v34 = vld [vmem:[#allocation5 + $0x52c] ss:$16 sps:$4 sm:$0xff]   ;;  %v20407_v5 = vld [vmem:[#allocation5 + $0x520] ss:$16 sps:$4 sm:$0xff]  }
 0x70b   :  { %9141 = vmatprep.subr.bf16.mxu0 %v20337_v50  ;;  %9359 = vmatprep.subr.bf16.mxu1 %v20340_v30  ;;  %v20410_v50 = vld [vmem:[#allocation5 + $0x528] ss:$16 sps:$4 sm:$0xff]   ;;  %v20415_v30 = vld [vmem:[#allocation5 + $0x544] ss:$16 sps:$4 sm:$0xff]  }
 0x70c   :  { %8500 = vmatprep.mubr.bf16.mxu0 %v24116_v4  ;;  %8718 = vmatprep.mubr.bf16.mxu1 %v24116_v4 }
 0x70e   :  { %9142 = vmatpush1.bf16.msra.mxu0 %v20335_v2  ;;  %9360 = vmatpush1.bf16.msra.mxu1 %v20338_v15  ;;  %v20418_v2 = vld [vmem:[#allocation5 + $0x54c] ss:$16 sps:$4 sm:$0xff]  }
 0x70f   :  { %9143 = vmatprep.subr.bf16.mxu0 %v20343_v6  ;;  %9361 = vmatprep.subr.bf16.mxu1 %v20346_v61  ;;  %v24238_v15 = vld [vmem:[#allocation2 + $0x58] sm:$0xff]  ;;  %v20413_v6 = vld [vmem:[#allocation5 + $0x540] ss:$16 sps:$4 sm:$0xff]  }
 0x710   :  { %v20416_v61 = vld [vmem:[#allocation5 + $0x548] ss:$16 sps:$4 sm:$0xff]  }
 0x711   :  { %17316 = vmatmul.mubr.msk.bf16.gmra.mrb[212].mxu0 %vm105_vm0, %v7838_v58  ;;  %17324 = vmatmul.mubr.msk.bf16.gmra.mrb[224].mxu1 %vm105_vm0, %v7838_v58  ;;  %v20421_v58 = vld [vmem:[#allocation5 + $0x564] ss:$16 sps:$4 sm:$0xff]  }
 0x712   :  { %9144 = vmatpush1.bf16.msra.mxu0 %v20341_v62  ;;  %9362 = vmatpush1.bf16.msra.mxu1 %v20344_v59  ;;  %v20424_v62 = vld [vmem:[#allocation5 + $0x56c] ss:$16 sps:$4 sm:$0xff]   ;;  %v20419_v59 = vld [vmem:[#allocation5 + $0x560] ss:$16 sps:$4 sm:$0xff]  }
 0x713   :  { %9145 = vmatprep.subr.bf16.mxu0 %v20349_v40  ;;  %9363 = vmatprep.subr.bf16.mxu1 %v20352_v1  ;;  %v20422_v40 = vld [vmem:[#allocation5 + $0x568] ss:$16 sps:$4 sm:$0xff]   ;;  %v20427_v1 = vld [vmem:[#allocation5 + $0x584] ss:$16 sps:$4 sm:$0xff]  }
 0x714   :  { %8510 = vmatprep.mubr.bf16.mxu0 %v24116_v4  ;;  %8728 = vmatprep.mubr.bf16.mxu1 %v24116_v4 }
 0x716   :  { %9146 = vmatpush1.bf16.msra.mxu0 %v20347_v47  ;;  %9364 = vmatpush1.bf16.msra.mxu1 %v20350_v51  ;;  %v20430_v47 = vld [vmem:[#allocation5 + $0x58c] ss:$16 sps:$4 sm:$0xff]   ;;  %v24246_v51 = vld [vmem:[#allocation2 + $0x70] sm:$0xff] }
 0x717   :  { %9147 = vmatprep.subr.bf16.mxu0 %v20355_v45  ;;  %9365 = vmatprep.subr.bf16.mxu1 %v20358_v44  ;;  %v20425_v45 = vld [vmem:[#allocation5 + $0x580] ss:$16 sps:$4 sm:$0xff]   ;;  %v20428_v44 = vld [vmem:[#allocation5 + $0x588] ss:$16 sps:$4 sm:$0xff]  }
 0x719   :  { %17317 = vmatmul.mubr.msk.bf16.gmra.mrb[220].mxu0 %vm105_vm0, %v7841_v38  ;;  %17325 = vmatmul.mubr.msk.bf16.gmra.mrb[232].mxu1 %vm105_vm0, %v7841_v38  ;;  %v20433_v38 = vld [vmem:[#allocation5 + $0x5a4] ss:$16 sps:$4 sm:$0xff]  }
 0x71a   :  { %9148 = vmatpush1.bf16.msra.mxu0 %v20353_v35  ;;  %9366 = vmatpush1.bf16.msra.mxu1 %v20356_v43  ;;  %v20436_v35 = vld [vmem:[#allocation5 + $0x5ac] ss:$16 sps:$4 sm:$0xff]   ;;  %v20431_v43 = vld [vmem:[#allocation5 + $0x5a0] ss:$16 sps:$4 sm:$0xff]  }
 0x71b   :  { %9149 = vmatprep.subr.bf16.mxu0 %v20361_v16  ;;  %9367 = vmatprep.subr.bf16.mxu1 %v20364_v52  ;;  %v20434_v16 = vld [vmem:[#allocation5 + $0x5a8] ss:$16 sps:$4 sm:$0xff]   ;;  %v20439_v52 = vld [vmem:[#allocation5 + $0x5c4] ss:$16 sps:$4 sm:$0xff]  }
 0x71c   :  { %9151 = vmatprep.mubr.bf16.mxu0 %v24116_v4  ;;  %9369 = vmatprep.mubr.bf16.mxu1 %v24116_v4 }
 0x71e   :  { %9150 = vmatpush1.bf16.msra.mxu0 %v20359_v55  ;;  %9368 = vmatpush1.bf16.msra.mxu1 %v20362_v13  ;;  %v20442_v55 = vld [vmem:[#allocation5 + $0x5cc] ss:$16 sps:$4 sm:$0xff]  }
 0x71f   :  { %9228 = vmatprep.subr.bf16.mxu0 %v20367_v3  ;;  %9446 = vmatprep.subr.bf16.mxu1 %v20370_v23  ;;  %v24254_v13 = vld [vmem:[#allocation2 + $0x88] sm:$0xff]  ;;  %v20437_v3 = vld [vmem:[#allocation5 + $0x5c0] ss:$16 sps:$4 sm:$0xff]  }
 0x720   :  { %v20440_v23 = vld [vmem:[#allocation5 + $0x5c8] ss:$16 sps:$4 sm:$0xff]  }
 0x721   :  { %9152 = vmatmul.mubr.bf16.vlgmr.msra.gmra.mrb[188].mxu0 %v24116_v4  ;;  %9370 = vmatmul.mubr.bf16.vlgmr.msra.gmra.mrb[200].mxu1 %v24116_v4 }
 0x722   :  { %9161 = vmatprep.mubr.bf16.mxu0 %v24103_v14  ;;  %9229 = vmatpush1.bf16.msra.mxu0 %v20365_v28  ;;  %v20445_v28 = vld [vmem:[#allocation5 + $0x5e4] ss:$16 sps:$4 sm:$0xff]  }
 0x723   :  { %9379 = vmatprep.mubr.bf16.mxu1 %v24103_v14  ;;  %9447 = vmatpush1.bf16.msra.mxu1 %v20368_v12  ;;  %v24182_v14 = vld [vmem:[#allocation2 + $0x30] sm:$0xff]  ;;  %v20448_v12 = vld [vmem:[#allocation5 + $0x5ec] ss:$16 sps:$4 sm:$0xff]  }
 0x724   :  { %9230 = vmatprep.subr.bf16.mxu0 %v20373_v42  ;;  %9448 = vmatprep.subr.bf16.mxu1 %v20376_v60  ;;  %v20443_v42 = vld [vmem:[#allocation5 + $0x5e0] ss:$16 sps:$4 sm:$0xff]   ;;  %v20446_v60 = vld [vmem:[#allocation5 + $0x5e8] ss:$16 sps:$4 sm:$0xff]  }
 0x726   :  { %9231 = vmatpush1.bf16.msra.mxu0 %v20371_v9  ;;  %v20451_v9 = vld [vmem:[#allocation5 + $0x604] ss:$16 sps:$4 sm:$0xff]  }
 0x727   :  { %9449 = vmatpush1.bf16.msra.mxu1 %v20374_v49  ;;  %10036 = vmatprep.subr.bf16.mxu0 %v20379_v10  ;;  %v20454_v49 = vld [vmem:[#allocation5 + $0x60c] ss:$16 sps:$4 sm:$0xff]   ;;  %v24262_v10 = vld [vmem:[#allocation2 + $0xa0] sm:$0xff] }
 0x728   :  { %10254 = vmatprep.subr.bf16.mxu1 %v20382_v25  ;;  %v20449_v25 = vld [vmem:[#allocation5 + $0x600] ss:$16 sps:$4 sm:$0xff]  }
 0x729   :  { %9162 = vmatmul.mubr.bf16.gmra.mrb[192].mxu0 %v24176_v48  ;;  %9380 = vmatmul.mubr.bf16.gmra.mrb[204].mxu1 %v24176_v48 }
 0x72a   :  { %9171 = vmatprep.mubr.bf16.mxu0 %v24108_v20  ;;  %9389 = vmatprep.mubr.bf16.mxu1 %v24108_v20  ;;  %v24194_v20 = vld [vmem:[#allocation2 + $0x60] sm:$0xff] }
 0x731   :  { %9172 = vmatmul.mubr.bf16.gmra.mrb[196].mxu0 %v24182_v14  ;;  %9390 = vmatmul.mubr.bf16.gmra.mrb[208].mxu1 %v24182_v14 }
 0x732   :  { %9181 = vmatprep.mubr.bf16.mxu0 %v24113_v37  ;;  %9399 = vmatprep.mubr.bf16.mxu1 %v24113_v37  ;;  %v24200_v37 = vld [vmem:[#allocation2 + $0x78] sm:$0xff] }
 0x739   :  { %9182 = vmatmul.mubr.bf16.gmra.mrb[200].mxu0 %v24188_v41  ;;  %9400 = vmatmul.mubr.bf16.gmra.mrb[212].mxu1 %v24188_v41 }
 0x73a   :  { %9191 = vmatprep.mubr.bf16.mxu0 %v24122_v18  ;;  %9409 = vmatprep.mubr.bf16.mxu1 %v24122_v18  ;;  %v24206_v18 = vld [vmem:[#allocation2 + $0x90] sm:$0xff] }
 0x741   :  { %9192 = vmatmul.mubr.bf16.gmra.mrb[204].mxu0 %v24194_v20  ;;  %9410 = vmatmul.mubr.bf16.gmra.mrb[216].mxu1 %v24194_v20 }
 0x742   :  { %9201 = vmatprep.mubr.bf16.mxu0 %v24127_v46  ;;  %9419 = vmatprep.mubr.bf16.mxu1 %v24127_v46  ;;  %v24212_v46 = vld [vmem:[#allocation2 + $0xa8] sm:$0xff] }
 0x749   :  { %9202 = vmatmul.mubr.bf16.gmra.mrb[208].mxu0 %v24200_v37  ;;  %9420 = vmatmul.mubr.bf16.gmra.mrb[220].mxu1 %v24200_v37 }
 0x74a   :  { %9211 = vmatprep.mubr.bf16.mxu0 %v24136_v56  ;;  %9429 = vmatprep.mubr.bf16.mxu1 %v24136_v56  ;;  %v7723_v56 = vld [vmem:[#allocation2 + $0x10] sm:$0xff] }
 0x751   :  { %9212 = vmatmul.mubr.bf16.gmra.mrb[212].mxu0 %v24206_v18  ;;  %9430 = vmatmul.mubr.bf16.gmra.mrb[224].mxu1 %v24206_v18 }
 0x752   :  { %9221 = vmatprep.mubr.bf16.mxu0 %v24141_v19  ;;  %9439 = vmatprep.mubr.bf16.mxu1 %v24141_v19  ;;  %v20383_v19 = vld [vmem:[#allocation5 + $0x4a0] ss:$16 sps:$4 sm:$0xff]  }
 0x759   :  { %9222 = vmatmul.mubr.bf16.gmra.mrb[224].mxu0 %v24212_v46  ;;  %9440 = vmatmul.mubr.bf16.gmra.mrb[236].mxu1 %v24212_v46 }
 0x75a   :  { %9260 = vmatprep.mubr.bf16.mxu0 %v24116_v4  ;;  %9478 = vmatprep.mubr.bf16.mxu1 %v24116_v4 }
 0x761   :  { %17398 = vmatmul.mubr.msk.bf16.vlgmr.msra.gmra.mrb[188].mxu0 %vm105_vm0, %v7723_v56  ;;  %17406 = vmatmul.mubr.msk.bf16.vlgmr.msra.gmra.mrb[200].mxu1 %vm105_vm0, %v7723_v56  ;;  %v20452_v56 = vld [vmem:[#allocation5 + $0x608] ss:$16 sps:$4 sm:$0xff]  }
 0x762   :  { %10037 = vmatpush1.bf16.msra.mxu0 %v20377_v17  ;;  %10255 = vmatpush1.bf16.msra.mxu1 %v20380_v8  ;;  %v20457_v17 = vld [vmem:[#allocation5 + $0x624] ss:$16 sps:$4 sm:$0xff]   ;;  %v20460_v8 = vld [vmem:[#allocation5 + $0x62c] ss:$16 sps:$4 sm:$0xff]  }
 0x763   :  { %10038 = vmatprep.subr.bf16.mxu0 %v20385_v7  ;;  %10256 = vmatprep.subr.bf16.mxu1 %v20388_v53  ;;  %v20455_v7 = vld [vmem:[#allocation5 + $0x620] ss:$16 sps:$4 sm:$0xff]   ;;  %v20458_v53 = vld [vmem:[#allocation5 + $0x628] ss:$16 sps:$4 sm:$0xff]  }
 0x764   :  { %9270 = vmatprep.mubr.bf16.mxu0 %v24116_v4  ;;  %9488 = vmatprep.mubr.bf16.mxu1 %v24116_v4 }
 0x766   :  { %10039 = vmatpush1.bf16.msra.mxu0 %v20383_v19  ;;  %10257 = vmatpush1.bf16.msra.mxu1 %v20386_v54  ;;  %v20463_v19 = vld [vmem:[#allocation5 + $0x644] ss:$16 sps:$4 sm:$0xff]   ;;  %v20466_v54 = vld [vmem:[#allocation5 + $0x64c] ss:$16 sps:$4 sm:$0xff]  }
 0x767   :  { %10040 = vmatprep.subr.bf16.mxu0 %v20391_v27  ;;  %10258 = vmatprep.subr.bf16.mxu1 %v20394_v57  ;;  %v24270_v27 = vld [vmem:[#allocation2 + $0xb8] sm:$0xff]  ;;  %v20461_v57 = vld [vmem:[#allocation5 + $0x640] ss:$16 sps:$4 sm:$0xff]  }
 0x769   :  { %17399 = vmatmul.mubr.msk.bf16.gmra.mrb[192].mxu0 %vm105_vm0, %v24222_v36  ;;  %17407 = vmatmul.mubr.msk.bf16.gmra.mrb[204].mxu1 %vm105_vm0, %v24222_v36 }
 0x76a   :  { %10041 = vmatpush1.bf16.msra.mxu0 %v20389_v29  ;;  %10259 = vmatpush1.bf16.msra.mxu1 %v20392_v0  ;;  %v20464_v29 = vld [vmem:[#allocation5 + $0x648] ss:$16 sps:$4 sm:$0xff]   ;;  %v20469_v0 = vld [vmem:[#allocation5 + $0x664] ss:$16 sps:$4 sm:$0xff]  }
 0x76b   :  { %10042 = vmatprep.subr.bf16.mxu0 %v20397_v11  ;;  %10260 = vmatprep.subr.bf16.mxu1 %v20400_v26  ;;  %v20472_v11 = vld [vmem:[#allocation5 + $0x66c] ss:$16 sps:$4 sm:$0xff]   ;;  %v9556_v26 = vld [vmem:[#allocation2 + $0x20] sm:$0xff] }
 0x76c   :  { %9280 = vmatprep.mubr.bf16.mxu0 %v24116_v4  ;;  %9498 = vmatprep.mubr.bf16.mxu1 %v24116_v4 }
 0x76e   :  { %10043 = vmatpush1.bf16.msra.mxu0 %v20395_v31  ;;  %10261 = vmatpush1.bf16.msra.mxu1 %v20398_v63  ;;  %v20467_v31 = vld [vmem:[#allocation5 + $0x660] ss:$16 sps:$4 sm:$0xff]   ;;  %v20470_v63 = vld [vmem:[#allocation5 + $0x668] ss:$16 sps:$4 sm:$0xff]  }
 0x76f   :  { %10044 = vmatprep.subr.bf16.mxu0 %v20403_v32  ;;  %10262 = vmatprep.subr.bf16.mxu1 %v20406_v21  ;;  %v20475_v32 = vld [vmem:[#allocation5 + $0x684] ss:$16 sps:$4 sm:$0xff]   ;;  %v20478_v21 = vld [vmem:[#allocation5 + $0x68c] ss:$16 sps:$4 sm:$0xff]  }
 0x771   :  { %17400 = vmatmul.mubr.msk.bf16.gmra.mrb[196].mxu0 %vm105_vm0, %v24230_v24  ;;  %17408 = vmatmul.mubr.msk.bf16.gmra.mrb[208].mxu1 %vm105_vm0, %v24230_v24 }
 0x772   :  { %10045 = vmatpush1.bf16.msra.mxu0 %v20401_v22  ;;  %10263 = vmatpush1.bf16.msra.mxu1 %v20404_v33  ;;  %v20473_v22 = vld [vmem:[#allocation5 + $0x680] ss:$16 sps:$4 sm:$0xff]   ;;  %v20476_v33 = vld [vmem:[#allocation5 + $0x688] ss:$16 sps:$4 sm:$0xff]  }
 0x773   :  { %10046 = vmatprep.subr.bf16.mxu0 %v20409_v39  ;;  %10264 = vmatprep.subr.bf16.mxu1 %v20412_v34  ;;  %v20481_v39 = vld [vmem:[#allocation5 + $0x6a4] ss:$16 sps:$4 sm:$0xff]   ;;  %v9559_v34 = vld [vmem:[#allocation2 + $0x38] sm:$0xff] }
 0x774   :  { %9290 = vmatprep.mubr.bf16.mxu0 %v24116_v4  ;;  %9508 = vmatprep.mubr.bf16.mxu1 %v24116_v4 }
 0x776   :  { %10047 = vmatpush1.bf16.msra.mxu0 %v20407_v5  ;;  %10265 = vmatpush1.bf16.msra.mxu1 %v20410_v50  ;;  %v20484_v5 = vld [vmem:[#allocation5 + $0x6ac] ss:$16 sps:$4 sm:$0xff]   ;;  %v20479_v50 = vld [vmem:[#allocation5 + $0x6a0] ss:$16 sps:$4 sm:$0xff]  }
 0x777   :  { %10048 = vmatprep.subr.bf16.mxu0 %v20415_v30  ;;  %10266 = vmatprep.subr.bf16.mxu1 %v20418_v2  ;;  %v20482_v30 = vld [vmem:[#allocation5 + $0x6a8] ss:$16 sps:$4 sm:$0xff]   ;;  %v20487_v2 = vld [vmem:[#allocation5 + $0x6c4] ss:$16 sps:$4 sm:$0xff]  }
 0x779   :  { %17401 = vmatmul.mubr.msk.bf16.gmra.mrb[200].mxu0 %vm105_vm0, %v24238_v15  ;;  %17409 = vmatmul.mubr.msk.bf16.gmra.mrb[212].mxu1 %vm105_vm0, %v24238_v15 }
 0x77a   :  { %10049 = vmatpush1.bf16.msra.mxu0 %v20413_v6  ;;  %10267 = vmatpush1.bf16.msra.mxu1 %v20416_v61  ;;  %v20490_v6 = vld [vmem:[#allocation5 + $0x6cc] ss:$16 sps:$4 sm:$0xff]   ;;  %v9562_v61 = vld [vmem:[#allocation2 + $0x50] sm:$0xff] }
 0x77b   :  { %10050 = vmatprep.subr.bf16.mxu0 %v20421_v58  ;;  %10268 = vmatprep.subr.bf16.mxu1 %v20424_v62 }
 0x77c   :  { %9300 = vmatprep.mubr.bf16.mxu0 %v24116_v4  ;;  %9518 = vmatprep.mubr.bf16.mxu1 %v24116_v4 }
 0x77e   :  { %10051 = vmatpush1.bf16.msra.mxu0 %v20419_v59  ;;  %10269 = vmatpush1.bf16.msra.mxu1 %v20422_v40 }
 0x77f   :  { %10052 = vmatprep.subr.bf16.mxu0 %v20427_v1  ;;  %10270 = vmatprep.subr.bf16.mxu1 %v20430_v47 }
 0x781   :  { %17402 = vmatmul.mubr.msk.bf16.gmra.mrb[204].mxu0 %vm105_vm0, %v24246_v51  ;;  %17410 = vmatmul.mubr.msk.bf16.gmra.mrb[216].mxu1 %vm105_vm0, %v24246_v51 }
 0x782   :  { %10053 = vmatpush1.bf16.msra.mxu0 %v20425_v45  ;;  %10271 = vmatpush1.bf16.msra.mxu1 %v20428_v44  ;;  %v9565_v44 = vld [vmem:[#allocation2 + $0x68] sm:$0xff] }
 0x783   :  { %10054 = vmatprep.subr.bf16.mxu0 %v20433_v38  ;;  %10272 = vmatprep.subr.bf16.mxu1 %v20436_v35  ;;  %v9571_v38 = vld [vmem:[#allocation2 + $0x98] sm:$0xff]  ;;  %v9574_v35 = vld [vmem:[#allocation2 + $0xb0] sm:$0xff] }
 0x784   :  { %9310 = vmatprep.mubr.bf16.mxu0 %v24116_v4  ;;  %9528 = vmatprep.mubr.bf16.mxu1 %v24116_v4 }
 0x786   :  { %10055 = vmatpush1.bf16.msra.mxu0 %v20431_v43  ;;  %10273 = vmatpush1.bf16.msra.mxu1 %v20434_v16  ;;  %v20494_v43 = vld [vmem:[#allocation5 + $0x6e8] ss:$16 sps:$4 sm:$0xff]   ;;  %v20499_v16 = vld [vmem:[#allocation5 + $0x704] ss:$16 sps:$4 sm:$0xff]  }
 0x787   :  { %10056 = vmatprep.subr.bf16.mxu0 %v20439_v52  ;;  %10274 = vmatprep.subr.bf16.mxu1 %v20442_v55  ;;  %v20502_v52 = vld [vmem:[#allocation5 + $0x70c] ss:$16 sps:$4 sm:$0xff]   ;;  %v20497_v55 = vld [vmem:[#allocation5 + $0x700] ss:$16 sps:$4 sm:$0xff]  }
 0x789   :  { %17403 = vmatmul.mubr.msk.bf16.gmra.mrb[208].mxu0 %vm105_vm0, %v24254_v13  ;;  %17411 = vmatmul.mubr.msk.bf16.gmra.mrb[220].mxu1 %vm105_vm0, %v24254_v13 }
 0x78a   :  { %10057 = vmatpush1.bf16.msra.mxu0 %v20437_v3  ;;  %10275 = vmatpush1.bf16.msra.mxu1 %v20440_v23  ;;  %v20500_v3 = vld [vmem:[#allocation5 + $0x708] ss:$16 sps:$4 sm:$0xff]   ;;  %v20505_v23 = vld [vmem:[#allocation5 + $0x724] ss:$16 sps:$4 sm:$0xff]  }
 0x78b   :  { %10058 = vmatprep.subr.bf16.mxu0 %v20445_v28  ;;  %10276 = vmatprep.subr.bf16.mxu1 %v20448_v12  ;;  %v20503_v28 = vld [vmem:[#allocation5 + $0x720] ss:$16 sps:$4 sm:$0xff]   ;;  %v20506_v12 = vld [vmem:[#allocation5 + $0x728] ss:$16 sps:$4 sm:$0xff]  }
 0x78c   :  { %9320 = vmatprep.mubr.bf16.mxu0 %v24116_v4  ;;  %9538 = vmatprep.mubr.bf16.mxu1 %v24116_v4 }
 0x78e   :  { %10059 = vmatpush1.bf16.msra.mxu0 %v20443_v42  ;;  %10277 = vmatpush1.bf16.msra.mxu1 %v20446_v60  ;;  %v20511_v42 = vld [vmem:[#allocation5 + $0x744] ss:$16 sps:$4 sm:$0xff]  }
 0x78f   :  { %10060 = vmatprep.subr.bf16.mxu0 %v20451_v9  ;;  %10278 = vmatprep.subr.bf16.mxu1 %v20454_v49  ;;  %v20514_v49 = vld [vmem:[#allocation5 + $0x74c] ss:$16 sps:$4 sm:$0xff]  }
 0x791   :  { %17404 = vmatmul.mubr.msk.bf16.gmra.mrb[212].mxu0 %vm105_vm0, %v24262_v10  ;;  %17412 = vmatmul.mubr.msk.bf16.gmra.mrb[224].mxu1 %vm105_vm0, %v24262_v10 }
 0x792   :  { %10061 = vmatpush1.bf16.msra.mxu0 %v20449_v25  ;;  %10279 = vmatpush1.bf16.msra.mxu1 %v20452_v56 }
 0x793   :  { %10062 = vmatprep.subr.bf16.mxu0 %v20457_v17  ;;  %10280 = vmatprep.subr.bf16.mxu1 %v20460_v8  ;;  %v24307_v17 = vld [vmem:[#allocation2] sm:$0xff] }
 0x794   :  { %9330 = vmatprep.mubr.bf16.mxu0 %v24116_v4  ;;  %9548 = vmatprep.mubr.bf16.mxu1 %v24116_v4 }
 0x796   :  { %10063 = vmatpush1.bf16.msra.mxu0 %v20455_v7  ;;  %10281 = vmatpush1.bf16.msra.mxu1 %v20458_v53  ;;  %v20509_v7 = vld [vmem:[#allocation5 + $0x740] ss:$16 sps:$4 sm:$0xff]  }
 0x797   :  { %10064 = vmatprep.subr.bf16.mxu0 %v20463_v19  ;;  %10282 = vmatprep.subr.bf16.mxu1 %v20466_v54  ;;  %v20512_v54 = vld [vmem:[#allocation5 + $0x748] ss:$16 sps:$4 sm:$0xff]  }
 0x799   :  { %17405 = vmatmul.mubr.msk.bf16.gmra.mrb[228].mxu0 %vm105_vm0, %v24270_v27  ;;  %17413 = vmatmul.mubr.msk.bf16.gmra.mrb[240].mxu1 %vm105_vm0, %v24270_v27 }
 0x79a   :  { %10065 = vmatpush1.bf16.msra.mxu0 %v20461_v57  ;;  %10068 = vmatprep.mubr.bf16.mxu0 %v9556_v26  ;;  %v20517_v57 = vld [vmem:[#allocation5 + $0x764] ss:$16 sps:$4 sm:$0xff]  }
 0x79b   :  { %10283 = vmatpush1.bf16.msra.mxu1 %v20464_v29  ;;  %10286 = vmatprep.mubr.bf16.mxu1 %v9556_v26  ;;  %v20520_v29 = vld [vmem:[#allocation5 + $0x76c] ss:$16 sps:$4 sm:$0xff]  }
 0x79c   :  { %10066 = vmatprep.subr.bf16.mxu0 %v20469_v0  ;;  %10284 = vmatprep.subr.bf16.mxu1 %v20472_v11  ;;  %v20518_v0 = vld [vmem:[#allocation5 + $0x768] ss:$16 sps:$4 sm:$0xff]   ;;  %v20523_v11 = vld [vmem:[#allocation5 + $0x784] ss:$16 sps:$4 sm:$0xff]   ;;  %v20526_v26 = vld [vmem:[#allocation5 + $0x78c] ss:$16 sps:$4 sm:$0xff]  }
 0x79e   :  { %10067 = vmatpush1.bf16.msra.mxu0 %v20467_v31  ;;  %v20521_v31 = vld [vmem:[#allocation5 + $0x780] ss:$16 sps:$4 sm:$0xff]  }
 0x79f   :  { %10285 = vmatpush1.bf16.msra.mxu1 %v20470_v63  ;;  %10145 = vmatprep.subr.bf16.mxu0 %v20475_v32  ;;  %v20524_v63 = vld [vmem:[#allocation5 + $0x788] ss:$16 sps:$4 sm:$0xff]   ;;  %v20529_v32 = vld [vmem:[#allocation5 + $0x7a4] ss:$16 sps:$4 sm:$0xff]  }
 0x7a0   :  { %10363 = vmatprep.subr.bf16.mxu1 %v20478_v21  ;;  %v20527_v21 = vld [vmem:[#allocation5 + $0x7a0] ss:$16 sps:$4 sm:$0xff]  }
 0x7a1   :  { %10069 = vmatmul.mubr.bf16.vlgmr.msra.gmra.mrb[188].mxu0 %v24176_v48 }
 0x7a2   :  { %10287 = vmatmul.mubr.bf16.vlgmr.msra.gmra.mrb[200].mxu1 %v24176_v48  ;;  %10078 = vmatprep.mubr.bf16.mxu0 %v9559_v34 }
 0x7a3   :  { %10146 = vmatpush1.bf16.msra.mxu0 %v20473_v22  ;;  %10296 = vmatprep.mubr.bf16.mxu1 %v9559_v34  ;;  %v20530_v22 = vld [vmem:[#allocation5 + $0x7a8] ss:$16 sps:$4 sm:$0xff]   ;;  %v20533_v34 = vld [vmem:[#allocation5 + $0x7c0] ss:$16 sps:$4 sm:$0xff]  }
 0x7a4   :  { %10364 = vmatpush1.bf16.msra.mxu1 %v20476_v33  ;;  %10147 = vmatprep.subr.bf16.mxu0 %v20481_v39  ;;  %v20535_v33 = vld [vmem:[#allocation5 + $0x7c4] ss:$16 sps:$4 sm:$0xff]   ;;  %v20538_v39 = vld [vmem:[#allocation5 + $0x7cc] ss:$16 sps:$4 sm:$0xff]  }
 0x7a5   :  { %10365 = vmatprep.subr.bf16.mxu1 %v20484_v5  ;;  %v20536_v5 = vld [vmem:[#allocation5 + $0x7c8] ss:$16 sps:$4 sm:$0xff]  }
 0x7a7   :  { %10148 = vmatpush1.bf16.msra.mxu0 %v20479_v50  ;;  %v20541_v50 = vld [vmem:[#allocation5 + $0x7e4] ss:$16 sps:$4 sm:$0xff]  }
 0x7a8   :  { %10366 = vmatpush1.bf16.msra.mxu1 %v20482_v30  ;;  %11009 = vmatprep.subr.bf16.mxu0 %v20487_v2  ;;  %v20539_v30 = vld [vmem:[#allocation5 + $0x7e0] ss:$16 sps:$4 sm:$0xff]   ;;  %v20542_v2 = vld [vmem:[#allocation5 + $0x7e8] ss:$16 sps:$4 sm:$0xff]  }
 0x7a9   :  { %10079 = vmatmul.mubr.bf16.gmra.mrb[192].mxu0 %v24182_v14  ;;  %11227 = vmatprep.subr.bf16.mxu1 %v20490_v6  ;;  %v20547_v6 = vld [vmem:[#allocation5 + $0x804] ss:$16 sps:$4 sm:$0xff]  }
 0x7aa   :  { %10297 = vmatmul.mubr.bf16.gmra.mrb[204].mxu1 %v24182_v14  ;;  %10088 = vmatprep.mubr.bf16.mxu0 %v9562_v61  ;;  %v9568_v14 = vld [vmem:[#allocation2 + $0x80] sm:$0xff] }
 0x7ab   :  { %10306 = vmatprep.mubr.bf16.mxu1 %v9562_v61  ;;  %v20550_v61 = vld [vmem:[#allocation5 + $0x80c] ss:$16 sps:$4 sm:$0xff]  }
 0x7ac   :  { %v8403_v48 = vpop.f32.mrb[216].mxu0  ;;  %v8621_v58 = vpop.f32.mrb[228].mxu1 }
 0x7ad   :  { %v8404_v62 = vpop.f32.mrb[217].mxu0  ;;  %v8622_v59 = vpop.f32.mrb[229].mxu1  ;;  %v20545_v48 = vld [vmem:[#allocation5 + $0x800] ss:$16 sps:$4 sm:$0xff]   ;;  %v20548_v58 = vld [vmem:[#allocation5 + $0x808] ss:$16 sps:$4 sm:$0xff]  }
 0x7ae   :  { %v8405_v40 = vpop.f32.mrb[218].mxu0  ;;  %v8623_v1 = vpop.f32.mrb[230].mxu1  ;;  %v20553_v62 = vld [vmem:[#allocation5 + $0x824] ss:$16 sps:$4 sm:$0xff]   ;;  %v20551_v59 = vld [vmem:[#allocation5 + $0x820] ss:$16 sps:$4 sm:$0xff]  }
 0x7af   :  { %v8406_v47 = vpop.f32.mrb[219].mxu0  ;;  %v8624_v45 = vpop.f32.mrb[231].mxu1  ;;  %v20554_v40 = vld [vmem:[#allocation5 + $0x828] ss:$16 sps:$4 sm:$0xff]   ;;  %v20559_v1 = vld [vmem:[#allocation5 + $0x844] ss:$16 sps:$4 sm:$0xff]  }
 0x7b0   :  { %v20562_v47 = vld [vmem:[#allocation5 + $0x84c] ss:$16 sps:$4 sm:$0xff]   ;;  %v20557_v45 = vld [vmem:[#allocation5 + $0x840] ss:$16 sps:$4 sm:$0xff]  }
 0x7b1   :  { %10089 = vmatmul.mubr.bf16.gmra.mrb[196].mxu0 %v24188_v41 }
 0x7b2   :  { %10307 = vmatmul.mubr.bf16.gmra.mrb[208].mxu1 %v24188_v41  ;;  %10098 = vmatprep.mubr.bf16.mxu0 %v9565_v44  ;;  %v20485_v41 = vld [vmem:[#allocation5 + $0x6c0] ss:$16 sps:$4 sm:$0xff]  }
 0x7b3   :  { %10316 = vmatprep.mubr.bf16.mxu1 %v9565_v44  ;;  %v20560_v44 = vld [vmem:[#allocation5 + $0x848] ss:$16 sps:$4 sm:$0xff]  }
 0x7b9   :  { %10099 = vmatmul.mubr.bf16.gmra.mrb[200].mxu0 %v24194_v20 }
 0x7ba   :  { %10317 = vmatmul.mubr.bf16.gmra.mrb[212].mxu1 %v24194_v20  ;;  %10108 = vmatprep.mubr.bf16.mxu0 %v9568_v14  ;;  %v20488_v20 = vld [vmem:[#allocation5 + $0x6c8] ss:$16 sps:$4 sm:$0xff]  }
 0x7bb   :  { %10326 = vmatprep.mubr.bf16.mxu1 %v9568_v14  ;;  %v20565_v14 = vld [vmem:[#allocation5 + $0x864] ss:$16 sps:$4 sm:$0xff]  }
 0x7c1   :  { %10109 = vmatmul.mubr.bf16.gmra.mrb[204].mxu0 %v24200_v37 }
 0x7c2   :  { %10327 = vmatmul.mubr.bf16.gmra.mrb[216].mxu1 %v24200_v37  ;;  %10118 = vmatprep.mubr.bf16.mxu0 %v9571_v38  ;;  %v20493_v37 = vld [vmem:[#allocation5 + $0x6e4] ss:$16 sps:$4 sm:$0xff]  }
 0x7c3   :  { %10336 = vmatprep.mubr.bf16.mxu1 %v9571_v38  ;;  %v20563_v38 = vld [vmem:[#allocation5 + $0x860] ss:$16 sps:$4 sm:$0xff]  }
 0x7c9   :  { %10119 = vmatmul.mubr.bf16.gmra.mrb[208].mxu0 %v24206_v18 }
 0x7ca   :  { %10337 = vmatmul.mubr.bf16.gmra.mrb[220].mxu1 %v24206_v18  ;;  %10128 = vmatprep.mubr.bf16.mxu0 %v9574_v35  ;;  %v20496_v18 = vld [vmem:[#allocation5 + $0x6ec] ss:$16 sps:$4 sm:$0xff]  }
 0x7cb   :  { %10346 = vmatprep.mubr.bf16.mxu1 %v9574_v35  ;;  %v20566_v35 = vld [vmem:[#allocation5 + $0x868] ss:$16 sps:$4 sm:$0xff]  }
 0x7d1   :  { %10129 = vmatmul.mubr.bf16.gmra.mrb[212].mxu0 %v24212_v46 }
 0x7d2   :  { %10347 = vmatmul.mubr.bf16.gmra.mrb[224].mxu1 %v24212_v46  ;;  %10138 = vmatprep.mubr.bf16.mxu0 %v24116_v4  ;;  %v20491_v46 = vld [vmem:[#allocation5 + $0x6e0] ss:$16 sps:$4 sm:$0xff]  }
 0x7d3   :  { %10356 = vmatprep.mubr.bf16.mxu1 %v24116_v4 }
 0x7d9   :  { %10139 = vmatmul.mubr.bf16.gmra.mrb[232].mxu0 %v24116_v4 }
 0x7da   :  { %10357 = vmatmul.mubr.bf16.gmra.mrb[244].mxu1 %v24116_v4  ;;  %10177 = vmatprep.mubr.bf16.mxu0 %v24116_v4 }
 0x7db   :  { %10395 = vmatprep.mubr.bf16.mxu1 %v24116_v4 }
 0x7e1   :  { %17486 = vmatmul.mubr.msk.bf16.vlgmr.msra.gmra.mrb[188].mxu0 %vm105_vm0, %v24222_v36 }
 0x7e2   :  { %17494 = vmatmul.mubr.msk.bf16.vlgmr.msra.gmra.mrb[200].mxu1 %vm105_vm0, %v24222_v36  ;;  %11010 = vmatpush1.bf16.msra.mxu0 %v20485_v41  ;;  %v20508_v36 = vld [vmem:[#allocation5 + $0x72c] ss:$16 sps:$4 sm:$0xff]   ;;  %v20571_v41 = vld [vmem:[#allocation5 + $0x884] ss:$16 sps:$4 sm:$0xff]  }
 0x7e3   :  { %11228 = vmatpush1.bf16.msra.mxu1 %v20488_v20  ;;  %11011 = vmatprep.subr.bf16.mxu0 %v20493_v37  ;;  %v20574_v20 = vld [vmem:[#allocation5 + $0x88c] ss:$16 sps:$4 sm:$0xff]   ;;  %v9578_v37 = vld [vmem:[#allocation2 + $0xd0] sm:$0xff] }
 0x7e4   :  { %11229 = vmatprep.subr.bf16.mxu1 %v20496_v18  ;;  %10187 = vmatprep.mubr.bf16.mxu0 %v24116_v4  ;;  %v20569_v18 = vld [vmem:[#allocation5 + $0x880] ss:$16 sps:$4 sm:$0xff]  }
 0x7e5   :  { %10405 = vmatprep.mubr.bf16.mxu1 %v24116_v4 }
 0x7e6   :  { %11012 = vmatpush1.bf16.msra.mxu0 %v20491_v46  ;;  %v20572_v46 = vld [vmem:[#allocation5 + $0x888] ss:$16 sps:$4 sm:$0xff]  }
 0x7e7   :  { %11230 = vmatpush1.bf16.msra.mxu1 %v20494_v43  ;;  %11013 = vmatprep.subr.bf16.mxu0 %v20499_v16  ;;  %v20580_v43 = vld [vmem:[#allocation5 + $0x8ac] ss:$16 sps:$4 sm:$0xff]   ;;  %v10529_v16 = vld [vmem:[#allocation2 + $0x110] sm:$0xff] }
 0x7e8   :  { %11231 = vmatprep.subr.bf16.mxu1 %v20502_v52  ;;  %v20575_v52 = vld [vmem:[#allocation5 + $0x8a0] ss:$16 sps:$4 sm:$0xff]  }
 0x7e9   :  { %17487 = vmatmul.mubr.msk.bf16.gmra.mrb[192].mxu0 %vm105_vm0, %v24230_v24 }
 0x7ea   :  { %17495 = vmatmul.mubr.msk.bf16.gmra.mrb[204].mxu1 %vm105_vm0, %v24230_v24  ;;  %11014 = vmatpush1.bf16.msra.mxu0 %v20497_v55  ;;  %v20578_v55 = vld [vmem:[#allocation5 + $0x8a8] ss:$16 sps:$4 sm:$0xff]  }
 0x7eb   :  { %11232 = vmatpush1.bf16.msra.mxu1 %v20500_v3  ;;  %11015 = vmatprep.subr.bf16.mxu0 %v20505_v23  ;;  %v20583_v3 = vld [vmem:[#allocation5 + $0x8c4] ss:$16 sps:$4 sm:$0xff]   ;;  %v20586_v23 = vld [vmem:[#allocation5 + $0x8cc] ss:$16 sps:$4 sm:$0xff]  }
 0x7ec   :  { %v8512_v60 = vpop.f32.mrb[220].mxu0  ;;  %v8730_v9 = vpop.f32.mrb[232].mxu1  ;;  %11233 = vmatprep.subr.bf16.mxu1 %v20508_v36  ;;  %10197 = vmatprep.mubr.bf16.mxu0 %v24116_v4  ;;  %v20515_v4 = vld [vmem:[#allocation5 + $0x760] ss:$16 sps:$4 sm:$0xff]  }
 0x7ed   :  { %v8513_v25 = vpop.f32.mrb[221].mxu0  ;;  %v8731_v56 = vpop.f32.mrb[233].mxu1  ;;  %10415 = vmatprep.mubr.bf16.mxu1 %v24307_v17  ;;  %v20581_v36 = vld [vmem:[#allocation5 + $0x8c0] ss:$16 sps:$4 sm:$0xff]   ;;  %v10532_v60 = vld [vmem:[#allocation2 + $0x128] sm:$0xff] }
 0x7ee   :  { %v8514_v8 = vpop.f32.mrb[222].mxu0  ;;  %v8732_v24 = vpop.f32.mrb[234].mxu1  ;;  %11016 = vmatpush1.bf16.msra.mxu0 %v20503_v28  ;;  %v10528_v28 = vld [vmem:[#allocation2 + $0x108] sm:$0xff]  ;;  %v20595_v56 = vld [vmem:[#allocation5 + $0x904] ss:$16 sps:$4 sm:$0xff]  }
 0x7ef   :  { %11234 = vmatpush1.bf16.msra.mxu1 %v20506_v12  ;;  %v8515_v53 = vpop.f32.mrb[223].mxu0  ;;  %v8733_v19 = vpop.f32.mrb[235].mxu1  ;;  %11017 = vmatprep.subr.bf16.mxu0 %v20511_v42  ;;  %v20584_v12 = vld [vmem:[#allocation5 + $0x8c8] ss:$16 sps:$4 sm:$0xff]   ;;  %v20589_v42 = vld [vmem:[#allocation5 + $0x8e4] ss:$16 sps:$4 sm:$0xff]  }
 0x7f0   :  { %11235 = vmatprep.subr.bf16.mxu1 %v20514_v49  ;;  %v20592_v9 = vld [vmem:[#allocation5 + $0x8ec] ss:$16 sps:$4 sm:$0xff]   ;;  %v20587_v49 = vld [vmem:[#allocation5 + $0x8e0] ss:$16 sps:$4 sm:$0xff]   ;;  %v20590_v25 = vld [vmem:[#allocation5 + $0x8e8] ss:$16 sps:$4 sm:$0xff]  }
 0x7f1   :  { %17488 = vmatmul.mubr.msk.bf16.gmra.mrb[196].mxu0 %vm105_vm0, %v24238_v15  ;;  %v20598_v8 = vld [vmem:[#allocation5 + $0x90c] ss:$16 sps:$4 sm:$0xff]   ;;  %v10531_v24 = vld [vmem:[#allocation2 + $0x120] sm:$0xff] }
 0x7f2   :  { %17496 = vmatmul.mubr.msk.bf16.gmra.mrb[208].mxu1 %vm105_vm0, %v24238_v15  ;;  %11018 = vmatpush1.bf16.msra.mxu0 %v20509_v7  ;;  %v20532_v15 = vld [vmem:[#allocation5 + $0x7ac] ss:$16 sps:$4 sm:$0xff]   ;;  %v10535_v7 = vld [vmem:[#allocation2 + $0x140] sm:$0xff] }
 0x7f3   :  { %11236 = vmatpush1.bf16.msra.mxu1 %v20512_v54  ;;  %11019 = vmatprep.subr.bf16.mxu0 %v20517_v57 }
 0x7f4   :  { %11237 = vmatprep.subr.bf16.mxu1 %v20520_v29  ;;  %10207 = vmatprep.mubr.bf16.mxu0 %v24307_v17 }
 0x7f5   :  { %10425 = vmatprep.mubr.bf16.mxu1 %v24307_v17 }
 0x7f6   :  { %11020 = vmatpush1.bf16.msra.mxu0 %v20515_v4 }
 0x7f7   :  { %11238 = vmatpush1.bf16.msra.mxu1 %v20518_v0  ;;  %11021 = vmatprep.subr.bf16.mxu0 %v20523_v11 }
 0x7f8   :  { %11239 = vmatprep.subr.bf16.mxu1 %v20526_v26  ;;  %v10534_v26 = vld [vmem:[#allocation2 + $0x138] sm:$0xff] }
 0x7f9   :  { %17489 = vmatmul.mubr.msk.bf16.gmra.mrb[200].mxu0 %vm105_vm0, %v24246_v51 }
 0x7fa   :  { %17497 = vmatmul.mubr.msk.bf16.gmra.mrb[212].mxu1 %vm105_vm0, %v24246_v51  ;;  %11022 = vmatpush1.bf16.msra.mxu0 %v20521_v31  ;;  %v20544_v51 = vld [vmem:[#allocation5 + $0x7ec] ss:$16 sps:$4 sm:$0xff]  }
 0x7fb   :  { %11240 = vmatpush1.bf16.msra.mxu1 %v20524_v63  ;;  %11023 = vmatprep.subr.bf16.mxu0 %v20529_v32  ;;  %v10538_v31 = vld [vmem:[#allocation2 + $0x158] sm:$0xff]  ;;  %v10537_v63 = vld [vmem:[#allocation2 + $0x150] sm:$0xff] }
 0x7fc   :  { %11241 = vmatprep.subr.bf16.mxu1 %v20532_v15  ;;  %10217 = vmatprep.mubr.bf16.mxu0 %v24307_v17  ;;  %v10541_v32 = vld [vmem:[#allocation2 + $0x170] sm:$0xff]  ;;  %v10540_v15 = vld [vmem:[#allocation2 + $0x168] sm:$0xff] }
 0x7fd   :  { %10435 = vmatprep.mubr.bf16.mxu1 %v24307_v17 }
 0x7fe   :  { %11024 = vmatpush1.bf16.msra.mxu0 %v20527_v21  ;;  %v10544_v21 = vld [vmem:[#allocation2 + $0x188] sm:$0xff] }
 0x7ff   :  { %11242 = vmatpush1.bf16.msra.mxu1 %v20530_v22  ;;  %11025 = vmatprep.subr.bf16.mxu0 %v20535_v33  ;;  %v10543_v22 = vld [vmem:[#allocation2 + $0x180] sm:$0xff] }
 0x800   :  { %11243 = vmatprep.subr.bf16.mxu1 %v20538_v39  ;;  %v10547_v33 = vld [vmem:[#allocation2 + $0x1a0] sm:$0xff]  ;;  %v10546_v39 = vld [vmem:[#allocation2 + $0x198] sm:$0xff] }
 0x801   :  { %17490 = vmatmul.mubr.msk.bf16.gmra.mrb[204].mxu0 %vm105_vm0, %v24254_v13 }
 0x802   :  { %17498 = vmatmul.mubr.msk.bf16.gmra.mrb[216].mxu1 %vm105_vm0, %v24254_v13  ;;  %11026 = vmatpush1.bf16.msra.mxu0 %v20533_v34  ;;  %v20556_v13 = vld [vmem:[#allocation5 + $0x82c] ss:$16 sps:$4 sm:$0xff]  }
 0x803   :  { %11244 = vmatpush1.bf16.msra.mxu1 %v20536_v5  ;;  %11027 = vmatprep.subr.bf16.mxu0 %v20541_v50  ;;  %v10530_v34 = vld [vmem:[#allocation2 + $0x118] sm:$0xff]  ;;  %v20593_v5 = vld [vmem:[#allocation5 + $0x900] ss:$16 sps:$4 sm:$0xff]  }
 0x804   :  { %11245 = vmatprep.subr.bf16.mxu1 %v20544_v51  ;;  %10227 = vmatprep.mubr.bf16.mxu0 %v24307_v17  ;;  %v20596_v50 = vld [vmem:[#allocation5 + $0x908] ss:$16 sps:$4 sm:$0xff]   ;;  %v20601_v51 = vld [vmem:[#allocation5 + $0x924] ss:$16 sps:$4 sm:$0xff]  }
 0x805   :  { %10445 = vmatprep.mubr.bf16.mxu1 %v24307_v17 }
 0x806   :  { %11028 = vmatpush1.bf16.msra.mxu0 %v20539_v30  ;;  %v20604_v30 = vld [vmem:[#allocation5 + $0x92c] ss:$16 sps:$4 sm:$0xff]  }
 0x807   :  { %11246 = vmatpush1.bf16.msra.mxu1 %v20542_v2  ;;  %11029 = vmatprep.subr.bf16.mxu0 %v20547_v6  ;;  %v20599_v2 = vld [vmem:[#allocation5 + $0x920] ss:$16 sps:$4 sm:$0xff]   ;;  %v20602_v6 = vld [vmem:[#allocation5 + $0x928] ss:$16 sps:$4 sm:$0xff]  }
 0x808   :  { %11247 = vmatprep.subr.bf16.mxu1 %v20550_v61  ;;  %v20607_v61 = vld [vmem:[#allocation5 + $0x944] ss:$16 sps:$4 sm:$0xff]  }
 0x809   :  { %17491 = vmatmul.mubr.msk.bf16.gmra.mrb[208].mxu0 %vm105_vm0, %v24262_v10 }
 0x80a   :  { %17499 = vmatmul.mubr.msk.bf16.gmra.mrb[220].mxu1 %vm105_vm0, %v24262_v10  ;;  %11030 = vmatpush1.bf16.msra.mxu0 %v20545_v48  ;;  %v20568_v10 = vld [vmem:[#allocation5 + $0x86c] ss:$16 sps:$4 sm:$0xff]  }
 0x80b   :  { %11248 = vmatpush1.bf16.msra.mxu1 %v20548_v58  ;;  %11031 = vmatprep.subr.bf16.mxu0 %v20553_v62  ;;  %v20610_v48 = vld [vmem:[#allocation5 + $0x94c] ss:$16 sps:$4 sm:$0xff]   ;;  %v10533_v58 = vld [vmem:[#allocation2 + $0x130] sm:$0xff] }
 0x80c   :  { %11249 = vmatprep.subr.bf16.mxu1 %v20556_v13  ;;  %10237 = vmatprep.mubr.bf16.mxu0 %v24307_v17  ;;  %v20605_v62 = vld [vmem:[#allocation5 + $0x940] ss:$16 sps:$4 sm:$0xff]   ;;  %v20608_v13 = vld [vmem:[#allocation5 + $0x948] ss:$16 sps:$4 sm:$0xff]  }
 0x80d   :  { %10455 = vmatprep.mubr.bf16.mxu1 %v24307_v17 }
 0x80e   :  { %11032 = vmatpush1.bf16.msra.mxu0 %v20551_v59  ;;  %v20613_v59 = vld [vmem:[#allocation5 + $0x964] ss:$16 sps:$4 sm:$0xff]  }
 0x80f   :  { %11250 = vmatpush1.bf16.msra.mxu1 %v20554_v40  ;;  %11033 = vmatprep.subr.bf16.mxu0 %v20559_v1  ;;  %v20616_v40 = vld [vmem:[#allocation5 + $0x96c] ss:$16 sps:$4 sm:$0xff]   ;;  %v20611_v1 = vld [vmem:[#allocation5 + $0x960] ss:$16 sps:$4 sm:$0xff]  }
 0x810   :  { %11251 = vmatprep.subr.bf16.mxu1 %v20562_v47  ;;  %v20614_v47 = vld [vmem:[#allocation5 + $0x968] ss:$16 sps:$4 sm:$0xff]  }
 0x811   :  { %17492 = vmatmul.mubr.msk.bf16.gmra.mrb[212].mxu0 %vm105_vm0, %v24270_v27 }
 0x812   :  { %17500 = vmatmul.mubr.msk.bf16.gmra.mrb[224].mxu1 %vm105_vm0, %v24270_v27  ;;  %11034 = vmatpush1.bf16.msra.mxu0 %v20557_v45  ;;  %v20577_v27 = vld [vmem:[#allocation5 + $0x8a4] ss:$16 sps:$4 sm:$0xff]  }
 0x813   :  { %11252 = vmatpush1.bf16.msra.mxu1 %v20560_v44  ;;  %11035 = vmatprep.subr.bf16.mxu0 %v20565_v14  ;;  %v20619_v45 = vld [vmem:[#allocation5 + $0x984] ss:$16 sps:$4 sm:$0xff]  }
 0x814   :  { %11253 = vmatprep.subr.bf16.mxu1 %v20568_v10  ;;  %10247 = vmatprep.mubr.bf16.mxu0 %v24307_v17  ;;  %v20622_v10 = vld [vmem:[#allocation5 + $0x98c] ss:$16 sps:$4 sm:$0xff]  }
 0x815   :  { %10465 = vmatprep.mubr.bf16.mxu1 %v24307_v17 }
 0x816   :  { %11036 = vmatpush1.bf16.msra.mxu0 %v20563_v38 }
 0x817   :  { %11254 = vmatpush1.bf16.msra.mxu1 %v20566_v35  ;;  %11037 = vmatprep.subr.bf16.mxu0 %v20571_v41 }
 0x818   :  { %11255 = vmatprep.subr.bf16.mxu1 %v20574_v20 }
 0x819   :  { %17493 = vmatmul.mubr.msk.bf16.gmra.mrb[236].mxu0 %vm105_vm0, %v9578_v37 }
 0x81a   :  { %17501 = vmatmul.mubr.msk.bf16.gmra.mrb[248].mxu1 %vm105_vm0, %v9578_v37  ;;  %11038 = vmatpush1.bf16.msra.mxu0 %v20569_v18  ;;  %v10536_v37 = vld [vmem:[#allocation2 + $0x148] sm:$0xff]  ;;  %v20617_v18 = vld [vmem:[#allocation5 + $0x980] ss:$16 sps:$4 sm:$0xff]  }
 0x81b   :  { %11041 = vmatprep.mubr.bf16.mxu0 %v10529_v16  ;;  %11256 = vmatpush1.bf16.msra.mxu1 %v20572_v46 }
 0x81c   :  { %11259 = vmatprep.mubr.bf16.mxu1 %v10529_v16  ;;  %11039 = vmatprep.subr.bf16.mxu0 %v20577_v27  ;;  %v20625_v16 = vld [vmem:[#allocation5 + $0x9a4] ss:$16 sps:$4 sm:$0xff]  }
 0x81d   :  { %11257 = vmatprep.subr.bf16.mxu1 %v20580_v43  ;;  %v20620_v43 = vld [vmem:[#allocation5 + $0x988] ss:$16 sps:$4 sm:$0xff]  }
 0x81e   :  { %11040 = vmatpush1.bf16.msra.mxu0 %v20575_v52  ;;  %v20628_v52 = vld [vmem:[#allocation5 + $0x9ac] ss:$16 sps:$4 sm:$0xff]  }
 0x81f   :  { %11258 = vmatpush1.bf16.msra.mxu1 %v20578_v55  ;;  %11118 = vmatprep.subr.bf16.mxu0 %v20583_v3  ;;  %v20623_v55 = vld [vmem:[#allocation5 + $0x9a0] ss:$16 sps:$4 sm:$0xff]   ;;  %v20626_v3 = vld [vmem:[#allocation5 + $0x9a8] ss:$16 sps:$4 sm:$0xff]  }
 0x820   :  { %11336 = vmatprep.subr.bf16.mxu1 %v20586_v23  ;;  %v20631_v23 = vld [vmem:[#allocation5 + $0x9c4] ss:$16 sps:$4 sm:$0xff]  }
 0x821   :  { %11042 = vmatmul.mubr.bf16.vlgmr.msra.gmra.mrb[188].mxu0 %v10528_v28 }
 0x822   :  { %11260 = vmatmul.mubr.bf16.vlgmr.msra.gmra.mrb[200].mxu1 %v10528_v28  ;;  %11051 = vmatprep.mubr.bf16.mxu0 %v10532_v60  ;;  %v10539_v28 = vld [vmem:[#allocation2 + $0x160] sm:$0xff] }
 0x823   :  { %11119 = vmatpush1.bf16.msra.mxu0 %v20581_v36  ;;  %11269 = vmatprep.mubr.bf16.mxu1 %v10532_v60  ;;  %v20634_v36 = vld [vmem:[#allocation5 + $0x9cc] ss:$16 sps:$4 sm:$0xff]   ;;  %v20637_v60 = vld [vmem:[#allocation5 + $0x9e4] ss:$16 sps:$4 sm:$0xff]  }
 0x824   :  { %11337 = vmatpush1.bf16.msra.mxu1 %v20584_v12  ;;  %11120 = vmatprep.subr.bf16.mxu0 %v20589_v42  ;;  %v20629_v12 = vld [vmem:[#allocation5 + $0x9c0] ss:$16 sps:$4 sm:$0xff]   ;;  %v20632_v42 = vld [vmem:[#allocation5 + $0x9c8] ss:$16 sps:$4 sm:$0xff]  }
 0x825   :  { %11338 = vmatprep.subr.bf16.mxu1 %v20592_v9  ;;  %v20640_v9 = vld [vmem:[#allocation5 + $0x9ec] ss:$16 sps:$4 sm:$0xff]  }
 0x827   :  { %11121 = vmatpush1.bf16.msra.mxu0 %v20587_v49  ;;  %v20635_v49 = vld [vmem:[#allocation5 + $0x9e0] ss:$16 sps:$4 sm:$0xff]  }
 0x828   :  { %11339 = vmatpush1.bf16.msra.mxu1 %v20590_v25  ;;  %11983 = vmatprep.subr.bf16.mxu0 %v20595_v56  ;;  %v20638_v25 = vld [vmem:[#allocation5 + $0x9e8] ss:$16 sps:$4 sm:$0xff]   ;;  %v20643_v56 = vld [vmem:[#allocation5 + $0xa04] ss:$16 sps:$4 sm:$0xff]  }
 0x829   :  { %11052 = vmatmul.mubr.bf16.gmra.mrb[192].mxu0 %v10531_v24  ;;  %12201 = vmatprep.subr.bf16.mxu1 %v20598_v8  ;;  %v20646_v8 = vld [vmem:[#allocation5 + $0xa0c] ss:$16 sps:$4 sm:$0xff]  }
 0x82a   :  { %11270 = vmatmul.mubr.bf16.gmra.mrb[204].mxu1 %v10531_v24  ;;  %11061 = vmatprep.mubr.bf16.mxu0 %v10535_v7  ;;  %v10542_v24 = vld [vmem:[#allocation2 + $0x178] sm:$0xff] }
 0x82b   :  { %11279 = vmatprep.mubr.bf16.mxu1 %v10535_v7  ;;  %v20641_v7 = vld [vmem:[#allocation5 + $0xa00] ss:$16 sps:$4 sm:$0xff]  }
 0x82c   :  { %v9223_v53 = vpop.f32.mrb[224].mxu0  ;;  %v9441_v19 = vpop.f32.mrb[236].mxu1 }
 0x82d   :  { %v9224_v54 = vpop.f32.mrb[225].mxu0  ;;  %v9442_v57 = vpop.f32.mrb[237].mxu1  ;;  %v20644_v53 = vld [vmem:[#allocation5 + $0xa08] ss:$16 sps:$4 sm:$0xff]   ;;  %v20649_v19 = vld [vmem:[#allocation5 + $0xa24] ss:$16 sps:$4 sm:$0xff]  }
 0x82e   :  { %v9225_v29 = vpop.f32.mrb[226].mxu0  ;;  %v9443_v4 = vpop.f32.mrb[238].mxu1  ;;  %v20652_v54 = vld [vmem:[#allocation5 + $0xa2c] ss:$16 sps:$4 sm:$0xff]   ;;  %v20647_v57 = vld [vmem:[#allocation5 + $0xa20] ss:$16 sps:$4 sm:$0xff]  }
 0x82f   :  { %v9226_v0 = vpop.f32.mrb[227].mxu0  ;;  %v9444_v11 = vpop.f32.mrb[239].mxu1  ;;  %v20650_v29 = vld [vmem:[#allocation5 + $0xa28] ss:$16 sps:$4 sm:$0xff]   ;;  %v20655_v4 = vld [vmem:[#allocation5 + $0xa44] ss:$16 sps:$4 sm:$0xff]  }
 0x830   :  { %v20658_v0 = vld [vmem:[#allocation5 + $0xa4c] ss:$16 sps:$4 sm:$0xff]   ;;  %v10545_v11 = vld [vmem:[#allocation2 + $0x190] sm:$0xff] }
 0x831   :  { %11062 = vmatmul.mubr.bf16.gmra.mrb[196].mxu0 %v10534_v26 }
 0x832   :  { %11280 = vmatmul.mubr.bf16.gmra.mrb[208].mxu1 %v10534_v26  ;;  %11071 = vmatprep.mubr.bf16.mxu0 %v10538_v31  ;;  %v20653_v26 = vld [vmem:[#allocation5 + $0xa40] ss:$16 sps:$4 sm:$0xff]  }
 0x833   :  { %11289 = vmatprep.mubr.bf16.mxu1 %v10538_v31  ;;  %v20656_v31 = vld [vmem:[#allocation5 + $0xa48] ss:$16 sps:$4 sm:$0xff]  }
 0x839   :  { %11072 = vmatmul.mubr.bf16.gmra.mrb[200].mxu0 %v10537_v63 }
 0x83a   :  { %11290 = vmatmul.mubr.bf16.gmra.mrb[212].mxu1 %v10537_v63  ;;  %11081 = vmatprep.mubr.bf16.mxu0 %v10541_v32  ;;  %v20661_v63 = vld [vmem:[#allocation5 + $0xa64] ss:$16 sps:$4 sm:$0xff]  }
 0x83b   :  { %11299 = vmatprep.mubr.bf16.mxu1 %v10541_v32  ;;  %v20664_v32 = vld [vmem:[#allocation5 + $0xa6c] ss:$16 sps:$4 sm:$0xff]  }
 0x841   :  { %11082 = vmatmul.mubr.bf16.gmra.mrb[204].mxu0 %v10540_v15 }
 0x842   :  { %11300 = vmatmul.mubr.bf16.gmra.mrb[216].mxu1 %v10540_v15  ;;  %11091 = vmatprep.mubr.bf16.mxu0 %v10544_v21  ;;  %v20659_v15 = vld [vmem:[#allocation5 + $0xa60] ss:$16 sps:$4 sm:$0xff]  }
 0x843   :  { %11309 = vmatprep.mubr.bf16.mxu1 %v10544_v21  ;;  %v20662_v21 = vld [vmem:[#allocation5 + $0xa68] ss:$16 sps:$4 sm:$0xff]  }
 0x849   :  { %11092 = vmatmul.mubr.bf16.gmra.mrb[208].mxu0 %v10543_v22 }
 0x84a   :  { %11310 = vmatmul.mubr.bf16.gmra.mrb[220].mxu1 %v10543_v22  ;;  %11101 = vmatprep.mubr.bf16.mxu0 %v10547_v33  ;;  %v20667_v22 = vld [vmem:[#allocation5 + $0xa84] ss:$16 sps:$4 sm:$0xff]  }
 0x84b   :  { %11319 = vmatprep.mubr.bf16.mxu1 %v10547_v33  ;;  %v20670_v33 = vld [vmem:[#allocation5 + $0xa8c] ss:$16 sps:$4 sm:$0xff]  }
 0x851   :  { %11102 = vmatmul.mubr.bf16.gmra.mrb[212].mxu0 %v10546_v39 }
 0x852   :  { %11320 = vmatmul.mubr.bf16.gmra.mrb[224].mxu1 %v10546_v39  ;;  %11111 = vmatprep.mubr.bf16.mxu0 %v24307_v17  ;;  %v10548_v39 = vld [vmem:[#allocation2 + $0x1a8] sm:$0xff] }
 0x853   :  { %11329 = vmatprep.mubr.bf16.mxu1 %v24307_v17 }
 0x859   :  { %11112 = vmatmul.mubr.bf16.gmra.mrb[240].mxu0 %v24307_v17 }
 0x85a   :  { %11330 = vmatmul.mubr.bf16.gmra.mrb[252].mxu1 %v24307_v17  ;;  %11150 = vmatprep.mubr.bf16.mxu0 %v24307_v17 }
 0x85b   :  { %11368 = vmatprep.mubr.bf16.mxu1 %v24307_v17 }
 0x861   :  { %17574 = vmatmul.mubr.msk.bf16.vlgmr.msra.gmra.mrb[188].mxu0 %vm105_vm0, %v10530_v34 }
 0x862   :  { %17582 = vmatmul.mubr.msk.bf16.vlgmr.msra.gmra.mrb[200].mxu1 %vm105_vm0, %v10530_v34  ;;  %11984 = vmatpush1.bf16.msra.mxu0 %v20593_v5  ;;  %v20665_v34 = vld [vmem:[#allocation5 + $0xa80] ss:$16 sps:$4 sm:$0xff]   ;;  %v20668_v5 = vld [vmem:[#allocation5 + $0xa88] ss:$16 sps:$4 sm:$0xff]  }
 0x863   :  { %12202 = vmatpush1.bf16.msra.mxu1 %v20596_v50  ;;  %11985 = vmatprep.subr.bf16.mxu0 %v20601_v51  ;;  %v20673_v50 = vld [vmem:[#allocation5 + $0xaa4] ss:$16 sps:$4 sm:$0xff]   ;;  %v20676_v51 = vld [vmem:[#allocation5 + $0xaac] ss:$16 sps:$4 sm:$0xff]  }
 0x864   :  { %12203 = vmatprep.subr.bf16.mxu1 %v20604_v30  ;;  %11160 = vmatprep.mubr.bf16.mxu0 %v24307_v17  ;;  %v20671_v30 = vld [vmem:[#allocation5 + $0xaa0] ss:$16 sps:$4 sm:$0xff]  }
 0x865   :  { %11378 = vmatprep.mubr.bf16.mxu1 %v24307_v17 }
 0x866   :  { %11986 = vmatpush1.bf16.msra.mxu0 %v20599_v2  ;;  %v20674_v2 = vld [vmem:[#allocation5 + $0xaa8] ss:$16 sps:$4 sm:$0xff]  }
 0x867   :  { %12204 = vmatpush1.bf16.msra.mxu1 %v20602_v6  ;;  %11987 = vmatprep.subr.bf16.mxu0 %v20607_v61  ;;  %v20679_v6 = vld [vmem:[#allocation5 + $0xac4] ss:$16 sps:$4 sm:$0xff]   ;;  %v20682_v61 = vld [vmem:[#allocation5 + $0xacc] ss:$16 sps:$4 sm:$0xff]  }
 0x868   :  { %12205 = vmatprep.subr.bf16.mxu1 %v20610_v48  ;;  %v10551_v48 = vld [vmem:[#allocation2 + $0x1c0] sm:$0xff] }
 0x869   :  { %17575 = vmatmul.mubr.msk.bf16.gmra.mrb[192].mxu0 %vm105_vm0, %v10533_v58 }
 0x86a   :  { %17583 = vmatmul.mubr.msk.bf16.gmra.mrb[204].mxu1 %vm105_vm0, %v10533_v58  ;;  %11988 = vmatpush1.bf16.msra.mxu0 %v20605_v62  ;;  %v20677_v58 = vld [vmem:[#allocation5 + $0xac0] ss:$16 sps:$4 sm:$0xff]   ;;  %v20680_v62 = vld [vmem:[#allocation5 + $0xac8] ss:$16 sps:$4 sm:$0xff]  }
 0x86b   :  { %12206 = vmatpush1.bf16.msra.mxu1 %v20608_v13  ;;  %11989 = vmatprep.subr.bf16.mxu0 %v20613_v59  ;;  %v20685_v13 = vld [vmem:[#allocation5 + $0xae4] ss:$16 sps:$4 sm:$0xff]   ;;  %v20688_v59 = vld [vmem:[#allocation5 + $0xaec] ss:$16 sps:$4 sm:$0xff]  }
 0x86c   :  { %v9332_v44 = vpop.f32.mrb[228].mxu0  ;;  %v9550_v14 = vpop.f32.mrb[240].mxu1  ;;  %12207 = vmatprep.subr.bf16.mxu1 %v20616_v40  ;;  %11170 = vmatprep.mubr.bf16.mxu0 %v24307_v17  ;;  %v11503_v40 = vld [vmem:[#allocation2 + $0x38] sm:$0xff] }
 0x86d   :  { %v9333_v38 = vpop.f32.mrb[229].mxu0  ;;  %v9551_v35 = vpop.f32.mrb[241].mxu1  ;;  %11388 = vmatprep.mubr.bf16.mxu1 %v24307_v17  ;;  %v20694_v44 = vld [vmem:[#allocation5 + $0xb0c] ss:$16 sps:$4 sm:$0xff]   ;;  %v20689_v14 = vld [vmem:[#allocation5 + $0xb00] ss:$16 sps:$4 sm:$0xff]  }
 0x86e   :  { %v9334_v41 = vpop.f32.mrb[230].mxu0  ;;  %v9552_v20 = vpop.f32.mrb[242].mxu1  ;;  %11990 = vmatpush1.bf16.msra.mxu0 %v20611_v1  ;;  %v20683_v1 = vld [vmem:[#allocation5 + $0xae0] ss:$16 sps:$4 sm:$0xff]   ;;  %v20692_v38 = vld [vmem:[#allocation5 + $0xb08] ss:$16 sps:$4 sm:$0xff]  }
 0x86f   :  { %12208 = vmatpush1.bf16.msra.mxu1 %v20614_v47  ;;  %v9335_v46 = vpop.f32.mrb[231].mxu0  ;;  %v9553_v27 = vpop.f32.mrb[243].mxu1  ;;  %11991 = vmatprep.subr.bf16.mxu0 %v20619_v45  ;;  %v20686_v47 = vld [vmem:[#allocation5 + $0xae8] ss:$16 sps:$4 sm:$0xff]   ;;  %v20691_v45 = vld [vmem:[#allocation5 + $0xb04] ss:$16 sps:$4 sm:$0xff]  }
 0x870   :  { %12209 = vmatprep.subr.bf16.mxu1 %v20622_v10  ;;  %v11502_v10 = vld [vmem:[#allocation2 + $0x30] sm:$0xff]  ;;  %v20700_v20 = vld [vmem:[#allocation5 + $0xb2c] ss:$16 sps:$4 sm:$0xff]  }
 0x871   :  { %17576 = vmatmul.mubr.msk.bf16.gmra.mrb[196].mxu0 %vm105_vm0, %v10536_v37  ;;  %v20697_v35 = vld [vmem:[#allocation5 + $0xb24] ss:$16 sps:$4 sm:$0xff]   ;;  %v11505_v46 = vld [vmem:[#allocation2 + $0x48] sm:$0xff] }
 0x872   :  { %17584 = vmatmul.mubr.msk.bf16.gmra.mrb[208].mxu1 %vm105_vm0, %v10536_v37  ;;  %11992 = vmatpush1.bf16.msra.mxu0 %v20617_v18  ;;  %v11506_v41 = vld [vmem:[#allocation2 + $0x50] sm:$0xff]  ;;  %v20698_v18 = vld [vmem:[#allocation5 + $0xb28] ss:$16 sps:$4 sm:$0xff]  }
 0x873   :  { %12210 = vmatpush1.bf16.msra.mxu1 %v20620_v43  ;;  %11993 = vmatprep.subr.bf16.mxu0 %v20625_v16  ;;  %v20695_v37 = vld [vmem:[#allocation5 + $0xb20] ss:$16 sps:$4 sm:$0xff]   ;;  %v20940_v27 = vld [vmem:[#allocation5 + $0x244] ss:$16 sps:$4 sm:$0xff]   ;;  %v11509_v43 = vld [vmem:[#allocation2 + $0x68] sm:$0xff] }
 0x874   :  { %12211 = vmatprep.subr.bf16.mxu1 %v20628_v52  ;;  %11180 = vmatprep.mubr.bf16.mxu0 %v24307_v17  ;;  %v20941_v16 = vld [vmem:[#allocation5 + $0x24c] ss:$16 sps:$4 sm:$0xff]  }
 0x875   :  { %11398 = vmatprep.mubr.bf16.mxu1 %v24307_v17 }
 0x876   :  { %11994 = vmatpush1.bf16.msra.mxu0 %v20623_v55 }
 0x877   :  { %12212 = vmatpush1.bf16.msra.mxu1 %v20626_v3  ;;  %11995 = vmatprep.subr.bf16.mxu0 %v20631_v23 }
 0x878   :  { %12213 = vmatprep.subr.bf16.mxu1 %v20634_v36 }
 0x879   :  { %17577 = vmatmul.mubr.msk.bf16.gmra.mrb[200].mxu0 %vm105_vm0, %v10539_v28 }
 0x87a   :  { %17585 = vmatmul.mubr.msk.bf16.gmra.mrb[212].mxu1 %vm105_vm0, %v10539_v28  ;;  %11996 = vmatpush1.bf16.msra.mxu0 %v20629_v12 }
 0x87b   :  { %12214 = vmatpush1.bf16.msra.mxu1 %v20632_v42  ;;  %11997 = vmatprep.subr.bf16.mxu0 %v20637_v60  ;;  %v11508_v60 = vld [vmem:[#allocation2 + $0x60] sm:$0xff] }
 0x87c   :  { %12215 = vmatprep.subr.bf16.mxu1 %v20640_v9  ;;  %11190 = vmatprep.mubr.bf16.mxu0 %v24307_v17  ;;  %v11512_v9 = vld [vmem:[#allocation2 + $0x80] sm:$0xff] }
 0x87d   :  { %11408 = vmatprep.mubr.bf16.mxu1 %v24307_v17 }
 0x87e   :  { %11998 = vmatpush1.bf16.msra.mxu0 %v20635_v49  ;;  %v11511_v49 = vld [vmem:[#allocation2 + $0x78] sm:$0xff] }
 0x87f   :  { %12216 = vmatpush1.bf16.msra.mxu1 %v20638_v25  ;;  %11999 = vmatprep.subr.bf16.mxu0 %v20643_v56  ;;  %v11515_v25 = vld [vmem:[#allocation2 + $0x98] sm:$0xff]  ;;  %v11514_v56 = vld [vmem:[#allocation2 + $0x90] sm:$0xff] }
 0x880   :  { %12217 = vmatprep.subr.bf16.mxu1 %v20646_v8  ;;  %v11518_v8 = vld [vmem:[#allocation2 + $0xb0] sm:$0xff] }
 0x881   :  { %17578 = vmatmul.mubr.msk.bf16.gmra.mrb[204].mxu0 %vm105_vm0, %v10542_v24 }
 0x882   :  { %17586 = vmatmul.mubr.msk.bf16.gmra.mrb[216].mxu1 %vm105_vm0, %v10542_v24  ;;  %12000 = vmatpush1.bf16.msra.mxu0 %v20641_v7  ;;  %v11517_v24 = vld [vmem:[#allocation2 + $0xa8] sm:$0xff]  ;;  %v11504_v7 = vld [vmem:[#allocation2 + $0x40] sm:$0xff] }
 0x883   :  { %12218 = vmatpush1.bf16.msra.mxu1 %v20644_v53  ;;  %12001 = vmatprep.subr.bf16.mxu0 %v20649_v19  ;;  %v20942_v53 = vld [vmem:[#allocation5 + $0x240] ss:$16 sps:$4 sm:$0xff]   ;;  %v20943_v19 = vld [vmem:[#allocation5 + $0x248] ss:$16 sps:$4 sm:$0xff]  }
 0x884   :  { %12219 = vmatprep.subr.bf16.mxu1 %v20652_v54  ;;  %11200 = vmatprep.mubr.bf16.mxu0 %v24307_v17  ;;  %v20944_v54 = vld [vmem:[#allocation5 + $0x264] ss:$16 sps:$4 sm:$0xff]  }
 0x885   :  { %11418 = vmatprep.mubr.bf16.mxu1 %v24307_v17 }
 0x886   :  { %12002 = vmatpush1.bf16.msra.mxu0 %v20647_v57  ;;  %v20945_v57 = vld [vmem:[#allocation5 + $0x26c] ss:$16 sps:$4 sm:$0xff]  }
 0x887   :  { %12220 = vmatpush1.bf16.msra.mxu1 %v20650_v29  ;;  %12003 = vmatprep.subr.bf16.mxu0 %v20655_v4  ;;  %v20946_v29 = vld [vmem:[#allocation5 + $0x260] ss:$16 sps:$4 sm:$0xff]   ;;  %v11507_v4 = vld [vmem:[#allocation2 + $0x58] sm:$0xff] }
 0x888   :  { %12221 = vmatprep.subr.bf16.mxu1 %v20658_v0  ;;  %v20947_v0 = vld [vmem:[#allocation5 + $0x268] ss:$16 sps:$4 sm:$0xff]  }
 0x889   :  { %17579 = vmatmul.mubr.msk.bf16.gmra.mrb[208].mxu0 %vm105_vm0, %v10545_v11 }
 0x88a   :  { %17587 = vmatmul.mubr.msk.bf16.gmra.mrb[220].mxu1 %vm105_vm0, %v10545_v11  ;;  %12004 = vmatpush1.bf16.msra.mxu0 %v20653_v26  ;;  %v20948_v11 = vld [vmem:[#allocation5 + $0x284] ss:$16 sps:$4 sm:$0xff]   ;;  %v20949_v26 = vld [vmem:[#allocation5 + $0x28c] ss:$16 sps:$4 sm:$0xff]  }
 0x88b   :  { %12222 = vmatpush1.bf16.msra.mxu1 %v20656_v31  ;;  %12005 = vmatprep.subr.bf16.mxu0 %v20661_v63  ;;  %v20950_v31 = vld [vmem:[#allocation5 + $0x280] ss:$16 sps:$4 sm:$0xff]   ;;  %v20951_v63 = vld [vmem:[#allocation5 + $0x288] ss:$16 sps:$4 sm:$0xff]  }
 0x88c   :  { %12223 = vmatprep.subr.bf16.mxu1 %v20664_v32  ;;  %11210 = vmatprep.mubr.bf16.mxu0 %v24307_v17  ;;  %v20952_v32 = vld [vmem:[#allocation5 + $0x2a4] ss:$16 sps:$4 sm:$0xff]  }
 0x88d   :  { %11428 = vmatprep.mubr.bf16.mxu1 %v24307_v17 }
 0x88e   :  { %12006 = vmatpush1.bf16.msra.mxu0 %v20659_v15 }
 0x88f   :  { %12224 = vmatpush1.bf16.msra.mxu1 %v20662_v21  ;;  %12007 = vmatprep.subr.bf16.mxu0 %v20667_v22  ;;  %v20953_v21 = vld [vmem:[#allocation5 + $0x2ac] ss:$16 sps:$4 sm:$0xff]  }
 0x890   :  { %12225 = vmatprep.subr.bf16.mxu1 %v20670_v33 }
 0x891   :  { %17580 = vmatmul.mubr.msk.bf16.gmra.mrb[212].mxu0 %vm105_vm0, %v10548_v39 }
 0x892   :  { %17588 = vmatmul.mubr.msk.bf16.gmra.mrb[224].mxu1 %vm105_vm0, %v10548_v39  ;;  %12008 = vmatpush1.bf16.msra.mxu0 %v20665_v34 }
 0x893   :  { %12226 = vmatpush1.bf16.msra.mxu1 %v20668_v5  ;;  %12009 = vmatprep.subr.bf16.mxu0 %v20673_v50  ;;  %v20954_v5 = vld [vmem:[#allocation5 + $0x2a0] ss:$16 sps:$4 sm:$0xff]  }
 0x894   :  { %12227 = vmatprep.subr.bf16.mxu1 %v20676_v51  ;;  %11220 = vmatprep.mubr.bf16.mxu0 %v24307_v17  ;;  %v11510_v50 = vld [vmem:[#allocation2 + $0x70] sm:$0xff] }
 0x895   :  { %11438 = vmatprep.mubr.bf16.mxu1 %v24307_v17 }
 0x896   :  { %12010 = vmatpush1.bf16.msra.mxu0 %v20671_v30  ;;  %v20955_v30 = vld [vmem:[#allocation5 + $0x2a8] ss:$16 sps:$4 sm:$0xff]  }
 0x897   :  { %12228 = vmatpush1.bf16.msra.mxu1 %v20674_v2  ;;  %12011 = vmatprep.subr.bf16.mxu0 %v20679_v6  ;;  %v20956_v6 = vld [vmem:[#allocation5 + $0x2c4] ss:$16 sps:$4 sm:$0xff]  }
 0x898   :  { %12229 = vmatprep.subr.bf16.mxu1 %v20682_v61 }
 0x899   :  { %17581 = vmatmul.mubr.msk.bf16.gmra.mrb[244].mxu0 %vm105_vm0, %v10551_v48 }
 0x89a   :  { %17589 = vmatmul.mubr.msk.bf16.gmra.mrb[4].mxu1 %vm105_vm0, %v10551_v48  ;;  %12012 = vmatpush1.bf16.msra.mxu0 %v20677_v58  ;;  %v20957_v48 = vld [vmem:[#allocation5 + $0x2cc] ss:$16 sps:$4 sm:$0xff]   ;;  %v20958_v58 = vld [vmem:[#allocation5 + $0x2c0] ss:$16 sps:$4 sm:$0xff]  }
 0x89b   :  { %12015 = vmatprep.mubr.bf16.mxu0 %v11503_v40  ;;  %12230 = vmatpush1.bf16.msra.mxu1 %v20680_v62  ;;  %v20959_v62 = vld [vmem:[#allocation5 + $0x2c8] ss:$16 sps:$4 sm:$0xff]  }
 0x89c   :  { %12233 = vmatprep.mubr.bf16.mxu1 %v11503_v40  ;;  %12013 = vmatprep.subr.bf16.mxu0 %v20685_v13  ;;  %v20960_v13 = vld [vmem:[#allocation5 + $0x2e4] ss:$16 sps:$4 sm:$0xff]   ;;  %v20962_v40 = vld [vmem:[#allocation5 + $0x2e0] ss:$16 sps:$4 sm:$0xff]  }
 0x89d   :  { %12231 = vmatprep.subr.bf16.mxu1 %v20688_v59  ;;  %v20961_v59 = vld [vmem:[#allocation5 + $0x2ec] ss:$16 sps:$4 sm:$0xff]  }
 0x89e   :  { %12014 = vmatpush1.bf16.msra.mxu0 %v20683_v1  ;;  %v11513_v1 = vld [vmem:[#allocation2 + $0x88] sm:$0xff] }
 0x89f   :  { %12232 = vmatpush1.bf16.msra.mxu1 %v20686_v47  ;;  %12092 = vmatprep.subr.bf16.mxu0 %v20691_v45  ;;  %v20963_v47 = vld [vmem:[#allocation5 + $0x2e8] ss:$16 sps:$4 sm:$0xff]   ;;  %v20964_v45 = vld [vmem:[#allocation5 + $0x304] ss:$16 sps:$4 sm:$0xff]  }
 0x8a0   :  { %12310 = vmatprep.subr.bf16.mxu1 %v20694_v44  ;;  %v20965_v44 = vld [vmem:[#allocation5 + $0x30c] ss:$16 sps:$4 sm:$0xff]  }
 0x8a1   :  { %12016 = vmatmul.mubr.bf16.vlgmr.msra.gmra.mrb[188].mxu0 %v11502_v10 }
 0x8a2   :  { %12234 = vmatmul.mubr.bf16.vlgmr.msra.gmra.mrb[200].mxu1 %v11502_v10  ;;  %12025 = vmatprep.mubr.bf16.mxu0 %v11506_v41  ;;  %v20967_v10 = vld [vmem:[#allocation5 + $0x308] ss:$16 sps:$4 sm:$0xff]  }
 0x8a3   :  { %12093 = vmatpush1.bf16.msra.mxu0 %v20689_v14  ;;  %12243 = vmatprep.mubr.bf16.mxu1 %v11506_v41  ;;  %v20966_v14 = vld [vmem:[#allocation5 + $0x300] ss:$16 sps:$4 sm:$0xff]  }
 0x8a4   :  { %12311 = vmatpush1.bf16.msra.mxu1 %v20692_v38  ;;  %12094 = vmatprep.subr.bf16.mxu0 %v20697_v35  ;;  %v20968_v38 = vld [vmem:[#allocation5 + $0x324] ss:$16 sps:$4 sm:$0xff]   ;;  %v20969_v35 = vld [vmem:[#allocation5 + $0x32c] ss:$16 sps:$4 sm:$0xff]   ;;  %v20970_v41 = vld [vmem:[#allocation5 + $0x320] ss:$16 sps:$4 sm:$0xff]  }
 0x8a5   :  { %12312 = vmatprep.subr.bf16.mxu1 %v20700_v20  ;;  %v11516_v20 = vld [vmem:[#allocation2 + $0xa0] sm:$0xff] }
 0x8a7   :  { %12095 = vmatpush1.bf16.msra.mxu0 %v20695_v37  ;;  %v20971_v37 = vld [vmem:[#allocation5 + $0x328] ss:$16 sps:$4 sm:$0xff]  }
 0x8a8   :  { %12313 = vmatpush1.bf16.msra.mxu1 %v20698_v18  ;;  %12713 = vmatprep.subr.bf16.mxu0 %v20940_v27  ;;  %v20972_v18 = vld [vmem:[#allocation5 + $0x344] ss:$16 sps:$4 sm:$0xff]   ;;  %v20974_v27 = vld [vmem:[#allocation5 + $0x340] ss:$16 sps:$4 sm:$0xff]  }
 0x8a9   :  { %12026 = vmatmul.mubr.bf16.gmra.mrb[192].mxu0 %v11505_v46  ;;  %12931 = vmatprep.subr.bf16.mxu1 %v20941_v16  ;;  %v20976_v16 = vld [vmem:[#allocation5 + $0x364] ss:$16 sps:$4 sm:$0xff]  }
 0x8aa   :  { %12244 = vmatmul.mubr.bf16.gmra.mrb[204].mxu1 %v11505_v46  ;;  %12035 = vmatprep.mubr.bf16.mxu0 %v11509_v43  ;;  %v20973_v46 = vld [vmem:[#allocation5 + $0x34c] ss:$16 sps:$4 sm:$0xff]  }
 0x8ab   :  { %12253 = vmatprep.mubr.bf16.mxu1 %v11509_v43  ;;  %v20975_v43 = vld [vmem:[#allocation5 + $0x348] ss:$16 sps:$4 sm:$0xff]  }
 0x8ac   :  { %v10140_v52 = vpop.f32.mrb[232].mxu0 }
 0x8ad   :  { %v10358_v55 = vpop.f32.mrb[244].mxu1  ;;  %v10141_v3 = vpop.f32.mrb[233].mxu0  ;;  %v20977_v52 = vld [vmem:[#allocation5 + $0x36c] ss:$16 sps:$4 sm:$0xff]  }
 0x8ae   :  { %v10359_v23 = vpop.f32.mrb[245].mxu1  ;;  %v10142_v36 = vpop.f32.mrb[234].mxu0  ;;  %v20978_v55 = vld [vmem:[#allocation5 + $0x360] ss:$16 sps:$4 sm:$0xff]   ;;  %v11519_v3 = vld [vmem:[#allocation2 + $0xb8] sm:$0xff] }
 0x8af   :  { %v10360_v28 = vpop.f32.mrb[246].mxu1  ;;  %v10143_v12 = vpop.f32.mrb[235].mxu0  ;;  %v20979_v23 = vld [vmem:[#allocation5 + $0x368] ss:$16 sps:$4 sm:$0xff]   ;;  %v20980_v36 = vld [vmem:[#allocation5 + $0x384] ss:$16 sps:$4 sm:$0xff]  }
 0x8b0   :  { %v10361_v42 = vpop.f32.mrb[247].mxu1  ;;  %v20981_v28 = vld [vmem:[#allocation5 + $0x38c] ss:$16 sps:$4 sm:$0xff]   ;;  %v20982_v12 = vld [vmem:[#allocation5 + $0x380] ss:$16 sps:$4 sm:$0xff]  }
 0x8b1   :  { %12036 = vmatmul.mubr.bf16.gmra.mrb[196].mxu0 %v11508_v60  ;;  %v20983_v42 = vld [vmem:[#allocation5 + $0x388] ss:$16 sps:$4 sm:$0xff]  }
 0x8b2   :  { %12254 = vmatmul.mubr.bf16.gmra.mrb[208].mxu1 %v11508_v60  ;;  %12045 = vmatprep.mubr.bf16.mxu0 %v11512_v9  ;;  %v20984_v60 = vld [vmem:[#allocation5 + $0x3a4] ss:$16 sps:$4 sm:$0xff]  }
 0x8b3   :  { %12263 = vmatprep.mubr.bf16.mxu1 %v11512_v9  ;;  %v24410_v9 = vld [vmem:[#allocation2] sm:$0xff] }
 0x8b9   :  { %12046 = vmatmul.mubr.bf16.gmra.mrb[200].mxu0 %v11511_v49 }
 0x8ba   :  { %12264 = vmatmul.mubr.bf16.gmra.mrb[212].mxu1 %v11511_v49  ;;  %12055 = vmatprep.mubr.bf16.mxu0 %v11515_v25  ;;  %v20987_v49 = vld [vmem:[#allocation5 + $0x3a0] ss:$16 sps:$4 sm:$0xff]  }
 0x8bb   :  { %12273 = vmatprep.mubr.bf16.mxu1 %v11515_v25  ;;  %v11522_v25 = vld [vmem:[#allocation2 + $0xd0] sm:$0xff] }
 0x8c1   :  { %12056 = vmatmul.mubr.bf16.gmra.mrb[204].mxu0 %v11514_v56 }
 0x8c2   :  { %12274 = vmatmul.mubr.bf16.gmra.mrb[216].mxu1 %v11514_v56  ;;  %12065 = vmatprep.mubr.bf16.mxu0 %v11518_v8  ;;  %v20988_v56 = vld [vmem:[#allocation5 + $0x3a8] ss:$16 sps:$4 sm:$0xff]  }
 0x8c3   :  { %12283 = vmatprep.mubr.bf16.mxu1 %v11518_v8  ;;  %v20989_v8 = vld [vmem:[#allocation5 + $0x3c4] ss:$16 sps:$4 sm:$0xff]  }
 0x8c9   :  { %12066 = vmatmul.mubr.bf16.gmra.mrb[208].mxu0 %v11517_v24 }
 0x8ca   :  { %12284 = vmatmul.mubr.bf16.gmra.mrb[220].mxu1 %v11517_v24  ;;  %12075 = vmatprep.mubr.bf16.mxu0 %v24307_v17  ;;  %v20990_v24 = vld [vmem:[#allocation5 + $0x3cc] ss:$16 sps:$4 sm:$0xff]  }
 0x8cb   :  { %12293 = vmatprep.mubr.bf16.mxu1 %v24307_v17 }
 0x8d1   :  { %12076 = vmatmul.mubr.bf16.gmra.mrb[212].mxu0 %v24307_v17 }
 0x8d2   :  { %12294 = vmatmul.mubr.bf16.gmra.mrb[224].mxu1 %v24307_v17  ;;  %12085 = vmatprep.mubr.bf16.mxu0 %v24307_v17 }
 0x8d3   :  { %12303 = vmatprep.mubr.bf16.mxu1 %v24307_v17 }
 0x8d9   :  { %12086 = vmatmul.mubr.bf16.gmra.mrb[248].mxu0 %v24307_v17 }
 0x8da   :  { %12304 = vmatmul.mubr.bf16.gmra.mrb[36].mxu1 %v24307_v17  ;;  %12124 = vmatprep.mubr.bf16.mxu0 %v24307_v17 }
 0x8db   :  { %12342 = vmatprep.mubr.bf16.mxu1 %v24307_v17 }
 0x8e1   :  { %17662 = vmatmul.mubr.msk.bf16.vlgmr.msra.gmra.mrb[188].mxu0 %vm105_vm0, %v11504_v7 }
 0x8e2   :  { %17670 = vmatmul.mubr.msk.bf16.vlgmr.msra.gmra.mrb[200].mxu1 %vm105_vm0, %v11504_v7  ;;  %12714 = vmatpush1.bf16.msra.mxu0 %v20942_v53  ;;  %v20991_v7 = vld [vmem:[#allocation5 + $0x3c0] ss:$16 sps:$4 sm:$0xff]   ;;  %v20992_v53 = vld [vmem:[#allocation5 + $0x3c8] ss:$16 sps:$4 sm:$0xff]  }
 0x8e3   :  { %12932 = vmatpush1.bf16.msra.mxu1 %v20943_v19  ;;  %12715 = vmatprep.subr.bf16.mxu0 %v20944_v54  ;;  %v20993_v19 = vld [vmem:[#allocation5 + $0x3e4] ss:$16 sps:$4 sm:$0xff]   ;;  %v20994_v54 = vld [vmem:[#allocation5 + $0x3ec] ss:$16 sps:$4 sm:$0xff]  }
 0x8e4   :  { %12933 = vmatprep.subr.bf16.mxu1 %v20945_v57  ;;  %12134 = vmatprep.mubr.bf16.mxu0 %v24307_v17  ;;  %v20995_v57 = vld [vmem:[#allocation5 + $0x3e0] ss:$16 sps:$4 sm:$0xff]  }
 0x8e5   :  { %12352 = vmatprep.mubr.bf16.mxu1 %v24307_v17 }
 0x8e6   :  { %12716 = vmatpush1.bf16.msra.mxu0 %v20946_v29  ;;  %v11525_v29 = vld [vmem:[#allocation2 + $0xe8] sm:$0xff] }
 0x8e7   :  { %12934 = vmatpush1.bf16.msra.mxu1 %v20947_v0  ;;  %12717 = vmatprep.subr.bf16.mxu0 %v20948_v11  ;;  %v20997_v0 = vld [vmem:[#allocation5 + $0x404] ss:$16 sps:$4 sm:$0xff]   ;;  %v20998_v11 = vld [vmem:[#allocation5 + $0x40c] ss:$16 sps:$4 sm:$0xff]  }
 0x8e8   :  { %12935 = vmatprep.subr.bf16.mxu1 %v20949_v26  ;;  %v20999_v26 = vld [vmem:[#allocation5 + $0x400] ss:$16 sps:$4 sm:$0xff]  }
 0x8e9   :  { %17663 = vmatmul.mubr.msk.bf16.gmra.mrb[192].mxu0 %vm105_vm0, %v11507_v4 }
 0x8ea   :  { %17671 = vmatmul.mubr.msk.bf16.gmra.mrb[204].mxu1 %vm105_vm0, %v11507_v4  ;;  %12718 = vmatpush1.bf16.msra.mxu0 %v20950_v31  ;;  %v20996_v4 = vld [vmem:[#allocation5 + $0x3e8] ss:$16 sps:$4 sm:$0xff]   ;;  %v21000_v31 = vld [vmem:[#allocation2 + $0x20] sm:$0xff] }
 0x8eb   :  { %12936 = vmatpush1.bf16.msra.mxu1 %v20951_v63  ;;  %12719 = vmatprep.subr.bf16.mxu0 %v20952_v32  ;;  %v21001_v63 = vld [vmem:[#allocation5 + $0x408] ss:$16 sps:$4 sm:$0xff]   ;;  %v21002_v32 = vld [vmem:[#allocation5 + $0x424] ss:$16 sps:$4 sm:$0xff]  }
 0x8ec   :  { %v10249_v15 = vpop.f32.mrb[236].mxu0  ;;  %12937 = vmatprep.subr.bf16.mxu1 %v20953_v21  ;;  %12144 = vmatprep.mubr.bf16.mxu0 %v24307_v17  ;;  %v21004_v21 = vld [vmem:[#allocation5 + $0x420] ss:$16 sps:$4 sm:$0xff]  }
 0x8ed   :  { %v10467_v22 = vpop.f32.mrb[248].mxu1  ;;  %v10250_v33 = vpop.f32.mrb[237].mxu0  ;;  %12362 = vmatprep.mubr.bf16.mxu1 %v24307_v17  ;;  %v21003_v15 = vld [vmem:[#allocation5 + $0x42c] ss:$16 sps:$4 sm:$0xff]  }
 0x8ee   :  { %v10468_v39 = vpop.f32.mrb[249].mxu1  ;;  %v10251_v34 = vpop.f32.mrb[238].mxu0  ;;  %12720 = vmatpush1.bf16.msra.mxu0 %v20954_v5  ;;  %v21005_v22 = vld [vmem:[#allocation5 + $0x428] ss:$16 sps:$4 sm:$0xff]   ;;  %v21006_v33 = vld [vmem:[#allocation5 + $0x444] ss:$16 sps:$4 sm:$0xff]  }
 0x8ef   :  { %v10469_v51 = vpop.f32.mrb[250].mxu1  ;;  %12938 = vmatpush1.bf16.msra.mxu1 %v20955_v30  ;;  %v10252_v2 = vpop.f32.mrb[239].mxu0  ;;  %12721 = vmatprep.subr.bf16.mxu0 %v20956_v6  ;;  %v21007_v39 = vld [vmem:[#allocation5 + $0x44c] ss:$16 sps:$4 sm:$0xff]   ;;  %v21012_v30 = vld [vmem:[#allocation5 + $0x464] ss:$16 sps:$4 sm:$0xff]  }
 0x8f0   :  { %v10470_v61 = vpop.f32.mrb[251].mxu1  ;;  %12939 = vmatprep.subr.bf16.mxu1 %v20957_v48  ;;  %v21008_v34 = vld [vmem:[#allocation2 + $0x18] sm:$0xff]  ;;  %v21014_v6 = vld [vmem:[#allocation5 + $0x460] ss:$16 sps:$4 sm:$0xff]   ;;  %v21016_v48 = vld [vmem:[#allocation5 + $0x4] ss:$16 sps:$4 sm:$0xff]  }
 0x8f1   :  { %17664 = vmatmul.mubr.msk.bf16.gmra.mrb[196].mxu0 %vm105_vm0, %v11510_v50  ;;  %v21009_v5 = vld [vmem:[#allocation2 + $0x38] sm:$0xff] }
 0x8f2   :  { %17672 = vmatmul.mubr.msk.bf16.gmra.mrb[208].mxu1 %vm105_vm0, %v11510_v50  ;;  %12722 = vmatpush1.bf16.msra.mxu0 %v20958_v58  ;;  %v21010_v50 = vld [vmem:[#allocation5 + $0x440] ss:$16 sps:$4 sm:$0xff]   ;;  %v21011_v51 = vld [vmem:[#allocation5 + $0x448] ss:$16 sps:$4 sm:$0xff]   ;;  %v21013_v2 = vld [vmem:[#allocation5 + $0x46c] ss:$16 sps:$4 sm:$0xff]  }
 0x8f3   :  { %12940 = vmatpush1.bf16.msra.mxu1 %v20959_v62  ;;  %12723 = vmatprep.subr.bf16.mxu0 %v20960_v13  ;;  %v21015_v61 = vld [vmem:[#allocation5 + $0x468] ss:$16 sps:$4 sm:$0xff]   ;;  %v21017_v58 = vld [vmem:[#allocation2 + $0x30] sm:$0xff]  ;;  %v21018_v62 = vld [vmem:[#allocation5 + $0xc] ss:$16 sps:$4 sm:$0xff]  }
 0x8f4   :  { %12941 = vmatprep.subr.bf16.mxu1 %v20961_v59  ;;  %12154 = vmatprep.mubr.bf16.mxu0 %v24307_v17  ;;  %v21019_v13 = vld [vmem:[#allocation2 + $0x50] sm:$0xff] }
 0x8f5   :  { %12372 = vmatprep.mubr.bf16.mxu1 %v24307_v17 }
 0x8f6   :  { %12724 = vmatpush1.bf16.msra.mxu0 %v20962_v40 }
 0x8f7   :  { %12942 = vmatpush1.bf16.msra.mxu1 %v20963_v47  ;;  %12725 = vmatprep.subr.bf16.mxu0 %v20964_v45 }
 0x8f8   :  { %12943 = vmatprep.subr.bf16.mxu1 %v20965_v44 }
 0x8f9   :  { %17665 = vmatmul.mubr.msk.bf16.gmra.mrb[200].mxu0 %vm105_vm0, %v11513_v1 }
 0x8fa   :  { %17673 = vmatmul.mubr.msk.bf16.gmra.mrb[212].mxu1 %vm105_vm0, %v11513_v1  ;;  %12726 = vmatpush1.bf16.msra.mxu0 %v20966_v14 }
 0x8fb   :  { %12944 = vmatpush1.bf16.msra.mxu1 %v20967_v10  ;;  %12727 = vmatprep.subr.bf16.mxu0 %v20968_v38  ;;  %v21020_v38 = vld [vmem:[#allocation2 + $0x48] sm:$0xff] }
 0x8fc   :  { %12945 = vmatprep.subr.bf16.mxu1 %v20969_v35  ;;  %12164 = vmatprep.mubr.bf16.mxu0 %v24307_v17  ;;  %v21021_v35 = vld [vmem:[#allocation2 + $0x68] sm:$0xff] }
 0x8fd   :  { %12382 = vmatprep.mubr.bf16.mxu1 %v24307_v17 }
 0x8fe   :  { %12728 = vmatpush1.bf16.msra.mxu0 %v20970_v41  ;;  %v21022_v41 = vld [vmem:[#allocation2 + $0x60] sm:$0xff] }
 0x8ff   :  { %12946 = vmatpush1.bf16.msra.mxu1 %v20971_v37  ;;  %12729 = vmatprep.subr.bf16.mxu0 %v20972_v18  ;;  %v21024_v37 = vld [vmem:[#allocation2 + $0x78] sm:$0xff] }
 0x900   :  { %12947 = vmatprep.subr.bf16.mxu1 %v20973_v46  ;;  %v21025_v18 = vld [vmem:[#allocation2 + $0x98] sm:$0xff]  ;;  %v21026_v46 = vld [vmem:[#allocation2 + $0x90] sm:$0xff] }
 0x901   :  { %17666 = vmatmul.mubr.msk.bf16.gmra.mrb[204].mxu0 %vm105_vm0, %v11516_v20 }
 0x902   :  { %17674 = vmatmul.mubr.msk.bf16.gmra.mrb[216].mxu1 %vm105_vm0, %v11516_v20  ;;  %12730 = vmatpush1.bf16.msra.mxu0 %v20974_v27  ;;  %v21023_v20 = vld [vmem:[#allocation2 + $0x80] sm:$0xff]  ;;  %v21027_v27 = vld [vmem:[#allocation2 + $0xb0] sm:$0xff] }
 0x903   :  { %12948 = vmatpush1.bf16.msra.mxu1 %v20975_v43  ;;  %12731 = vmatprep.subr.bf16.mxu0 %v20976_v16  ;;  %v21028_v43 = vld [vmem:[#allocation2 + $0xa8] sm:$0xff] }
 0x904   :  { %12949 = vmatprep.subr.bf16.mxu1 %v20977_v52  ;;  %12174 = vmatprep.mubr.bf16.mxu0 %v24307_v17  ;;  %v21029_v16 = vld [vmem:[#allocation2 + $0x28] sm:$0xff]  ;;  %v21030_v52 = vld [vmem:[#allocation5] ss:$16 sps:$4 sm:$0xff]  }
 0x905   :  { %12392 = vmatprep.mubr.bf16.mxu1 %v24307_v17  ;;  %v20985_v17 = vld [vmem:[#allocation5 + $0x3ac] ss:$16 sps:$4 sm:$0xff]  }
 0x906   :  { %12732 = vmatpush1.bf16.msra.mxu0 %v20978_v55  ;;  %v21031_v55 = vld [vmem:[#allocation5 + $0x8] ss:$16 sps:$4 sm:$0xff]  }
 0x907   :  { %12950 = vmatpush1.bf16.msra.mxu1 %v20979_v23  ;;  %12733 = vmatprep.subr.bf16.mxu0 %v20980_v36  ;;  %v21033_v23 = vld [vmem:[#allocation5 + $0x2c] ss:$16 sps:$4 sm:$0xff]   ;;  %v21034_v36 = vld [vmem:[#allocation5 + $0x20] ss:$16 sps:$4 sm:$0xff]  }
 0x908   :  { %12951 = vmatprep.subr.bf16.mxu1 %v20981_v28  ;;  %v21035_v28 = vld [vmem:[#allocation5 + $0x28] ss:$16 sps:$4 sm:$0xff]  }
 0x909   :  { %17667 = vmatmul.mubr.msk.bf16.gmra.mrb[208].mxu0 %vm105_vm0, %v11519_v3 }
 0x90a   :  { %17675 = vmatmul.mubr.msk.bf16.gmra.mrb[220].mxu1 %vm105_vm0, %v11519_v3  ;;  %12734 = vmatpush1.bf16.msra.mxu0 %v20982_v12  ;;  %v21032_v3 = vld [vmem:[#allocation5 + $0x24] ss:$16 sps:$4 sm:$0xff]  }
 0x90b   :  { %12952 = vmatpush1.bf16.msra.mxu1 %v20983_v42  ;;  %12735 = vmatprep.subr.bf16.mxu0 %v20984_v60  ;;  %v21036_v12 = vld [vmem:[#allocation5 + $0x44] ss:$16 sps:$4 sm:$0xff]   ;;  %v21037_v42 = vld [vmem:[#allocation5 + $0x4c] ss:$16 sps:$4 sm:$0xff]  }
 0x90c   :  { %12953 = vmatprep.subr.bf16.mxu1 %v20985_v17  ;;  %12184 = vmatprep.mubr.bf16.mxu0 %v24410_v9  ;;  %v21038_v60 = vld [vmem:[#allocation2 + $0x40] sm:$0xff] }
 0x90d   :  { %12402 = vmatprep.mubr.bf16.mxu1 %v24410_v9  ;;  %v21039_v17 = vld [vmem:[#allocation5 + $0x40] ss:$16 sps:$4 sm:$0xff]  }
 0x90e   :  { %12736 = vmatpush1.bf16.msra.mxu0 %v20987_v49  ;;  %v21040_v49 = vld [vmem:[#allocation5 + $0x48] ss:$16 sps:$4 sm:$0xff]  }
 0x90f   :  { %12954 = vmatpush1.bf16.msra.mxu1 %v20988_v56  ;;  %12737 = vmatprep.subr.bf16.mxu0 %v20989_v8  ;;  %v21042_v8 = vld [vmem:[#allocation5 + $0x6c] ss:$16 sps:$4 sm:$0xff]  }
 0x910   :  { %12955 = vmatprep.subr.bf16.mxu1 %v20990_v24 }
 0x911   :  { %17668 = vmatmul.mubr.msk.bf16.gmra.mrb[212].mxu0 %vm105_vm0, %v11522_v25 }
 0x912   :  { %17676 = vmatmul.mubr.msk.bf16.gmra.mrb[224].mxu1 %vm105_vm0, %v11522_v25  ;;  %12738 = vmatpush1.bf16.msra.mxu0 %v20991_v7  ;;  %v21041_v25 = vld [vmem:[#allocation5 + $0x64] ss:$16 sps:$4 sm:$0xff]  }
 0x913   :  { %12956 = vmatpush1.bf16.msra.mxu1 %v20992_v53  ;;  %12739 = vmatprep.subr.bf16.mxu0 %v20993_v19 }
 0x914   :  { %12957 = vmatprep.subr.bf16.mxu1 %v20994_v54  ;;  %12194 = vmatprep.mubr.bf16.mxu0 %v24410_v9  ;;  %v21043_v54 = vld [vmem:[#allocation5 + $0x60] ss:$16 sps:$4 sm:$0xff]  }
 0x915   :  { %12412 = vmatprep.mubr.bf16.mxu1 %v24410_v9 }
 0x916   :  { %12740 = vmatpush1.bf16.msra.mxu0 %v20995_v57 }
 0x917   :  { %12958 = vmatpush1.bf16.msra.mxu1 %v20996_v4  ;;  %12741 = vmatprep.subr.bf16.mxu0 %v20997_v0  ;;  %v21045_v0 = vld [vmem:[#allocation5 + $0x84] ss:$16 sps:$4 sm:$0xff]  }
 0x918   :  { %12959 = vmatprep.subr.bf16.mxu1 %v20998_v11 }
 0x919   :  { %17669 = vmatmul.mubr.msk.bf16.gmra.mrb[252].mxu0 %vm105_vm0, %v11525_v29 }
 0x91a   :  { %17677 = vmatmul.mubr.msk.bf16.gmra.mrb[0].mxu1 %vm105_vm0, %v11525_v29  ;;  %12742 = vmatpush1.bf16.msra.mxu0 %v20999_v26  ;;  %v21044_v29 = vld [vmem:[#allocation5 + $0x68] ss:$16 sps:$4 sm:$0xff]   ;;  %v21046_v26 = vld [vmem:[#allocation5 + $0x8c] ss:$16 sps:$4 sm:$0xff]  }
 0x91b   :  { %12745 = vmatprep.mubr.bf16.mxu0 %v21000_v31  ;;  %12960 = vmatpush1.bf16.msra.mxu1 %v21001_v63  ;;  %v21048_v63 = vld [vmem:[#allocation5 + $0x80] ss:$16 sps:$4 sm:$0xff]  }
 0x91c   :  { %12963 = vmatprep.mubr.bf16.mxu1 %v21000_v31  ;;  %12743 = vmatprep.subr.bf16.mxu0 %v21002_v32  ;;  %v21047_v31 = vld [vmem:[#allocation2 + $0x58] sm:$0xff] }
 0x91d   :  { %12961 = vmatprep.subr.bf16.mxu1 %v21003_v15  ;;  %v21049_v32 = vld [vmem:[#allocation5 + $0x88] ss:$16 sps:$4 sm:$0xff]   ;;  %v21050_v15 = vld [vmem:[#allocation5 + $0xa4] ss:$16 sps:$4 sm:$0xff]  }
 0x91e   :  { %12744 = vmatpush1.bf16.msra.mxu0 %v21004_v21  ;;  %v21051_v21 = vld [vmem:[#allocation5 + $0xac] ss:$16 sps:$4 sm:$0xff]  }
 0x91f   :  { %12962 = vmatpush1.bf16.msra.mxu1 %v21005_v22  ;;  %12822 = vmatprep.subr.bf16.mxu0 %v21006_v33  ;;  %v21052_v22 = vld [vmem:[#allocation5 + $0xa0] ss:$16 sps:$4 sm:$0xff]   ;;  %v21053_v33 = vld [vmem:[#allocation5 + $0xa8] ss:$16 sps:$4 sm:$0xff]  }
 0x920   :  { %13040 = vmatprep.subr.bf16.mxu1 %v21007_v39  ;;  %v21054_v39 = vld [vmem:[#allocation5 + $0xc4] ss:$16 sps:$4 sm:$0xff]  }
 0x921   :  { %12746 = vmatmul.mubr.bf16.vlgmr.msra.gmra.mrb[28].mxu0 %v21008_v34 }
 0x922   :  { %12964 = vmatmul.mubr.bf16.vlgmr.msra.gmra.mrb[40].mxu1 %v21008_v34  ;;  %12755 = vmatprep.mubr.bf16.mxu0 %v21009_v5  ;;  %v21055_v34 = vld [vmem:[#allocation5 + $0xcc] ss:$16 sps:$4 sm:$0xff]  }
 0x923   :  { %12823 = vmatpush1.bf16.msra.mxu0 %v21010_v50  ;;  %12973 = vmatprep.mubr.bf16.mxu1 %v21009_v5  ;;  %v21056_v5 = vld [vmem:[#allocation2 + $0x70] sm:$0xff] }
 0x924   :  { %13041 = vmatpush1.bf16.msra.mxu1 %v21011_v51  ;;  %12824 = vmatprep.subr.bf16.mxu0 %v21012_v30  ;;  %v21057_v50 = vld [vmem:[#allocation5 + $0xc0] ss:$16 sps:$4 sm:$0xff]   ;;  %v21058_v51 = vld [vmem:[#allocation5 + $0xc8] ss:$16 sps:$4 sm:$0xff]   ;;  %v21059_v30 = vld [vmem:[#allocation5 + $0xe4] ss:$16 sps:$4 sm:$0xff]  }
 0x925   :  { %13042 = vmatprep.subr.bf16.mxu1 %v21013_v2  ;;  %v21060_v2 = vld [vmem:[#allocation5 + $0xec] ss:$16 sps:$4 sm:$0xff]  }
 0x927   :  { %12825 = vmatpush1.bf16.msra.mxu0 %v21014_v6  ;;  %v21061_v6 = vld [vmem:[#allocation5 + $0xe0] ss:$16 sps:$4 sm:$0xff]  }
 0x928   :  { %13043 = vmatpush1.bf16.msra.mxu1 %v21015_v61  ;;  %13149 = vmatprep.subr.bf16.mxu0 %v21016_v48  ;;  %v21062_v61 = vld [vmem:[#allocation5 + $0xe8] ss:$16 sps:$4 sm:$0xff]   ;;  %v21063_v48 = vld [vmem:[#allocation5 + $0x104] ss:$16 sps:$4 sm:$0xff]  }
 0x929   :  { %12756 = vmatmul.mubr.bf16.gmra.mrb[32].mxu0 %v21017_v58  ;;  %13367 = vmatprep.subr.bf16.mxu1 %v21018_v62  ;;  %v21065_v62 = vld [vmem:[#allocation2 + $0x88] sm:$0xff] }
 0x92a   :  { %12974 = vmatmul.mubr.bf16.gmra.mrb[44].mxu1 %v21017_v58  ;;  %12765 = vmatprep.mubr.bf16.mxu0 %v21019_v13  ;;  %v21064_v58 = vld [vmem:[#allocation5 + $0x10c] ss:$16 sps:$4 sm:$0xff]  }
 0x92b   :  { %12983 = vmatprep.mubr.bf16.mxu1 %v21019_v13  ;;  %v21066_v13 = vld [vmem:[#allocation5 + $0x100] ss:$16 sps:$4 sm:$0xff]  }
 0x92c   :  { %v11113_v59 = vpop.f32.mrb[240].mxu0 }
 0x92d   :  { %v11331_v40 = vpop.f32.mrb[252].mxu1  ;;  %v11114_v1 = vpop.f32.mrb[241].mxu0  ;;  %v21067_v59 = vld [vmem:[#allocation5 + $0x108] ss:$16 sps:$4 sm:$0xff]  }
 0x92e   :  { %v11332_v47 = vpop.f32.mrb[253].mxu1  ;;  %v11115_v45 = vpop.f32.mrb[242].mxu0  ;;  %v21068_v40 = vld [vmem:[#allocation5 + $0x124] ss:$16 sps:$4 sm:$0xff]   ;;  %v21069_v1 = vld [vmem:[#allocation5 + $0x12c] ss:$16 sps:$4 sm:$0xff]  }
 0x92f   :  { %v11333_v44 = vpop.f32.mrb[254].mxu1  ;;  %v11116_v14 = vpop.f32.mrb[243].mxu0  ;;  %v21070_v47 = vld [vmem:[#allocation5 + $0x120] ss:$16 sps:$4 sm:$0xff]   ;;  %v21071_v45 = vld [vmem:[#allocation5 + $0x128] ss:$16 sps:$4 sm:$0xff]  }
 0x930   :  { %v11334_v10 = vpop.f32.mrb[255].mxu1  ;;  %v21072_v44 = vld [vmem:[#allocation5 + $0x144] ss:$16 sps:$4 sm:$0xff]   ;;  %v21073_v14 = vld [vmem:[#allocation5 + $0x14c] ss:$16 sps:$4 sm:$0xff]  }
 0x931   :  { %12766 = vmatmul.mubr.bf16.gmra.mrb[36].mxu0 %v21020_v38  ;;  %v21074_v10 = vld [vmem:[#allocation2 + $0xa0] sm:$0xff] }
 0x932   :  { %12984 = vmatmul.mubr.bf16.gmra.mrb[48].mxu1 %v21020_v38  ;;  %12775 = vmatprep.mubr.bf16.mxu0 %v21021_v35  ;;  %v21075_v38 = vld [vmem:[#allocation5 + $0x140] ss:$16 sps:$4 sm:$0xff]  }
 0x933   :  { %12993 = vmatprep.mubr.bf16.mxu1 %v21021_v35  ;;  %v21076_v35 = vld [vmem:[#allocation5 + $0x148] ss:$16 sps:$4 sm:$0xff]  }
 0x939   :  { %12776 = vmatmul.mubr.bf16.gmra.mrb[0].mxu0 %v21022_v41 }
 0x93a   :  { %12994 = vmatmul.mubr.bf16.gmra.mrb[8].mxu1 %v21022_v41  ;;  %12785 = vmatprep.mubr.bf16.mxu0 %v21023_v20  ;;  %v21077_v41 = vld [vmem:[#allocation5 + $0x164] ss:$16 sps:$4 sm:$0xff]  }
 0x93b   :  { %13003 = vmatprep.mubr.bf16.mxu1 %v21023_v20  ;;  %v21078_v20 = vld [vmem:[#allocation5 + $0x16c] ss:$16 sps:$4 sm:$0xff]  }
 0x941   :  { %12786 = vmatmul.mubr.bf16.gmra.mrb[4].mxu0 %v21024_v37 }
 0x942   :  { %13004 = vmatmul.mubr.bf16.gmra.mrb[12].mxu1 %v21024_v37  ;;  %12795 = vmatprep.mubr.bf16.mxu0 %v21025_v18  ;;  %v21079_v37 = vld [vmem:[#allocation5 + $0x160] ss:$16 sps:$4 sm:$0xff]  }
 0x943   :  { %13013 = vmatprep.mubr.bf16.mxu1 %v21025_v18  ;;  %v21080_v18 = vld [vmem:[#allocation5 + $0x168] ss:$16 sps:$4 sm:$0xff]  }
 0x949   :  { %12796 = vmatmul.mubr.bf16.gmra.mrb[8].mxu0 %v21026_v46 }
 0x94a   :  { %13014 = vmatmul.mubr.bf16.gmra.mrb[16].mxu1 %v21026_v46  ;;  %12805 = vmatprep.mubr.bf16.mxu0 %v21027_v27  ;;  %v21081_v46 = vld [vmem:[#allocation5 + $0x184] ss:$16 sps:$4 sm:$0xff]  }
 0x94b   :  { %13023 = vmatprep.mubr.bf16.mxu1 %v21027_v27  ;;  %v21082_v27 = vld [vmem:[#allocation5 + $0x18c] ss:$16 sps:$4 sm:$0xff]  }
 0x951   :  { %12806 = vmatmul.mubr.bf16.gmra.mrb[12].mxu0 %v21028_v43 }
 0x952   :  { %13024 = vmatmul.mubr.bf16.gmra.mrb[20].mxu1 %v21028_v43  ;;  %12815 = vmatprep.mubr.bf16.mxu0 %v24410_v9  ;;  %v21083_v43 = vld [vmem:[#allocation2 + $0xb8] sm:$0xff] }
 0x953   :  { %13033 = vmatprep.mubr.bf16.mxu1 %v24410_v9 }
 0x959   :  { %12816 = vmatmul.mubr.bf16.gmra.mrb[16].mxu0 %v24410_v9 }
 0x95a   :  { %13034 = vmatmul.mubr.bf16.gmra.mrb[24].mxu1 %v24410_v9  ;;  %12854 = vmatprep.mubr.bf16.mxu0 %v24410_v9 }
 0x95b   :  { %13072 = vmatprep.mubr.bf16.mxu1 %v24410_v9 }
 0x961   :  { %17678 = vmatmul.mubr.msk.bf16.vlgmr.msra.gmra.mrb[28].mxu0 %vm105_vm0, %v21029_v16 }
 0x962   :  { %17686 = vmatmul.mubr.msk.bf16.vlgmr.msra.gmra.mrb[40].mxu1 %vm105_vm0, %v21029_v16  ;;  %13150 = vmatpush1.bf16.msra.mxu0 %v21030_v52  ;;  %v21084_v16 = vld [vmem:[#allocation5 + $0x180] ss:$16 sps:$4 sm:$0xff]   ;;  %v21085_v52 = vld [vmem:[#allocation5 + $0x188] ss:$16 sps:$4 sm:$0xff]  }
 0x963   :  { %13368 = vmatpush1.bf16.msra.mxu1 %v21031_v55  ;;  %13151 = vmatprep.subr.bf16.mxu0 %v21032_v3  ;;  %v21086_v55 = vld [vmem:[#allocation5 + $0x1a4] ss:$16 sps:$4 sm:$0xff]   ;;  %v21087_v3 = vld [vmem:[#allocation5 + $0x1ac] ss:$16 sps:$4 sm:$0xff]  }
 0x964   :  { %13369 = vmatprep.subr.bf16.mxu1 %v21033_v23  ;;  %12864 = vmatprep.mubr.bf16.mxu0 %v24410_v9  ;;  %v21088_v23 = vld [vmem:[#allocation5 + $0x1a0] ss:$16 sps:$4 sm:$0xff]  }
 0x965   :  { %13082 = vmatprep.mubr.bf16.mxu1 %v24410_v9 }
 0x966   :  { %13152 = vmatpush1.bf16.msra.mxu0 %v21034_v36  ;;  %v21089_v36 = vld [vmem:[#allocation5 + $0x1a8] ss:$16 sps:$4 sm:$0xff]  }
 0x967   :  { %13370 = vmatpush1.bf16.msra.mxu1 %v21035_v28  ;;  %13153 = vmatprep.subr.bf16.mxu0 %v21036_v12  ;;  %v21090_v28 = vld [vmem:[#allocation5 + $0x1c4] ss:$16 sps:$4 sm:$0xff]   ;;  %v21091_v12 = vld [vmem:[#allocation5 + $0x1cc] ss:$16 sps:$4 sm:$0xff]  }
 0x968   :  { %13371 = vmatprep.subr.bf16.mxu1 %v21037_v42  ;;  %v21092_v42 = vld [vmem:[#allocation2 + $0xd0] sm:$0xff] }
 0x969   :  { %17679 = vmatmul.mubr.msk.bf16.gmra.mrb[32].mxu0 %vm105_vm0, %v21038_v60 }
 0x96a   :  { %17687 = vmatmul.mubr.msk.bf16.gmra.mrb[44].mxu1 %vm105_vm0, %v21038_v60  ;;  %13154 = vmatpush1.bf16.msra.mxu0 %v21039_v17  ;;  %v21093_v60 = vld [vmem:[#allocation5 + $0x1c0] ss:$16 sps:$4 sm:$0xff]   ;;  %v21094_v17 = vld [vmem:[#allocation5 + $0x1c8] ss:$16 sps:$4 sm:$0xff]  }
 0x96b   :  { %13372 = vmatpush1.bf16.msra.mxu1 %v21040_v49  ;;  %13155 = vmatprep.subr.bf16.mxu0 %v21041_v25  ;;  %v21095_v49 = vld [vmem:[#allocation5 + $0x1e4] ss:$16 sps:$4 sm:$0xff]   ;;  %v21096_v25 = vld [vmem:[#allocation5 + $0x1ec] ss:$16 sps:$4 sm:$0xff]  }
 0x96c   :  { %v11222_v56 = vpop.f32.mrb[244].mxu0  ;;  %13373 = vmatprep.subr.bf16.mxu1 %v21042_v8  ;;  %12874 = vmatprep.mubr.bf16.mxu0 %v24410_v9  ;;  %v21098_v8 = vld [vmem:[#allocation5 + $0x1e8] ss:$16 sps:$4 sm:$0xff]  }
 0x96d   :  { %v11440_v24 = vpop.f32.mrb[4].mxu1  ;;  %v11223_v7 = vpop.f32.mrb[245].mxu0  ;;  %13092 = vmatprep.mubr.bf16.mxu1 %v24410_v9  ;;  %v21097_v56 = vld [vmem:[#allocation5 + $0x1e0] ss:$16 sps:$4 sm:$0xff]  }
 0x96e   :  { %v11441_v53 = vpop.f32.mrb[5].mxu1  ;;  %v11224_v19 = vpop.f32.mrb[246].mxu0  ;;  %13156 = vmatpush1.bf16.msra.mxu0 %v21043_v54  ;;  %v21099_v24 = vld [vmem:[#allocation5 + $0x204] ss:$16 sps:$4 sm:$0xff]   ;;  %v21100_v7 = vld [vmem:[#allocation5 + $0x20c] ss:$16 sps:$4 sm:$0xff]  }
 0x96f   :  { %v11442_v57 = vpop.f32.mrb[6].mxu1  ;;  %13374 = vmatpush1.bf16.msra.mxu1 %v21044_v29  ;;  %v11225_v4 = vpop.f32.mrb[247].mxu0  ;;  %13157 = vmatprep.subr.bf16.mxu0 %v21045_v0  ;;  %v21101_v53 = vld [vmem:[#allocation2 + $0x110] sm:$0xff]  ;;  %v21103_v54 = vld [vmem:[#allocation5 + $0x208] ss:$16 sps:$4 sm:$0xff]  }
 0x970   :  { %v11443_v11 = vpop.f32.mrb[7].mxu1  ;;  %13375 = vmatprep.subr.bf16.mxu1 %v21046_v26  ;;  %v21102_v19 = vld [vmem:[#allocation5 + $0x200] ss:$16 sps:$4 sm:$0xff]   ;;  %v21104_v57 = vld [vmem:[#allocation5 + $0x224] ss:$16 sps:$4 sm:$0xff]   ;;  %v21109_v26 = vld [vmem:[#allocation2 + $0x108] sm:$0xff] }
 0x971   :  { %17680 = vmatmul.mubr.msk.bf16.gmra.mrb[36].mxu0 %vm105_vm0, %v21047_v31  ;;  %v21105_v29 = vld [vmem:[#allocation5 + $0x22c] ss:$16 sps:$4 sm:$0xff]   ;;  %v21106_v4 = vld [vmem:[#allocation5 + $0x220] ss:$16 sps:$4 sm:$0xff]   ;;  %v21107_v0 = vld [vmem:[#allocation5 + $0x228] ss:$16 sps:$4 sm:$0xff]  }
 0x972   :  { %17688 = vmatmul.mubr.msk.bf16.gmra.mrb[48].mxu1 %vm105_vm0, %v21047_v31  ;;  %13158 = vmatpush1.bf16.msra.mxu0 %v21048_v63  ;;  %v21108_v11 = vld [vmem:[#allocation5 + $0x484] ss:$16 sps:$4 sm:$0xff]   ;;  %v21110_v31 = vld [vmem:[#allocation5 + $0x48c] ss:$16 sps:$4 sm:$0xff]  }
 0x973   :  { %13376 = vmatpush1.bf16.msra.mxu1 %v21049_v32  ;;  %13159 = vmatprep.subr.bf16.mxu0 %v21050_v15  ;;  %v21111_v63 = vld [vmem:[#allocation2 + $0x128] sm:$0xff] }
 0x974   :  { %13377 = vmatprep.subr.bf16.mxu1 %v21051_v21  ;;  %12884 = vmatprep.mubr.bf16.mxu0 %v24410_v9 }
 0x975   :  { %13102 = vmatprep.mubr.bf16.mxu1 %v24410_v9 }
 0x976   :  { %13160 = vmatpush1.bf16.msra.mxu0 %v21052_v22 }
 0x977   :  { %13378 = vmatpush1.bf16.msra.mxu1 %v21053_v33  ;;  %13161 = vmatprep.subr.bf16.mxu0 %v21054_v39  ;;  %v167_v39 = vld [vmem:[#allocation10] ss:$2 sm:$0xf] }
 0x978   :  { %13379 = vmatprep.subr.bf16.mxu1 %v21055_v34 }
 0x979   :  { %17681 = vmatmul.mubr.msk.bf16.gmra.mrb[0].mxu0 %vm105_vm0, %v21056_v5 }
 0x97a   :  { %17689 = vmatmul.mubr.msk.bf16.gmra.mrb[8].mxu1 %vm105_vm0, %v21056_v5  ;;  %13162 = vmatpush1.bf16.msra.mxu0 %v21057_v50 }
 0x97b   :  { %13380 = vmatpush1.bf16.msra.mxu1 %v21058_v51  ;;  %13163 = vmatprep.subr.bf16.mxu0 %v21059_v30  ;;  %v169_v51 = vld [vmem:[#allocation10 + $0x1] ss:$2 sm:$0xf]  ;;  %v21112_v30 = vld [vmem:[#allocation2 + $0x120] sm:$0xff] }
 0x97c   :  { %13381 = vmatprep.subr.bf16.mxu1 %v21060_v2  ;;  %12894 = vmatprep.mubr.bf16.mxu0 %v24410_v9  ;;  %v25120_v2 = vld [vmem:[#allocation17_spill] sm:$0xff] }
 0x97d   :  { %13112 = vmatprep.mubr.bf16.mxu1 %v24410_v9 }
 0x97e   :  { %13164 = vmatpush1.bf16.msra.mxu0 %v21061_v6  ;;  %v24461_v6 = vrot.slane %v167_v39, %v25120_v2 }
 0x97f   :  { %13382 = vmatpush1.bf16.msra.mxu1 %v21062_v61  ;;  %13165 = vmatprep.subr.bf16.mxu0 %v21063_v48  ;;  %v21113_v61 = vld [vmem:[#allocation2 + $0x140] sm:$0xff] }
 0x980   :  { %13383 = vmatprep.subr.bf16.mxu1 %v21064_v58  ;;  %v25121_v48 = vld [vmem:[#allocation19_spill] sm:$0xff] }
 0x981   :  { %17682 = vmatmul.mubr.msk.bf16.gmra.mrb[4].mxu0 %vm105_vm0, %v21065_v62  ;;  %v24464_v58 = vrot.slane %v167_v39, %v25121_v48 }
 0x982   :  { %17690 = vmatmul.mubr.msk.bf16.gmra.mrb[12].mxu1 %vm105_vm0, %v21065_v62  ;;  %13166 = vmatpush1.bf16.msra.mxu0 %v21066_v13  ;;  %v25122_v62 = vld [vmem:[#allocation18_spill] sm:$0xff] }
 0x983   :  { %13384 = vmatpush1.bf16.msra.mxu1 %v21067_v59  ;;  %13167 = vmatprep.subr.bf16.mxu0 %v21068_v40  ;;  %v24467_v13 = vrot.slane %v167_v39, %v25122_v62  ;;  %v24470_v59 = vrot.slane %v169_v51, %v25120_v2  ;;  %v25123_v40 = vld [vmem:[#allocation20_spill] sm:$0xff] }
 0x984   :  { %13385 = vmatprep.subr.bf16.mxu1 %v21069_v1  ;;  %12904 = vmatprep.mubr.bf16.mxu0 %v24410_v9  ;;  %v24473_v1 = vrot.slane %v167_v39, %v25123_v40 }
 0x985   :  { %13122 = vmatprep.mubr.bf16.mxu1 %v24410_v9 }
 0x986   :  { %13168 = vmatpush1.bf16.msra.mxu0 %v21070_v47 }
 0x987   :  { %13386 = vmatpush1.bf16.msra.mxu1 %v21071_v45  ;;  %13169 = vmatprep.subr.bf16.mxu0 %v21072_v44  ;;  %v24476_v45 = vrot.slane %v169_v51, %v25121_v48  ;;  %v24479_v44 = vrot.slane %v169_v51, %v25122_v62 }
 0x988   :  { %13387 = vmatprep.subr.bf16.mxu1 %v21073_v14 }
 0x989   :  { %17683 = vmatmul.mubr.msk.bf16.gmra.mrb[8].mxu0 %vm105_vm0, %v21074_v10 }
 0x98a   :  { %17691 = vmatmul.mubr.msk.bf16.gmra.mrb[16].mxu1 %vm105_vm0, %v21074_v10  ;;  %13170 = vmatpush1.bf16.msra.mxu0 %v21075_v38 }
 0x98b   :  { %13388 = vmatpush1.bf16.msra.mxu1 %v21076_v35  ;;  %13171 = vmatprep.subr.bf16.mxu0 %v21077_v41  ;;  %v24483_v35 = vrot.slane %v169_v51, %v25123_v40 }
 0x98c   :  { %13389 = vmatprep.subr.bf16.mxu1 %v21078_v20  ;;  %12914 = vmatprep.mubr.bf16.mxu0 %v24410_v9 }
 0x98d   :  { %13132 = vmatprep.mubr.bf16.mxu1 %v24410_v9 }
 0x98e   :  { %13172 = vmatpush1.bf16.msra.mxu0 %v21079_v37 }
 0x98f   :  { %13390 = vmatpush1.bf16.msra.mxu1 %v21080_v18  ;;  %13173 = vmatprep.subr.bf16.mxu0 %v21081_v46 }
 0x990   :  { %13391 = vmatprep.subr.bf16.mxu1 %v21082_v27 }
 0x991   :  { %17684 = vmatmul.mubr.msk.bf16.gmra.mrb[12].mxu0 %vm105_vm0, %v21083_v43 }
 0x992   :  { %17692 = vmatmul.mubr.msk.bf16.gmra.mrb[20].mxu1 %vm105_vm0, %v21083_v43  ;;  %13174 = vmatpush1.bf16.msra.mxu0 %v21084_v16 }
 0x993   :  { %13392 = vmatpush1.bf16.msra.mxu1 %v21085_v52  ;;  %13175 = vmatprep.subr.bf16.mxu0 %v21086_v55 }
 0x994   :  { %13393 = vmatprep.subr.bf16.mxu1 %v21087_v3  ;;  %12924 = vmatprep.mubr.bf16.mxu0 %v24410_v9 }
 0x995   :  { %13142 = vmatprep.mubr.bf16.mxu1 %v24410_v9 }
 0x996   :  { %13176 = vmatpush1.bf16.msra.mxu0 %v21088_v23 }
 0x997   :  { %13394 = vmatpush1.bf16.msra.mxu1 %v21089_v36  ;;  %13177 = vmatprep.subr.bf16.mxu0 %v21090_v28 }
 0x998   :  { %13395 = vmatprep.subr.bf16.mxu1 %v21091_v12 }
 0x999   :  { %17685 = vmatmul.mubr.msk.bf16.gmra.mrb[20].mxu0 %vm105_vm0, %v21092_v42 }
 0x99a   :  { %17693 = vmatmul.mubr.msk.bf16.gmra.mrb[28].mxu1 %vm105_vm0, %v21092_v42  ;;  %13178 = vmatpush1.bf16.msra.mxu0 %v21093_v60 }
 0x99b   :  { %13396 = vmatpush1.bf16.msra.mxu1 %v21094_v17  ;;  %13179 = vmatprep.subr.bf16.mxu0 %v21095_v49  ;;  %v21114_v49 = vld [vmem:[#allocation2 + $0x138] sm:$0xff] }
 0x99c   :  { %13397 = vmatprep.subr.bf16.mxu1 %v21096_v25  ;;  %13181 = vmatprep.mubr.bf16.mxu0 %v24410_v9 }
 0x99d   :  { %13399 = vmatprep.mubr.bf16.mxu1 %v24410_v9 }
 0x99e   :  { %13180 = vmatpush1.bf16.msra.mxu0 %v21097_v56 }
 0x99f   :  { %13398 = vmatpush1.bf16.msra.mxu1 %v21098_v8  ;;  %13258 = vmatprep.subr.bf16.mxu0 %v21099_v24 }
 0x9a0   :  { %13476 = vmatprep.subr.bf16.mxu1 %v21100_v7  ;;  %v21115_v7 = vld [vmem:[#allocation2 + $0x158] sm:$0xff] }
 0x9a1   :  { %13182 = vmatmul.mubr.bf16.vlgmr.msra.gmra.mrb[28].mxu0 %v24410_v9 }
 0x9a2   :  { %13400 = vmatmul.mubr.bf16.vlgmr.msra.gmra.mrb[40].mxu1 %v24410_v9  ;;  %13191 = vmatprep.mubr.bf16.mxu0 %v21101_v53 }
 0x9a3   :  { %13259 = vmatpush1.bf16.msra.mxu0 %v21102_v19  ;;  %13409 = vmatprep.mubr.bf16.mxu1 %v21101_v53 }
 0x9a4   :  { %13477 = vmatpush1.bf16.msra.mxu1 %v21103_v54  ;;  %13260 = vmatprep.subr.bf16.mxu0 %v21104_v57 }
 0x9a5   :  { %13478 = vmatprep.subr.bf16.mxu1 %v21105_v29 }
 0x9a7   :  { %13261 = vmatpush1.bf16.msra.mxu0 %v21106_v4 }
 0x9a8   :  { %13479 = vmatpush1.bf16.msra.mxu1 %v21107_v0  ;;  %13585 = vmatprep.subr.bf16.mxu0 %v21108_v11 }
 0x9a9   :  { %13192 = vmatmul.mubr.bf16.gmra.mrb[32].mxu0 %v21109_v26  ;;  %13803 = vmatprep.subr.bf16.mxu1 %v21110_v31 }
 0x9aa   :  { %13410 = vmatmul.mubr.bf16.gmra.mrb[44].mxu1 %v21109_v26  ;;  %13201 = vmatprep.mubr.bf16.mxu0 %v21111_v63 }
 0x9ab   :  { %13419 = vmatprep.mubr.bf16.mxu1 %v21111_v63 }
 0x9ac   :  { %v12087_v32 = vpop.f32.mrb[248].mxu0 }
 0x9ad   :  { %v12305_v15 = vpop.f32.mrb[36].mxu1  ;;  %v12088_v21 = vpop.f32.mrb[249].mxu0 }
 0x9ae   :  { %v12306_v22 = vpop.f32.mrb[37].mxu1  ;;  %v12089_v33 = vpop.f32.mrb[250].mxu0 }
 0x9af   :  { %v12307_v34 = vpop.f32.mrb[38].mxu1  ;;  %v12090_v5 = vpop.f32.mrb[251].mxu0 }
 0x9b0   :  { %v12308_v50 = vpop.f32.mrb[39].mxu1 }
 0x9b1   :  { %13202 = vmatmul.mubr.bf16.gmra.mrb[36].mxu0 %v21112_v30 }
 0x9b2   :  { %13420 = vmatmul.mubr.bf16.gmra.mrb[48].mxu1 %v21112_v30  ;;  %13211 = vmatprep.mubr.bf16.mxu0 %v21113_v61 }
 0x9b3   :  { %13429 = vmatprep.mubr.bf16.mxu1 %v21113_v61 }
 0x9b4   :  { %v12126_v47 = vpop.f32.mrb[188].mxu0 }
 0x9b5   :  { %v12496_v14 = vmul.f32 %v24461_v6, %v12126_v47  ;;  %v12344_v10 = vpop.f32.mrb[200].mxu1  ;;  %v12128_v38 = vpop.f32.mrb[189].mxu0 }
 0x9b6   :  { %v12498_v41 = vmul.f32 %v24464_v58, %v12344_v10  ;;  %v12497_v20 = vmul.f32 %v24467_v13, %v12128_v38  ;;  %v12346_v37 = vpop.f32.mrb[201].mxu1  ;;  %v12130_v18 = vpop.f32.mrb[190].mxu0 }
 0x9b7   :  { %v12573_v46 = vadd.f32 %v24470_v59, %v12496_v14  ;;  %v12499_v27 = vmul.f32 %v24473_v1, %v12346_v37  ;;  %v12500_v43 = vmul.f32 %v24461_v6, %v12130_v18  ;;  %v12348_v16 = vpop.f32.mrb[202].mxu1  ;;  %v12132_v52 = vpop.f32.mrb[191].mxu0 }
 0x9b8   :  { %v12575_v55 = vadd.f32 %v24476_v45, %v12498_v41  ;;  %v12574_v3 = vadd.f32 %v24479_v44, %v12497_v20  ;;  %v12502_v23 = vmul.f32 %v24464_v58, %v12348_v16  ;;  %v12501_v36 = vmul.f32 %v24467_v13, %v12132_v52  ;;  %v12350_v28 = vpop.f32.mrb[203].mxu1  ;;  %v21116_v20 = vld [vmem:[#allocation2 + $0x150] sm:$0xff] }
 0x9b9   :  { %v12629_v12 = vmax.f32 %v12573_v46, 0.0  ;;  %v12576_v42 = vadd.f32 %v24483_v35, %v12499_v27  ;;  %v12577_v60 = vadd.f32 %v24470_v59, %v12500_v43  ;;  %v12503_v17 = vmul.f32 %v24473_v1, %v12350_v28  ;;  %13212 = vmatmul.mubr.bf16.gmra.mrb[0].mxu0 %v21114_v49  ;;  %v21117_v43 = vld [vmem:[#allocation2 + $0x170] sm:$0xff] }
 0x9ba   :  { %v12631_v25 = vmax.f32 %v12575_v55, 0.0  ;;  %v12630_v56 = vmax.f32 %v12574_v3, 0.0  ;;  %v12579_v8 = vadd.f32 %v24476_v45, %v12502_v23  ;;  %v12578_v24 = vadd.f32 %v24479_v44, %v12501_v36  ;;  %13430 = vmatmul.mubr.bf16.gmra.mrb[8].mxu1 %v21114_v49  ;;  %13221 = vmatprep.mubr.bf16.mxu0 %v21115_v7 }
 0x9bb   :  { %v12632_v53 = vmax.f32 %v12576_v42, 0.0  ;;  %v12633_v19 = vmax.f32 %v12577_v60, 0.0  ;;  %v12580_v54 = vadd.f32 %v24483_v35, %v12503_v17  ;;  %13439 = vmatprep.mubr.bf16.mxu1 %v21115_v7 }
 0x9bc   :  { %v24500_v57 = vmax.f32 %v12629_v12, %v12631_v25  ;;  %v12635_v29 = vmax.f32 %v12579_v8, 0.0  ;;  %v12634_v4 = vmax.f32 %v12578_v24, 0.0  ;;  %v12136_v0 = vpop.f32.mrb[192].mxu0 }
 0x9bd   :  { %v24502_v11 = vmax.f32 %v12630_v56, %v12632_v53  ;;  %v12636_v26 = vmax.f32 %v12580_v54, 0.0  ;;  %v12504_v31 = vmul.f32 %v24461_v6, %v12136_v0  ;;  %v12354_v63 = vpop.f32.mrb[204].mxu1  ;;  %v12138_v32 = vpop.f32.mrb[193].mxu0 }
 0x9be   :  { %v24505_v15 = vmax.f32 %v12633_v19, %v12635_v29  ;;  %v12506_v21 = vmul.f32 %v24464_v58, %v12354_v63  ;;  %v12505_v22 = vmul.f32 %v24467_v13, %v12138_v32  ;;  %v12356_v33 = vpop.f32.mrb[205].mxu1  ;;  %v12140_v39 = vpop.f32.mrb[194].mxu0 }
 0x9bf   :  { %v24509_v34 = vmax.f32 %v12634_v4, %v12636_v26  ;;  %v12581_v5 = vadd.f32 %v24470_v59, %v12504_v31  ;;  %v12507_v50 = vmul.f32 %v24473_v1, %v12356_v33  ;;  %v12508_v51 = vmul.f32 %v24461_v6, %v12140_v39  ;;  %v12358_v30 = vpop.f32.mrb[206].mxu1  ;;  %v12142_v2 = vpop.f32.mrb[195].mxu0 }
 0x9c0   :  { %v12583_v61 = vadd.f32 %v24476_v45, %v12506_v21  ;;  %v12582_v48 = vadd.f32 %v24479_v44, %v12505_v22  ;;  %v12510_v62 = vmul.f32 %v24464_v58, %v12358_v30  ;;  %v12509_v40 = vmul.f32 %v24467_v13, %v12142_v2  ;;  %v12360_v47 = vpop.f32.mrb[207].mxu1 }
 0x9c1   :  { %v12637_v14 = vmax.f32 %v12581_v5, 0.0  ;;  %v12584_v10 = vadd.f32 %v24483_v35, %v12507_v50  ;;  %v12585_v38 = vadd.f32 %v24470_v59, %v12508_v51  ;;  %v12511_v41 = vmul.f32 %v24473_v1, %v12360_v47  ;;  %13222 = vmatmul.mubr.bf16.gmra.mrb[4].mxu0 %v21116_v20  ;;  %v21118_v50 = vld [vmem:[#allocation2 + $0x168] sm:$0xff] }
 0x9c2   :  { %v12639_v37 = vmax.f32 %v12583_v61, 0.0  ;;  %v12638_v18 = vmax.f32 %v12582_v48, 0.0  ;;  %v12587_v46 = vadd.f32 %v24476_v45, %v12510_v62  ;;  %v12586_v27 = vadd.f32 %v24479_v44, %v12509_v40  ;;  %13440 = vmatmul.mubr.bf16.gmra.mrb[12].mxu1 %v21116_v20  ;;  %13231 = vmatprep.mubr.bf16.mxu0 %v21117_v43  ;;  %v21119_v48 = vld [vmem:[#allocation2 + $0x188] sm:$0xff] }
 0x9c3   :  { %v12640_v16 = vmax.f32 %v12584_v10, 0.0  ;;  %v12641_v52 = vmax.f32 %v12585_v38, 0.0  ;;  %v12588_v55 = vadd.f32 %v24483_v35, %v12511_v41  ;;  %13449 = vmatprep.mubr.bf16.mxu1 %v21117_v43 }
 0x9c4   :  { %v24524_v3 = vmax.f32 %v12637_v14, %v12639_v37  ;;  %v12643_v23 = vmax.f32 %v12587_v46, 0.0  ;;  %v12642_v36 = vmax.f32 %v12586_v27, 0.0  ;;  %v12146_v28 = vpop.f32.mrb[196].mxu0 }
 0x9c5   :  { %v24526_v12 = vmax.f32 %v12638_v18, %v12640_v16  ;;  %v12644_v42 = vmax.f32 %v12588_v55, 0.0  ;;  %v12512_v60 = vmul.f32 %v24461_v6, %v12146_v28  ;;  %v12364_v17 = vpop.f32.mrb[208].mxu1  ;;  %v12148_v49 = vpop.f32.mrb[197].mxu0 }
 0x9c6   :  { %v24529_v25 = vmax.f32 %v12641_v52, %v12643_v23  ;;  %v12514_v56 = vmul.f32 %v24464_v58, %v12364_v17  ;;  %v12513_v8 = vmul.f32 %v24467_v13, %v12148_v49  ;;  %v12366_v24 = vpop.f32.mrb[209].mxu1  ;;  %v12150_v7 = vpop.f32.mrb[198].mxu0 }
 0x9c7   :  { %v24533_v53 = vmax.f32 %v12642_v36, %v12644_v42  ;;  %v12589_v19 = vadd.f32 %v24470_v59, %v12512_v60  ;;  %v12515_v54 = vmul.f32 %v24473_v1, %v12366_v24  ;;  %v12516_v29 = vmul.f32 %v24461_v6, %v12150_v7  ;;  %v12368_v4 = vpop.f32.mrb[210].mxu1  ;;  %v12152_v0 = vpop.f32.mrb[199].mxu0 }
 0x9c8   :  { %v12591_v26 = vadd.f32 %v24476_v45, %v12514_v56  ;;  %v12590_v31 = vadd.f32 %v24479_v44, %v12513_v8  ;;  %v12518_v63 = vmul.f32 %v24464_v58, %v12368_v4  ;;  %v12517_v32 = vmul.f32 %v24467_v13, %v12152_v0  ;;  %v12370_v21 = vpop.f32.mrb[211].mxu1 }
 0x9c9   :  { %v12645_v22 = vmax.f32 %v12589_v19, 0.0  ;;  %v12592_v33 = vadd.f32 %v24483_v35, %v12515_v54  ;;  %v12593_v39 = vadd.f32 %v24470_v59, %v12516_v29  ;;  %v12519_v5 = vmul.f32 %v24473_v1, %v12370_v21  ;;  %13232 = vmatmul.mubr.bf16.gmra.mrb[8].mxu0 %v21118_v50 }
 0x9ca   :  { %v12647_v51 = vmax.f32 %v12591_v26, 0.0  ;;  %v12646_v30 = vmax.f32 %v12590_v31, 0.0  ;;  %v12595_v2 = vadd.f32 %v24476_v45, %v12518_v63  ;;  %v12594_v61 = vadd.f32 %v24479_v44, %v12517_v32  ;;  %13450 = vmatmul.mubr.bf16.gmra.mrb[16].mxu1 %v21118_v50  ;;  %13241 = vmatprep.mubr.bf16.mxu0 %v21119_v48  ;;  %v21120_v26 = vld [vmem:[#allocation2 + $0x180] sm:$0xff] }
 0x9cb   :  { %v12648_v62 = vmax.f32 %v12592_v33, 0.0  ;;  %v12649_v40 = vmax.f32 %v12593_v39, 0.0  ;;  %v12596_v47 = vadd.f32 %v24483_v35, %v12519_v5  ;;  %13459 = vmatprep.mubr.bf16.mxu1 %v21119_v48 }
 0x9cc   :  { %v24548_v14 = vmax.f32 %v12645_v22, %v12647_v51  ;;  %v12651_v10 = vmax.f32 %v12595_v2, 0.0  ;;  %v12650_v38 = vmax.f32 %v12594_v61, 0.0  ;;  %v12156_v41 = vpop.f32.mrb[200].mxu0  ;;  %v21121_v22 = vld [vmem:[#allocation2 + $0x1a0] sm:$0xff] }
 0x9cd   :  { %v24550_v20 = vmax.f32 %v12646_v30, %v12648_v62  ;;  %v12652_v37 = vmax.f32 %v12596_v47, 0.0  ;;  %v12520_v18 = vmul.f32 %v24461_v6, %v12156_v41  ;;  %v12374_v46 = vpop.f32.mrb[212].mxu1  ;;  %v12158_v27 = vpop.f32.mrb[201].mxu0 }
 0x9ce   :  { %v24553_v43 = vmax.f32 %v12649_v40, %v12651_v10  ;;  %v12522_v16 = vmul.f32 %v24464_v58, %v12374_v46  ;;  %v12521_v52 = vmul.f32 %v24467_v13, %v12158_v27  ;;  %v12376_v55 = vpop.f32.mrb[213].mxu1  ;;  %v12160_v23 = vpop.f32.mrb[202].mxu0 }
 0x9cf   :  { %v24557_v36 = vmax.f32 %v12650_v38, %v12652_v37  ;;  %v12597_v28 = vadd.f32 %v24470_v59, %v12520_v18  ;;  %v12523_v42 = vmul.f32 %v24473_v1, %v12376_v55  ;;  %v12524_v60 = vmul.f32 %v24461_v6, %v12160_v23  ;;  %v12378_v17 = vpop.f32.mrb[214].mxu1  ;;  %v12162_v49 = vpop.f32.mrb[203].mxu0 }
 0x9d0   :  { %v12599_v56 = vadd.f32 %v24476_v45, %v12522_v16  ;;  %v12598_v8 = vadd.f32 %v24479_v44, %v12521_v52  ;;  %v12526_v24 = vmul.f32 %v24464_v58, %v12378_v17  ;;  %v12525_v7 = vmul.f32 %v24467_v13, %v12162_v49  ;;  %v12380_v19 = vpop.f32.mrb[215].mxu1 }
 0x9d1   :  { %v12653_v54 = vmax.f32 %v12597_v28, 0.0  ;;  %v12600_v29 = vadd.f32 %v24483_v35, %v12523_v42  ;;  %v12601_v4 = vadd.f32 %v24470_v59, %v12524_v60  ;;  %v12527_v0 = vmul.f32 %v24473_v1, %v12380_v19  ;;  %13242 = vmatmul.mubr.bf16.gmra.mrb[12].mxu0 %v21120_v26  ;;  %v21122_v19 = vld [vmem:[#allocation2 + $0x198] sm:$0xff] }
 0x9d2   :  { %v12655_v31 = vmax.f32 %v12599_v56, 0.0  ;;  %v12654_v63 = vmax.f32 %v12598_v8, 0.0  ;;  %v12603_v32 = vadd.f32 %v24476_v45, %v12526_v24  ;;  %v12602_v21 = vadd.f32 %v24479_v44, %v12525_v7  ;;  %13460 = vmatmul.mubr.bf16.gmra.mrb[20].mxu1 %v21120_v26  ;;  %13251 = vmatprep.mubr.bf16.mxu0 %v21121_v22 }
 0x9d3   :  { %v12656_v33 = vmax.f32 %v12600_v29, 0.0  ;;  %v12657_v39 = vmax.f32 %v12601_v4, 0.0  ;;  %v12604_v5 = vadd.f32 %v24483_v35, %v12527_v0  ;;  %13469 = vmatprep.mubr.bf16.mxu1 %v21121_v22 }
 0x9d4   :  { %v24572_v50 = vmax.f32 %v12653_v54, %v12655_v31  ;;  %v12659_v51 = vmax.f32 %v12603_v32, 0.0  ;;  %v12658_v30 = vmax.f32 %v12602_v21, 0.0  ;;  %v12166_v2 = vpop.f32.mrb[204].mxu0 }
 0x9d5   :  { %v24574_v61 = vmax.f32 %v12654_v63, %v12656_v33  ;;  %v12660_v48 = vmax.f32 %v12604_v5, 0.0  ;;  %v12528_v62 = vmul.f32 %v24461_v6, %v12166_v2  ;;  %v12384_v40 = vpop.f32.mrb[216].mxu1  ;;  %v12168_v47 = vpop.f32.mrb[205].mxu0 }
 0x9d6   :  { %v24577_v10 = vmax.f32 %v12657_v39, %v12659_v51  ;;  %v12530_v38 = vmul.f32 %v24464_v58, %v12384_v40  ;;  %v12529_v41 = vmul.f32 %v24467_v13, %v12168_v47  ;;  %v12386_v37 = vpop.f32.mrb[217].mxu1  ;;  %v12170_v18 = vpop.f32.mrb[206].mxu0 }
 0x9d7   :  { %v24581_v46 = vmax.f32 %v12658_v30, %v12660_v48  ;;  %v12605_v27 = vadd.f32 %v24470_v59, %v12528_v62  ;;  %v12531_v16 = vmul.f32 %v24473_v1, %v12386_v37  ;;  %v12532_v52 = vmul.f32 %v24461_v6, %v12170_v18  ;;  %v12388_v55 = vpop.f32.mrb[218].mxu1  ;;  %v12172_v23 = vpop.f32.mrb[207].mxu0 }
 0x9d8   :  { %v12607_v28 = vadd.f32 %v24476_v45, %v12530_v38  ;;  %v12606_v42 = vadd.f32 %v24479_v44, %v12529_v41  ;;  %v12534_v60 = vmul.f32 %v24464_v58, %v12388_v55  ;;  %v12533_v17 = vmul.f32 %v24467_v13, %v12172_v23  ;;  %v12390_v49 = vpop.f32.mrb[219].mxu1 }
 0x9d9   :  { %v12661_v56 = vmax.f32 %v12605_v27, 0.0  ;;  %v12608_v8 = vadd.f32 %v24483_v35, %v12531_v16  ;;  %v12609_v24 = vadd.f32 %v24470_v59, %v12532_v52  ;;  %v12535_v7 = vmul.f32 %v24473_v1, %v12390_v49  ;;  %13252 = vmatmul.mubr.bf16.gmra.mrb[24].mxu0 %v21122_v19 }
 0x9da   :  { %v12663_v54 = vmax.f32 %v12607_v28, 0.0  ;;  %v12662_v29 = vmax.f32 %v12606_v42, 0.0  ;;  %v12611_v4 = vadd.f32 %v24476_v45, %v12534_v60  ;;  %v12610_v0 = vadd.f32 %v24479_v44, %v12533_v17  ;;  %13470 = vmatmul.mubr.bf16.gmra.mrb[32].mxu1 %v21122_v19  ;;  %13290 = vmatprep.mubr.bf16.mxu0 %v24410_v9 }
 0x9db   :  { %v12664_v26 = vmax.f32 %v12608_v8, 0.0  ;;  %v12665_v31 = vmax.f32 %v12609_v24, 0.0  ;;  %v12612_v63 = vadd.f32 %v24483_v35, %v12535_v7  ;;  %13508 = vmatprep.mubr.bf16.mxu1 %v24410_v9  ;;  %v21123_v24 = vld [vmem:[#allocation2 + $0x100] sm:$0xff] }
 0x9dc   :  { %v24598_v32 = vmax.f32 %v12661_v56, %v12663_v54  ;;  %v12667_v21 = vmax.f32 %v12611_v4, 0.0  ;;  %v12666_v22 = vmax.f32 %v12610_v0, 0.0  ;;  %v12176_v33 = vpop.f32.mrb[208].mxu0  ;;  %v21124_v4 = vld [vmem:[#allocation5 + $0x480] ss:$16 sps:$4 sm:$0xff]  }
 0x9dd   :  { %v24600_v39 = vmax.f32 %v12662_v29, %v12664_v26  ;;  %v12668_v5 = vmax.f32 %v12612_v63, 0.0  ;;  %v12536_v51 = vmul.f32 %v24461_v6, %v12176_v33  ;;  %v12394_v30 = vpop.f32.mrb[220].mxu1  ;;  %v12178_v2 = vpop.f32.mrb[209].mxu0  ;;  %v21125_v63 = vld [vmem:[#allocation5 + $0x488] ss:$16 sps:$4 sm:$0xff]  }
 0x9de   :  { %v24603_v48 = vmax.f32 %v12665_v31, %v12667_v21  ;;  %v12538_v62 = vmul.f32 %v24464_v58, %v12394_v30  ;;  %v12537_v40 = vmul.f32 %v24467_v13, %v12178_v2  ;;  %v12396_v47 = vpop.f32.mrb[221].mxu1  ;;  %v12180_v38 = vpop.f32.mrb[210].mxu0  ;;  %v21126_v21 = vld [vmem:[#allocation5 + $0x4a4] ss:$16 sps:$4 sm:$0xff]   ;;  %v21127_v30 = vld [vmem:[#allocation5 + $0x4ac] ss:$16 sps:$4 sm:$0xff]  }
 0x9df   :  { %v24607_v41 = vmax.f32 %v12666_v22, %v12668_v5  ;;  %v12613_v37 = vadd.f32 %v24470_v59, %v12536_v51  ;;  %v12539_v18 = vmul.f32 %v24473_v1, %v12396_v47  ;;  %v12540_v27 = vmul.f32 %v24461_v6, %v12180_v38  ;;  %v12398_v16 = vpop.f32.mrb[222].mxu1  ;;  %v12182_v52 = vpop.f32.mrb[211].mxu0 }
 0x9e0   :  { %v12615_v55 = vadd.f32 %v24476_v45, %v12538_v62  ;;  %v12614_v23 = vadd.f32 %v24479_v44, %v12537_v40  ;;  %v12542_v28 = vmul.f32 %v24464_v58, %v12398_v16  ;;  %v12541_v42 = vmul.f32 %v24467_v13, %v12182_v52  ;;  %v12400_v60 = vpop.f32.mrb[223].mxu1 }
 0x9e1   :  { %v12669_v17 = vmax.f32 %v12613_v37, 0.0  ;;  %v12616_v49 = vadd.f32 %v24483_v35, %v12539_v18  ;;  %v12617_v56 = vadd.f32 %v24470_v59, %v12540_v27  ;;  %v12543_v8 = vmul.f32 %v24473_v1, %v12400_v60  ;;  %17694 = vmatmul.mubr.msk.bf16.vlgmr.msra.gmra.mrb[28].mxu0 %vm105_vm0, %v21123_v24 }
 0x9e2   :  { %v12671_v7 = vmax.f32 %v12615_v55, 0.0  ;;  %v12670_v19 = vmax.f32 %v12614_v23, 0.0  ;;  %v12619_v54 = vadd.f32 %v24476_v45, %v12542_v28  ;;  %v12618_v29 = vadd.f32 %v24479_v44, %v12541_v42  ;;  %17702 = vmatmul.mubr.msk.bf16.vlgmr.msra.gmra.mrb[40].mxu1 %vm105_vm0, %v21123_v24  ;;  %13586 = vmatpush1.bf16.msra.mxu0 %v21124_v4  ;;  %v21128_v55 = vld [vmem:[#allocation5 + $0x4a0] ss:$16 sps:$4 sm:$0xff]  }
 0x9e3   :  { %v12672_v0 = vmax.f32 %v12616_v49, 0.0  ;;  %v12673_v26 = vmax.f32 %v12617_v56, 0.0  ;;  %v12620_v31 = vadd.f32 %v24483_v35, %v12543_v8  ;;  %13804 = vmatpush1.bf16.msra.mxu1 %v21125_v63  ;;  %13587 = vmatprep.subr.bf16.mxu0 %v21126_v21  ;;  %v21129_v49 = vld [vmem:[#allocation5 + $0x4a8] ss:$16 sps:$4 sm:$0xff]   ;;  %v21132_v21 = vld [vmem:[#allocation5 + $0x4cc] ss:$16 sps:$4 sm:$0xff]  }
 0x9e4   :  { %v24624_v22 = vmax.f32 %v12669_v17, %v12671_v7  ;;  %v12675_v33 = vmax.f32 %v12619_v54, 0.0  ;;  %v12674_v5 = vmax.f32 %v12618_v29, 0.0  ;;  %v12186_v51 = vpop.f32.mrb[212].mxu0  ;;  %13805 = vmatprep.subr.bf16.mxu1 %v21127_v30  ;;  %13300 = vmatprep.mubr.bf16.mxu0 %v24410_v9  ;;  %v21130_v29 = vld [vmem:[#allocation5 + $0x4c4] ss:$16 sps:$4 sm:$0xff]   ;;  %v21131_v63 = vld [vmem:[#allocation2 + $0x118] sm:$0xff] }
 0x9e5   :  { %v24627_v2 = vmax.f32 %v12670_v19, %v12672_v0  ;;  %v12676_v62 = vmax.f32 %v12620_v31, 0.0  ;;  %v12544_v40 = vmul.f32 %v24461_v6, %v12186_v51  ;;  %v12404_v47 = vpop.f32.mrb[224].mxu1  ;;  %v12188_v38 = vpop.f32.mrb[213].mxu0  ;;  %13518 = vmatprep.mubr.bf16.mxu1 %v24410_v9 }
 0x9e6   :  { %v24631_v37 = vmax.f32 %v12673_v26, %v12675_v33  ;;  %v12546_v18 = vmul.f32 %v24464_v58, %v12404_v47  ;;  %v12545_v27 = vmul.f32 %v24467_v13, %v12188_v38  ;;  %v12406_v16 = vpop.f32.mrb[225].mxu1  ;;  %v12190_v52 = vpop.f32.mrb[214].mxu0  ;;  %13588 = vmatpush1.bf16.msra.mxu0 %v21128_v55 }
 0x9e7   :  { %v24635_v23 = vmax.f32 %v12674_v5, %v12676_v62  ;;  %v12621_v28 = vadd.f32 %v24470_v59, %v12544_v40  ;;  %v12547_v42 = vmul.f32 %v24473_v1, %v12406_v16  ;;  %v12548_v60 = vmul.f32 %v24461_v6, %v12190_v52  ;;  %v12408_v17 = vpop.f32.mrb[226].mxu1  ;;  %13806 = vmatpush1.bf16.msra.mxu1 %v21129_v49  ;;  %v12192_v56 = vpop.f32.mrb[215].mxu0  ;;  %v21133_v62 = vld [vmem:[#allocation5 + $0x4c0] ss:$16 sps:$4 sm:$0xff]  }
 0x9e8   :  { %v12623_v8 = vadd.f32 %v24476_v45, %v12546_v18  ;;  %v12622_v24 = vadd.f32 %v24479_v44, %v12545_v27  ;;  %v12550_v7 = vmul.f32 %v24464_v58, %v12408_v17  ;;  %v12549_v19 = vmul.f32 %v24467_v13, %v12192_v56  ;;  %v12410_v54 = vpop.f32.mrb[227].mxu1  ;;  %13589 = vmatprep.subr.bf16.mxu0 %v21130_v29  ;;  %v21134_v18 = vld [vmem:[#allocation5 + $0x4c8] ss:$16 sps:$4 sm:$0xff]   ;;  %v21135_v27 = vld [vmem:[#allocation5 + $0x4e4] ss:$16 sps:$4 sm:$0xff]  }
 0x9e9   :  { %v12677_v4 = vmax.f32 %v12621_v28, 0.0  ;;  %v12624_v0 = vadd.f32 %v24483_v35, %v12547_v42  ;;  %v12625_v26 = vadd.f32 %v24470_v59, %v12548_v60  ;;  %v12551_v31 = vmul.f32 %v24473_v1, %v12410_v54  ;;  %17695 = vmatmul.mubr.msk.bf16.gmra.mrb[32].mxu0 %vm105_vm0, %v21131_v63  ;;  %13807 = vmatprep.subr.bf16.mxu1 %v21132_v21  ;;  %v21136_v42 = vld [vmem:[#allocation5 + $0x4ec] ss:$16 sps:$4 sm:$0xff]   ;;  %v21138_v54 = vld [vmem:[#allocation5 + $0x4e0] ss:$16 sps:$4 sm:$0xff]  }
 0x9ea   :  { %v12679_v33 = vmax.f32 %v12623_v8, 0.0  ;;  %v12678_v5 = vmax.f32 %v12622_v24, 0.0  ;;  %v12627_v51 = vadd.f32 %v24476_v45, %v12550_v7  ;;  %v12626_v30 = vadd.f32 %v24479_v44, %v12549_v19  ;;  %17703 = vmatmul.mubr.msk.bf16.gmra.mrb[44].mxu1 %vm105_vm0, %v21131_v63  ;;  %13590 = vmatpush1.bf16.msra.mxu0 %v21133_v62  ;;  %v24657_v8 = vld [vmem:[#allocation2] sm:$0xff]  ;;  %v21141_v63 = vld [vmem:[#allocation5 + $0x50c] ss:$16 sps:$4 sm:$0xff]   ;;  %v21142_v21 = vld [vmem:[#allocation2 + $0x130] sm:$0xff] }
 0x9eb   :  { %v12680_v40 = vmax.f32 %v12624_v0, 0.0  ;;  %v12681_v47 = vmax.f32 %v12625_v26, 0.0  ;;  %v12628_v38 = vadd.f32 %v24483_v35, %v12551_v31  ;;  %13808 = vmatpush1.bf16.msra.mxu1 %v21134_v18  ;;  %13591 = vmatprep.subr.bf16.mxu0 %v21135_v27  ;;  %v21139_v0 = vld [vmem:[#allocation5 + $0x4e8] ss:$16 sps:$4 sm:$0xff]   ;;  %v21140_v26 = vld [vmem:[#allocation5 + $0x504] ss:$16 sps:$4 sm:$0xff]  }
 0x9ec   :  { %v24652_v16 = vmax.f32 %v12677_v4, %v12679_v33  ;;  %v12683_v52 = vmax.f32 %v12627_v51, 0.0  ;;  %v12682_v55 = vmax.f32 %v12626_v30, 0.0  ;;  %v12196_v28 = vpop.f32.mrb[252].mxu0  ;;  %13809 = vmatprep.subr.bf16.mxu1 %v21136_v42  ;;  %13310 = vmatprep.mubr.bf16.mxu0 %v24410_v9  ;;  %v21143_v33 = vld [vmem:[#allocation5 + $0x500] ss:$16 sps:$4 sm:$0xff]   ;;  %v21151_v18 = vld [vmem:[#allocation2 + $0x148] sm:$0xff] }
 0x9ed   :  { %v24655_v60 = vmax.f32 %v12678_v5, %v12680_v40  ;;  %v12684_v17 = vmax.f32 %v12628_v38, 0.0  ;;  %v12414_v49 = vpop.f32.mrb[0].mxu1  ;;  %v12197_v56 = vpop.f32.mrb[253].mxu0  ;;  %13528 = vmatprep.mubr.bf16.mxu1 %v24657_v8  ;;  %v21144_v5 = vld [vmem:[#allocation5 + $0x508] ss:$16 sps:$4 sm:$0xff]  }
 0x9ee   :  { %v24660_v24 = vmax.f32 %v12681_v47, %v12683_v52  ;;  %v12415_v7 = vpop.f32.mrb[1].mxu1  ;;  %v12198_v19 = vpop.f32.mrb[254].mxu0  ;;  %13592 = vmatpush1.bf16.msra.mxu0 %v21138_v54  ;;  %v21145_v51 = vld [vmem:[#allocation5 + $0x524] ss:$16 sps:$4 sm:$0xff]   ;;  %v21146_v30 = vld [vmem:[#allocation5 + $0x52c] ss:$16 sps:$4 sm:$0xff]  }
 0x9ef   :  { %v24662_v29 = vmax.f32 %v12682_v55, %v12684_v17  ;;  %v12416_v4 = vpop.f32.mrb[2].mxu1  ;;  %13810 = vmatpush1.bf16.msra.mxu1 %v21139_v0  ;;  %v12199_v9 = vpop.f32.mrb[255].mxu0  ;;  %13593 = vmatprep.subr.bf16.mxu0 %v21140_v26  ;;  %v21147_v62 = vld [vmem:[#allocation5 + $0x520] ss:$16 sps:$4 sm:$0xff]   ;;  %v21148_v40 = vld [vmem:[#allocation5 + $0x528] ss:$16 sps:$4 sm:$0xff]  }
 0x9f0   :  { %v12417_v31 = vpop.f32.mrb[3].mxu1  ;;  %13811 = vmatprep.subr.bf16.mxu1 %v21141_v63  ;;  %v21149_v47 = vld [vmem:[#allocation5 + $0x544] ss:$16 sps:$4 sm:$0xff]   ;;  %v21150_v38 = vld [vmem:[#allocation5 + $0x54c] ss:$16 sps:$4 sm:$0xff]  }
 0x9f1   :  { %17696 = vmatmul.mubr.msk.bf16.gmra.mrb[36].mxu0 %vm105_vm0, %v21142_v21  ;;  %v21152_v27 = vld [vmem:[#allocation5 + $0x540] ss:$16 sps:$4 sm:$0xff]   ;;  %v21153_v52 = vld [vmem:[#allocation5 + $0x548] ss:$16 sps:$4 sm:$0xff]   ;;  %v21154_v55 = vld [vmem:[#allocation5 + $0x564] ss:$16 sps:$4 sm:$0xff]  }
 0x9f2   :  { %17704 = vmatmul.mubr.msk.bf16.gmra.mrb[48].mxu1 %vm105_vm0, %v21142_v21  ;;  %13594 = vmatpush1.bf16.msra.mxu0 %v21143_v33  ;;  %v21155_v28 = vld [vmem:[#allocation5 + $0x56c] ss:$16 sps:$4 sm:$0xff]   ;;  %v21156_v42 = vld [vmem:[#allocation5 + $0x560] ss:$16 sps:$4 sm:$0xff]   ;;  %v21157_v17 = vld [vmem:[#allocation5 + $0x568] ss:$16 sps:$4 sm:$0xff]  }
 0x9f3   :  { %13812 = vmatpush1.bf16.msra.mxu1 %v21144_v5  ;;  %13595 = vmatprep.subr.bf16.mxu0 %v21145_v51  ;;  %v21158_v49 = vld [vmem:[#allocation5 + $0x584] ss:$16 sps:$4 sm:$0xff]   ;;  %v21159_v56 = vld [vmem:[#allocation5 + $0x58c] ss:$16 sps:$4 sm:$0xff]   ;;  %v21161_v19 = vld [vmem:[#allocation5 + $0x580] ss:$16 sps:$4 sm:$0xff]  }
 0x9f4   :  { %13813 = vmatprep.subr.bf16.mxu1 %v21146_v30  ;;  %13320 = vmatprep.mubr.bf16.mxu0 %v24657_v8  ;;  %v21160_v7 = vld [vmem:[#allocation2 + $0x160] sm:$0xff]  ;;  %v21162_v54 = vld [vmem:[#allocation5 + $0x588] ss:$16 sps:$4 sm:$0xff]   ;;  %v21164_v0 = vld [vmem:[#allocation5 + $0x5ac] ss:$16 sps:$4 sm:$0xff]  }
 0x9f5   :  { %13538 = vmatprep.mubr.bf16.mxu1 %v24657_v8  ;;  %v21163_v4 = vld [vmem:[#allocation5 + $0x5a4] ss:$16 sps:$4 sm:$0xff]   ;;  %v21165_v9 = vld [vmem:[#allocation5 + $0x5a0] ss:$16 sps:$4 sm:$0xff]   ;;  %v21166_v26 = vld [vmem:[#allocation5 + $0x5a8] ss:$16 sps:$4 sm:$0xff]  }
 0x9f6   :  { %13596 = vmatpush1.bf16.msra.mxu0 %v21147_v62  ;;  %v21167_v31 = vld [vmem:[#allocation5 + $0x5c4] ss:$16 sps:$4 sm:$0xff]   ;;  %v21168_v63 = vld [vmem:[#allocation5 + $0x5cc] ss:$16 sps:$4 sm:$0xff]   ;;  %v21170_v33 = vld [vmem:[#allocation5 + $0x5c0] ss:$16 sps:$4 sm:$0xff]  }
 0x9f7   :  { %13814 = vmatpush1.bf16.msra.mxu1 %v21148_v40  ;;  %13597 = vmatprep.subr.bf16.mxu0 %v21149_v47  ;;  %v21169_v21 = vld [vmem:[#allocation2 + $0x178] sm:$0xff]  ;;  %v21172_v51 = vld [vmem:[#allocation5 + $0x5e4] ss:$16 sps:$4 sm:$0xff]   ;;  %v21174_v62 = vld [vmem:[#allocation5 + $0x5e0] ss:$16 sps:$4 sm:$0xff]  }
 0x9f8   :  { %13815 = vmatprep.subr.bf16.mxu1 %v21150_v38  ;;  %v21171_v5 = vld [vmem:[#allocation5 + $0x5c8] ss:$16 sps:$4 sm:$0xff]   ;;  %v21173_v30 = vld [vmem:[#allocation5 + $0x5ec] ss:$16 sps:$4 sm:$0xff]   ;;  %v21176_v47 = vld [vmem:[#allocation5 + $0x604] ss:$16 sps:$4 sm:$0xff]  }
 0x9f9   :  { %17697 = vmatmul.mubr.msk.bf16.gmra.mrb[0].mxu0 %vm105_vm0, %v21151_v18  ;;  %v21175_v40 = vld [vmem:[#allocation5 + $0x5e8] ss:$16 sps:$4 sm:$0xff]   ;;  %v21177_v38 = vld [vmem:[#allocation5 + $0x60c] ss:$16 sps:$4 sm:$0xff]  }
 0x9fa   :  { %17705 = vmatmul.mubr.msk.bf16.gmra.mrb[8].mxu1 %vm105_vm0, %v21151_v18  ;;  %13598 = vmatpush1.bf16.msra.mxu0 %v21152_v27  ;;  %v21178_v18 = vld [vmem:[#allocation2 + $0x190] sm:$0xff] }
 0x9fb   :  { %13816 = vmatpush1.bf16.msra.mxu1 %v21153_v52  ;;  %13599 = vmatprep.subr.bf16.mxu0 %v21154_v55  ;;  %v21179_v27 = vld [vmem:[#allocation5 + $0x600] ss:$16 sps:$4 sm:$0xff]   ;;  %v21180_v52 = vld [vmem:[#allocation5 + $0x608] ss:$16 sps:$4 sm:$0xff]   ;;  %v21181_v55 = vld [vmem:[#allocation5 + $0x624] ss:$16 sps:$4 sm:$0xff]  }
 0x9fc   :  { %13817 = vmatprep.subr.bf16.mxu1 %v21155_v28  ;;  %13330 = vmatprep.mubr.bf16.mxu0 %v24657_v8  ;;  %v21182_v28 = vld [vmem:[#allocation5 + $0x62c] ss:$16 sps:$4 sm:$0xff]  }
 0x9fd   :  { %13548 = vmatprep.mubr.bf16.mxu1 %v24657_v8 }
 0x9fe   :  { %13600 = vmatpush1.bf16.msra.mxu0 %v21156_v42  ;;  %v21183_v42 = vld [vmem:[#allocation5 + $0x620] ss:$16 sps:$4 sm:$0xff]  }
 0x9ff   :  { %13818 = vmatpush1.bf16.msra.mxu1 %v21157_v17  ;;  %13601 = vmatprep.subr.bf16.mxu0 %v21158_v49  ;;  %v21184_v17 = vld [vmem:[#allocation5 + $0x628] ss:$16 sps:$4 sm:$0xff]   ;;  %v21185_v49 = vld [vmem:[#allocation5 + $0x644] ss:$16 sps:$4 sm:$0xff]  }
 0xa00   :  { %13819 = vmatprep.subr.bf16.mxu1 %v21159_v56  ;;  %v21186_v56 = vld [vmem:[#allocation5 + $0x64c] ss:$16 sps:$4 sm:$0xff]  }
 0xa01   :  { %17698 = vmatmul.mubr.msk.bf16.gmra.mrb[4].mxu0 %vm105_vm0, %v21160_v7 }
 0xa02   :  { %17706 = vmatmul.mubr.msk.bf16.gmra.mrb[12].mxu1 %vm105_vm0, %v21160_v7  ;;  %13602 = vmatpush1.bf16.msra.mxu0 %v21161_v19  ;;  %v21187_v7 = vld [vmem:[#allocation2 + $0x1a8] sm:$0xff]  ;;  %v21188_v19 = vld [vmem:[#allocation5 + $0x640] ss:$16 sps:$4 sm:$0xff]  }
 0xa03   :  { %13820 = vmatpush1.bf16.msra.mxu1 %v21162_v54  ;;  %13603 = vmatprep.subr.bf16.mxu0 %v21163_v4  ;;  %v21189_v54 = vld [vmem:[#allocation2 + $0x110] sm:$0xff]  ;;  %v21190_v4 = vld [vmem:[#allocation5 + $0x648] ss:$16 sps:$4 sm:$0xff]  }
 0xa04   :  { %13821 = vmatprep.subr.bf16.mxu1 %v21164_v0  ;;  %13340 = vmatprep.mubr.bf16.mxu0 %v24657_v8  ;;  %v21191_v0 = vld [vmem:[#allocation5 + $0x664] ss:$16 sps:$4 sm:$0xff]  }
 0xa05   :  { %13558 = vmatprep.mubr.bf16.mxu1 %v24657_v8 }
 0xa06   :  { %13604 = vmatpush1.bf16.msra.mxu0 %v21165_v9  ;;  %v21192_v9 = vld [vmem:[#allocation5 + $0x66c] ss:$16 sps:$4 sm:$0xff]  }
 0xa07   :  { %13822 = vmatpush1.bf16.msra.mxu1 %v21166_v26  ;;  %13605 = vmatprep.subr.bf16.mxu0 %v21167_v31  ;;  %v21193_v26 = vld [vmem:[#allocation5 + $0x660] ss:$16 sps:$4 sm:$0xff]   ;;  %v21194_v31 = vld [vmem:[#allocation5 + $0x668] ss:$16 sps:$4 sm:$0xff]  }
 0xa08   :  { %13823 = vmatprep.subr.bf16.mxu1 %v21168_v63  ;;  %v21195_v63 = vld [vmem:[#allocation5 + $0x684] ss:$16 sps:$4 sm:$0xff]  }
 0xa09   :  { %17699 = vmatmul.mubr.msk.bf16.gmra.mrb[8].mxu0 %vm105_vm0, %v21169_v21 }
 0xa0a   :  { %17707 = vmatmul.mubr.msk.bf16.gmra.mrb[16].mxu1 %vm105_vm0, %v21169_v21  ;;  %13606 = vmatpush1.bf16.msra.mxu0 %v21170_v33  ;;  %v21196_v21 = vld [vmem:[#allocation5 + $0x68c] ss:$16 sps:$4 sm:$0xff]  }
 0xa0b   :  { %13824 = vmatpush1.bf16.msra.mxu1 %v21171_v5  ;;  %13607 = vmatprep.subr.bf16.mxu0 %v21172_v51  ;;  %v21197_v33 = vld [vmem:[#allocation2 + $0x108] sm:$0xff]  ;;  %v21199_v51 = vld [vmem:[#allocation5 + $0x680] ss:$16 sps:$4 sm:$0xff]  }
 0xa0c   :  { %13825 = vmatprep.subr.bf16.mxu1 %v21173_v30  ;;  %13350 = vmatprep.mubr.bf16.mxu0 %v24657_v8  ;;  %v21198_v5 = vld [vmem:[#allocation2 + $0x128] sm:$0xff] }
 0xa0d   :  { %13568 = vmatprep.mubr.bf16.mxu1 %v24657_v8  ;;  %v21200_v30 = vld [vmem:[#allocation5 + $0x688] ss:$16 sps:$4 sm:$0xff]  }
 0xa0e   :  { %13608 = vmatpush1.bf16.msra.mxu0 %v21174_v62  ;;  %v21201_v62 = vld [vmem:[#allocation5 + $0x6a4] ss:$16 sps:$4 sm:$0xff]  }
 0xa0f   :  { %13826 = vmatpush1.bf16.msra.mxu1 %v21175_v40  ;;  %13609 = vmatprep.subr.bf16.mxu0 %v21176_v47  ;;  %v21202_v40 = vld [vmem:[#allocation5 + $0x6ac] ss:$16 sps:$4 sm:$0xff]   ;;  %v21203_v47 = vld [vmem:[#allocation5 + $0x6a0] ss:$16 sps:$4 sm:$0xff]  }
 0xa10   :  { %13827 = vmatprep.subr.bf16.mxu1 %v21177_v38  ;;  %v21204_v38 = vld [vmem:[#allocation5 + $0x6a8] ss:$16 sps:$4 sm:$0xff]  }
 0xa11   :  { %17700 = vmatmul.mubr.msk.bf16.gmra.mrb[12].mxu0 %vm105_vm0, %v21178_v18 }
 0xa12   :  { %17708 = vmatmul.mubr.msk.bf16.gmra.mrb[20].mxu1 %vm105_vm0, %v21178_v18  ;;  %13610 = vmatpush1.bf16.msra.mxu0 %v21179_v27  ;;  %v21205_v18 = vld [vmem:[#allocation5 + $0x6c4] ss:$16 sps:$4 sm:$0xff]  }
 0xa13   :  { %13828 = vmatpush1.bf16.msra.mxu1 %v21180_v52  ;;  %13611 = vmatprep.subr.bf16.mxu0 %v21181_v55  ;;  %v21206_v27 = vld [vmem:[#allocation2 + $0x120] sm:$0xff]  ;;  %v21207_v52 = vld [vmem:[#allocation5 + $0x6cc] ss:$16 sps:$4 sm:$0xff]  }
 0xa14   :  { %13829 = vmatprep.subr.bf16.mxu1 %v21182_v28  ;;  %13360 = vmatprep.mubr.bf16.mxu0 %v24657_v8  ;;  %v21208_v55 = vld [vmem:[#allocation2 + $0x140] sm:$0xff] }
 0xa15   :  { %13578 = vmatprep.mubr.bf16.mxu1 %v24657_v8 }
 0xa16   :  { %13612 = vmatpush1.bf16.msra.mxu0 %v21183_v42 }
 0xa17   :  { %13830 = vmatpush1.bf16.msra.mxu1 %v21184_v17  ;;  %13613 = vmatprep.subr.bf16.mxu0 %v21185_v49 }
 0xa18   :  { %13831 = vmatprep.subr.bf16.mxu1 %v21186_v56 }
 0xa19   :  { %17701 = vmatmul.mubr.msk.bf16.gmra.mrb[40].mxu0 %vm105_vm0, %v21187_v7 }
 0xa1a   :  { %17709 = vmatmul.mubr.msk.bf16.gmra.mrb[52].mxu1 %vm105_vm0, %v21187_v7  ;;  %13614 = vmatpush1.bf16.msra.mxu0 %v21188_v19 }
 0xa1b   :  { %13617 = vmatprep.mubr.bf16.mxu0 %v21189_v54  ;;  %13832 = vmatpush1.bf16.msra.mxu1 %v21190_v4  ;;  %v21209_v4 = vld [vmem:[#allocation2 + $0x138] sm:$0xff] }
 0xa1c   :  { %13835 = vmatprep.mubr.bf16.mxu1 %v21189_v54  ;;  %13615 = vmatprep.subr.bf16.mxu0 %v21191_v0  ;;  %v21210_v0 = vld [vmem:[#allocation2 + $0x158] sm:$0xff] }
 0xa1d   :  { %13833 = vmatprep.subr.bf16.mxu1 %v21192_v9  ;;  %v21211_v9 = vld [vmem:[#allocation2 + $0x150] sm:$0xff] }
 0xa1e   :  { %13616 = vmatpush1.bf16.msra.mxu0 %v21193_v26  ;;  %v21212_v26 = vld [vmem:[#allocation2 + $0x170] sm:$0xff] }
 0xa1f   :  { %13834 = vmatpush1.bf16.msra.mxu1 %v21194_v31  ;;  %13694 = vmatprep.subr.bf16.mxu0 %v21195_v63  ;;  %v21213_v31 = vld [vmem:[#allocation2 + $0x168] sm:$0xff] }
 0xa20   :  { %13912 = vmatprep.subr.bf16.mxu1 %v21196_v21  ;;  %v21214_v63 = vld [vmem:[#allocation2 + $0x188] sm:$0xff]  ;;  %v21215_v21 = vld [vmem:[#allocation2 + $0x180] sm:$0xff] }
 0xa21   :  { %13618 = vmatmul.mubr.bf16.vlgmr.msra.gmra.mrb[28].mxu0 %v21197_v33 }
 0xa22   :  { %13836 = vmatmul.mubr.bf16.vlgmr.msra.gmra.mrb[40].mxu1 %v21197_v33  ;;  %13627 = vmatprep.mubr.bf16.mxu0 %v21198_v5  ;;  %v21216_v33 = vld [vmem:[#allocation2 + $0x1a0] sm:$0xff] }
 0xa23   :  { %13695 = vmatpush1.bf16.msra.mxu0 %v21199_v51  ;;  %13845 = vmatprep.mubr.bf16.mxu1 %v21198_v5  ;;  %v21217_v5 = vld [vmem:[#allocation2 + $0x198] sm:$0xff] }
 0xa24   :  { %13913 = vmatpush1.bf16.msra.mxu1 %v21200_v30  ;;  %13696 = vmatprep.subr.bf16.mxu0 %v21201_v62  ;;  %v21218_v51 = vld [vmem:[#allocation2 + $0x118] sm:$0xff]  ;;  %v21219_v30 = vld [vmem:[#allocation5 + $0x6c0] ss:$16 sps:$4 sm:$0xff]  }
 0xa25   :  { %13914 = vmatprep.subr.bf16.mxu1 %v21202_v40  ;;  %v21220_v62 = vld [vmem:[#allocation5 + $0x6c8] ss:$16 sps:$4 sm:$0xff]   ;;  %v21221_v40 = vld [vmem:[#allocation5 + $0x6e4] ss:$16 sps:$4 sm:$0xff]  }
 0xa27   :  { %13697 = vmatpush1.bf16.msra.mxu0 %v21203_v47  ;;  %v21222_v47 = vld [vmem:[#allocation5 + $0x6ec] ss:$16 sps:$4 sm:$0xff]  }
 0xa28   :  { %13915 = vmatpush1.bf16.msra.mxu1 %v21204_v38  ;;  %14077 = vmatprep.subr.bf16.mxu0 %v21205_v18  ;;  %v21223_v38 = vld [vmem:[#allocation5 + $0x6e0] ss:$16 sps:$4 sm:$0xff]   ;;  %v21224_v18 = vld [vmem:[#allocation5 + $0x6e8] ss:$16 sps:$4 sm:$0xff]  }
 0xa29   :  { %13628 = vmatmul.mubr.bf16.gmra.mrb[32].mxu0 %v21206_v27  ;;  %14295 = vmatprep.subr.bf16.mxu1 %v21207_v52  ;;  %v21226_v52 = vld [vmem:[#allocation5 + $0x70c] ss:$16 sps:$4 sm:$0xff]  }
 0xa2a   :  { %13846 = vmatmul.mubr.bf16.gmra.mrb[44].mxu1 %v21206_v27  ;;  %13637 = vmatprep.mubr.bf16.mxu0 %v21208_v55  ;;  %v21225_v27 = vld [vmem:[#allocation5 + $0x704] ss:$16 sps:$4 sm:$0xff]  }
 0xa2b   :  { %13855 = vmatprep.mubr.bf16.mxu1 %v21208_v55  ;;  %v21227_v55 = vld [vmem:[#allocation2 + $0x130] sm:$0xff] }
 0xa2c   :  { %v12817_v28 = vpop.f32.mrb[16].mxu0 }
 0xa2d   :  { %v13035_v42 = vpop.f32.mrb[24].mxu1  ;;  %v12818_v17 = vpop.f32.mrb[17].mxu0  ;;  %v21228_v28 = vld [vmem:[#allocation5 + $0x700] ss:$16 sps:$4 sm:$0xff]  }
 0xa2e   :  { %v13036_v49 = vpop.f32.mrb[25].mxu1  ;;  %v12819_v56 = vpop.f32.mrb[18].mxu0  ;;  %v21229_v42 = vld [vmem:[#allocation5 + $0x708] ss:$16 sps:$4 sm:$0xff]   ;;  %v21230_v17 = vld [vmem:[#allocation5 + $0x724] ss:$16 sps:$4 sm:$0xff]  }
 0xa2f   :  { %v13037_v7 = vpop.f32.mrb[26].mxu1  ;;  %v12820_v19 = vpop.f32.mrb[19].mxu0  ;;  %v21231_v56 = vld [vmem:[#allocation5 + $0x72c] ss:$16 sps:$4 sm:$0xff]  }
 0xa30   :  { %v13038_v54 = vpop.f32.mrb[27].mxu1 }
 0xa31   :  { %13638 = vmatmul.mubr.bf16.gmra.mrb[36].mxu0 %v21209_v4 }
 0xa32   :  { %13856 = vmatmul.mubr.bf16.gmra.mrb[48].mxu1 %v21209_v4  ;;  %13647 = vmatprep.mubr.bf16.mxu0 %v21210_v0 }
 0xa33   :  { %13865 = vmatprep.mubr.bf16.mxu1 %v21210_v0  ;;  %v21232_v0 = vld [vmem:[#allocation5 + $0x720] ss:$16 sps:$4 sm:$0xff]  }
 0xa39   :  { %13648 = vmatmul.mubr.bf16.gmra.mrb[0].mxu0 %v21211_v9 }
 0xa3a   :  { %13866 = vmatmul.mubr.bf16.gmra.mrb[8].mxu1 %v21211_v9  ;;  %13657 = vmatprep.mubr.bf16.mxu0 %v21212_v26 }
 0xa3b   :  { %13875 = vmatprep.mubr.bf16.mxu1 %v21212_v26  ;;  %v21233_v26 = vld [vmem:[#allocation5 + $0x728] ss:$16 sps:$4 sm:$0xff]  }
 0xa41   :  { %13658 = vmatmul.mubr.bf16.gmra.mrb[4].mxu0 %v21213_v31 }
 0xa42   :  { %13876 = vmatmul.mubr.bf16.gmra.mrb[12].mxu1 %v21213_v31  ;;  %13667 = vmatprep.mubr.bf16.mxu0 %v21214_v63 }
 0xa43   :  { %13885 = vmatprep.mubr.bf16.mxu1 %v21214_v63  ;;  %v21234_v63 = vld [vmem:[#allocation5 + $0x744] ss:$16 sps:$4 sm:$0xff]  }
 0xa49   :  { %13668 = vmatmul.mubr.bf16.gmra.mrb[8].mxu0 %v21215_v21 }
 0xa4a   :  { %13886 = vmatmul.mubr.bf16.gmra.mrb[16].mxu1 %v21215_v21  ;;  %13677 = vmatprep.mubr.bf16.mxu0 %v21216_v33 }
 0xa4b   :  { %13895 = vmatprep.mubr.bf16.mxu1 %v21216_v33  ;;  %v21235_v33 = vld [vmem:[#allocation5 + $0x74c] ss:$16 sps:$4 sm:$0xff]  }
 0xa51   :  { %13678 = vmatmul.mubr.bf16.gmra.mrb[12].mxu0 %v21217_v5 }
 0xa52   :  { %13896 = vmatmul.mubr.bf16.gmra.mrb[20].mxu1 %v21217_v5  ;;  %13687 = vmatprep.mubr.bf16.mxu0 %v24657_v8  ;;  %v21236_v5 = vld [vmem:[#allocation2 + $0x148] sm:$0xff] }
 0xa53   :  { %13905 = vmatprep.mubr.bf16.mxu1 %v24657_v8 }
 0xa59   :  { %13688 = vmatmul.mubr.bf16.gmra.mrb[72].mxu0 %v24657_v8 }
 0xa5a   :  { %13906 = vmatmul.mubr.bf16.gmra.mrb[84].mxu1 %v24657_v8  ;;  %13726 = vmatprep.mubr.bf16.mxu0 %v24657_v8 }
 0xa5b   :  { %13944 = vmatprep.mubr.bf16.mxu1 %v24657_v8 }
 0xa61   :  { %17710 = vmatmul.mubr.msk.bf16.vlgmr.msra.gmra.mrb[28].mxu0 %vm105_vm0, %v21218_v51 }
 0xa62   :  { %17718 = vmatmul.mubr.msk.bf16.vlgmr.msra.gmra.mrb[40].mxu1 %vm105_vm0, %v21218_v51  ;;  %14078 = vmatpush1.bf16.msra.mxu0 %v21219_v30  ;;  %v21237_v51 = vld [vmem:[#allocation5 + $0x740] ss:$16 sps:$4 sm:$0xff]   ;;  %v21238_v30 = vld [vmem:[#allocation5 + $0x748] ss:$16 sps:$4 sm:$0xff]  }
 0xa63   :  { %14296 = vmatpush1.bf16.msra.mxu1 %v21220_v62  ;;  %14079 = vmatprep.subr.bf16.mxu0 %v21221_v40  ;;  %v21239_v62 = vld [vmem:[#allocation5 + $0x764] ss:$16 sps:$4 sm:$0xff]   ;;  %v21240_v40 = vld [vmem:[#allocation5 + $0x76c] ss:$16 sps:$4 sm:$0xff]  }
 0xa64   :  { %14297 = vmatprep.subr.bf16.mxu1 %v21222_v47  ;;  %13736 = vmatprep.mubr.bf16.mxu0 %v24657_v8  ;;  %v21241_v47 = vld [vmem:[#allocation5 + $0x760] ss:$16 sps:$4 sm:$0xff]  }
 0xa65   :  { %13954 = vmatprep.mubr.bf16.mxu1 %v24657_v8 }
 0xa66   :  { %14080 = vmatpush1.bf16.msra.mxu0 %v21223_v38  ;;  %v21242_v38 = vld [vmem:[#allocation5 + $0x768] ss:$16 sps:$4 sm:$0xff]  }
 0xa67   :  { %14298 = vmatpush1.bf16.msra.mxu1 %v21224_v18  ;;  %14081 = vmatprep.subr.bf16.mxu0 %v21225_v27  ;;  %v21243_v18 = vld [vmem:[#allocation5 + $0x784] ss:$16 sps:$4 sm:$0xff]   ;;  %v21244_v27 = vld [vmem:[#allocation5 + $0x78c] ss:$16 sps:$4 sm:$0xff]  }
 0xa68   :  { %14299 = vmatprep.subr.bf16.mxu1 %v21226_v52  ;;  %v21245_v52 = vld [vmem:[#allocation2 + $0x160] sm:$0xff] }
 0xa69   :  { %17711 = vmatmul.mubr.msk.bf16.gmra.mrb[32].mxu0 %vm105_vm0, %v21227_v55 }
 0xa6a   :  { %17719 = vmatmul.mubr.msk.bf16.gmra.mrb[44].mxu1 %vm105_vm0, %v21227_v55  ;;  %14082 = vmatpush1.bf16.msra.mxu0 %v21228_v28  ;;  %v21246_v55 = vld [vmem:[#allocation5 + $0x780] ss:$16 sps:$4 sm:$0xff]   ;;  %v21247_v28 = vld [vmem:[#allocation5 + $0x788] ss:$16 sps:$4 sm:$0xff]  }
 0xa6b   :  { %14300 = vmatpush1.bf16.msra.mxu1 %v21229_v42  ;;  %14083 = vmatprep.subr.bf16.mxu0 %v21230_v17  ;;  %v21248_v42 = vld [vmem:[#allocation5 + $0x7a4] ss:$16 sps:$4 sm:$0xff]   ;;  %v21249_v17 = vld [vmem:[#allocation5 + $0x7ac] ss:$16 sps:$4 sm:$0xff]  }
 0xa6c   :  { %v12926_v49 = vpop.f32.mrb[20].mxu0  ;;  %14301 = vmatprep.subr.bf16.mxu1 %v21231_v56  ;;  %13746 = vmatprep.mubr.bf16.mxu0 %v24657_v8  ;;  %v21251_v56 = vld [vmem:[#allocation5 + $0x7a8] ss:$16 sps:$4 sm:$0xff]  }
 0xa6d   :  { %v13144_v7 = vpop.f32.mrb[28].mxu1  ;;  %v12927_v19 = vpop.f32.mrb[21].mxu0  ;;  %13964 = vmatprep.mubr.bf16.mxu1 %v24657_v8  ;;  %v21250_v49 = vld [vmem:[#allocation5 + $0x7a0] ss:$16 sps:$4 sm:$0xff]  }
 0xa6e   :  { %v13145_v54 = vpop.f32.mrb[29].mxu1  ;;  %v12928_v4 = vpop.f32.mrb[22].mxu0  ;;  %14084 = vmatpush1.bf16.msra.mxu0 %v21232_v0  ;;  %v21252_v7 = vld [vmem:[#allocation5 + $0x7c4] ss:$16 sps:$4 sm:$0xff]   ;;  %v21253_v19 = vld [vmem:[#allocation5 + $0x7cc] ss:$16 sps:$4 sm:$0xff]  }
 0xa6f   :  { %v13146_v9 = vpop.f32.mrb[30].mxu1  ;;  %14302 = vmatpush1.bf16.msra.mxu1 %v21233_v26  ;;  %v12929_v31 = vpop.f32.mrb[23].mxu0  ;;  %14085 = vmatprep.subr.bf16.mxu0 %v21234_v63  ;;  %v21254_v54 = vld [vmem:[#allocation2 + $0x178] sm:$0xff]  ;;  %v21255_v4 = vld [vmem:[#allocation5 + $0x7c0] ss:$16 sps:$4 sm:$0xff]  }
 0xa70   :  { %v13147_v21 = vpop.f32.mrb[31].mxu1  ;;  %14303 = vmatprep.subr.bf16.mxu1 %v21235_v33  ;;  %v21256_v0 = vld [vmem:[#allocation5 + $0x7c8] ss:$16 sps:$4 sm:$0xff]   ;;  %v21257_v9 = vld [vmem:[#allocation5 + $0x7e4] ss:$16 sps:$4 sm:$0xff]  }
 0xa71   :  { %17712 = vmatmul.mubr.msk.bf16.gmra.mrb[36].mxu0 %vm105_vm0, %v21236_v5  ;;  %v21258_v26 = vld [vmem:[#allocation5 + $0x7ec] ss:$16 sps:$4 sm:$0xff]   ;;  %v21259_v31 = vld [vmem:[#allocation5 + $0x7e0] ss:$16 sps:$4 sm:$0xff]   ;;  %v21260_v63 = vld [vmem:[#allocation5 + $0x7e8] ss:$16 sps:$4 sm:$0xff]  }
 0xa72   :  { %17720 = vmatmul.mubr.msk.bf16.gmra.mrb[48].mxu1 %vm105_vm0, %v21236_v5  ;;  %14086 = vmatpush1.bf16.msra.mxu0 %v21237_v51  ;;  %v21261_v21 = vld [vmem:[#allocation5 + $0x804] ss:$16 sps:$4 sm:$0xff]   ;;  %v21262_v33 = vld [vmem:[#allocation5 + $0x80c] ss:$16 sps:$4 sm:$0xff]   ;;  %v21264_v51 = vld [vmem:[#allocation5 + $0x800] ss:$16 sps:$4 sm:$0xff]  }
 0xa73   :  { %14304 = vmatpush1.bf16.msra.mxu1 %v21238_v30  ;;  %14087 = vmatprep.subr.bf16.mxu0 %v21239_v62  ;;  %v21263_v5 = vld [vmem:[#allocation2 + $0x190] sm:$0xff]  ;;  %v21265_v30 = vld [vmem:[#allocation5 + $0x808] ss:$16 sps:$4 sm:$0xff]  }
 0xa74   :  { %14305 = vmatprep.subr.bf16.mxu1 %v21240_v40  ;;  %13756 = vmatprep.mubr.bf16.mxu0 %v24657_v8  ;;  %v21266_v62 = vld [vmem:[#allocation5 + $0x824] ss:$16 sps:$4 sm:$0xff]   ;;  %v21267_v40 = vld [vmem:[#allocation5 + $0x82c] ss:$16 sps:$4 sm:$0xff]  }
 0xa75   :  { %13974 = vmatprep.mubr.bf16.mxu1 %v24657_v8 }
 0xa76   :  { %14088 = vmatpush1.bf16.msra.mxu0 %v21241_v47  ;;  %v21268_v47 = vld [vmem:[#allocation5 + $0x820] ss:$16 sps:$4 sm:$0xff]  }
 0xa77   :  { %14306 = vmatpush1.bf16.msra.mxu1 %v21242_v38  ;;  %14089 = vmatprep.subr.bf16.mxu0 %v21243_v18  ;;  %v21269_v38 = vld [vmem:[#allocation5 + $0x828] ss:$16 sps:$4 sm:$0xff]   ;;  %v21270_v18 = vld [vmem:[#allocation5 + $0x844] ss:$16 sps:$4 sm:$0xff]  }
 0xa78   :  { %14307 = vmatprep.subr.bf16.mxu1 %v21244_v27  ;;  %v21271_v27 = vld [vmem:[#allocation5 + $0x84c] ss:$16 sps:$4 sm:$0xff]  }
 0xa79   :  { %17713 = vmatmul.mubr.msk.bf16.gmra.mrb[0].mxu0 %vm105_vm0, %v21245_v52 }
 0xa7a   :  { %17721 = vmatmul.mubr.msk.bf16.gmra.mrb[8].mxu1 %vm105_vm0, %v21245_v52  ;;  %14090 = vmatpush1.bf16.msra.mxu0 %v21246_v55  ;;  %v21272_v52 = vld [vmem:[#allocation2 + $0x1a8] sm:$0xff]  ;;  %v21273_v55 = vld [vmem:[#allocation5 + $0x840] ss:$16 sps:$4 sm:$0xff]  }
 0xa7b   :  { %14308 = vmatpush1.bf16.msra.mxu1 %v21247_v28  ;;  %14091 = vmatprep.subr.bf16.mxu0 %v21248_v42  ;;  %v21274_v28 = vld [vmem:[#allocation5 + $0x848] ss:$16 sps:$4 sm:$0xff]   ;;  %v21275_v42 = vld [vmem:[#allocation5 + $0x864] ss:$16 sps:$4 sm:$0xff]  }
 0xa7c   :  { %14309 = vmatprep.subr.bf16.mxu1 %v21249_v17  ;;  %13766 = vmatprep.mubr.bf16.mxu0 %v24657_v8  ;;  %v21276_v17 = vld [vmem:[#allocation5 + $0x86c] ss:$16 sps:$4 sm:$0xff]  }
 0xa7d   :  { %13984 = vmatprep.mubr.bf16.mxu1 %v24657_v8 }
 0xa7e   :  { %14092 = vmatpush1.bf16.msra.mxu0 %v21250_v49  ;;  %v21277_v49 = vld [vmem:[#allocation5 + $0x860] ss:$16 sps:$4 sm:$0xff]  }
 0xa7f   :  { %14310 = vmatpush1.bf16.msra.mxu1 %v21251_v56  ;;  %14093 = vmatprep.subr.bf16.mxu0 %v21252_v7  ;;  %v21278_v56 = vld [vmem:[#allocation5 + $0x868] ss:$16 sps:$4 sm:$0xff]   ;;  %v21279_v7 = vld [vmem:[#allocation5 + $0x884] ss:$16 sps:$4 sm:$0xff]  }
 0xa80   :  { %14311 = vmatprep.subr.bf16.mxu1 %v21253_v19  ;;  %v21280_v19 = vld [vmem:[#allocation5 + $0x88c] ss:$16 sps:$4 sm:$0xff]  }
 0xa81   :  { %17714 = vmatmul.mubr.msk.bf16.gmra.mrb[4].mxu0 %vm105_vm0, %v21254_v54 }
 0xa82   :  { %17722 = vmatmul.mubr.msk.bf16.gmra.mrb[12].mxu1 %vm105_vm0, %v21254_v54  ;;  %14094 = vmatpush1.bf16.msra.mxu0 %v21255_v4  ;;  %v21281_v54 = vld [vmem:[#allocation2 + $0x1c0] sm:$0xff] }
 0xa83   :  { %14312 = vmatpush1.bf16.msra.mxu1 %v21256_v0  ;;  %14095 = vmatprep.subr.bf16.mxu0 %v21257_v9  ;;  %v21282_v4 = vld [vmem:[#allocation5 + $0x880] ss:$16 sps:$4 sm:$0xff]   ;;  %v21283_v0 = vld [vmem:[#allocation2 + $0x38] sm:$0xff] }
 0xa84   :  { %14313 = vmatprep.subr.bf16.mxu1 %v21258_v26  ;;  %13776 = vmatprep.mubr.bf16.mxu0 %v24657_v8  ;;  %v21284_v9 = vld [vmem:[#allocation5 + $0x888] ss:$16 sps:$4 sm:$0xff]   ;;  %v21285_v26 = vld [vmem:[#allocation5 + $0x8a4] ss:$16 sps:$4 sm:$0xff]  }
 0xa85   :  { %13994 = vmatprep.mubr.bf16.mxu1 %v24657_v8 }
 0xa86   :  { %14096 = vmatpush1.bf16.msra.mxu0 %v21259_v31  ;;  %v21286_v31 = vld [vmem:[#allocation5 + $0x8ac] ss:$16 sps:$4 sm:$0xff]  }
 0xa87   :  { %14314 = vmatpush1.bf16.msra.mxu1 %v21260_v63  ;;  %14097 = vmatprep.subr.bf16.mxu0 %v21261_v21  ;;  %v21287_v63 = vld [vmem:[#allocation5 + $0x8a0] ss:$16 sps:$4 sm:$0xff]   ;;  %v21288_v21 = vld [vmem:[#allocation5 + $0x8a8] ss:$16 sps:$4 sm:$0xff]  }
 0xa88   :  { %14315 = vmatprep.subr.bf16.mxu1 %v21262_v33  ;;  %v21289_v33 = vld [vmem:[#allocation5 + $0x8c4] ss:$16 sps:$4 sm:$0xff]  }
 0xa89   :  { %17715 = vmatmul.mubr.msk.bf16.gmra.mrb[8].mxu0 %vm105_vm0, %v21263_v5 }
 0xa8a   :  { %17723 = vmatmul.mubr.msk.bf16.gmra.mrb[16].mxu1 %vm105_vm0, %v21263_v5  ;;  %14098 = vmatpush1.bf16.msra.mxu0 %v21264_v51  ;;  %v21290_v5 = vld [vmem:[#allocation5 + $0x8cc] ss:$16 sps:$4 sm:$0xff]   ;;  %v21291_v51 = vld [vmem:[#allocation2 + $0x30] sm:$0xff] }
 0xa8b   :  { %14316 = vmatpush1.bf16.msra.mxu1 %v21265_v30  ;;  %14099 = vmatprep.subr.bf16.mxu0 %v21266_v62  ;;  %v21292_v30 = vld [vmem:[#allocation2 + $0x50] sm:$0xff] }
 0xa8c   :  { %14317 = vmatprep.subr.bf16.mxu1 %v21267_v40  ;;  %13786 = vmatprep.mubr.bf16.mxu0 %v24657_v8  ;;  %v21293_v62 = vld [vmem:[#allocation5 + $0x8c0] ss:$16 sps:$4 sm:$0xff]   ;;  %v21294_v40 = vld [vmem:[#allocation5 + $0x8c8] ss:$16 sps:$4 sm:$0xff]  }
 0xa8d   :  { %14004 = vmatprep.mubr.bf16.mxu1 %v24657_v8 }
 0xa8e   :  { %14100 = vmatpush1.bf16.msra.mxu0 %v21268_v47  ;;  %v21295_v47 = vld [vmem:[#allocation5 + $0x8e4] ss:$16 sps:$4 sm:$0xff]  }
 0xa8f   :  { %14318 = vmatpush1.bf16.msra.mxu1 %v21269_v38  ;;  %14101 = vmatprep.subr.bf16.mxu0 %v21270_v18  ;;  %v21296_v38 = vld [vmem:[#allocation5 + $0x8ec] ss:$16 sps:$4 sm:$0xff]   ;;  %v21297_v18 = vld [vmem:[#allocation5 + $0x8e0] ss:$16 sps:$4 sm:$0xff]  }
 0xa90   :  { %14319 = vmatprep.subr.bf16.mxu1 %v21271_v27  ;;  %v21298_v27 = vld [vmem:[#allocation5 + $0x8e8] ss:$16 sps:$4 sm:$0xff]  }
 0xa91   :  { %17716 = vmatmul.mubr.msk.bf16.gmra.mrb[12].mxu0 %vm105_vm0, %v21272_v52 }
 0xa92   :  { %17724 = vmatmul.mubr.msk.bf16.gmra.mrb[20].mxu1 %vm105_vm0, %v21272_v52  ;;  %14102 = vmatpush1.bf16.msra.mxu0 %v21273_v55  ;;  %v21299_v52 = vld [vmem:[#allocation5 + $0x904] ss:$16 sps:$4 sm:$0xff]   ;;  %v21300_v55 = vld [vmem:[#allocation2 + $0x48] sm:$0xff] }
 0xa93   :  { %14320 = vmatpush1.bf16.msra.mxu1 %v21274_v28  ;;  %14103 = vmatprep.subr.bf16.mxu0 %v21275_v42  ;;  %v21301_v28 = vld [vmem:[#allocation5 + $0x90c] ss:$16 sps:$4 sm:$0xff]  }
 0xa94   :  { %14321 = vmatprep.subr.bf16.mxu1 %v21276_v17  ;;  %13796 = vmatprep.mubr.bf16.mxu0 %v24657_v8  ;;  %v21302_v42 = vld [vmem:[#allocation2 + $0x68] sm:$0xff] }
 0xa95   :  { %14014 = vmatprep.mubr.bf16.mxu1 %v24657_v8 }
 0xa96   :  { %14104 = vmatpush1.bf16.msra.mxu0 %v21277_v49 }
 0xa97   :  { %14322 = vmatpush1.bf16.msra.mxu1 %v21278_v56  ;;  %14105 = vmatprep.subr.bf16.mxu0 %v21279_v7 }
 0xa98   :  { %14323 = vmatprep.subr.bf16.mxu1 %v21280_v19 }
 0xa99   :  { %17717 = vmatmul.mubr.msk.bf16.gmra.mrb[76].mxu0 %vm105_vm0, %v21281_v54 }
 0xa9a   :  { %17725 = vmatmul.mubr.msk.bf16.gmra.mrb[88].mxu1 %vm105_vm0, %v21281_v54  ;;  %14106 = vmatpush1.bf16.msra.mxu0 %v21282_v4 }
 0xa9b   :  { %14109 = vmatprep.mubr.bf16.mxu0 %v21283_v0  ;;  %14324 = vmatpush1.bf16.msra.mxu1 %v21284_v9  ;;  %v21303_v9 = vld [vmem:[#allocation2 + $0x60] sm:$0xff] }
 0xa9c   :  { %14327 = vmatprep.mubr.bf16.mxu1 %v21283_v0  ;;  %14107 = vmatprep.subr.bf16.mxu0 %v21285_v26  ;;  %v21304_v26 = vld [vmem:[#allocation2 + $0x80] sm:$0xff] }
 0xa9d   :  { %14325 = vmatprep.subr.bf16.mxu1 %v21286_v31  ;;  %v21305_v31 = vld [vmem:[#allocation2 + $0x78] sm:$0xff] }
 0xa9e   :  { %14108 = vmatpush1.bf16.msra.mxu0 %v21287_v63  ;;  %v21306_v63 = vld [vmem:[#allocation2 + $0x98] sm:$0xff] }
 0xa9f   :  { %14326 = vmatpush1.bf16.msra.mxu1 %v21288_v21  ;;  %14186 = vmatprep.subr.bf16.mxu0 %v21289_v33  ;;  %v21307_v21 = vld [vmem:[#allocation2 + $0x90] sm:$0xff] }
 0xaa0   :  { %14404 = vmatprep.subr.bf16.mxu1 %v21290_v5  ;;  %v21308_v33 = vld [vmem:[#allocation2 + $0xb0] sm:$0xff]  ;;  %v21309_v5 = vld [vmem:[#allocation2 + $0xa8] sm:$0xff] }
 0xaa1   :  { %14110 = vmatmul.mubr.bf16.vlgmr.msra.gmra.mrb[28].mxu0 %v21291_v51 }
 0xaa2   :  { %14328 = vmatmul.mubr.bf16.vlgmr.msra.gmra.mrb[40].mxu1 %v21291_v51  ;;  %14119 = vmatprep.mubr.bf16.mxu0 %v21292_v30  ;;  %v21310_v51 = vld [vmem:[#allocation2 + $0x40] sm:$0xff] }
 0xaa3   :  { %14187 = vmatpush1.bf16.msra.mxu0 %v21293_v62  ;;  %14337 = vmatprep.mubr.bf16.mxu1 %v21292_v30  ;;  %v21311_v30 = vld [vmem:[#allocation5 + $0x900] ss:$16 sps:$4 sm:$0xff]   ;;  %v21312_v62 = vld [vmem:[#allocation5 + $0x908] ss:$16 sps:$4 sm:$0xff]  }
 0xaa4   :  { %14405 = vmatpush1.bf16.msra.mxu1 %v21294_v40  ;;  %14188 = vmatprep.subr.bf16.mxu0 %v21295_v47  ;;  %v21313_v40 = vld [vmem:[#allocation5 + $0x924] ss:$16 sps:$4 sm:$0xff]   ;;  %v21314_v47 = vld [vmem:[#allocation5 + $0x92c] ss:$16 sps:$4 sm:$0xff]  }
 0xaa5   :  { %14406 = vmatprep.subr.bf16.mxu1 %v21296_v38  ;;  %v21315_v38 = vld [vmem:[#allocation5 + $0x920] ss:$16 sps:$4 sm:$0xff]  }
 0xaa7   :  { %14189 = vmatpush1.bf16.msra.mxu0 %v21297_v18  ;;  %v21316_v18 = vld [vmem:[#allocation5 + $0x928] ss:$16 sps:$4 sm:$0xff]  }
 0xaa8   :  { %14407 = vmatpush1.bf16.msra.mxu1 %v21298_v27  ;;  %14618 = vmatprep.subr.bf16.mxu0 %v21299_v52  ;;  %v21317_v27 = vld [vmem:[#allocation5 + $0x944] ss:$16 sps:$4 sm:$0xff]   ;;  %v21318_v52 = vld [vmem:[#allocation5 + $0x94c] ss:$16 sps:$4 sm:$0xff]  }
 0xaa9   :  { %14120 = vmatmul.mubr.bf16.gmra.mrb[32].mxu0 %v21300_v55  ;;  %14836 = vmatprep.subr.bf16.mxu1 %v21301_v28  ;;  %v21320_v28 = vld [vmem:[#allocation5 + $0x940] ss:$16 sps:$4 sm:$0xff]  }
 0xaaa   :  { %14338 = vmatmul.mubr.bf16.gmra.mrb[44].mxu1 %v21300_v55  ;;  %14129 = vmatprep.mubr.bf16.mxu0 %v21302_v42  ;;  %v21319_v55 = vld [vmem:[#allocation2 + $0x58] sm:$0xff] }
 0xaab   :  { %14347 = vmatprep.mubr.bf16.mxu1 %v21302_v42  ;;  %v21321_v42 = vld [vmem:[#allocation5 + $0x948] ss:$16 sps:$4 sm:$0xff]  }
 0xaac   :  { %v13253_v17 = vpop.f32.mrb[24].mxu0 }
 0xaad   :  { %v13471_v49 = vpop.f32.mrb[32].mxu1  ;;  %v13254_v56 = vpop.f32.mrb[25].mxu0  ;;  %v21322_v17 = vld [vmem:[#allocation5 + $0x964] ss:$16 sps:$4 sm:$0xff]  }
 0xaae   :  { %v13472_v7 = vpop.f32.mrb[33].mxu1  ;;  %v13255_v19 = vpop.f32.mrb[26].mxu0  ;;  %v21323_v56 = vld [vmem:[#allocation5 + $0x96c] ss:$16 sps:$4 sm:$0xff]  }
 0xaaf   :  { %v13473_v54 = vpop.f32.mrb[34].mxu1  ;;  %v13256_v4 = vpop.f32.mrb[27].mxu0 }
 0xab0   :  { %v13474_v0 = vpop.f32.mrb[35].mxu1 }
 0xab1   :  { %14130 = vmatmul.mubr.bf16.gmra.mrb[36].mxu0 %v21303_v9  ;;  %v21324_v0 = vld [vmem:[#allocation5 + $0x960] ss:$16 sps:$4 sm:$0xff]  }
 0xab2   :  { %14348 = vmatmul.mubr.bf16.gmra.mrb[48].mxu1 %v21303_v9  ;;  %14139 = vmatprep.mubr.bf16.mxu0 %v21304_v26 }
 0xab3   :  { %14357 = vmatprep.mubr.bf16.mxu1 %v21304_v26  ;;  %v21325_v26 = vld [vmem:[#allocation5 + $0x968] ss:$16 sps:$4 sm:$0xff]  }
 0xab9   :  { %14140 = vmatmul.mubr.bf16.gmra.mrb[0].mxu0 %v21305_v31 }
 0xaba   :  { %14358 = vmatmul.mubr.bf16.gmra.mrb[8].mxu1 %v21305_v31  ;;  %14149 = vmatprep.mubr.bf16.mxu0 %v21306_v63 }
 0xabb   :  { %14367 = vmatprep.mubr.bf16.mxu1 %v21306_v63  ;;  %v21326_v63 = vld [vmem:[#allocation5 + $0x984] ss:$16 sps:$4 sm:$0xff]  }
 0xac1   :  { %14150 = vmatmul.mubr.bf16.gmra.mrb[4].mxu0 %v21307_v21 }
 0xac2   :  { %14368 = vmatmul.mubr.bf16.gmra.mrb[12].mxu1 %v21307_v21  ;;  %14159 = vmatprep.mubr.bf16.mxu0 %v21308_v33 }
 0xac3   :  { %14377 = vmatprep.mubr.bf16.mxu1 %v21308_v33  ;;  %v21327_v33 = vld [vmem:[#allocation5 + $0x98c] ss:$16 sps:$4 sm:$0xff]  }
 0xac9   :  { %14160 = vmatmul.mubr.bf16.gmra.mrb[8].mxu0 %v21309_v5 }
 0xaca   :  { %14378 = vmatmul.mubr.bf16.gmra.mrb[16].mxu1 %v21309_v5  ;;  %14169 = vmatprep.mubr.bf16.mxu0 %v24657_v8  ;;  %v21328_v5 = vld [vmem:[#allocation2 + $0x70] sm:$0xff] }
 0xacb   :  { %14387 = vmatprep.mubr.bf16.mxu1 %v24657_v8 }
 0xad1   :  { %14170 = vmatmul.mubr.bf16.gmra.mrb[12].mxu0 %v24657_v8 }
 0xad2   :  { %14388 = vmatmul.mubr.bf16.gmra.mrb[20].mxu1 %v24657_v8  ;;  %14179 = vmatprep.mubr.bf16.mxu0 %v24657_v8 }
 0xad3   :  { %14397 = vmatprep.mubr.bf16.mxu1 %v24657_v8 }
 0xad9   :  { %14180 = vmatmul.mubr.bf16.gmra.mrb[80].mxu0 %v24657_v8 }
 0xada   :  { %14398 = vmatmul.mubr.bf16.gmra.mrb[92].mxu1 %v24657_v8  ;;  %14218 = vmatprep.mubr.bf16.mxu0 %v24657_v8 }
 0xadb   :  { %14436 = vmatprep.mubr.bf16.mxu1 %v24657_v8 }
 0xae1   :  { %17726 = vmatmul.mubr.msk.bf16.vlgmr.msra.gmra.mrb[28].mxu0 %vm105_vm0, %v21310_v51 }
 0xae2   :  { %17734 = vmatmul.mubr.msk.bf16.vlgmr.msra.gmra.mrb[40].mxu1 %vm105_vm0, %v21310_v51  ;;  %14619 = vmatpush1.bf16.msra.mxu0 %v21311_v30  ;;  %v21329_v51 = vld [vmem:[#allocation5 + $0x980] ss:$16 sps:$4 sm:$0xff]   ;;  %v21330_v30 = vld [vmem:[#allocation5 + $0x988] ss:$16 sps:$4 sm:$0xff]  }
 0xae3   :  { %14837 = vmatpush1.bf16.msra.mxu1 %v21312_v62  ;;  %14620 = vmatprep.subr.bf16.mxu0 %v21313_v40  ;;  %v21331_v62 = vld [vmem:[#allocation5 + $0x9a4] ss:$16 sps:$4 sm:$0xff]   ;;  %v21332_v40 = vld [vmem:[#allocation5 + $0x9ac] ss:$16 sps:$4 sm:$0xff]  }
 0xae4   :  { %14838 = vmatprep.subr.bf16.mxu1 %v21314_v47  ;;  %14228 = vmatprep.mubr.bf16.mxu0 %v24657_v8  ;;  %v21333_v47 = vld [vmem:[#allocation5 + $0x9a0] ss:$16 sps:$4 sm:$0xff]  }
 0xae5   :  { %14446 = vmatprep.mubr.bf16.mxu1 %v24657_v8 }
 0xae6   :  { %14621 = vmatpush1.bf16.msra.mxu0 %v21315_v38  ;;  %v21334_v38 = vld [vmem:[#allocation5 + $0x9a8] ss:$16 sps:$4 sm:$0xff]  }
 0xae7   :  { %14839 = vmatpush1.bf16.msra.mxu1 %v21316_v18  ;;  %14622 = vmatprep.subr.bf16.mxu0 %v21317_v27  ;;  %v21335_v18 = vld [vmem:[#allocation5 + $0x9c4] ss:$16 sps:$4 sm:$0xff]   ;;  %v21336_v27 = vld [vmem:[#allocation5 + $0x9cc] ss:$16 sps:$4 sm:$0xff]  }
 0xae8   :  { %14840 = vmatprep.subr.bf16.mxu1 %v21318_v52  ;;  %v21337_v52 = vld [vmem:[#allocation2 + $0x88] sm:$0xff] }
 0xae9   :  { %17727 = vmatmul.mubr.msk.bf16.gmra.mrb[32].mxu0 %vm105_vm0, %v21319_v55 }
 0xaea   :  { %17735 = vmatmul.mubr.msk.bf16.gmra.mrb[44].mxu1 %vm105_vm0, %v21319_v55  ;;  %14623 = vmatpush1.bf16.msra.mxu0 %v21320_v28  ;;  %v21338_v55 = vld [vmem:[#allocation5 + $0x9c0] ss:$16 sps:$4 sm:$0xff]   ;;  %v21339_v28 = vld [vmem:[#allocation5 + $0x9c8] ss:$16 sps:$4 sm:$0xff]  }
 0xaeb   :  { %14841 = vmatpush1.bf16.msra.mxu1 %v21321_v42  ;;  %14624 = vmatprep.subr.bf16.mxu0 %v21322_v17  ;;  %v21340_v42 = vld [vmem:[#allocation5 + $0x9e4] ss:$16 sps:$4 sm:$0xff]   ;;  %v21341_v17 = vld [vmem:[#allocation5 + $0x9ec] ss:$16 sps:$4 sm:$0xff]  }
 0xaec   :  { %v13362_v49 = vpop.f32.mrb[40].mxu0  ;;  %14842 = vmatprep.subr.bf16.mxu1 %v21323_v56  ;;  %14238 = vmatprep.mubr.bf16.mxu0 %v24657_v8  ;;  %v21343_v56 = vld [vmem:[#allocation5 + $0x9e8] ss:$16 sps:$4 sm:$0xff]  }
 0xaed   :  { %v13580_v7 = vpop.f32.mrb[52].mxu1  ;;  %v13363_v19 = vpop.f32.mrb[41].mxu0  ;;  %14456 = vmatprep.mubr.bf16.mxu1 %v24657_v8  ;;  %v21342_v49 = vld [vmem:[#allocation5 + $0x9e0] ss:$16 sps:$4 sm:$0xff]  }
 0xaee   :  { %v13581_v54 = vpop.f32.mrb[53].mxu1  ;;  %v13364_v4 = vpop.f32.mrb[42].mxu0  ;;  %14625 = vmatpush1.bf16.msra.mxu0 %v21324_v0  ;;  %v21344_v7 = vld [vmem:[#allocation5 + $0xa04] ss:$16 sps:$4 sm:$0xff]   ;;  %v21345_v19 = vld [vmem:[#allocation5 + $0xa0c] ss:$16 sps:$4 sm:$0xff]  }
 0xaef   :  { %v13582_v9 = vpop.f32.mrb[54].mxu1  ;;  %14843 = vmatpush1.bf16.msra.mxu1 %v21325_v26  ;;  %v13365_v31 = vpop.f32.mrb[43].mxu0  ;;  %14626 = vmatprep.subr.bf16.mxu0 %v21326_v63  ;;  %v21346_v54 = vld [vmem:[#allocation2 + $0xa0] sm:$0xff]  ;;  %v21348_v0 = vld [vmem:[#allocation5 + $0xa08] ss:$16 sps:$4 sm:$0xff]  }
 0xaf0   :  { %v13583_v21 = vpop.f32.mrb[55].mxu1  ;;  %14844 = vmatprep.subr.bf16.mxu1 %v21327_v33  ;;  %v21347_v4 = vld [vmem:[#allocation5 + $0xa00] ss:$16 sps:$4 sm:$0xff]   ;;  %v21349_v9 = vld [vmem:[#allocation5 + $0xa24] ss:$16 sps:$4 sm:$0xff]  }
 0xaf1   :  { %17728 = vmatmul.mubr.msk.bf16.gmra.mrb[36].mxu0 %vm105_vm0, %v21328_v5  ;;  %v21350_v26 = vld [vmem:[#allocation5 + $0xa2c] ss:$16 sps:$4 sm:$0xff]   ;;  %v21351_v31 = vld [vmem:[#allocation5 + $0xa20] ss:$16 sps:$4 sm:$0xff]   ;;  %v21352_v63 = vld [vmem:[#allocation5 + $0xa28] ss:$16 sps:$4 sm:$0xff]  }
 0xaf2   :  { %17736 = vmatmul.mubr.msk.bf16.gmra.mrb[48].mxu1 %vm105_vm0, %v21328_v5  ;;  %14627 = vmatpush1.bf16.msra.mxu0 %v21329_v51  ;;  %v21353_v21 = vld [vmem:[#allocation5 + $0xa44] ss:$16 sps:$4 sm:$0xff]   ;;  %v21354_v33 = vld [vmem:[#allocation5 + $0xa4c] ss:$16 sps:$4 sm:$0xff]   ;;  %v21356_v51 = vld [vmem:[#allocation5 + $0xa40] ss:$16 sps:$4 sm:$0xff]  }
 0xaf3   :  { %14845 = vmatpush1.bf16.msra.mxu1 %v21330_v30  ;;  %14628 = vmatprep.subr.bf16.mxu0 %v21331_v62  ;;  %v21355_v5 = vld [vmem:[#allocation2 + $0xb8] sm:$0xff]  ;;  %v21358_v62 = vld [vmem:[#allocation5 + $0xa64] ss:$16 sps:$4 sm:$0xff]  }
 0xaf4   :  { %14846 = vmatprep.subr.bf16.mxu1 %v21332_v40  ;;  %14248 = vmatprep.mubr.bf16.mxu0 %v24657_v8  ;;  %v21357_v30 = vld [vmem:[#allocation5 + $0xa48] ss:$16 sps:$4 sm:$0xff]   ;;  %v21359_v40 = vld [vmem:[#allocation5 + $0xa6c] ss:$16 sps:$4 sm:$0xff]  }
 0xaf5   :  { %14466 = vmatprep.mubr.bf16.mxu1 %v24657_v8 }
 0xaf6   :  { %14629 = vmatpush1.bf16.msra.mxu0 %v21333_v47  ;;  %v21360_v47 = vld [vmem:[#allocation5 + $0xa60] ss:$16 sps:$4 sm:$0xff]  }
 0xaf7   :  { %14847 = vmatpush1.bf16.msra.mxu1 %v21334_v38  ;;  %14630 = vmatprep.subr.bf16.mxu0 %v21335_v18  ;;  %v21361_v38 = vld [vmem:[#allocation5 + $0xa68] ss:$16 sps:$4 sm:$0xff]   ;;  %v21362_v18 = vld [vmem:[#allocation5 + $0xa84] ss:$16 sps:$4 sm:$0xff]  }
 0xaf8   :  { %14848 = vmatprep.subr.bf16.mxu1 %v21336_v27  ;;  %v21363_v27 = vld [vmem:[#allocation5 + $0xa8c] ss:$16 sps:$4 sm:$0xff]  }
 0xaf9   :  { %17729 = vmatmul.mubr.msk.bf16.gmra.mrb[0].mxu0 %vm105_vm0, %v21337_v52 }
 0xafa   :  { %17737 = vmatmul.mubr.msk.bf16.gmra.mrb[8].mxu1 %vm105_vm0, %v21337_v52  ;;  %14631 = vmatpush1.bf16.msra.mxu0 %v21338_v55  ;;  %v21364_v52 = vld [vmem:[#allocation2 + $0xd0] sm:$0xff] }
 0xafb   :  { %14849 = vmatpush1.bf16.msra.mxu1 %v21339_v28  ;;  %14632 = vmatprep.subr.bf16.mxu0 %v21340_v42  ;;  %v21365_v55 = vld [vmem:[#allocation5 + $0xa80] ss:$16 sps:$4 sm:$0xff]   ;;  %v21366_v28 = vld [vmem:[#allocation5 + $0xa88] ss:$16 sps:$4 sm:$0xff]   ;;  %v21367_v42 = vld [vmem:[#allocation5 + $0xaa4] ss:$16 sps:$4 sm:$0xff]  }
 0xafc   :  { %14850 = vmatprep.subr.bf16.mxu1 %v21341_v17  ;;  %14258 = vmatprep.mubr.bf16.mxu0 %v24657_v8  ;;  %v21368_v17 = vld [vmem:[#allocation5 + $0xaac] ss:$16 sps:$4 sm:$0xff]  }
 0xafd   :  { %14476 = vmatprep.mubr.bf16.mxu1 %v24657_v8 }
 0xafe   :  { %14633 = vmatpush1.bf16.msra.mxu0 %v21342_v49  ;;  %v21369_v49 = vld [vmem:[#allocation5 + $0xaa0] ss:$16 sps:$4 sm:$0xff]  }
 0xaff   :  { %14851 = vmatpush1.bf16.msra.mxu1 %v21343_v56  ;;  %14634 = vmatprep.subr.bf16.mxu0 %v21344_v7  ;;  %v21370_v56 = vld [vmem:[#allocation5 + $0xaa8] ss:$16 sps:$4 sm:$0xff]   ;;  %v21371_v7 = vld [vmem:[#allocation5 + $0xac4] ss:$16 sps:$4 sm:$0xff]  }
 0xb00   :  { %14852 = vmatprep.subr.bf16.mxu1 %v21345_v19  ;;  %v21372_v19 = vld [vmem:[#allocation5 + $0xacc] ss:$16 sps:$4 sm:$0xff]  }
 0xb01   :  { %17730 = vmatmul.mubr.msk.bf16.gmra.mrb[4].mxu0 %vm105_vm0, %v21346_v54 }
 0xb02   :  { %17738 = vmatmul.mubr.msk.bf16.gmra.mrb[12].mxu1 %vm105_vm0, %v21346_v54  ;;  %14635 = vmatpush1.bf16.msra.mxu0 %v21347_v4  ;;  %v21373_v54 = vld [vmem:[#allocation2 + $0xe8] sm:$0xff]  ;;  %v21374_v4 = vld [vmem:[#allocation5 + $0xac0] ss:$16 sps:$4 sm:$0xff]  }
 0xb03   :  { %14853 = vmatpush1.bf16.msra.mxu1 %v21348_v0  ;;  %14636 = vmatprep.subr.bf16.mxu0 %v21349_v9  ;;  %v14571_v0 = vld [vmem:[#allocation2 + $0x128] sm:$0xff] }
 0xb04   :  { %14854 = vmatprep.subr.bf16.mxu1 %v21350_v26  ;;  %14268 = vmatprep.mubr.bf16.mxu0 %v24657_v8  ;;  %v21375_v9 = vld [vmem:[#allocation5 + $0xac8] ss:$16 sps:$4 sm:$0xff]   ;;  %v21376_v26 = vld [vmem:[#allocation5 + $0xae4] ss:$16 sps:$4 sm:$0xff]  }
 0xb05   :  { %14486 = vmatprep.mubr.bf16.mxu1 %v24657_v8 }
 0xb06   :  { %14637 = vmatpush1.bf16.msra.mxu0 %v21351_v31  ;;  %v21377_v31 = vld [vmem:[#allocation5 + $0xaec] ss:$16 sps:$4 sm:$0xff]  }
 0xb07   :  { %14855 = vmatpush1.bf16.msra.mxu1 %v21352_v63  ;;  %14638 = vmatprep.subr.bf16.mxu0 %v21353_v21  ;;  %v21378_v63 = vld [vmem:[#allocation5 + $0xae0] ss:$16 sps:$4 sm:$0xff]   ;;  %v21379_v21 = vld [vmem:[#allocation5 + $0xae8] ss:$16 sps:$4 sm:$0xff]  }
 0xb08   :  { %14856 = vmatprep.subr.bf16.mxu1 %v21354_v33  ;;  %v21380_v33 = vld [vmem:[#allocation5 + $0xb04] ss:$16 sps:$4 sm:$0xff]  }
 0xb09   :  { %17731 = vmatmul.mubr.msk.bf16.gmra.mrb[8].mxu0 %vm105_vm0, %v21355_v5 }
 0xb0a   :  { %17739 = vmatmul.mubr.msk.bf16.gmra.mrb[16].mxu1 %vm105_vm0, %v21355_v5  ;;  %14639 = vmatpush1.bf16.msra.mxu0 %v21356_v51  ;;  %v14570_v5 = vld [vmem:[#allocation2 + $0x120] sm:$0xff]  ;;  %v21381_v51 = vld [vmem:[#allocation5 + $0xb0c] ss:$16 sps:$4 sm:$0xff]  }
 0xb0b   :  { %14857 = vmatpush1.bf16.msra.mxu1 %v21357_v30  ;;  %14640 = vmatprep.subr.bf16.mxu0 %v21358_v62  ;;  %v14574_v30 = vld [vmem:[#allocation2 + $0x140] sm:$0xff] }
 0xb0c   :  { %14858 = vmatprep.subr.bf16.mxu1 %v21359_v40  ;;  %14278 = vmatprep.mubr.bf16.mxu0 %v24657_v8  ;;  %v21382_v62 = vld [vmem:[#allocation5 + $0xb00] ss:$16 sps:$4 sm:$0xff]   ;;  %v21383_v40 = vld [vmem:[#allocation5 + $0xb08] ss:$16 sps:$4 sm:$0xff]  }
 0xb0d   :  { %14496 = vmatprep.mubr.bf16.mxu1 %v24657_v8 }
 0xb0e   :  { %14641 = vmatpush1.bf16.msra.mxu0 %v21360_v47  ;;  %v21384_v47 = vld [vmem:[#allocation5 + $0xb24] ss:$16 sps:$4 sm:$0xff]  }
 0xb0f   :  { %14859 = vmatpush1.bf16.msra.mxu1 %v21361_v38  ;;  %14642 = vmatprep.subr.bf16.mxu0 %v21362_v18  ;;  %v21385_v38 = vld [vmem:[#allocation5 + $0xb2c] ss:$16 sps:$4 sm:$0xff]   ;;  %v21386_v18 = vld [vmem:[#allocation5 + $0xb20] ss:$16 sps:$4 sm:$0xff]  }
 0xb10   :  { %14860 = vmatprep.subr.bf16.mxu1 %v21363_v27  ;;  %v14573_v27 = vld [vmem:[#allocation2 + $0x138] sm:$0xff] }
 0xb11   :  { %17732 = vmatmul.mubr.msk.bf16.gmra.mrb[12].mxu0 %vm105_vm0, %v21364_v52 }
 0xb12   :  { %17740 = vmatmul.mubr.msk.bf16.gmra.mrb[20].mxu1 %vm105_vm0, %v21364_v52  ;;  %14643 = vmatpush1.bf16.msra.mxu0 %v21365_v55  ;;  %v21387_v52 = vld [vmem:[#allocation5 + $0xb28] ss:$16 sps:$4 sm:$0xff]  }
 0xb13   :  { %14861 = vmatpush1.bf16.msra.mxu1 %v21366_v28  ;;  %14644 = vmatprep.subr.bf16.mxu0 %v21367_v42  ;;  %v14577_v55 = vld [vmem:[#allocation2 + $0x158] sm:$0xff] }
 0xb14   :  { %14862 = vmatprep.subr.bf16.mxu1 %v21368_v17  ;;  %14288 = vmatprep.mubr.bf16.mxu0 %v24657_v8 }
 0xb15   :  { %14506 = vmatprep.mubr.bf16.mxu1 %v24657_v8 }
 0xb16   :  { %14645 = vmatpush1.bf16.msra.mxu0 %v21369_v49 }
 0xb17   :  { %14863 = vmatpush1.bf16.msra.mxu1 %v21370_v56  ;;  %14646 = vmatprep.subr.bf16.mxu0 %v21371_v7 }
 0xb18   :  { %14864 = vmatprep.subr.bf16.mxu1 %v21372_v19 }
 0xb19   :  { %17733 = vmatmul.mubr.msk.bf16.gmra.mrb[84].mxu0 %vm105_vm0, %v21373_v54 }
 0xb1a   :  { %17741 = vmatmul.mubr.msk.bf16.gmra.mrb[96].mxu1 %vm105_vm0, %v21373_v54  ;;  %14647 = vmatpush1.bf16.msra.mxu0 %v21374_v4  ;;  %v14576_v4 = vld [vmem:[#allocation2 + $0x150] sm:$0xff] }
 0xb1b   :  { %14650 = vmatprep.mubr.bf16.mxu0 %v14571_v0  ;;  %14865 = vmatpush1.bf16.msra.mxu1 %v21375_v9  ;;  %v14579_v9 = vld [vmem:[#allocation2 + $0x168] sm:$0xff] }
 0xb1c   :  { %14868 = vmatprep.mubr.bf16.mxu1 %v14571_v0  ;;  %14648 = vmatprep.subr.bf16.mxu0 %v21376_v26  ;;  %v14580_v0 = vld [vmem:[#allocation2 + $0x170] sm:$0xff]  ;;  %v14583_v26 = vld [vmem:[#allocation2 + $0x188] sm:$0xff] }
 0xb1d   :  { %14866 = vmatprep.subr.bf16.mxu1 %v21377_v31  ;;  %v14582_v31 = vld [vmem:[#allocation2 + $0x180] sm:$0xff] }
 0xb1e   :  { %14649 = vmatpush1.bf16.msra.mxu0 %v21378_v63  ;;  %v14586_v63 = vld [vmem:[#allocation2 + $0x1a0] sm:$0xff] }
 0xb1f   :  { %14867 = vmatpush1.bf16.msra.mxu1 %v21379_v21  ;;  %14727 = vmatprep.subr.bf16.mxu0 %v21380_v33  ;;  %v14585_v21 = vld [vmem:[#allocation2 + $0x198] sm:$0xff]  ;;  %v14572_v33 = vld [vmem:[#allocation2 + $0x130] sm:$0xff] }
 0xb20   :  { %14945 = vmatprep.subr.bf16.mxu1 %v21381_v51 }
 0xb21   :  { %14651 = vmatmul.mubr.bf16.vlgmr.msra.gmra.mrb[28].mxu0 %v14570_v5 }
 0xb22   :  { %14869 = vmatmul.mubr.bf16.vlgmr.msra.gmra.mrb[40].mxu1 %v14570_v5  ;;  %14660 = vmatprep.mubr.bf16.mxu0 %v14574_v30  ;;  %v14575_v5 = vld [vmem:[#allocation2 + $0x148] sm:$0xff] }
 0xb23   :  { %14728 = vmatpush1.bf16.msra.mxu0 %v21382_v62  ;;  %14878 = vmatprep.mubr.bf16.mxu1 %v14574_v30 }
 0xb24   :  { %14946 = vmatpush1.bf16.msra.mxu1 %v21383_v40  ;;  %14729 = vmatprep.subr.bf16.mxu0 %v21384_v47 }
 0xb25   :  { %14947 = vmatprep.subr.bf16.mxu1 %v21385_v38  ;;  %v14578_v38 = vld [vmem:[#allocation2 + $0x160] sm:$0xff] }
 0xb27   :  { %14730 = vmatpush1.bf16.msra.mxu0 %v21386_v18 }
 0xb28   :  { %14948 = vmatpush1.bf16.msra.mxu1 %v21387_v52 }
 0xb29   :  { %14661 = vmatmul.mubr.bf16.gmra.mrb[32].mxu0 %v14573_v27 }
 0xb2a   :  { %14879 = vmatmul.mubr.bf16.gmra.mrb[44].mxu1 %v14573_v27  ;;  %14670 = vmatprep.mubr.bf16.mxu0 %v14577_v55 }
 0xb2b   :  { %14888 = vmatprep.mubr.bf16.mxu1 %v14577_v55  ;;  %v20701_v55 = vld [vmem:[#allocation7 + $0xc0] sm:$0xff]  }
 0xb2c   :  { %v13689_v28 = vpop.f32.mrb[72].mxu0  ;;  %17871 = vmatprep.subr.bf16.mxu0 %v20701_v55  ;;  %v20716_v55 = vld [vmem:[#allocation7 + $0xa0] sm:$0xff]  }
 0xb2d   :  { %v13907_v42 = vpop.f32.mrb[84].mxu1  ;;  %v13690_v17 = vpop.f32.mrb[73].mxu0  ;;  %v20702_v28 = vld [vmem:[#allocation7 + $0x80] sm:$0xff]  }
 0xb2e   :  { %v13908_v49 = vpop.f32.mrb[85].mxu1  ;;  %v13691_v56 = vpop.f32.mrb[74].mxu0  ;;  %v20703_v42 = vld [vmem:[#allocation7 + $0xc8] sm:$0xff]   ;;  %v20707_v17 = vld [vmem:[#allocation7 + $0x40] sm:$0xff]  }
 0xb2f   :  { %v13909_v7 = vpop.f32.mrb[86].mxu1  ;;  %v13692_v19 = vpop.f32.mrb[75].mxu0  ;;  %v20709_v49 = vld [vmem:[#allocation7] sm:$0xff]   ;;  %v20711_v56 = vld [vmem:[#allocation7 + $0x48] sm:$0xff]   ;;  %17893 = vmatprep.subr.bf16.mxu1 %v20707_v17  ;;  %v20718_v17 = vld [vmem:[#allocation7 + $0x18] sm:$0xff]  }
 0xb30   :  { %v13910_v54 = vpop.f32.mrb[87].mxu1  ;;  %v20704_v7 = vld [vmem:[#allocation7 + $0x88] sm:$0xff]   ;;  %v20705_v19 = vld [vmem:[#allocation7 + $0xd0] sm:$0xff]  }
 0xb31   :  { %14671 = vmatmul.mubr.bf16.gmra.mrb[36].mxu0 %v14576_v4  ;;  %v14581_v54 = vld [vmem:[#allocation2 + $0x178] sm:$0xff] }
 0xb32   :  { %14889 = vmatmul.mubr.bf16.gmra.mrb[48].mxu1 %v14576_v4  ;;  %14680 = vmatprep.mubr.bf16.mxu0 %v14580_v0  ;;  %v20712_v4 = vld [vmem:[#allocation7 + $0x8] sm:$0xff]  }
 0xb33   :  { %14898 = vmatprep.mubr.bf16.mxu1 %v14580_v0  ;;  %v20706_v0 = vld [vmem:[#allocation7 + $0x90] sm:$0xff]  }
 0xb39   :  { %14681 = vmatmul.mubr.bf16.gmra.mrb[0].mxu0 %v14579_v9 }
 0xb3a   :  { %14899 = vmatmul.mubr.bf16.gmra.mrb[8].mxu1 %v14579_v9  ;;  %14690 = vmatprep.mubr.bf16.mxu0 %v14583_v26  ;;  %v20708_v9 = vld [vmem:[#allocation7 + $0xd8] sm:$0xff]  }
 0xb3b   :  { %14908 = vmatprep.mubr.bf16.mxu1 %v14583_v26  ;;  %v20710_v26 = vld [vmem:[#allocation7 + $0x98] sm:$0xff]  }
 0xb41   :  { %14691 = vmatmul.mubr.bf16.gmra.mrb[4].mxu0 %v14582_v31 }
 0xb42   :  { %14909 = vmatmul.mubr.bf16.gmra.mrb[12].mxu1 %v14582_v31  ;;  %14700 = vmatprep.mubr.bf16.mxu0 %v14586_v63  ;;  %v14584_v31 = vld [vmem:[#allocation2 + $0x190] sm:$0xff] }
 0xb43   :  { %14918 = vmatprep.mubr.bf16.mxu1 %v14586_v63  ;;  %v14587_v63 = vld [vmem:[#allocation2 + $0x1a8] sm:$0xff] }
 0xb49   :  { %14701 = vmatmul.mubr.bf16.gmra.mrb[8].mxu0 %v14585_v21 }
 0xb4a   :  { %14919 = vmatmul.mubr.bf16.gmra.mrb[16].mxu1 %v14585_v21  ;;  %14710 = vmatprep.mubr.bf16.mxu0 %v24657_v8  ;;  %v14590_v21 = vld [vmem:[#allocation2 + $0x1c0] sm:$0xff] }
 0xb4b   :  { %14928 = vmatprep.mubr.bf16.mxu1 %v24657_v8 }
 0xb51   :  { %14711 = vmatmul.mubr.bf16.gmra.mrb[12].mxu0 %v24657_v8 }
 0xb52   :  { %14929 = vmatmul.mubr.bf16.gmra.mrb[20].mxu1 %v24657_v8  ;;  %14720 = vmatprep.mubr.bf16.mxu0 %v24657_v8 }
 0xb53   :  { %14938 = vmatprep.mubr.bf16.mxu1 %v24657_v8 }
 0xb59   :  { %14721 = vmatmul.mubr.bf16.gmra.mrb[44].mxu0 %v24657_v8 }
 0xb5a   :  { %14939 = vmatmul.mubr.bf16.gmra.mrb[56].mxu1 %v24657_v8  ;;  %14759 = vmatprep.mubr.bf16.mxu0 %v24657_v8 }
 0xb5b   :  { %14977 = vmatprep.mubr.bf16.mxu1 %v24657_v8 }
 0xb61   :  { %17742 = vmatmul.mubr.msk.bf16.vlgmr.msra.gmra.mrb[28].mxu0 %vm105_vm0, %v14572_v33 }
 0xb62   :  { %17750 = vmatmul.mubr.msk.bf16.vlgmr.msra.gmra.mrb[40].mxu1 %vm105_vm0, %v14572_v33  ;;  %14769 = vmatprep.mubr.bf16.mxu0 %v24657_v8  ;;  %v21388_v33 = vld [vmem:[#allocation2] sm:$0xff] }
 0xb63   :  { %14987 = vmatprep.mubr.bf16.mxu1 %v24657_v8  ;;  %17872 = vmatpush3.bf16.msra.mxu0 %v20702_v28 }
 0xb64   :  { %17873 = vmatprep.subr.bf16.mxu0 %v20703_v42  ;;  %17894 = vmatpush3.bf16.msra.mxu1 %v20709_v49  ;;  %v20717_v42 = vld [vmem:[#allocation7 + $0x58] sm:$0xff]   ;;  %v20721_v49 = vld [vmem:[#allocation7 + $0x20] sm:$0xff]  }
 0xb65   :  { %17895 = vmatprep.subr.bf16.mxu1 %v20711_v56  ;;  %v20723_v56 = vld [vmem:[#allocation7 + $0x68] sm:$0xff]  }
 0xb67   :  { %17874 = vmatpush3.bf16.msra.mxu0 %v20704_v7  ;;  %v20724_v7 = vld [vmem:[#allocation7 + $0x28] sm:$0xff]  }
 0xb68   :  { %17875 = vmatprep.subr.bf16.mxu0 %v20705_v19  ;;  %17896 = vmatpush3.bf16.msra.mxu1 %v20712_v4  ;;  %v20725_v19 = vld [vmem:[#allocation7 + $0x70] sm:$0xff]   ;;  %v20720_v4 = vld [vmem:[#allocation7 + $0xe8] sm:$0xff]  }
 0xb69   :  { %17743 = vmatmul.mubr.msk.bf16.gmra.mrb[32].mxu0 %vm105_vm0, %v14575_v5 }
 0xb6a   :  { %17751 = vmatmul.mubr.msk.bf16.gmra.mrb[44].mxu1 %vm105_vm0, %v14575_v5  ;;  %14779 = vmatprep.mubr.bf16.mxu0 %v24657_v8 }
 0xb6b   :  { %14997 = vmatprep.mubr.bf16.mxu1 %v24657_v8  ;;  %17876 = vmatpush3.bf16.msra.mxu0 %v20706_v0  ;;  %v14593_v0 = vld [vmem:[#allocation2 + $0x1d8] sm:$0xff] }
 0xb6c   :  { %v13798_v51 = vpop.f32.mrb[76].mxu0  ;;  %17877 = vmatprep.subr.bf16.mxu0 %v20708_v9  ;;  %v20722_v9 = vld [vmem:[#allocation7 + $0xa8] sm:$0xff]  }
 0xb6d   :  { %v14016_v30 = vpop.f32.mrb[88].mxu1  ;;  %v13799_v62 = vpop.f32.mrb[77].mxu0  ;;  %v20713_v51 = vld [vmem:[#allocation7 + $0x50] sm:$0xff]  }
 0xb6e   :  { %v14017_v40 = vpop.f32.mrb[89].mxu1  ;;  %v13800_v47 = vpop.f32.mrb[78].mxu0  ;;  %17897 = vmatprep.subr.bf16.mxu1 %v20713_v51  ;;  %v20734_v51 = vld [vmem:[#allocation7 + $0xb8] sm:$0xff]  }
 0xb6f   :  { %v14018_v18 = vpop.f32.mrb[90].mxu1  ;;  %v13801_v27 = vpop.f32.mrb[79].mxu0  ;;  %17878 = vmatpush3.bf16.msra.mxu0 %v20710_v26  ;;  %v20715_v40 = vld [vmem:[#allocation7 + $0x10] sm:$0xff]   ;;  %v20729_v26 = vld [vmem:[#allocation7 + $0x78] sm:$0xff]  }
 0xb70   :  { %v14019_v52 = vpop.f32.mrb[91].mxu1  ;;  %v20714_v18 = vld [vmem:[#allocation7 + $0xe0] sm:$0xff]   ;;  %17898 = vmatpush3.bf16.msra.mxu1 %v20715_v40 }
 0xb71   :  { %17744 = vmatmul.mubr.msk.bf16.gmra.mrb[36].mxu0 %vm105_vm0, %v14578_v38  ;;  %17879 = vmatprep.subr.bf16.mxu0 %v20714_v18 }
 0xb72   :  { %17752 = vmatmul.mubr.msk.bf16.gmra.mrb[48].mxu1 %vm105_vm0, %v14578_v38  ;;  %14789 = vmatprep.mubr.bf16.mxu0 %v24657_v8 }
 0xb73   :  { %15007 = vmatprep.mubr.bf16.mxu1 %v24657_v8  ;;  %17880 = vmatpush3.bf16.msra.mxu0 %v20716_v55 }
 0xb74   :  { %17899 = vmatprep.subr.bf16.mxu1 %v20717_v42  ;;  %17881 = vmatprep.subr.bf16.mxu0 %v20720_v4 }
 0xb75   :  { %17900 = vmatpush3.bf16.msra.mxu1 %v20718_v17 }
 0xb77   :  { %17882 = vmatpush3.bf16.msra.mxu0 %v20722_v9 }
 0xb79   :  { %17745 = vmatmul.mubr.msk.bf16.gmra.mrb[0].mxu0 %vm105_vm0, %v14581_v54 }
 0xb7a   :  { %17753 = vmatmul.mubr.msk.bf16.gmra.mrb[8].mxu1 %vm105_vm0, %v14581_v54  ;;  %14799 = vmatprep.mubr.bf16.mxu0 %v24657_v8  ;;  %v20727_v54 = vld [vmem:[#allocation7 + $0x30] sm:$0xff]  }
 0xb7b   :  { %15017 = vmatprep.mubr.bf16.mxu1 %v24657_v8 }
 0xb81   :  { %17746 = vmatmul.mubr.msk.bf16.gmra.mrb[4].mxu0 %vm105_vm0, %v14584_v31 }
 0xb82   :  { %17754 = vmatmul.mubr.msk.bf16.gmra.mrb[12].mxu1 %vm105_vm0, %v14584_v31  ;;  %14809 = vmatprep.mubr.bf16.mxu0 %v24657_v8  ;;  %v20730_v31 = vld [vmem:[#allocation7 + $0x38] sm:$0xff]  }
 0xb83   :  { %15027 = vmatprep.mubr.bf16.mxu1 %v24657_v8 }
 0xb89   :  { %17747 = vmatmul.mubr.msk.bf16.gmra.mrb[8].mxu0 %vm105_vm0, %v14587_v63 }
 0xb8a   :  { %17755 = vmatmul.mubr.msk.bf16.gmra.mrb[16].mxu1 %vm105_vm0, %v14587_v63  ;;  %14819 = vmatprep.mubr.bf16.mxu0 %v24657_v8  ;;  %v20726_v63 = vld [vmem:[#allocation7 + $0xf0] sm:$0xff]  }
 0xb8b   :  { %15037 = vmatprep.mubr.bf16.mxu1 %v24657_v8  ;;  %17883 = vmatprep.subr.bf16.mxu0 %v20726_v63 }
 0xb91   :  { %17748 = vmatmul.mubr.msk.bf16.gmra.mrb[12].mxu0 %vm105_vm0, %v14590_v21 }
 0xb92   :  { %17756 = vmatmul.mubr.msk.bf16.gmra.mrb[20].mxu1 %vm105_vm0, %v14590_v21  ;;  %14829 = vmatprep.mubr.bf16.mxu0 %v24657_v8  ;;  %v20719_v8 = vld [vmem:[#allocation7 + $0x60] sm:$0xff]   ;;  %v20728_v21 = vld [vmem:[#allocation7 + $0xb0] sm:$0xff]  }
 0xb93   :  { %15047 = vmatprep.mubr.bf16.mxu1 %v21388_v33  ;;  %17901 = vmatprep.subr.bf16.mxu1 %v20719_v8  ;;  %v20731_v33 = vld [vmem:[#allocation7 + $0x1c0] sm:$0xff]  }
 0xb94   :  { %17902 = vmatpush3.bf16.msra.mxu1 %v20721_v49  ;;  %17884 = vmatpush3.bf16.msra.mxu0 %v20728_v21 }
 0xb95   :  { %17903 = vmatprep.subr.bf16.mxu1 %v20723_v56 }
 0xb98   :  { %17904 = vmatpush3.bf16.msra.mxu1 %v20724_v7 }
 0xb99   :  { %17905 = vmatprep.subr.bf16.mxu1 %v20725_v19  ;;  %17749 = vmatmul.mubr.msk.bf16.gmra.mrb[48].mxu0 %vm105_vm0, %v14593_v0 }
 0xb9a   :  { %17757 = vmatmul.mubr.msk.bf16.gmra.mrb[60].mxu1 %vm105_vm0, %v14593_v0 }
 0xb9c   :  { %17906 = vmatpush3.bf16.msra.mxu1 %v20727_v54 }
 0xb9d   :  { %17907 = vmatprep.subr.bf16.mxu1 %v20729_v26 }
 0xba0   :  { %17908 = vmatpush3.bf16.msra.mxu1 %v20730_v31 }
 0xba1   :  { %17937 = vmatprep.subr.bf16.mxu1 %v20731_v33 }
 0xbac   :  { %v14181_v5 = vpop.f32.mrb[80].mxu0 }
 0xbad   :  { %v14399_v30 = vpop.f32.mrb[92].mxu1  ;;  %v14182_v62 = vpop.f32.mrb[81].mxu0  ;;  %v20732_v5 = vld [vmem:[#allocation7 + $0xf8] sm:$0xff]  }
 0xbae   :  { %v14400_v47 = vpop.f32.mrb[93].mxu1  ;;  %v14183_v38 = vpop.f32.mrb[82].mxu0  ;;  %17885 = vmatprep.subr.bf16.mxu0 %v20732_v5  ;;  %v20737_v30 = vld [vmem:[#allocation7 + $0x140] sm:$0xff]  }
 0xbaf   :  { %v14401_v27 = vpop.f32.mrb[94].mxu1  ;;  %v14184_v52 = vpop.f32.mrb[83].mxu0  ;;  %17886 = vmatpush3.bf16.msra.mxu0 %v20734_v51 }
 0xbb0   :  { %v14402_v28 = vpop.f32.mrb[95].mxu1  ;;  %17915 = vmatprep.subr.bf16.mxu0 %v20737_v30 }
 0xbec   :  { %v14290_v62 = vpop.f32.mrb[84].mxu0 }
 0xbed   :  { %v14508_v40 = vpop.f32.mrb[96].mxu1  ;;  %v14291_v47 = vpop.f32.mrb[85].mxu0 }
 0xbee   :  { %v14509_v38 = vpop.f32.mrb[97].mxu1  ;;  %v14292_v18 = vpop.f32.mrb[86].mxu0 }
 0xbef   :  { %v14510_v27 = vpop.f32.mrb[98].mxu1  ;;  %v14293_v52 = vpop.f32.mrb[87].mxu0 }
 0xbf0   :  { %v14511_v55 = vpop.f32.mrb[99].mxu1 }
 0xc2c   :  { %v14722_v28 = vpop.f32.mrb[44].mxu0 }
 0xc2d   :  { %v14940_v42 = vpop.f32.mrb[56].mxu1  ;;  %v14723_v17 = vpop.f32.mrb[45].mxu0 }
 0xc2e   :  { %v14941_v8 = vpop.f32.mrb[57].mxu1  ;;  %v14724_v49 = vpop.f32.mrb[46].mxu0 }
 0xc2f   :  { %v14942_v56 = vpop.f32.mrb[58].mxu1  ;;  %v14725_v7 = vpop.f32.mrb[47].mxu0 }
 0xc30   :  { %v14943_v19 = vpop.f32.mrb[59].mxu1 }
 0xc34   :  { %v14761_v54 = vpop.f32.mrb[28].mxu0 }
 0xc35   :  { %v15110_v4 = vmul.f32 %v14761_v54, %v24461_v6  ;;  %v14979_v0 = vpop.f32.mrb[40].mxu1  ;;  %v14763_v9 = vpop.f32.mrb[29].mxu0 }
 0xc36   :  { %v15112_v26 = vmul.f32 %v14979_v0, %v24464_v58  ;;  %v15111_v31 = vmul.f32 %v14763_v9, %v24467_v13  ;;  %v14981_v63 = vpop.f32.mrb[41].mxu1  ;;  %v14765_v21 = vpop.f32.mrb[30].mxu0 }
 0xc37   :  { %v15166_v33 = vadd.f32 %v15110_v4, %v24470_v59  ;;  %v15113_v5 = vmul.f32 %v14981_v63, %v24473_v1  ;;  %v15114_v51 = vmul.f32 %v14765_v21, %v24461_v6  ;;  %v14983_v30 = vpop.f32.mrb[42].mxu1  ;;  %v14767_v62 = vpop.f32.mrb[31].mxu0 }
 0xc38   :  { %v15168_v40 = vadd.f32 %v15112_v26, %v24476_v45  ;;  %v15167_v47 = vadd.f32 %v15111_v31, %v24479_v44  ;;  %v15116_v38 = vmul.f32 %v14983_v30, %v24464_v58  ;;  %v15115_v18 = vmul.f32 %v14767_v62, %v24467_v13  ;;  %v14985_v27 = vpop.f32.mrb[43].mxu1 }
 0xc39   :  { %v15222_v52 = vmax.f32 %v15166_v33, 0.0  ;;  %v15169_v55 = vadd.f32 %v15113_v5, %v24483_v35  ;;  %v15170_v28 = vadd.f32 %v15114_v51, %v24470_v59  ;;  %v15117_v42 = vmul.f32 %v14985_v27, %v24473_v1 }
 0xc3a   :  { %v15224_v17 = vmax.f32 %v15168_v40, 0.0  ;;  %v15223_v8 = vmax.f32 %v15167_v47, 0.0  ;;  %v15172_v49 = vadd.f32 %v15116_v38, %v24476_v45  ;;  %v15171_v56 = vadd.f32 %v15115_v18, %v24479_v44 }
 0xc3b   :  { %v15225_v7 = vmax.f32 %v15169_v55, 0.0  ;;  %v15226_v19 = vmax.f32 %v15170_v28, 0.0  ;;  %v15173_v54 = vadd.f32 %v15117_v42, %v24483_v35 }
 0xc3c   :  { %v15278_v4 = vmax.f32 %v15222_v52, %v15224_v17  ;;  %v15228_v0 = vmax.f32 %v15172_v49, 0.0  ;;  %v15227_v9 = vmax.f32 %v15171_v56, 0.0  ;;  %v14771_v26 = vpop.f32.mrb[32].mxu0 }
 0xc3d   :  { %v15279_v31 = vmax.f32 %v15223_v8, %v15225_v7  ;;  %v15229_v63 = vmax.f32 %v15173_v54, 0.0  ;;  %v15118_v21 = vmul.f32 %v14771_v26, %v24461_v6  ;;  %v14989_v33 = vpop.f32.mrb[44].mxu1  ;;  %v14773_v5 = vpop.f32.mrb[33].mxu0 }
 0xc3e   :  { %v15306_v51 = vmax.f32 %v24500_v57, %v15278_v4  ;;  %v15280_v30 = vmax.f32 %v15226_v19, %v15228_v0  ;;  %v15120_v62 = vmul.f32 %v14989_v33, %v24464_v58  ;;  %v15119_v40 = vmul.f32 %v14773_v5, %v24467_v13  ;;  %v14991_v47 = vpop.f32.mrb[45].mxu1  ;;  %v14775_v38 = vpop.f32.mrb[34].mxu0 }
 0xc3f   :  { %v15281_v18 = vmax.f32 %v15227_v9, %v15229_v63  ;;  %v15174_v27 = vadd.f32 %v15118_v21, %v24470_v59  ;;  %v15121_v52 = vmul.f32 %v14991_v47, %v24473_v1  ;;  %v15122_v55 = vmul.f32 %v14775_v38, %v24461_v6  ;;  %v14993_v28 = vpop.f32.mrb[46].mxu1  ;;  %v14777_v42 = vpop.f32.mrb[35].mxu0 }
 0xc40   :  { %v15308_v17 = vmax.f32 %v24505_v15, %v15280_v30  ;;  %v15176_v57 = vadd.f32 %v15120_v62, %v24476_v45  ;;  %v15175_v8 = vadd.f32 %v15119_v40, %v24479_v44  ;;  %v15124_v49 = vmul.f32 %v14993_v28, %v24464_v58  ;;  %v14995_v56 = vpop.f32.mrb[47].mxu1 }
 0xc41   :  { %v15230_v7 = vmax.f32 %v15174_v27, 0.0  ;;  %v15177_v19 = vadd.f32 %v15121_v52, %v24483_v35  ;;  %v15178_v54 = vadd.f32 %v15122_v55, %v24470_v59  ;;  %v15123_v4 = vmul.f32 %v14777_v42, %v24467_v13 }
 0xc42   :  { %v15334_v0 = vpack.c.bf16 %v15308_v17, %v15306_v51  ;;  %v15232_v9 = vmax.f32 %v15176_v57, 0.0  ;;  %v15231_v26 = vmax.f32 %v15175_v8, 0.0  ;;  %v15180_v63 = vadd.f32 %v15124_v49, %v24476_v45 }
 0xc43   :  { %v15233_v15 = vmax.f32 %v15177_v19, 0.0  ;;  %v15234_v21 = vmax.f32 %v15178_v54, 0.0  ;;  %v15179_v33 = vadd.f32 %v15123_v4, %v24479_v44  ;;  %v15125_v5 = vmul.f32 %v14995_v56, %v24473_v1 }
 0xc44   :  { %v15282_v30 = vmax.f32 %v15230_v7, %v15232_v9  ;;  %v15236_v62 = vmax.f32 %v15180_v63, 0.0  ;;  %v14781_v40 = vpop.f32.mrb[36].mxu0  ;;  %v15307_v47 = vmax.f32 %v24502_v11, %v15279_v31  ;;  %v15309_v38 = vmax.f32 %v24509_v34, %v15281_v18  ;;  %v20733_v7 = vld [vmem:[#allocation7 + $0x180] sm:$0xff]   ;;  %v20735_v9 = vld [vmem:[#allocation7 + $0x1c8] sm:$0xff]  }
 0xc45   :  { %v24836_v27 = vmax.f32 %v15231_v26, %v15233_v15  ;;  %v15235_v51 = vmax.f32 %v15179_v33, 0.0  ;;  %v15181_v52 = vadd.f32 %v15125_v5, %v24483_v35  ;;  %v15126_v55 = vmul.f32 %v14781_v40, %v24461_v6  ;;  %v14999_v28 = vpop.f32.mrb[48].mxu1  ;;  %v14783_v42 = vpop.f32.mrb[37].mxu0 }
 0xc46   :  { %v15310_v17 = vmax.f32 %v24524_v3, %v15282_v30  ;;  %v15284_v57 = vmax.f32 %v15234_v21, %v15236_v62  ;;  %v15128_v8 = vmul.f32 %v14999_v28, %v24464_v58  ;;  %v15335_v49 = vpack.c.bf16 %v15309_v38, %v15307_v47  ;;  %v15001_v56 = vpop.f32.mrb[49].mxu1  ;;  %v14785_v11 = vpop.f32.mrb[38].mxu0 }
 0xc47   :  { %v15237_v31 = vmax.f32 %v15181_v52, 0.0  ;;  %v15182_v34 = vadd.f32 %v15126_v55, %v24470_v59  ;;  %v15127_v18 = vmul.f32 %v14783_v42, %v24467_v13  ;;  %v15129_v19 = vmul.f32 %v15001_v56, %v24473_v1  ;;  %v15003_v54 = vpop.f32.mrb[50].mxu1  ;;  %v14787_v4 = vpop.f32.mrb[39].mxu0  ;;  %v20736_v52 = vld [vmem:[#allocation7 + $0x188] sm:$0xff]  }
 0xc48   :  { %v15312_v26 = vmax.f32 %v24529_v25, %v15284_v57  ;;  %v15184_v3 = vadd.f32 %v15128_v8, %v24476_v45  ;;  %15678 = vmatprep.mubr.bf16.mxu1 %v15335_v49  ;;  %v15130_v63 = vmul.f32 %v14785_v11, %v24461_v6  ;;  %v15132_v15 = vmul.f32 %v15003_v54, %v24464_v58  ;;  %v15005_v21 = vpop.f32.mrb[51].mxu1  ;;  %v20738_v57 = vld [vmem:[#allocation7 + $0x1d0] sm:$0xff]  }
 0xc49   :  { %v15285_v33 = vmax.f32 %v15235_v51, %v15237_v31  ;;  %v15238_v5 = vmax.f32 %v15182_v34, 0.0  ;;  %v15183_v30 = vadd.f32 %v15127_v18, %v24479_v44  ;;  %v15185_v62 = vadd.f32 %v15129_v19, %v24483_v35  ;;  %15679 = vmatmul.mubr.bf16.vlgmr.msra.gmra.mrb[64].mxu1 %v15334_v0 }
 0xc4a   :  { %v15336_v40 = vpack.c.bf16 %v15312_v26, %v15310_v17  ;;  %v15240_v47 = vmax.f32 %v15184_v3, 0.0  ;;  %17938 = vmatpush3.bf16.msra.mxu1 %v20733_v7  ;;  %v15186_v25 = vadd.f32 %v15130_v63, %v24470_v59  ;;  %v15188_v38 = vadd.f32 %v15132_v15, %v24476_v45 }
 0xc4b   :  { %v15239_v55 = vmax.f32 %v15183_v30, 0.0  ;;  %v15241_v28 = vmax.f32 %v15185_v62, 0.0  ;;  %v15131_v42 = vmul.f32 %v14787_v4, %v24467_v13  ;;  %v15133_v51 = vmul.f32 %v15005_v21, %v24473_v1  ;;  %17939 = vmatprep.subr.bf16.mxu1 %v20735_v9 }
 0xc4c   :  { %v15286_v8 = vmax.f32 %v15238_v5, %v15240_v47  ;;  %v15242_v49 = vmax.f32 %v15186_v25, 0.0  ;;  %v15244_v56 = vmax.f32 %v15188_v38, 0.0  ;;  %v14791_v0 = vpop.f32.mrb[0].mxu0  ;;  %v15311_v17 = vmax.f32 %v24526_v12, %v24836_v27  ;;  %v20740_v12 = vld [vmem:[#allocation7 + $0x190] sm:$0xff]   ;;  %v20742_v47 = vld [vmem:[#allocation7 + $0x1d8] sm:$0xff]  }
 0xc4d   :  { %v24857_v7 = vmax.f32 %v15239_v55, %v15241_v28  ;;  %v15187_v11 = vadd.f32 %v15131_v42, %v24479_v44  ;;  %v15189_v31 = vadd.f32 %v15133_v51, %v24483_v35  ;;  %v15134_v34 = vmul.f32 %v14791_v0, %v24461_v6  ;;  %v15009_v18 = vpop.f32.mrb[8].mxu1  ;;  %v14793_v19 = vpop.f32.mrb[1].mxu0  ;;  %v20744_v0 = vld [vmem:[#allocation7 + $0x198] sm:$0xff]  }
 0xc4e   :  { %v15314_v54 = vmax.f32 %v24548_v14, %v15286_v8  ;;  %v15288_v4 = vmax.f32 %v15242_v49, %v15244_v56  ;;  %17940 = vmatpush3.bf16.msra.mxu1 %v20736_v52  ;;  %v15136_v9 = vmul.f32 %v15009_v18, %v24464_v58  ;;  %v15313_v26 = vmax.f32 %v24533_v53, %v15285_v33  ;;  %v15011_v3 = vpop.f32.mrb[9].mxu1  ;;  %v14795_v27 = vpop.f32.mrb[2].mxu0  ;;  %v20739_v33 = vld [vmem:[#allocation7 + $0x100] sm:$0xff]  }
 0xc4f   :  { %v15243_v63 = vmax.f32 %v15187_v11, 0.0  ;;  %v15245_v15 = vmax.f32 %v15189_v31, 0.0  ;;  %v15190_v21 = vadd.f32 %v15134_v34, %v24470_v59  ;;  %17941 = vmatprep.subr.bf16.mxu1 %v20738_v57  ;;  %v15135_v5 = vmul.f32 %v14793_v19, %v24467_v13  ;;  %v15013_v30 = vpop.f32.mrb[10].mxu1  ;;  %v14797_v62 = vpop.f32.mrb[3].mxu0  ;;  %v20741_v57 = vld [vmem:[#allocation7 + $0x148] sm:$0xff]   ;;  %v20746_v18 = vld [vmem:[#allocation7 + $0x1e0] sm:$0xff]  }
 0xc50   :  { %v15316_v14 = vmax.f32 %v24553_v43, %v15288_v4  ;;  %v15192_v25 = vadd.f32 %v15136_v9, %v24476_v45  ;;  %v15337_v38 = vpack.c.bf16 %v15313_v26, %v15311_v17  ;;  %v15137_v53 = vmul.f32 %v15011_v3, %v24473_v1  ;;  %v15015_v52 = vpop.f32.mrb[11].mxu1  ;;  %v20743_v9 = vld [vmem:[#allocation7 + $0x108] sm:$0xff]  }
 0xc51   :  { %v15289_v55 = vmax.f32 %v15243_v63, %v15245_v15  ;;  %v15246_v28 = vmax.f32 %v15190_v21, 0.0  ;;  %v15191_v42 = vadd.f32 %v15135_v5, %v24479_v44  ;;  %v15138_v51 = vmul.f32 %v14795_v27, %v24461_v6  ;;  %v20745_v21 = vld [vmem:[#allocation7 + $0x150] sm:$0xff]  }
 0xc52   :  { %v24872_v8 = vpack.c.bf16 %v15316_v14, %v15314_v54  ;;  %v15248_v49 = vmax.f32 %v15192_v25, 0.0  ;;  %15541 = vmatprep.mubr.bf16.mxu0 %v15337_v38  ;;  %v15193_v43 = vadd.f32 %v15137_v53, %v24483_v35  ;;  %17942 = vmatpush3.bf16.msra.mxu1 %v20740_v12  ;;  %v15140_v56 = vmul.f32 %v15013_v30, %v24464_v58 }
 0xc53   :  { %v15247_v17 = vmax.f32 %v15191_v42, 0.0  ;;  %15542 = vmatmul.mubr.bf16.vlgmr.msra.gmra.mrb[52].mxu0 %v15336_v40  ;;  %v15194_v11 = vadd.f32 %v15138_v51, %v24470_v59  ;;  %v15139_v31 = vmul.f32 %v14797_v62, %v24467_v13  ;;  %v15141_v34 = vmul.f32 %v15015_v52, %v24473_v1  ;;  %17943 = vmatprep.subr.bf16.mxu1 %v20742_v47 }
 0xc54   :  { %v15290_v19 = vmax.f32 %v15246_v28, %v15248_v49  ;;  %v15249_v54 = vmax.f32 %v15193_v43, 0.0  ;;  %17916 = vmatpush3.bf16.msra.mxu0 %v20739_v33  ;;  %v15196_v4 = vadd.f32 %v15140_v56, %v24476_v45  ;;  %v14801_v26 = vpop.f32.mrb[4].mxu0  ;;  %v15315_v3 = vmax.f32 %v24550_v20, %v24857_v7  ;;  %v20748_v7 = vld [vmem:[#allocation7 + $0x1a0] sm:$0xff]   ;;  %v20747_v43 = vld [vmem:[#allocation7 + $0x110] sm:$0xff]  }
 0xc55   :  { %v15250_v12 = vmax.f32 %v15194_v11, 0.0  ;;  %v15195_v40 = vadd.f32 %v15139_v31, %v24479_v44  ;;  %v15197_v27 = vadd.f32 %v15141_v34, %v24483_v35  ;;  %17917 = vmatprep.subr.bf16.mxu0 %v20741_v57  ;;  %v15142_v63 = vmul.f32 %v14801_v26, %v24461_v6  ;;  %v15019_v15 = vpop.f32.mrb[12].mxu1  ;;  %v14803_v5 = vpop.f32.mrb[5].mxu0 }
 0xc56   :  { %v15318_v30 = vmax.f32 %v24572_v50, %v15290_v19  ;;  %v24886_v62 = vmax.f32 %v15247_v17, %v15249_v54  ;;  %v15252_v47 = vmax.f32 %v15196_v4, 0.0  ;;  %17944 = vmatpush3.bf16.msra.mxu1 %v20744_v0  ;;  %v15144_v14 = vmul.f32 %v15019_v15, %v24464_v58  ;;  %v15021_v20 = vpop.f32.mrb[13].mxu1  ;;  %v14805_v25 = vpop.f32.mrb[6].mxu0  ;;  %v20750_v0 = vld [vmem:[#allocation7 + $0x1e8] sm:$0xff]  }
 0xc57   :  { %v15251_v38 = vmax.f32 %v15195_v40, 0.0  ;;  %v15253_v53 = vmax.f32 %v15197_v27, 0.0  ;;  %v15198_v33 = vadd.f32 %v15142_v63, %v24470_v59  ;;  %v15317_v52 = vmax.f32 %v24557_v36, %v15289_v55  ;;  %17945 = vmatprep.subr.bf16.mxu1 %v20746_v18  ;;  %v15023_v28 = vpop.f32.mrb[14].mxu1  ;;  %v14807_v42 = vpop.f32.mrb[7].mxu0  ;;  %v20749_v55 = vld [vmem:[#allocation7 + $0x158] sm:$0xff]   ;;  %v20752_v4 = vld [vmem:[#allocation7 + $0x1a8] sm:$0xff]  }
 0xc58   :  { %v15292_v51 = vmax.f32 %v15250_v12, %v15252_v47  ;;  %17918 = vmatpush3.bf16.msra.mxu0 %v20743_v9  ;;  %v15200_v50 = vadd.f32 %v15144_v14, %v24476_v45  ;;  %v15143_v57 = vmul.f32 %v14803_v5, %v24467_v13  ;;  %v15145_v49 = vmul.f32 %v15021_v20, %v24473_v1  ;;  %v15025_v56 = vpop.f32.mrb[15].mxu1  ;;  %v20754_v40 = vld [vmem:[#allocation7 + $0x1f0] sm:$0xff]  }
 0xc59   :  { %v24894_v17 = vmax.f32 %v15251_v38, %v15253_v53  ;;  %v15254_v11 = vmax.f32 %v15198_v33, 0.0  ;;  %17919 = vmatprep.subr.bf16.mxu0 %v20745_v21  ;;  %v15339_v31 = vpack.c.bf16 %v15317_v52, %v15315_v3  ;;  %v15146_v36 = vmul.f32 %v14805_v25, %v24461_v6  ;;  %v20751_v21 = vld [vmem:[#allocation7 + $0x118] sm:$0xff]   ;;  %v20753_v38 = vld [vmem:[#allocation7 + $0x160] sm:$0xff]  }
 0xc5a   :  { %v15320_v34 = vmax.f32 %v24577_v10, %v15292_v51  ;;  %v15256_v18 = vmax.f32 %v15200_v50, 0.0  ;;  %v15199_v19 = vadd.f32 %v15143_v57, %v24479_v44  ;;  %v15201_v54 = vadd.f32 %v15145_v49, %v24483_v35  ;;  %17946 = vmatpush3.bf16.msra.mxu1 %v20748_v7  ;;  %v20756_v51 = vld [vmem:[#allocation7 + $0x1b0] sm:$0xff]  }
 0xc5b   :  { %15848 = vmatprep.mubr.bf16.mxu0 %v15339_v31  ;;  %v15202_v9 = vadd.f32 %v15146_v36, %v24470_v59  ;;  %v15148_v26 = vmul.f32 %v15023_v28, %v24464_v58  ;;  %v15147_v12 = vmul.f32 %v14807_v42, %v24467_v13  ;;  %v15149_v3 = vmul.f32 %v15025_v56, %v24473_v1 }
 0xc5c   :  { %v24904_v27 = vpack.c.bf16 %v15320_v34, %v15318_v30  ;;  %v24906_v10 = vmax.f32 %v15254_v11, %v15256_v18  ;;  %v15255_v63 = vmax.f32 %v15199_v19, 0.0  ;;  %v15257_v15 = vmax.f32 %v15201_v54, 0.0  ;;  %17920 = vmatpush3.bf16.msra.mxu0 %v20747_v43  ;;  %17947 = vmatprep.subr.bf16.mxu1 %v20750_v0  ;;  %v14811_v5 = vpop.f32.mrb[8].mxu0  ;;  %v20755_v18 = vld [vmem:[#allocation7 + $0x120] sm:$0xff]  }
 0xc5d   :  { %v15258_v47 = vmax.f32 %v15202_v9, 0.0  ;;  %v15204_v14 = vadd.f32 %v15148_v26, %v24476_v45  ;;  %v15203_v20 = vadd.f32 %v15147_v12, %v24479_v44  ;;  %v15205_v7 = vadd.f32 %v15149_v3, %v24483_v35  ;;  %17921 = vmatprep.subr.bf16.mxu0 %v20749_v55  ;;  %v15029_v25 = vpop.f32.mrb[16].mxu1  ;;  %v14813_v30 = vpop.f32.mrb[9].mxu0  ;;  %v20757_v9 = vld [vmem:[#allocation7 + $0x168] sm:$0xff]  }
 0xc5e   :  { %v15322_v53 = vmax.f32 %v24598_v32, %v24906_v10  ;;  %v24913_v33 = vmax.f32 %v15255_v63, %v15257_v15  ;;  %17948 = vmatpush3.bf16.msra.mxu1 %v20752_v4  ;;  %v15150_v52 = vmul.f32 %v14811_v5, %v24461_v6  ;;  %v15152_v28 = vmul.f32 %v15029_v25, %v24464_v58  ;;  %v15031_v42 = vpop.f32.mrb[17].mxu1  ;;  %v14815_v50 = vpop.f32.mrb[10].mxu0  ;;  %v20758_v32 = vld [vmem:[#allocation7 + $0x1f8] sm:$0xff]  }
 0xc5f   :  { %v15260_v57 = vmax.f32 %v15204_v14, 0.0  ;;  %v15259_v49 = vmax.f32 %v15203_v20, 0.0  ;;  %v15261_v43 = vmax.f32 %v15205_v7, 0.0  ;;  %17949 = vmatprep.subr.bf16.mxu1 %v20754_v40  ;;  %v15319_v56 = vmax.f32 %v24574_v61, %v24886_v62  ;;  %v15033_v0 = vpop.f32.mrb[18].mxu1  ;;  %v14817_v11 = vpop.f32.mrb[11].mxu0  ;;  %v20759_v7 = vld [vmem:[#allocation7 + $0x128] sm:$0xff]  }
 0xc60   :  { %17922 = vmatpush3.bf16.msra.mxu0 %v20751_v21  ;;  %v15206_v31 = vadd.f32 %v15150_v52, %v24470_v59  ;;  %v15208_v36 = vadd.f32 %v15152_v28, %v24476_v45  ;;  %v15321_v55 = vmax.f32 %v24581_v46, %v24894_v17  ;;  %v15151_v34 = vmul.f32 %v14813_v30, %v24467_v13  ;;  %v15035_v19 = vpop.f32.mrb[19].mxu1  ;;  %v20760_v46 = vld [vmem:[#allocation7 + $0x1b8] sm:$0xff]   ;;  %v20762_v21 = vld [vmem:[#allocation7 + $0x2c0] sm:$0xff]  }
 0xc61   :  { %v15296_v54 = vmax.f32 %v15258_v47, %v15260_v57  ;;  %v24924_v4 = vmax.f32 %v15259_v49, %v15261_v43  ;;  %17923 = vmatprep.subr.bf16.mxu0 %v20753_v38  ;;  %v15153_v61 = vmul.f32 %v15031_v42, %v24473_v1  ;;  %v15154_v62 = vmul.f32 %v14815_v50, %v24461_v6  ;;  %v20761_v42 = vld [vmem:[#allocation7 + $0x170] sm:$0xff]  }
 0xc62   :  { %v15262_v26 = vmax.f32 %v15206_v31, 0.0  ;;  %v15264_v12 = vmax.f32 %v15208_v36, 0.0  ;;  %v15341_v3 = vpack.c.bf16 %v15321_v55, %v15319_v56  ;;  %v15207_v40 = vadd.f32 %v15151_v34, %v24479_v44  ;;  %17950 = vmatpush3.bf16.msra.mxu1 %v20756_v51  ;;  %v20764_v56 = vld [vmem:[#allocation7 + $0x280] sm:$0xff]   ;;  %v20766_v34 = vld [vmem:[#allocation7 + $0x2c8] sm:$0xff]  }
 0xc63   :  { %v15324_v17 = vmax.f32 %v24603_v48, %v15296_v54  ;;  %v15209_v10 = vadd.f32 %v15153_v61, %v24483_v35  ;;  %v15210_v63 = vadd.f32 %v15154_v62, %v24470_v59  ;;  %v15156_v15 = vmul.f32 %v15033_v0, %v24464_v58  ;;  %17951 = vmatprep.subr.bf16.mxu1 %v20758_v32  ;;  %v20763_v62 = vld [vmem:[#allocation7 + $0x130] sm:$0xff]  }
 0xc64   :  { %v24933_v5 = vmax.f32 %v15262_v26, %v15264_v12  ;;  %16020 = vmatprep.mubr.bf16.mxu1 %v15341_v3  ;;  %v15263_v47 = vmax.f32 %v15207_v40, 0.0  ;;  %17924 = vmatpush3.bf16.msra.mxu0 %v20755_v18  ;;  %v15155_v14 = vmul.f32 %v14817_v11, %v24467_v13  ;;  %v15157_v20 = vmul.f32 %v15035_v19, %v24473_v1  ;;  %v14821_v25 = vpop.f32.mrb[12].mxu0  ;;  %v20765_v40 = vld [vmem:[#allocation7 + $0x178] sm:$0xff]  }
 0xc65   :  { %v24937_v48 = vpack.c.bf16 %v15324_v17, %v15322_v53  ;;  %v15265_v38 = vmax.f32 %v15209_v10, 0.0  ;;  %v15266_v30 = vmax.f32 %v15210_v63, 0.0  ;;  %v15212_v52 = vadd.f32 %v15156_v15, %v24476_v45  ;;  %17925 = vmatprep.subr.bf16.mxu0 %v20757_v9  ;;  %v15039_v28 = vpop.f32.mrb[20].mxu1  ;;  %v14823_v51 = vpop.f32.mrb[13].mxu0  ;;  %v20768_v15 = vld [vmem:[#allocation7 + $0x288] sm:$0xff]  }
 0xc66   :  { %v15326_v50 = vmax.f32 %v24624_v22, %v24933_v5  ;;  %v15211_v57 = vadd.f32 %v15155_v14, %v24479_v44  ;;  %v15213_v49 = vadd.f32 %v15157_v20, %v24483_v35  ;;  %17952 = vmatpush3.bf16.msra.mxu1 %v20760_v46  ;;  %v15158_v43 = vmul.f32 %v14821_v25, %v24461_v6  ;;  %v15041_v53 = vpop.f32.mrb[21].mxu1  ;;  %v14825_v0 = vpop.f32.mrb[14].mxu0  ;;  %v20770_v20 = vld [vmem:[#allocation7 + $0x2d0] sm:$0xff]  }
 0xc67   :  { %v24945_v11 = vmax.f32 %v15263_v47, %v15265_v38  ;;  %v15268_v32 = vmax.f32 %v15212_v52, 0.0  ;;  %v15160_v31 = vmul.f32 %v15039_v28, %v24464_v58  ;;  %17981 = vmatprep.subr.bf16.mxu1 %v20762_v21  ;;  %v15159_v36 = vmul.f32 %v14823_v51, %v24467_v13  ;;  %v15043_v55 = vpop.f32.mrb[22].mxu1  ;;  %v14827_v22 = vpop.f32.mrb[15].mxu0  ;;  %v20769_v28 = vld [vmem:[#allocation7 + $0x240] sm:$0xff]  }
 0xc68   :  { %v15267_v18 = vmax.f32 %v15211_v57, 0.0  ;;  %v15269_v19 = vmax.f32 %v15213_v49, 0.0  ;;  %17926 = vmatpush3.bf16.msra.mxu0 %v20759_v7  ;;  %v15214_v54 = vadd.f32 %v15158_v43, %v24470_v59  ;;  %v15161_v61 = vmul.f32 %v15041_v53, %v24473_v1  ;;  %v15045_v9 = vpop.f32.mrb[23].mxu1 }
 0xc69   :  { %v15300_v26 = vmax.f32 %v15266_v30, %v15268_v32  ;;  %v15216_v12 = vadd.f32 %v15160_v31, %v24476_v45  ;;  %17927 = vmatprep.subr.bf16.mxu0 %v20761_v42  ;;  %16021 = vmatmul.mubr.bf16.vlgmr.msra.gmra.mrb[68].mxu1 %v24904_v27  ;;  %v15215_v3 = vadd.f32 %v15159_v36, %v24479_v44  ;;  %v20767_v30 = vld [vmem:[#allocation7 + $0x138] sm:$0xff]   ;;  %v20777_v36 = vld [vmem:[#allocation7 + $0x250] sm:$0xff]  }
 0xc6a   :  { %v15301_v46 = vmax.f32 %v15267_v18, %v15269_v19  ;;  %v15270_v17 = vmax.f32 %v15214_v54, 0.0  ;;  %v15217_v10 = vadd.f32 %v15161_v61, %v24483_v35  ;;  %17982 = vmatpush3.bf16.msra.mxu1 %v20764_v56  ;;  %v15162_v63 = vmul.f32 %v14825_v0, %v24461_v6  ;;  %v20784_v18 = vld [vmem:[#allocation7 + $0x2a8] sm:$0xff]   ;;  %v20786_v19 = vld [vmem:[#allocation7 + $0x2f0] sm:$0xff]   ;;  %v20785_v54 = vld [vmem:[#allocation7 + $0x260] sm:$0xff]  }
 0xc6b   :  { %v15328_v21 = vmax.f32 %v24631_v37, %v15300_v26  ;;  %v15272_v5 = vmax.f32 %v15216_v12, 0.0  ;;  %v15271_v47 = vmax.f32 %v15215_v3, 0.0  ;;  %v15164_v14 = vmul.f32 %v15043_v55, %v24464_v58  ;;  %17983 = vmatprep.subr.bf16.mxu1 %v20766_v34  ;;  %v20780_v55 = vld [vmem:[#allocation7 + $0x2a0] sm:$0xff]   ;;  %v20782_v34 = vld [vmem:[#allocation7 + $0x2e8] sm:$0xff]   ;;  %v20788_v61 = vld [vmem:[#allocation7 + $0x2b0] sm:$0xff]  }
 0xc6c   :  { %v15273_v27 = vmax.f32 %v15217_v10, 0.0  ;;  %17928 = vmatpush3.bf16.msra.mxu0 %v20763_v62  ;;  %v15218_v7 = vadd.f32 %v15162_v63, %v24470_v59  ;;  %v15163_v25 = vmul.f32 %v14827_v22, %v24467_v13  ;;  %v15165_v38 = vmul.f32 %v15045_v9, %v24473_v1  ;;  %v20772_v13 = vld [vmem:[#allocation7 + $0x290] sm:$0xff]   ;;  %v20790_v62 = vld [vmem:[#allocation7 + $0x2f8] sm:$0xff]   ;;  %v20787_v9 = vld [vmem:[#allocation7 + $0x220] sm:$0xff]  }
 0xc6d   :  { %v24961_v52 = vpack.c.bf16 %v15328_v21, %v15326_v50  ;;  %v15302_v6 = vmax.f32 %v15270_v17, %v15272_v5  ;;  %v15220_v37 = vadd.f32 %v15164_v14, %v24476_v45  ;;  %17929 = vmatprep.subr.bf16.mxu0 %v20765_v40  ;;  %v15327_v58 = vmax.f32 %v24627_v2, %v24945_v11  ;;  %v20771_v2 = vld [vmem:[#allocation7 + $0x200] sm:$0xff]   ;;  %v20774_v11 = vld [vmem:[#allocation7 + $0x2d8] sm:$0xff]   ;;  %v20789_v26 = vld [vmem:[#allocation7 + $0x268] sm:$0xff]   ;;  %v15049_v5 = vpop.f32.mrb[60].mxu1 }
 0xc6e   :  { %v15303_v42 = vmax.f32 %v15271_v47, %v15273_v27  ;;  %v15274_v51 = vmax.f32 %v15218_v7, 0.0  ;;  %v15219_v57 = vadd.f32 %v15163_v25, %v24479_v44  ;;  %v15221_v59 = vadd.f32 %v15165_v38, %v24483_v35  ;;  %17984 = vmatpush3.bf16.msra.mxu1 %v20768_v15  ;;  %v20792_v12 = vld [vmem:[#allocation7 + $0x2b8] sm:$0xff]   ;;  %v20791_v3 = vld [vmem:[#allocation7 + $0x228] sm:$0xff]   ;;  %v20793_v40 = vld [vmem:[#allocation7 + $0x270] sm:$0xff]   ;;  %v14831_v47 = vpop.f32.mrb[48].mxu0  ;;  %v15050_v14 = vpop.f32.mrb[61].mxu1 }
 0xc6f   :  { %v15330_v1 = vmax.f32 %v24652_v16, %v15302_v6  ;;  %v15276_v50 = vmax.f32 %v15220_v37, 0.0  ;;  %17985 = vmatprep.subr.bf16.mxu1 %v20770_v20  ;;  %v15329_v49 = vmax.f32 %v24635_v23, %v15301_v46  ;;  %v15323_v45 = vmax.f32 %v24600_v39, %v24913_v33  ;;  %v20773_v16 = vld [vmem:[#allocation7 + $0x248] sm:$0xff]   ;;  %v20776_v23 = vld [vmem:[#allocation7 + $0x298] sm:$0xff]   ;;  %v20778_v33 = vld [vmem:[#allocation7 + $0x2e0] sm:$0xff]   ;;  %v14832_v20 = vpop.f32.mrb[49].mxu0  ;;  %v15051_v7 = vpop.f32.mrb[62].mxu1 }
 0xc70   :  { %v15275_v43 = vmax.f32 %v15219_v57, 0.0  ;;  %v15277_v53 = vmax.f32 %v15221_v59, 0.0  ;;  %17930 = vmatpush3.bf16.msra.mxu0 %v20767_v30  ;;  %v15325_v44 = vmax.f32 %v24607_v41, %v24924_v4  ;;  %v15331_v35 = vmax.f32 %v24655_v60, %v15303_v42  ;;  %v20775_v41 = vld [vmem:[#allocation7 + $0x208] sm:$0xff]   ;;  %v20794_v46 = vld [vmem:[#allocation7 + $0x230] sm:$0xff]   ;;  %v20795_v17 = vld [vmem:[#allocation7 + $0x278] sm:$0xff]   ;;  %v14833_v25 = vpop.f32.mrb[50].mxu0 }
 0xc71   :  { %v15304_v56 = vmax.f32 %v15274_v51, %v15276_v50  ;;  %17959 = vmatprep.subr.bf16.mxu0 %v20769_v28  ;;  %v15345_v0 = vpack.c.bf16 %v15329_v49, %v15327_v58  ;;  %v20796_v10 = vld [vmem:[#allocation7 + $0x238] sm:$0xff]   ;;  %v20797_v63 = vld [vmem:[#allocation7 + $0x340] sm:$0xff]   ;;  %v20799_v21 = vld [vmem:[#allocation7 + $0x348] sm:$0xff]   ;;  %v15052_v30 = vpop.f32.mrb[63].mxu1 }
 0xc72   :  { %v15305_v32 = vmax.f32 %v15275_v43, %v15277_v53  ;;  %v15343_v31 = vpack.c.bf16 %v15325_v44, %v15323_v45  ;;  %17986 = vmatpush3.bf16.msra.mxu1 %v20772_v13  ;;  %v20798_v15 = vld [vmem:[#allocation7 + $0x300] sm:$0xff]   ;;  %v20800_v27 = vld [vmem:[#allocation7 + $0x308] sm:$0xff]   ;;  %v20801_v38 = vld [vmem:[#allocation7 + $0x350] sm:$0xff]  }
 0xc73   :  { %v15332_v39 = vmax.f32 %v24660_v24, %v15304_v56  ;;  %15849 = vmatmul.mubr.bf16.vlgmr.msra.gmra.mrb[56].mxu0 %v24872_v8  ;;  %16364 = vmatprep.mubr.bf16.mxu1 %v15345_v0  ;;  %v20779_v24 = vld [vmem:[#allocation7 + $0x210] sm:$0xff]   ;;  %v20781_v8 = vld [vmem:[#allocation7 + $0x258] sm:$0xff]   ;;  %v20805_v58 = vld [vmem:[#allocation7 + $0x360] sm:$0xff]  }
 0xc74   :  { %17960 = vmatpush3.bf16.msra.mxu0 %v20771_v2  ;;  %16192 = vmatprep.mubr.bf16.mxu0 %v15343_v31  ;;  %v15333_v60 = vmax.f32 %v24662_v29, %v15305_v32  ;;  %v20783_v29 = vld [vmem:[#allocation7 + $0x218] sm:$0xff]   ;;  %v20802_v6 = vld [vmem:[#allocation7 + $0x310] sm:$0xff]   ;;  %v20807_v42 = vld [vmem:[#allocation7 + $0x368] sm:$0xff]  }
 0xc75   :  { %v24978_v4 = vpack.c.bf16 %v15332_v39, %v15330_v1  ;;  %17961 = vmatprep.subr.bf16.mxu0 %v20773_v16  ;;  %17987 = vmatprep.subr.bf16.mxu1 %v20774_v11  ;;  %v20803_v37 = vld [vmem:[#allocation7 + $0x358] sm:$0xff]   ;;  %v20808_v51 = vld [vmem:[#allocation7 + $0x328] sm:$0xff]   ;;  %v20809_v57 = vld [vmem:[#allocation7 + $0x370] sm:$0xff]  }
 0xc76   :  { %17988 = vmatpush3.bf16.msra.mxu1 %v20776_v23  ;;  %v15347_v22 = vpack.c.bf16 %v15333_v60, %v15331_v35  ;;  %v20804_v28 = vld [vmem:[#allocation7 + $0x318] sm:$0xff]   ;;  %v20810_v59 = vld [vmem:[#allocation7 + $0x330] sm:$0xff]  }
 0xc77   :  { %17989 = vmatprep.subr.bf16.mxu1 %v20778_v33  ;;  %v20811_v13 = vld [vmem:[#allocation7 + $0x378] sm:$0xff]  }
 0xc78   :  { %17962 = vmatpush3.bf16.msra.mxu0 %v20775_v41  ;;  %v20812_v1 = vld [vmem:[#allocation7 + $0x338] sm:$0xff]  }
 0xc79   :  { %17963 = vmatprep.subr.bf16.mxu0 %v20777_v36 }
 0xc7a   :  { %17990 = vmatpush3.bf16.msra.mxu1 %v20780_v55 }
 0xc7b   :  { %17991 = vmatprep.subr.bf16.mxu1 %v20782_v34 }
 0xc7c   :  { %17964 = vmatpush3.bf16.msra.mxu0 %v20779_v24 }
 0xc7d   :  { %17965 = vmatprep.subr.bf16.mxu0 %v20781_v8 }
 0xc7e   :  { %17992 = vmatpush3.bf16.msra.mxu1 %v20784_v18 }
 0xc7f   :  { %17993 = vmatprep.subr.bf16.mxu1 %v20786_v19 }
 0xc80   :  { %17966 = vmatpush3.bf16.msra.mxu0 %v20783_v29 }
 0xc81   :  { %17967 = vmatprep.subr.bf16.mxu0 %v20785_v54 }
 0xc82   :  { %17994 = vmatpush3.bf16.msra.mxu1 %v20788_v61 }
 0xc83   :  { %17995 = vmatprep.subr.bf16.mxu1 %v20790_v62 }
 0xc84   :  { %17968 = vmatpush3.bf16.msra.mxu0 %v20787_v9 }
 0xc85   :  { %17969 = vmatprep.subr.bf16.mxu0 %v20789_v26 }
 0xc86   :  { %17996 = vmatpush3.bf16.msra.mxu1 %v20792_v12 }
 0xc88   :  { %17970 = vmatpush3.bf16.msra.mxu0 %v20791_v3 }
 0xc89   :  { %17971 = vmatprep.subr.bf16.mxu0 %v20793_v40  ;;  %16365 = vmatmul.mubr.bf16.vlgmr.msra.gmra.mrb[72].mxu1 %v24961_v52  ;;  %v14834_v52 = vpop.f32.mrb[51].mxu0 }
 0xc8c   :  { %17972 = vmatpush3.bf16.msra.mxu0 %v20794_v46 }
 0xc8d   :  { %17973 = vmatprep.subr.bf16.mxu0 %v20795_v17 }
 0xc90   :  { %17974 = vmatpush3.bf16.msra.mxu0 %v20796_v10 }
 0xc91   :  { %18003 = vmatprep.subr.bf16.mxu0 %v20797_v63 }
 0xc93   :  { %16193 = vmatmul.mubr.bf16.vlgmr.msra.gmra.mrb[60].mxu0 %v24937_v48  ;;  %v20806_v48 = vld [vmem:[#allocation7 + $0x320] sm:$0xff]  }
 0xc94   :  { %18004 = vmatpush3.bf16.msra.mxu0 %v20798_v15  ;;  %16536 = vmatprep.mubr.bf16.mxu0 %v15347_v22 }
 0xc95   :  { %18005 = vmatprep.subr.bf16.mxu0 %v20799_v21 }
 0xc98   :  { %18006 = vmatpush3.bf16.msra.mxu0 %v20800_v27 }
 0xc99   :  { %18007 = vmatprep.subr.bf16.mxu0 %v20801_v38  ;;  %v17870_v38 = vld [vmem:[#allocation11] ss:$0 sm:$0xff] }
 0xc9c   :  { %18008 = vmatpush3.bf16.msra.mxu0 %v20802_v6 }
 0xc9d   :  { %18009 = vmatprep.subr.bf16.mxu0 %v20803_v37 }
 0xca0   :  { %18010 = vmatpush3.bf16.msra.mxu0 %v20804_v28 }
 0xca1   :  { %18011 = vmatprep.subr.bf16.mxu0 %v20805_v58 }
 0xca4   :  { %18012 = vmatpush3.bf16.msra.mxu0 %v20806_v48 }
 0xca5   :  { %18013 = vmatprep.subr.bf16.mxu0 %v20807_v42 }
 0xca8   :  { %18014 = vmatpush3.bf16.msra.mxu0 %v20808_v51 }
 0xca9   :  { %18015 = vmatprep.subr.bf16.mxu0 %v20809_v57 }
 0xcac   :  { %18016 = vmatpush3.bf16.msra.mxu0 %v20810_v59 }
 0xcad   :  { %18017 = vmatprep.subr.bf16.mxu0 %v20811_v13 }
 0xcb0   :  { %18018 = vmatpush3.bf16.msra.mxu0 %v20812_v1 }
 0xcb3   :  { %16537 = vmatmul.mubr.bf16.vlgmr.msra.gmra.mrb[64].mxu0 %v24978_v4 }
 0xd1c   :  { %v17909_v50 = vpop.f32.mrb[64].mxu1 }
 0xd1d   :  { %v17910_v49 = vpop.f32.mrb[65].mxu1 }
 0xd1e   :  { %v17911_v45 = vadd.f32 %v17910_v49, %v17909_v50  ;;  %v17912_v43 = vpop.f32.mrb[66].mxu1 }
 0xd1f   :  { %v17913_v53 = vpop.f32.mrb[67].mxu1 }
 0xd20   :  { %v17914_v2 = vadd.f32 %v17913_v53, %v17912_v43 }
 0xd26   :  { %v17887_v44 = vpop.f32.mrb[52].mxu0 }
 0xd27   :  { %v17888_v35 = vpop.f32.mrb[53].mxu0 }
 0xd28   :  { %v17889_v56 = vadd.f32 %v17888_v35, %v17887_v44  ;;  %v17890_v0 = vpop.f32.mrb[54].mxu0 }
 0xd29   :  { %v17891_v16 = vpop.f32.mrb[55].mxu0 }
 0xd2a   :  { %v15681_v11 = vadd.f32 %v17911_v45, %v17889_v56  ;;  %v17892_v32 = vadd.f32 %v17891_v16, %v17890_v0 }
 0xd2c   :  { %v15684_v31 = vadd.f32 %v17914_v2, %v17892_v32 }
 0xd3c   :  { %v17953_v23 = vpop.f32.mrb[68].mxu1 }
 0xd3d   :  { %v17954_v39 = vpop.f32.mrb[69].mxu1 }
 0xd3e   :  { %v17955_v33 = vadd.f32 %v17954_v39, %v17953_v23  ;;  %v17956_v41 = vpop.f32.mrb[70].mxu1 }
 0xd3f   :  { %v17957_v60 = vpop.f32.mrb[71].mxu1 }
 0xd40   :  { %v17958_v4 = vadd.f32 %v17957_v60, %v17956_v41 }
 0xd46   :  { %v17931_v36 = vpop.f32.mrb[56].mxu0 }
 0xd47   :  { %v17932_v55 = vpop.f32.mrb[57].mxu0 }
 0xd48   :  { %v17933_v22 = vadd.f32 %v17932_v55, %v17931_v36  ;;  %v17934_v34 = vpop.f32.mrb[58].mxu0 }
 0xd49   :  { %v17935_v24 = vpop.f32.mrb[59].mxu0 }
 0xd4a   :  { %v15857_v8 = vadd.f32 %v17933_v22, %v15681_v11  ;;  %v17936_v18 = vadd.f32 %v17935_v24, %v17934_v34 }
 0xd4c   :  { %v15858_v19 = vadd.f32 %v17936_v18, %v15684_v31  ;;  %v16029_v29 = vadd.f32 %v17955_v33, %v15857_v8 }
 0xd4e   :  { %v16030_v54 = vadd.f32 %v17958_v4, %v15858_v19 }
 0xd5c   :  { %v17997_v61 = vpop.f32.mrb[72].mxu1 }
 0xd5d   :  { %v17998_v62 = vpop.f32.mrb[73].mxu1 }
 0xd5e   :  { %v17999_v9 = vadd.f32 %v17998_v62, %v17997_v61  ;;  %v18000_v26 = vpop.f32.mrb[74].mxu1 }
 0xd5f   :  { %v18001_v12 = vpop.f32.mrb[75].mxu1 }
 0xd60   :  { %v18002_v3 = vadd.f32 %v18001_v12, %v18000_v26 }
 0xd66   :  { %v17975_v40 = vpop.f32.mrb[60].mxu0 }
 0xd67   :  { %v17976_v46 = vpop.f32.mrb[61].mxu0 }
 0xd68   :  { %v17977_v17 = vadd.f32 %v17976_v46, %v17975_v40  ;;  %v17978_v10 = vpop.f32.mrb[62].mxu0 }
 0xd69   :  { %v17979_v63 = vpop.f32.mrb[63].mxu0 }
 0xd6a   :  { %v16201_v15 = vadd.f32 %v17977_v17, %v16029_v29  ;;  %v17980_v21 = vadd.f32 %v17979_v63, %v17978_v10 }
 0xd6c   :  { %v16202_v5 = vadd.f32 %v17980_v21, %v16030_v54  ;;  %v16373_v47 = vadd.f32 %v17999_v9, %v16201_v15 }
 0xd6e   :  { %v16374_v14 = vadd.f32 %v18002_v3, %v16202_v5 }
 0xd86   :  { %v18019_v20 = vpop.f32.mrb[64].mxu0 }
 0xd87   :  { %v18020_v27 = vpop.f32.mrb[65].mxu0 }
 0xd88   :  { %v18021_v7 = vadd.f32 %v18020_v27, %v18019_v20  ;;  %v18022_v25 = vpop.f32.mrb[66].mxu0 }
 0xd89   :  { %v18023_v30 = vpop.f32.mrb[67].mxu0 }
 0xd8a   :  { %v16545_v52 = vadd.f32 %v18021_v7, %v16373_v47  ;;  %v18024_v6 = vadd.f32 %v18023_v30, %v18022_v25 }
 0xd8c   :  { %v16554_v37 = vadd.f32 %v17870_v38, %v16545_v52  ;;  %v16546_v28 = vadd.f32 %v18024_v6, %v16374_v14 }
 0xd8e   :  { %16556 = vst [vmem:[%s24996_s7] sm:$0xff] %v16554_v37  ;;  %v16555_v58 = vadd.f32 %v17870_v38, %v16546_v28 }
 0xd90   :  { %16557 = vst [vmem:[%s24996_s7 + $0x8] sm:$0xff] %v16555_v58 }
 0xd91   :  { %16562 = vsyncpa [#allocation4], 1 }
 0xd92   :  { %16563 = vsyncpa [#allocation6], 1 }
 0xd93   :  { %16564 = vsyncpa [#allocation9], 1 }
 0xd94   :  { %16565 = vsyncpa [#allocation12], 1 }

</bundles_post_ra>
